<compile_context>
chip_gen: v7x
topology: tpu7x:2x2x1
jax: 0.10.0
libtpu: 0.0.40
codegen_flags: <defaults>
</compile_context>

<pallas_src>
import functools

import jax
import jax.numpy as jnp
from jax.experimental import pallas as pl
from jax.experimental.pallas import tpu as pltpu


_VMEM_LIMIT = 32 * 1024 * 1024
_SUB = 16  # bf16 packed-sublane tile; row tiles and dynamic starts align to this


# ----------------------------------------------------------------------------
# Small helpers
# ----------------------------------------------------------------------------
def _round_up(x, m):
    return (x + m - 1) // m * m


def _pick_tm(m):
    """Row tile: prefer >=4 grid steps (v7x dual-TC balance), cap 512, floor 16."""
    for tm in (512, 256, 128, 64, 32, 16):
        if m >= 4 * tm:
            return tm
    return 16


def _make_taps(k, stride, wext, shift=0):
    """Map conv tap (dy, dx) -> (phase index, row offset) into the flattened phase
    images.  `shift` = (phase-pack padding) - (this conv's padding); it lets the 1x1
    stride-2 downsample reuse conv1's pad-1 phase pack (shift=1 -> center tap)."""
    taps = []
    for dy in range(k):
        for dx in range(k):
            ey, ex = dy + shift, dx + shift
            taps.append(((ey % stride) * stride + (ex % stride),
                         (ey // stride) * wext + (ex // stride)))
    return taps


def _phase_pack(x, k, stride, pad, pad_value=0.0):
    """Prepare an NHWC activation for in-kernel tap accumulation.

    The padded image is split into stride^2 (row-phase, col-phase) sub-images and
    each is flattened row-major with a small tail pad, so a KxK stride-s conv tap
    (dy, dx) reads a contiguous window at static offset (dy//s)*Wext + dx//s of one
    phase image.  No HBM im2col; only ~1x the activation bytes are staged."""
    n, h, w, c = x.shape
    s = stride
    ho = (h + 2 * pad - k) // s + 1
    wo = (w + 2 * pad - k) // s + 1
    hp2 = -(-(h + 2 * pad) // s)          # phase-image height
    wext = -(-(w + 2 * pad) // s)         # phase-image width == extended output width
    xp = jnp.pad(x, ((0, 0), (pad, hp2 * s - h - pad), (pad, wext * s - w - pad), (0, 0)),
                 constant_values=pad_value)
    ph = jnp.stack([xp[:, py::s, px::s, :] for py in range(s) for px in range(s)],
                   axis=1)                                   # (N, s*s, hp2, wext, C)
    ph = ph.reshape(n, s * s, hp2 * wext, c)

    m_ext = ho * wext                     # extended-output rows (wext, not wo)
    tm = _pick_tm(m_ext)
    m_pad = _round_up(m_ext, tm)
    taps = _make_taps(k, s, wext)
    max_off = max(off for _, off in taps)
    lp = _round_up(max(m_pad + max_off + _SUB, hp2 * wext), _SUB)
    if lp > hp2 * wext:                   # tail pad so every tap window stays in bounds
        ph = jnp.pad(ph, ((0, 0), (0, 0), (0, lp - hp2 * wext), (0, 0)),
                     constant_values=pad_value)
    return {"phases": ph.astype(jnp.bfloat16), "taps": taps, "N": n, "C": c,
            "Ho": ho, "Wo": wo, "Wext": wext, "M_ext": m_ext, "M_pad": m_pad,
            "TM": tm, "Lp": lp}


def _to_extended(r, pack):
    """NHWC residual -> the extended flattened layout the conv kernel writes."""
    n, wo, wext = pack["N"], pack["Wo"], pack["Wext"]
    m_ext, m_pad = pack["M_ext"], pack["M_pad"]
    r = jnp.pad(r, ((0, 0), (0, 0), (0, wext - wo), (0, 0)))
    r = r.reshape(n, m_ext, r.shape[-1])
    if m_pad > m_ext:
        r = jnp.pad(r, ((0, 0), (0, m_pad - m_ext), (0, 0)))
    return r.astype(jnp.bfloat16)


def _from_extended(y, pack):
    n, ho, wo, wext, m_ext = pack["N"], pack["Ho"], pack["Wo"], pack["Wext"], pack["M_ext"]
    return y[:, :m_ext, :].reshape(n, ho, wext, y.shape[-1])[:, :, :wo, :]


# ----------------------------------------------------------------------------
# Pallas kernels
# ----------------------------------------------------------------------------
def _tap_matmul(ph_ref, w_ref, taps, tm):
    """acc = sum_t phases[p_t][base+off_t : base+off_t+tm, :] @ W_t  (f32 acc).

    Dynamic starts are 16-aligned (base = i*TM with TM a multiple of 16, plus the
    rounded-down static tap offset); the residual sub-16 shift is a static slice."""
    base = pl.program_id(1) * tm
    cout = w_ref.shape[-1]
    acc = jnp.zeros((tm, cout), jnp.float32)
    for t, (p, off) in enumerate(taps):
        start = pl.multiple_of(base + (off // _SUB) * _SUB, _SUB)
        a = ph_ref[0, p, pl.ds(start, tm + _SUB), :]
        a = a[off % _SUB: off % _SUB + tm, :]
        acc = acc + jnp.dot(a, w_ref[t, :, :], preferred_element_type=jnp.float32)
    return acc


def _tap_conv_kernel(ph_ref, w_ref, b_ref, o_ref, *, taps, tm, relu):
    out = _tap_matmul(ph_ref, w_ref, taps, tm) + b_ref[...]
    if relu:
        out = jnp.maximum(out, 0.0)
    o_ref[0, :, :] = out.astype(o_ref.dtype)


def _tap_conv_res_kernel(ph_ref, w_ref, b_ref, r_ref, o_ref, *, taps, tm, relu):
    out = (_tap_matmul(ph_ref, w_ref, taps, tm) + b_ref[...]
           + r_ref[0, :, :].astype(jnp.float32))
    if relu:
        out = jnp.maximum(out, 0.0)
    o_ref[0, :, :] = out.astype(o_ref.dtype)


def _maxpool_tap_kernel(ph_ref, o_ref, *, taps, tm):
    base = pl.program_id(1) * tm
    res = None
    for p, off in taps:
        start = pl.multiple_of(base + (off // _SUB) * _SUB, _SUB)
        a = ph_ref[0, p, pl.ds(start, tm + _SUB), :]
        a = a[off % _SUB: off % _SUB + tm, :]
        res = a if res is None else jnp.maximum(res, a)
    o_ref[0, :, :] = res


def _mm_bias_relu_kernel(a_ref, w_ref, b_ref, o_ref):
    acc = jnp.dot(a_ref[...], w_ref[...], preferred_element_type=jnp.float32)
    o_ref[...] = jnp.maximum(acc + b_ref[...], 0.0).astype(o_ref.dtype)


# ----------------------------------------------------------------------------
# Conv / pool wrappers (pallas_call plumbing)
# ----------------------------------------------------------------------------
def _tap_conv(pack, taps, p, *, relu, residual=None):
    """Conv(W, BN-folded) + bias (+ residual) (+ ReLU) via in-kernel tap accumulation."""
    ph = pack["phases"]
    wt, bias = p["wt"], p["bias"]
    n, c = pack["N"], pack["C"]
    t, _, cout = wt.shape
    assert t == len(taps)
    tm, m_pad, lp = pack["TM"], pack["M_pad"], pack["Lp"]
    nph = ph.shape[1]
    grid = (n, m_pad // tm)

    ph_spec = pl.BlockSpec((1, nph, lp, c), lambda b, i: (b, 0, 0, 0))
    w_spec = pl.BlockSpec((t, c, cout), lambda b, i: (0, 0, 0))
    b_spec = pl.BlockSpec((1, cout), lambda b, i: (0, 0))
    o_spec = pl.BlockSpec((1, tm, cout), lambda b, i: (b, i, 0))
    out_shape = jax.ShapeDtypeStruct((n, m_pad, cout), jnp.bfloat16)

    flops = 2 * n * m_pad * c * cout * t
    bytes_acc = 2 * (ph.size + wt.size + n * m_pad * cout)
    cp = pltpu.CompilerParams(dimension_semantics=("parallel", "parallel"),
                              vmem_limit_bytes=_VMEM_LIMIT)

    if residual is None:
        out = pl.pallas_call(
            functools.partial(_tap_conv_kernel, taps=tuple(taps), tm=tm, relu=relu),
            out_shape=out_shape, grid=grid,
            in_specs=[ph_spec, w_spec, b_spec], out_specs=o_spec,
            compiler_params=cp,
            cost_estimate=pl.CostEstimate(flops=flops, transcendentals=0,
                                          bytes_accessed=bytes_acc),
        )(ph, wt, bias)
    else:
        r = _to_extended(residual, pack)
        r_spec = pl.BlockSpec((1, tm, cout), lambda b, i: (b, i, 0))
        out = pl.pallas_call(
            functools.partial(_tap_conv_res_kernel, taps=tuple(taps), tm=tm, relu=relu),
            out_shape=out_shape, grid=grid,
            in_specs=[ph_spec, w_spec, b_spec, r_spec], out_specs=o_spec,
            compiler_params=cp,
            cost_estimate=pl.CostEstimate(flops=flops, transcendentals=0,
                                          bytes_accessed=bytes_acc + 2 * r.size),
        )(ph, wt, bias, r)
    return _from_extended(out, pack)


def stem_conv(x, stem):
    """conv1 (7x7 s2 p3) + bn1 + relu.  Input-channel replication and BN scale are
    folded into the weights; im2col K is padded only to 64 (review item)."""
    n, h, w = x.shape
    xp = jnp.pad(x.astype(jnp.bfloat16), ((0, 0), (3, 3), (3, 3)))
    ho = (h + 6 - 7) // 2 + 1
    wo = (w + 6 - 7) // 2 + 1
    cols = [xp[:, dy:dy + 2 * ho:2, dx:dx + 2 * wo:2]
            for dy in range(7) for dx in range(7)]
    a = jnp.stack(cols, axis=-1).reshape(n * ho * wo, 49)
    kp, cout = stem["Wm"].shape
    a = jnp.pad(a, ((0, 0), (0, kp - 49)))
    m = n * ho * wo
    tm = _pick_tm(m)
    m_pad = _round_up(m, tm)
    if m_pad > m:
        a = jnp.pad(a, ((0, m_pad - m), (0, 0)))

    out = pl.pallas_call(
        _mm_bias_relu_kernel,
        out_shape=jax.ShapeDtypeStruct((m_pad, cout), jnp.bfloat16),
        grid=(m_pad // tm,),
        in_specs=[pl.BlockSpec((tm, kp), lambda i: (i, 0)),
                  pl.BlockSpec((kp, cout), lambda i: (0, 0)),
                  pl.BlockSpec((1, cout), lambda i: (0, 0))],
        out_specs=pl.BlockSpec((tm, cout), lambda i: (i, 0)),
        compiler_params=pltpu.CompilerParams(dimension_semantics=("parallel",),
                                             vmem_limit_bytes=_VMEM_LIMIT),
        cost_estimate=pl.CostEstimate(flops=2 * m_pad * kp * cout, transcendentals=0,
                                      bytes_accessed=2 * (a.size + kp * cout + m_pad * cout)),
    )(a, stem["Wm"], stem["bias"])
    return out[:m].reshape(n, ho, wo, cout)


def maxpool_3x3_s2_p1(x):
    """nn.MaxPool2d(3, 2, 1) via the same phase-pack + 9-tap in-kernel max."""
    pk = _phase_pack(x, 3, 2, 1, pad_value=-jnp.inf)
    n, c, tm, m_pad, lp = pk["N"], pk["C"], pk["TM"], pk["M_pad"], pk["Lp"]
    nph = pk["phases"].shape[1]
    out = pl.pallas_call(
        functools.partial(_maxpool_tap_kernel, taps=tuple(pk["taps"]), tm=tm),
        out_shape=jax.ShapeDtypeStruct((n, m_pad, c), jnp.bfloat16),
        grid=(n, m_pad // tm),
        in_specs=[pl.BlockSpec((1, nph, lp, c), lambda b, i: (b, 0, 0, 0))],
        out_specs=pl.BlockSpec((1, tm, c), lambda b, i: (b, i, 0)),
        compiler_params=pltpu.CompilerParams(dimension_semantics=("parallel", "parallel"),
                                             vmem_limit_bytes=_VMEM_LIMIT),
    )(pk["phases"])
    return _from_extended(out, pk)


# ----------------------------------------------------------------------------
# Parameters (He-init conv + eval-mode BatchNorm, BN scale folded into W)
# ----------------------------------------------------------------------------
def _conv_bn_params(key, cin, cout, k, eps=1e-5):
    kw_key, g_key, b_key, m_key, v_key = jax.random.split(key, 5)
    fan_in = cin * k * k
    w = jax.random.normal(kw_key, (cout, cin, k, k), jnp.float32) * jnp.sqrt(2.0 / fan_in)
    gamma = 1.0 + 0.1 * jax.random.normal(g_key, (cout,), jnp.float32)
    beta = 0.1 * jax.random.normal(b_key, (cout,), jnp.float32)
    rmean = 0.1 * jax.random.normal(m_key, (cout,), jnp.float32)
    rvar = 1.0 + 0.1 * jax.random.uniform(v_key, (cout,), jnp.float32)
    scale = gamma / jnp.sqrt(rvar + eps)
    bias = beta - rmean * scale
    return w, scale, bias


def _prep_taps(w, scale, bias):
    """Fold BN scale into W and lay weights out as per-tap (T, cin, cout) slabs."""
    cout, cin, kh, kw = w.shape
    w = w * scale[:, None, None, None]
    wt = jnp.transpose(w, (2, 3, 1, 0)).reshape(kh * kw, cin, cout)  # tap-major order
    return {"wt": wt.astype(jnp.bfloat16),
            "bias": bias.reshape(1, cout).astype(jnp.float32)}


def _prep_stem(w, scale, bias, k_pad=64):
    """Fold the 3x replicated input channel (sum over cin) and BN scale; K 49->64."""
    cout = w.shape[0]
    w = w.sum(axis=1, keepdims=True) * scale[:, None, None, None]
    wm = jnp.transpose(w, (2, 3, 1, 0)).reshape(49, cout)
    wm = jnp.pad(wm, ((0, k_pad - 49), (0, 0)))
    return {"Wm": wm.astype(jnp.bfloat16),
            "bias": bias.reshape(1, cout).astype(jnp.float32)}


def init_params(key):
    keys = iter(jax.random.split(key, 64))
    params = {}
    w, s, b = _conv_bn_params(next(keys), 3, 64, 7)
    params["stem"] = _prep_stem(w, s, b)

    def make_layer(cin, cout, nblocks, stride):
        blocks = []
        for bi in range(nblocks):
            s_ = stride if bi == 0 else 1
            inp = cin if bi == 0 else cout
            blk = {}
            w1, s1, b1 = _conv_bn_params(next(keys), inp, cout, 3)
            blk["conv1"] = _prep_taps(w1, s1, b1)
            w2, s2, b2 = _conv_bn_params(next(keys), cout, cout, 3)
            blk["conv2"] = _prep_taps(w2, s2, b2)
            if s_ != 1 or inp != cout:
                wd, sd, bd = _conv_bn_params(next(keys), inp, cout, 1)
                blk["down"] = _prep_taps(wd, sd, bd)
            blocks.append(blk)
        return blocks

    # ResNet-34: layer1 = 3x64, layer2 = 4x128 (s2), layer3 = 6x256 (s2)
    params["layer1"] = make_layer(64, 64, 3, 1)
    params["layer2"] = make_layer(64, 128, 4, 2)
    params["layer3"] = make_layer(128, 256, 6, 2)
    return params


# ----------------------------------------------------------------------------
# Network forward (matches ResNetBackBone.forward)
# ----------------------------------------------------------------------------
def basic_block(x, blk, stride):
    pk1 = _phase_pack(x, 3, stride, 1)
    out = _tap_conv(pk1, pk1["taps"], blk["conv1"], relu=True)           # conv1+bn1+relu
    if "down" in blk:
        # 1x1 stride-s downsample reuses conv1's phase pack (its single tap is the
        # center tap of the pad-1 pack: shift=1).
        identity = _tap_conv(pk1, _make_taps(1, stride, pk1["Wext"], shift=1),
                             blk["down"], relu=False)
    else:
        identity = x
    pk2 = _phase_pack(out, 3, 1, 1)
    # conv2 + bn2 + residual add + relu fused in one pallas_call
    return _tap_conv(pk2, pk2["taps"], blk["conv2"], relu=True, residual=identity)


def resnet_backbone_forward(x, params):
    # x: (N, H, W) single-channel input; torch.stack((x,x,x), dim=1) is folded into
    # the stem weights.
    y = stem_conv(x, params["stem"])                                     # (N, H/2, W/2, 64)
    y = maxpool_3x3_s2_p1(y)                                             # (N, H/4, W/4, 64)
    for name, first_stride in (("layer1", 1), ("layer2", 2), ("layer3", 2)):
        for bi, blk in enumerate(params[name]):
            y = basic_block(y, blk, first_stride if bi == 0 else 1)
    # NCHW / float32 to match the PyTorch module's output
    return jnp.transpose(y, (0, 3, 1, 2)).astype(jnp.float32)            # (N, 256, H/16, W/16)


if __name__ == "__main__":
    key = jax.random.PRNGKey(0)
    pkey, xkey = jax.random.split(key)
    params = init_params(pkey)

    # small deterministic input: batch=2, spatial=32x32 (single-channel depth map)
    x = jax.random.normal(xkey, (2, 32, 32), jnp.float32)

    fwd = jax.jit(resnet_backbone_forward)
    out = jax.block_until_ready(fwd(x, params))

    assert out.shape == (2, 256, 2, 2), out.shape
    assert out.dtype == jnp.float32
    assert bool(jnp.all(jnp.isfinite(out)))
    print("KERNEL_OK")
</pallas_src>

<mosaic_0001>
module attributes {stable_mosaic.version = 11 : i64} {
  func.func @_mm_bias_relu_kernel(%arg0: i32, %arg1: memref<128x64xbf16, #tpu.memory_space<vmem>>, %arg2: memref<64x64xbf16, #tpu.memory_space<vmem>>, %arg3: memref<1x64xf32, #tpu.memory_space<vmem>>, %arg4: memref<128x64xbf16, #tpu.memory_space<vmem>>) attributes {dimension_semantics = [#tpu.dimension_semantics<parallel>], iteration_bounds = array<i64: 4>, scalar_prefetch = 0 : i64, scratch_operands = 0 : i64, tpu.core_type = #tpu.core_type<tc>, window_params = [{transform_indices = @transform_0, window_bounds = array<i64: 128, 64>}, {pipeline_mode = #tpu.pipeline_mode<synchronous>, transform_indices = @transform_1, window_bounds = array<i64: 64, 64>}, {pipeline_mode = #tpu.pipeline_mode<synchronous>, transform_indices = @transform_2, window_bounds = array<i64: 1, 64>}, {transform_indices = @transform_3, window_bounds = array<i64: 128, 64>}]} {
    %c0 = arith.constant 0 : index
    %c0_0 = arith.constant 0 : index
    %0 = vector.load %arg1[%c0, %c0_0] : memref<128x64xbf16, #tpu.memory_space<vmem>>, vector<128x64xbf16>
    %c0_1 = arith.constant 0 : index
    %c0_2 = arith.constant 0 : index
    %1 = vector.load %arg2[%c0_1, %c0_2] : memref<64x64xbf16, #tpu.memory_space<vmem>>, vector<64x64xbf16>
    %cst = arith.constant dense<0.000000e+00> : vector<128x64xf32>
    %2 = tpu.matmul %0, %1, %cst {dimension_numbers = #tpu.dot_dimension_numbers<[1], [0], [0], [1], [0, 0, 1, 1], [], []>} : vector<128x64xbf16>, vector<64x64xbf16>, vector<128x64xf32> -> vector<128x64xf32>
    %c0_3 = arith.constant 0 : index
    %c0_4 = arith.constant 0 : index
    %3 = vector.load %arg3[%c0_3, %c0_4] : memref<1x64xf32, #tpu.memory_space<vmem>>, vector<1x64xf32>
    %4 = vector.broadcast %3 : vector<1x64xf32> to vector<128x64xf32>
    %5 = arith.addf %2, %4 : vector<128x64xf32>
    %cst_5 = arith.constant 0.000000e+00 : f32
    %6 = vector.broadcast %cst_5 : f32 to vector<128x64xf32>
    %7 = arith.maximumf %5, %6 : vector<128x64xf32>
    %8 = arith.truncf %7 : vector<128x64xf32> to vector<128x64xbf16>
    %c0_6 = arith.constant 0 : index
    %c0_7 = arith.constant 0 : index
    %9 = vector.load %arg4[%c0_6, %c0_7] : memref<128x64xbf16, #tpu.memory_space<vmem>>, vector<128x64xbf16>
    tpu.vector_store %arg4[%c0_6, %c0_7], %8 {strides = array<i32>} : memref<128x64xbf16, #tpu.memory_space<vmem>>, vector<128x64xbf16>,
    return
  }
  func.func @transform_0(%arg0: i32) -> (i32, i32) {
    %c0_i32 = arith.constant 0 : i32
    %c0_i32_0 = arith.constant 0 : i32
    return %arg0, %c0_i32 : i32, i32
  }
  func.func @transform_1(%arg0: i32) -> (i32, i32) {
    %c0_i32 = arith.constant 0 : i32
    %c0_i32_0 = arith.constant 0 : i32
    %c0_i32_1 = arith.constant 0 : i32
    return %c0_i32, %c0_i32_0 : i32, i32
  }
  func.func @transform_2(%arg0: i32) -> (i32, i32) {
    %c0_i32 = arith.constant 0 : i32
    %c0_i32_0 = arith.constant 0 : i32
    %c0_i32_1 = arith.constant 0 : i32
    return %c0_i32, %c0_i32_0 : i32, i32
  }
  func.func @transform_3(%arg0: i32) -> (i32, i32) {
    %c0_i32 = arith.constant 0 : i32
    %c0_i32_0 = arith.constant 0 : i32
    return %arg0, %c0_i32 : i32, i32
  }
}

module attributes {stable_mosaic.version = 11 : i64} {
  func.func @_maxpool_tap_kernel(%arg0: i32, %arg1: i32, %arg2: memref<1x4x112x64xbf16, #tpu.memory_space<vmem>>, %arg3: memref<1x16x64xbf16, #tpu.memory_space<vmem>>) attributes {dimension_semantics = [#tpu.dimension_semantics<parallel>, #tpu.dimension_semantics<parallel>], iteration_bounds = array<i64: 2, 5>, scalar_prefetch = 0 : i64, scratch_operands = 0 : i64, tpu.core_type = #tpu.core_type<tc>, window_params = [{transform_indices = @transform_0, window_bounds = array<i64: 1, 4, 112, 64>}, {transform_indices = @transform_1, window_bounds = array<i64: 1, 16, 64>}]} {
    %c16_i32 = arith.constant 16 : i32
    %0 = arith.muli %arg1, %c16_i32 : i32
    %c0_i32 = arith.constant 0 : i32
    %1 = arith.addi %0, %c0_i32 : i32
    %2 = tpu.assume_multiple %1, 16 : i32
    %c0 = arith.constant 0 : index
    %c0_0 = arith.constant 0 : index
    %3 = arith.index_cast %2 : i32 to index
    %c0_1 = arith.constant 0 : index
    %4 = vector.load %arg2[%c0, %c0_0, %3, %c0_1] : memref<1x4x112x64xbf16, #tpu.memory_space<vmem>>, vector<1x1x32x64xbf16>
    %5 = vector.shape_cast %4 : vector<1x1x32x64xbf16> to vector<32x64xbf16>
    %6 = vector.extract_strided_slice %5 {offsets = [0, 0], sizes = [16, 64], strides = [1, 1]} : vector<32x64xbf16> to vector<16x64xbf16>
    %c0_i32_2 = arith.constant 0 : i32
    %7 = arith.addi %0, %c0_i32_2 : i32
    %8 = tpu.assume_multiple %7, 16 : i32
    %c0_3 = arith.constant 0 : index
    %c1 = arith.constant 1 : index
    %9 = arith.index_cast %8 : i32 to index
    %c0_4 = arith.constant 0 : index
    %10 = vector.load %arg2[%c0_3, %c1, %9, %c0_4] : memref<1x4x112x64xbf16, #tpu.memory_space<vmem>>, vector<1x1x32x64xbf16>
    %11 = vector.shape_cast %10 : vector<1x1x32x64xbf16> to vector<32x64xbf16>
    %12 = vector.extract_strided_slice %11 {offsets = [0, 0], sizes = [16, 64], strides = [1, 1]} : vector<32x64xbf16> to vector<16x64xbf16>
    %13 = arith.maximumf %6, %12 : vector<16x64xbf16>
    %c0_i32_5 = arith.constant 0 : i32
    %14 = arith.addi %0, %c0_i32_5 : i32
    %15 = tpu.assume_multiple %14, 16 : i32
    %c0_6 = arith.constant 0 : index
    %c0_7 = arith.constant 0 : index
    %16 = arith.index_cast %15 : i32 to index
    %c0_8 = arith.constant 0 : index
    %17 = vector.load %arg2[%c0_6, %c0_7, %16, %c0_8] : memref<1x4x112x64xbf16, #tpu.memory_space<vmem>>, vector<1x1x32x64xbf16>
    %18 = vector.shape_cast %17 : vector<1x1x32x64xbf16> to vector<32x64xbf16>
    %19 = vector.extract_strided_slice %18 {offsets = [1, 0], sizes = [16, 64], strides = [1, 1]} : vector<32x64xbf16> to vector<16x64xbf16>
    %20 = arith.maximumf %13, %19 : vector<16x64xbf16>
    %c0_i32_9 = arith.constant 0 : i32
    %21 = arith.addi %0, %c0_i32_9 : i32
    %22 = tpu.assume_multiple %21, 16 : i32
    %c0_10 = arith.constant 0 : index
    %c2 = arith.constant 2 : index
    %23 = arith.index_cast %22 : i32 to index
    %c0_11 = arith.constant 0 : index
    %24 = vector.load %arg2[%c0_10, %c2, %23, %c0_11] : memref<1x4x112x64xbf16, #tpu.memory_space<vmem>>, vector<1x1x32x64xbf16>
    %25 = vector.shape_cast %24 : vector<1x1x32x64xbf16> to vector<32x64xbf16>
    %26 = vector.extract_strided_slice %25 {offsets = [0, 0], sizes = [16, 64], strides = [1, 1]} : vector<32x64xbf16> to vector<16x64xbf16>
    %27 = arith.maximumf %20, %26 : vector<16x64xbf16>
    %c0_i32_12 = arith.constant 0 : i32
    %28 = arith.addi %0, %c0_i32_12 : i32
    %29 = tpu.assume_multiple %28, 16 : i32
    %c0_13 = arith.constant 0 : index
    %c3 = arith.constant 3 : index
    %30 = arith.index_cast %29 : i32 to index
    %c0_14 = arith.constant 0 : index
    %31 = vector.load %arg2[%c0_13, %c3, %30, %c0_14] : memref<1x4x112x64xbf16, #tpu.memory_space<vmem>>, vector<1x1x32x64xbf16>
    %32 = vector.shape_cast %31 : vector<1x1x32x64xbf16> to vector<32x64xbf16>
    %33 = vector.extract_strided_slice %32 {offsets = [0, 0], sizes = [16, 64], strides = [1, 1]} : vector<32x64xbf16> to vector<16x64xbf16>
    %34 = arith.maximumf %27, %33 : vector<16x64xbf16>
    %c0_i32_15 = arith.constant 0 : i32
    %35 = arith.addi %0, %c0_i32_15 : i32
    %36 = tpu.assume_multiple %35, 16 : i32
    %c0_16 = arith.constant 0 : index
    %c2_17 = arith.constant 2 : index
    %37 = arith.index_cast %36 : i32 to index
    %c0_18 = arith.constant 0 : index
    %38 = vector.load %arg2[%c0_16, %c2_17, %37, %c0_18] : memref<1x4x112x64xbf16, #tpu.memory_space<vmem>>, vector<1x1x32x64xbf16>
    %39 = vector.shape_cast %38 : vector<1x1x32x64xbf16> to vector<32x64xbf16>
    %40 = vector.extract_strided_slice %39 {offsets = [1, 0], sizes = [16, 64], strides = [1, 1]} : vector<32x64xbf16> to vector<16x64xbf16>
    %41 = arith.maximumf %34, %40 : vector<16x64xbf16>
    %c0_i32_19 = arith.constant 0 : i32
    %42 = arith.addi %0, %c0_i32_19 : i32
    %43 = tpu.assume_multiple %42, 16 : i32
    %c0_20 = arith.constant 0 : index
    %c0_21 = arith.constant 0 : index
    %44 = arith.index_cast %43 : i32 to index
    %c0_22 = arith.constant 0 : index
    %45 = vector.load %arg2[%c0_20, %c0_21, %44, %c0_22] : memref<1x4x112x64xbf16, #tpu.memory_space<vmem>>, vector<1x1x32x64xbf16>
    %46 = vector.shape_cast %45 : vector<1x1x32x64xbf16> to vector<32x64xbf16>
    %47 = vector.extract_strided_slice %46 {offsets = [9, 0], sizes = [16, 64], strides = [1, 1]} : vector<32x64xbf16> to vector<16x64xbf16>
    %48 = arith.maximumf %41, %47 : vector<16x64xbf16>
    %c0_i32_23 = arith.constant 0 : i32
    %49 = arith.addi %0, %c0_i32_23 : i32
    %50 = tpu.assume_multiple %49, 16 : i32
    %c0_24 = arith.constant 0 : index
    %c1_25 = arith.constant 1 : index
    %51 = arith.index_cast %50 : i32 to index
    %c0_26 = arith.constant 0 : index
    %52 = vector.load %arg2[%c0_24, %c1_25, %51, %c0_26] : memref<1x4x112x64xbf16, #tpu.memory_space<vmem>>, vector<1x1x32x64xbf16>
    %53 = vector.shape_cast %52 : vector<1x1x32x64xbf16> to vector<32x64xbf16>
    %54 = vector.extract_strided_slice %53 {offsets = [9, 0], sizes = [16, 64], strides = [1, 1]} : vector<32x64xbf16> to vector<16x64xbf16>
    %55 = arith.maximumf %48, %54 : vector<16x64xbf16>
    %c0_i32_27 = arith.constant 0 : i32
    %56 = arith.addi %0, %c0_i32_27 : i32
    %57 = tpu.assume_multiple %56, 16 : i32
    %c0_28 = arith.constant 0 : index
    %c0_29 = arith.constant 0 : index
    %58 = arith.index_cast %57 : i32 to index
    %c0_30 = arith.constant 0 : index
    %59 = vector.load %arg2[%c0_28, %c0_29, %58, %c0_30] : memref<1x4x112x64xbf16, #tpu.memory_space<vmem>>, vector<1x1x32x64xbf16>
    %60 = vector.shape_cast %59 : vector<1x1x32x64xbf16> to vector<32x64xbf16>
    %61 = vector.extract_strided_slice %60 {offsets = [10, 0], sizes = [16, 64], strides = [1, 1]} : vector<32x64xbf16> to vector<16x64xbf16>
    %62 = arith.maximumf %55, %61 : vector<16x64xbf16>
    %c0_31 = arith.constant 0 : index
    %c0_32 = arith.constant 0 : index
    %c0_33 = arith.constant 0 : index
    %63 = vector.load %arg3[%c0_31, %c0_32, %c0_33] : memref<1x16x64xbf16, #tpu.memory_space<vmem>>, vector<1x16x64xbf16>
    %64 = vector.shape_cast %63 : vector<1x16x64xbf16> to vector<16x64xbf16>
    %65 = vector.shape_cast %62 : vector<16x64xbf16> to vector<1x16x64xbf16>
    tpu.vector_store %arg3[%c0_31, %c0_32, %c0_33], %65 {strides = array<i32>} : memref<1x16x64xbf16, #tpu.memory_space<vmem>>, vector<1x16x64xbf16>,
    return
  }
  func.func @transform_0(%arg0: i32, %arg1: i32) -> (i32, i32, i32, i32) {
    %c0_i32 = arith.constant 0 : i32
    %c0_i32_0 = arith.constant 0 : i32
    %c0_i32_1 = arith.constant 0 : i32
    %c0_i32_2 = arith.constant 0 : i32
    return %arg0, %c0_i32, %c0_i32_0, %c0_i32_1 : i32, i32, i32, i32
  }
  func.func @transform_1(%arg0: i32, %arg1: i32) -> (i32, i32, i32) {
    %c0_i32 = arith.constant 0 : i32
    %c0_i32_0 = arith.constant 0 : i32
    return %arg0, %arg1, %c0_i32 : i32, i32, i32
  }
}

module attributes {stable_mosaic.version = 11 : i64} {
  func.func @_tap_conv_kernel(%arg0: i32, %arg1: i32, %arg2: memref<1x1x128x64xbf16, #tpu.memory_space<vmem>>, %arg3: memref<9x64x64xbf16, #tpu.memory_space<vmem>>, %arg4: memref<1x64xf32, #tpu.memory_space<vmem>>, %arg5: memref<1x16x64xbf16, #tpu.memory_space<vmem>>) attributes {dimension_semantics = [#tpu.dimension_semantics<parallel>, #tpu.dimension_semantics<parallel>], iteration_bounds = array<i64: 2, 5>, scalar_prefetch = 0 : i64, scratch_operands = 0 : i64, tpu.core_type = #tpu.core_type<tc>, window_params = [{transform_indices = @transform_0, window_bounds = array<i64: 1, 1, 128, 64>}, {pipeline_mode = #tpu.pipeline_mode<synchronous>, transform_indices = @transform_1, window_bounds = array<i64: 9, 64, 64>}, {pipeline_mode = #tpu.pipeline_mode<synchronous>, transform_indices = @transform_2, window_bounds = array<i64: 1, 64>}, {transform_indices = @transform_3, window_bounds = array<i64: 1, 16, 64>}]} {
    %c16_i32 = arith.constant 16 : i32
    %0 = arith.muli %arg1, %c16_i32 : i32
    %cst = arith.constant 0.000000e+00 : f32
    %1 = vector.broadcast %cst : f32 to vector<16x64xf32>
    %c0_i32 = arith.constant 0 : i32
    %2 = arith.addi %0, %c0_i32 : i32
    %3 = tpu.assume_multiple %2, 16 : i32
    %c0 = arith.constant 0 : index
    %c0_0 = arith.constant 0 : index
    %4 = arith.index_cast %3 : i32 to index
    %c0_1 = arith.constant 0 : index
    %5 = vector.load %arg2[%c0, %c0_0, %4, %c0_1] : memref<1x1x128x64xbf16, #tpu.memory_space<vmem>>, vector<1x1x32x64xbf16>
    %6 = vector.shape_cast %5 : vector<1x1x32x64xbf16> to vector<32x64xbf16>
    %7 = vector.extract_strided_slice %6 {offsets = [0, 0], sizes = [16, 64], strides = [1, 1]} : vector<32x64xbf16> to vector<16x64xbf16>
    %c0_2 = arith.constant 0 : index
    %c0_3 = arith.constant 0 : index
    %c0_4 = arith.constant 0 : index
    %8 = vector.load %arg3[%c0_2, %c0_3, %c0_4] : memref<9x64x64xbf16, #tpu.memory_space<vmem>>, vector<1x64x64xbf16>
    %9 = vector.shape_cast %8 : vector<1x64x64xbf16> to vector<64x64xbf16>
    %cst_5 = arith.constant dense<0.000000e+00> : vector<16x64xf32>
    %10 = tpu.matmul %7, %9, %cst_5 {dimension_numbers = #tpu.dot_dimension_numbers<[1], [0], [0], [1], [0, 0, 1, 1], [], []>} : vector<16x64xbf16>, vector<64x64xbf16>, vector<16x64xf32> -> vector<16x64xf32>
    %11 = arith.addf %1, %10 : vector<16x64xf32>
    %c0_i32_6 = arith.constant 0 : i32
    %12 = arith.addi %0, %c0_i32_6 : i32
    %13 = tpu.assume_multiple %12, 16 : i32
    %c0_7 = arith.constant 0 : index
    %c0_8 = arith.constant 0 : index
    %14 = arith.index_cast %13 : i32 to index
    %c0_9 = arith.constant 0 : index
    %15 = vector.load %arg2[%c0_7, %c0_8, %14, %c0_9] : memref<1x1x128x64xbf16, #tpu.memory_space<vmem>>, vector<1x1x32x64xbf16>
    %16 = vector.shape_cast %15 : vector<1x1x32x64xbf16> to vector<32x64xbf16>
    %17 = vector.extract_strided_slice %16 {offsets = [1, 0], sizes = [16, 64], strides = [1, 1]} : vector<32x64xbf16> to vector<16x64xbf16>
    %c1 = arith.constant 1 : index
    %c0_10 = arith.constant 0 : index
    %c0_11 = arith.constant 0 : index
    %18 = vector.load %arg3[%c1, %c0_10, %c0_11] : memref<9x64x64xbf16, #tpu.memory_space<vmem>>, vector<1x64x64xbf16>
    %19 = vector.shape_cast %18 : vector<1x64x64xbf16> to vector<64x64xbf16>
    %cst_12 = arith.constant dense<0.000000e+00> : vector<16x64xf32>
    %20 = tpu.matmul %17, %19, %cst_12 {dimension_numbers = #tpu.dot_dimension_numbers<[1], [0], [0], [1], [0, 0, 1, 1], [], []>} : vector<16x64xbf16>, vector<64x64xbf16>, vector<16x64xf32> -> vector<16x64xf32>
    %21 = arith.addf %11, %20 : vector<16x64xf32>
    %c0_i32_13 = arith.constant 0 : i32
    %22 = arith.addi %0, %c0_i32_13 : i32
    %23 = tpu.assume_multiple %22, 16 : i32
    %c0_14 = arith.constant 0 : index
    %c0_15 = arith.constant 0 : index
    %24 = arith.index_cast %23 : i32 to index
    %c0_16 = arith.constant 0 : index
    %25 = vector.load %arg2[%c0_14, %c0_15, %24, %c0_16] : memref<1x1x128x64xbf16, #tpu.memory_space<vmem>>, vector<1x1x32x64xbf16>
    %26 = vector.shape_cast %25 : vector<1x1x32x64xbf16> to vector<32x64xbf16>
    %27 = vector.extract_strided_slice %26 {offsets = [2, 0], sizes = [16, 64], strides = [1, 1]} : vector<32x64xbf16> to vector<16x64xbf16>
    %c2 = arith.constant 2 : index
    %c0_17 = arith.constant 0 : index
    %c0_18 = arith.constant 0 : index
    %28 = vector.load %arg3[%c2, %c0_17, %c0_18] : memref<9x64x64xbf16, #tpu.memory_space<vmem>>, vector<1x64x64xbf16>
    %29 = vector.shape_cast %28 : vector<1x64x64xbf16> to vector<64x64xbf16>
    %cst_19 = arith.constant dense<0.000000e+00> : vector<16x64xf32>
    %30 = tpu.matmul %27, %29, %cst_19 {dimension_numbers = #tpu.dot_dimension_numbers<[1], [0], [0], [1], [0, 0, 1, 1], [], []>} : vector<16x64xbf16>, vector<64x64xbf16>, vector<16x64xf32> -> vector<16x64xf32>
    %31 = arith.addf %21, %30 : vector<16x64xf32>
    %c0_i32_20 = arith.constant 0 : i32
    %32 = arith.addi %0, %c0_i32_20 : i32
    %33 = tpu.assume_multiple %32, 16 : i32
    %c0_21 = arith.constant 0 : index
    %c0_22 = arith.constant 0 : index
    %34 = arith.index_cast %33 : i32 to index
    %c0_23 = arith.constant 0 : index
    %35 = vector.load %arg2[%c0_21, %c0_22, %34, %c0_23] : memref<1x1x128x64xbf16, #tpu.memory_space<vmem>>, vector<1x1x32x64xbf16>
    %36 = vector.shape_cast %35 : vector<1x1x32x64xbf16> to vector<32x64xbf16>
    %37 = vector.extract_strided_slice %36 {offsets = [10, 0], sizes = [16, 64], strides = [1, 1]} : vector<32x64xbf16> to vector<16x64xbf16>
    %c3 = arith.constant 3 : index
    %c0_24 = arith.constant 0 : index
    %c0_25 = arith.constant 0 : index
    %38 = vector.load %arg3[%c3, %c0_24, %c0_25] : memref<9x64x64xbf16, #tpu.memory_space<vmem>>, vector<1x64x64xbf16>
    %39 = vector.shape_cast %38 : vector<1x64x64xbf16> to vector<64x64xbf16>
    %cst_26 = arith.constant dense<0.000000e+00> : vector<16x64xf32>
    %40 = tpu.matmul %37, %39, %cst_26 {dimension_numbers = #tpu.dot_dimension_numbers<[1], [0], [0], [1], [0, 0, 1, 1], [], []>} : vector<16x64xbf16>, vector<64x64xbf16>, vector<16x64xf32> -> vector<16x64xf32>
    %41 = arith.addf %31, %40 : vector<16x64xf32>
    %c0_i32_27 = arith.constant 0 : i32
    %42 = arith.addi %0, %c0_i32_27 : i32
    %43 = tpu.assume_multiple %42, 16 : i32
    %c0_28 = arith.constant 0 : index
    %c0_29 = arith.constant 0 : index
    %44 = arith.index_cast %43 : i32 to index
    %c0_30 = arith.constant 0 : index
    %45 = vector.load %arg2[%c0_28, %c0_29, %44, %c0_30] : memref<1x1x128x64xbf16, #tpu.memory_space<vmem>>, vector<1x1x32x64xbf16>
    %46 = vector.shape_cast %45 : vector<1x1x32x64xbf16> to vector<32x64xbf16>
    %47 = vector.extract_strided_slice %46 {offsets = [11, 0], sizes = [16, 64], strides = [1, 1]} : vector<32x64xbf16> to vector<16x64xbf16>
    %c4 = arith.constant 4 : index
    %c0_31 = arith.constant 0 : index
    %c0_32 = arith.constant 0 : index
    %48 = vector.load %arg3[%c4, %c0_31, %c0_32] : memref<9x64x64xbf16, #tpu.memory_space<vmem>>, vector<1x64x64xbf16>
    %49 = vector.shape_cast %48 : vector<1x64x64xbf16> to vector<64x64xbf16>
    %cst_33 = arith.constant dense<0.000000e+00> : vector<16x64xf32>
    %50 = tpu.matmul %47, %49, %cst_33 {dimension_numbers = #tpu.dot_dimension_numbers<[1], [0], [0], [1], [0, 0, 1, 1], [], []>} : vector<16x64xbf16>, vector<64x64xbf16>, vector<16x64xf32> -> vector<16x64xf32>
    %51 = arith.addf %41, %50 : vector<16x64xf32>
    %c0_i32_34 = arith.constant 0 : i32
    %52 = arith.addi %0, %c0_i32_34 : i32
    %53 = tpu.assume_multiple %52, 16 : i32
    %c0_35 = arith.constant 0 : index
    %c0_36 = arith.constant 0 : index
    %54 = arith.index_cast %53 : i32 to index
    %c0_37 = arith.constant 0 : index
    %55 = vector.load %arg2[%c0_35, %c0_36, %54, %c0_37] : memref<1x1x128x64xbf16, #tpu.memory_space<vmem>>, vector<1x1x32x64xbf16>
    %56 = vector.shape_cast %55 : vector<1x1x32x64xbf16> to vector<32x64xbf16>
    %57 = vector.extract_strided_slice %56 {offsets = [12, 0], sizes = [16, 64], strides = [1, 1]} : vector<32x64xbf16> to vector<16x64xbf16>
    %c5 = arith.constant 5 : index
    %c0_38 = arith.constant 0 : index
    %c0_39 = arith.constant 0 : index
    %58 = vector.load %arg3[%c5, %c0_38, %c0_39] : memref<9x64x64xbf16, #tpu.memory_space<vmem>>, vector<1x64x64xbf16>
    %59 = vector.shape_cast %58 : vector<1x64x64xbf16> to vector<64x64xbf16>
    %cst_40 = arith.constant dense<0.000000e+00> : vector<16x64xf32>
    %60 = tpu.matmul %57, %59, %cst_40 {dimension_numbers = #tpu.dot_dimension_numbers<[1], [0], [0], [1], [0, 0, 1, 1], [], []>} : vector<16x64xbf16>, vector<64x64xbf16>, vector<16x64xf32> -> vector<16x64xf32>
    %61 = arith.addf %51, %60 : vector<16x64xf32>
    %c16_i32_41 = arith.constant 16 : i32
    %62 = arith.addi %0, %c16_i32_41 : i32
    %63 = tpu.assume_multiple %62, 16 : i32
    %c0_42 = arith.constant 0 : index
    %c0_43 = arith.constant 0 : index
    %64 = arith.index_cast %63 : i32 to index
    %c0_44 = arith.constant 0 : index
    %65 = vector.load %arg2[%c0_42, %c0_43, %64, %c0_44] : memref<1x1x128x64xbf16, #tpu.memory_space<vmem>>, vector<1x1x32x64xbf16>
    %66 = vector.shape_cast %65 : vector<1x1x32x64xbf16> to vector<32x64xbf16>
    %67 = vector.extract_strided_slice %66 {offsets = [4, 0], sizes = [16, 64], strides = [1, 1]} : vector<32x64xbf16> to vector<16x64xbf16>
    %c6 = arith.constant 6 : index
    %c0_45 = arith.constant 0 : index
    %c0_46 = arith.constant 0 : index
    %68 = vector.load %arg3[%c6, %c0_45, %c0_46] : memref<9x64x64xbf16, #tpu.memory_space<vmem>>, vector<1x64x64xbf16>
    %69 = vector.shape_cast %68 : vector<1x64x64xbf16> to vector<64x64xbf16>
    %cst_47 = arith.constant dense<0.000000e+00> : vector<16x64xf32>
    %70 = tpu.matmul %67, %69, %cst_47 {dimension_numbers = #tpu.dot_dimension_numbers<[1], [0], [0], [1], [0, 0, 1, 1], [], []>} : vector<16x64xbf16>, vector<64x64xbf16>, vector<16x64xf32> -> vector<16x64xf32>
    %71 = arith.addf %61, %70 : vector<16x64xf32>
    %c16_i32_48 = arith.constant 16 : i32
    %72 = arith.addi %0, %c16_i32_48 : i32
    %73 = tpu.assume_multiple %72, 16 : i32
    %c0_49 = arith.constant 0 : index
    %c0_50 = arith.constant 0 : index
    %74 = arith.index_cast %73 : i32 to index
    %c0_51 = arith.constant 0 : index
    %75 = vector.load %arg2[%c0_49, %c0_50, %74, %c0_51] : memref<1x1x128x64xbf16, #tpu.memory_space<vmem>>, vector<1x1x32x64xbf16>
    %76 = vector.shape_cast %75 : vector<1x1x32x64xbf16> to vector<32x64xbf16>
    %77 = vector.extract_strided_slice %76 {offsets = [5, 0], sizes = [16, 64], strides = [1, 1]} : vector<32x64xbf16> to vector<16x64xbf16>
    %c7 = arith.constant 7 : index
    %c0_52 = arith.constant 0 : index
    %c0_53 = arith.constant 0 : index
    %78 = vector.load %arg3[%c7, %c0_52, %c0_53] : memref<9x64x64xbf16, #tpu.memory_space<vmem>>, vector<1x64x64xbf16>
    %79 = vector.shape_cast %78 : vector<1x64x64xbf16> to vector<64x64xbf16>
    %cst_54 = arith.constant dense<0.000000e+00> : vector<16x64xf32>
    %80 = tpu.matmul %77, %79, %cst_54 {dimension_numbers = #tpu.dot_dimension_numbers<[1], [0], [0], [1], [0, 0, 1, 1], [], []>} : vector<16x64xbf16>, vector<64x64xbf16>, vector<16x64xf32> -> vector<16x64xf32>
    %81 = arith.addf %71, %80 : vector<16x64xf32>
    %c16_i32_55 = arith.constant 16 : i32
    %82 = arith.addi %0, %c16_i32_55 : i32
    %83 = tpu.assume_multiple %82, 16 : i32
    %c0_56 = arith.constant 0 : index
    %c0_57 = arith.constant 0 : index
    %84 = arith.index_cast %83 : i32 to index
    %c0_58 = arith.constant 0 : index
    %85 = vector.load %arg2[%c0_56, %c0_57, %84, %c0_58] : memref<1x1x128x64xbf16, #tpu.memory_space<vmem>>, vector<1x1x32x64xbf16>
    %86 = vector.shape_cast %85 : vector<1x1x32x64xbf16> to vector<32x64xbf16>
    %87 = vector.extract_strided_slice %86 {offsets = [6, 0], sizes = [16, 64], strides = [1, 1]} : vector<32x64xbf16> to vector<16x64xbf16>
    %c8 = arith.constant 8 : index
    %c0_59 = arith.constant 0 : index
    %c0_60 = arith.constant 0 : index
    %88 = vector.load %arg3[%c8, %c0_59, %c0_60] : memref<9x64x64xbf16, #tpu.memory_space<vmem>>, vector<1x64x64xbf16>
    %89 = vector.shape_cast %88 : vector<1x64x64xbf16> to vector<64x64xbf16>
    %cst_61 = arith.constant dense<0.000000e+00> : vector<16x64xf32>
    %90 = tpu.matmul %87, %89, %cst_61 {dimension_numbers = #tpu.dot_dimension_numbers<[1], [0], [0], [1], [0, 0, 1, 1], [], []>} : vector<16x64xbf16>, vector<64x64xbf16>, vector<16x64xf32> -> vector<16x64xf32>
    %91 = arith.addf %81, %90 : vector<16x64xf32>
    %c0_62 = arith.constant 0 : index
    %c0_63 = arith.constant 0 : index
    %92 = vector.load %arg4[%c0_62, %c0_63] : memref<1x64xf32, #tpu.memory_space<vmem>>, vector<1x64xf32>
    %93 = vector.broadcast %92 : vector<1x64xf32> to vector<16x64xf32>
    %94 = arith.addf %91, %93 : vector<16x64xf32>
    %cst_64 = arith.constant 0.000000e+00 : f32
    %95 = vector.broadcast %cst_64 : f32 to vector<16x64xf32>
    %96 = arith.maximumf %94, %95 : vector<16x64xf32>
    %97 = arith.truncf %96 : vector<16x64xf32> to vector<16x64xbf16>
    %c0_65 = arith.constant 0 : index
    %c0_66 = arith.constant 0 : index
    %c0_67 = arith.constant 0 : index
    %98 = vector.load %arg5[%c0_65, %c0_66, %c0_67] : memref<1x16x64xbf16, #tpu.memory_space<vmem>>, vector<1x16x64xbf16>
    %99 = vector.shape_cast %98 : vector<1x16x64xbf16> to vector<16x64xbf16>
    %100 = vector.shape_cast %97 : vector<16x64xbf16> to vector<1x16x64xbf16>
    tpu.vector_store %arg5[%c0_65, %c0_66, %c0_67], %100 {strides = array<i32>} : memref<1x16x64xbf16, #tpu.memory_space<vmem>>, vector<1x16x64xbf16>,
    return
  }
  func.func @transform_0(%arg0: i32, %arg1: i32) -> (i32, i32, i32, i32) {
    %c0_i32 = arith.constant 0 : i32
    %c0_i32_0 = arith.constant 0 : i32
    %c0_i32_1 = arith.constant 0 : i32
    %c0_i32_2 = arith.constant 0 : i32
    return %arg0, %c0_i32, %c0_i32_0, %c0_i32_1 : i32, i32, i32, i32
  }
  func.func @transform_1(%arg0: i32, %arg1: i32) -> (i32, i32, i32) {
    %c0_i32 = arith.constant 0 : i32
    %c0_i32_0 = arith.constant 0 : i32
    %c0_i32_1 = arith.constant 0 : i32
    %c0_i32_2 = arith.constant 0 : i32
    return %c0_i32, %c0_i32_0, %c0_i32_1 : i32, i32, i32
  }
  func.func @transform_2(%arg0: i32, %arg1: i32) -> (i32, i32) {
    %c0_i32 = arith.constant 0 : i32
    %c0_i32_0 = arith.constant 0 : i32
    %c0_i32_1 = arith.constant 0 : i32
    return %c0_i32, %c0_i32_0 : i32, i32
  }
  func.func @transform_3(%arg0: i32, %arg1: i32) -> (i32, i32, i32) {
    %c0_i32 = arith.constant 0 : i32
    %c0_i32_0 = arith.constant 0 : i32
    return %arg0, %arg1, %c0_i32 : i32, i32, i32
  }
}

module attributes {stable_mosaic.version = 11 : i64} {
  func.func @_tap_conv_res_kernel(%arg0: i32, %arg1: i32, %arg2: memref<1x1x128x64xbf16, #tpu.memory_space<vmem>>, %arg3: memref<9x64x64xbf16, #tpu.memory_space<vmem>>, %arg4: memref<1x64xf32, #tpu.memory_space<vmem>>, %arg5: memref<1x16x64xbf16, #tpu.memory_space<vmem>>, %arg6: memref<1x16x64xbf16, #tpu.memory_space<vmem>>) attributes {dimension_semantics = [#tpu.dimension_semantics<parallel>, #tpu.dimension_semantics<parallel>], iteration_bounds = array<i64: 2, 5>, scalar_prefetch = 0 : i64, scratch_operands = 0 : i64, tpu.core_type = #tpu.core_type<tc>, window_params = [{transform_indices = @transform_0, window_bounds = array<i64: 1, 1, 128, 64>}, {pipeline_mode = #tpu.pipeline_mode<synchronous>, transform_indices = @transform_1, window_bounds = array<i64: 9, 64, 64>}, {pipeline_mode = #tpu.pipeline_mode<synchronous>, transform_indices = @transform_2, window_bounds = array<i64: 1, 64>}, {transform_indices = @transform_3, window_bounds = array<i64: 1, 16, 64>}, {transform_indices = @transform_4, window_bounds = array<i64: 1, 16, 64>}]} {
    %c16_i32 = arith.constant 16 : i32
    %0 = arith.muli %arg1, %c16_i32 : i32
    %cst = arith.constant 0.000000e+00 : f32
    %1 = vector.broadcast %cst : f32 to vector<16x64xf32>
    %c0_i32 = arith.constant 0 : i32
    %2 = arith.addi %0, %c0_i32 : i32
    %3 = tpu.assume_multiple %2, 16 : i32
    %c0 = arith.constant 0 : index
    %c0_0 = arith.constant 0 : index
    %4 = arith.index_cast %3 : i32 to index
    %c0_1 = arith.constant 0 : index
    %5 = vector.load %arg2[%c0, %c0_0, %4, %c0_1] : memref<1x1x128x64xbf16, #tpu.memory_space<vmem>>, vector<1x1x32x64xbf16>
    %6 = vector.shape_cast %5 : vector<1x1x32x64xbf16> to vector<32x64xbf16>
    %7 = vector.extract_strided_slice %6 {offsets = [0, 0], sizes = [16, 64], strides = [1, 1]} : vector<32x64xbf16> to vector<16x64xbf16>
    %c0_2 = arith.constant 0 : index
    %c0_3 = arith.constant 0 : index
    %c0_4 = arith.constant 0 : index
    %8 = vector.load %arg3[%c0_2, %c0_3, %c0_4] : memref<9x64x64xbf16, #tpu.memory_space<vmem>>, vector<1x64x64xbf16>
    %9 = vector.shape_cast %8 : vector<1x64x64xbf16> to vector<64x64xbf16>
    %cst_5 = arith.constant dense<0.000000e+00> : vector<16x64xf32>
    %10 = tpu.matmul %7, %9, %cst_5 {dimension_numbers = #tpu.dot_dimension_numbers<[1], [0], [0], [1], [0, 0, 1, 1], [], []>} : vector<16x64xbf16>, vector<64x64xbf16>, vector<16x64xf32> -> vector<16x64xf32>
    %11 = arith.addf %1, %10 : vector<16x64xf32>
    %c0_i32_6 = arith.constant 0 : i32
    %12 = arith.addi %0, %c0_i32_6 : i32
    %13 = tpu.assume_multiple %12, 16 : i32
    %c0_7 = arith.constant 0 : index
    %c0_8 = arith.constant 0 : index
    %14 = arith.index_cast %13 : i32 to index
    %c0_9 = arith.constant 0 : index
    %15 = vector.load %arg2[%c0_7, %c0_8, %14, %c0_9] : memref<1x1x128x64xbf16, #tpu.memory_space<vmem>>, vector<1x1x32x64xbf16>
    %16 = vector.shape_cast %15 : vector<1x1x32x64xbf16> to vector<32x64xbf16>
    %17 = vector.extract_strided_slice %16 {offsets = [1, 0], sizes = [16, 64], strides = [1, 1]} : vector<32x64xbf16> to vector<16x64xbf16>
    %c1 = arith.constant 1 : index
    %c0_10 = arith.constant 0 : index
    %c0_11 = arith.constant 0 : index
    %18 = vector.load %arg3[%c1, %c0_10, %c0_11] : memref<9x64x64xbf16, #tpu.memory_space<vmem>>, vector<1x64x64xbf16>
    %19 = vector.shape_cast %18 : vector<1x64x64xbf16> to vector<64x64xbf16>
    %cst_12 = arith.constant dense<0.000000e+00> : vector<16x64xf32>
    %20 = tpu.matmul %17, %19, %cst_12 {dimension_numbers = #tpu.dot_dimension_numbers<[1], [0], [0], [1], [0, 0, 1, 1], [], []>} : vector<16x64xbf16>, vector<64x64xbf16>, vector<16x64xf32> -> vector<16x64xf32>
    %21 = arith.addf %11, %20 : vector<16x64xf32>
    %c0_i32_13 = arith.constant 0 : i32
    %22 = arith.addi %0, %c0_i32_13 : i32
    %23 = tpu.assume_multiple %22, 16 : i32
    %c0_14 = arith.constant 0 : index
    %c0_15 = arith.constant 0 : index
    %24 = arith.index_cast %23 : i32 to index
    %c0_16 = arith.constant 0 : index
    %25 = vector.load %arg2[%c0_14, %c0_15, %24, %c0_16] : memref<1x1x128x64xbf16, #tpu.memory_space<vmem>>, vector<1x1x32x64xbf16>
    %26 = vector.shape_cast %25 : vector<1x1x32x64xbf16> to vector<32x64xbf16>
    %27 = vector.extract_strided_slice %26 {offsets = [2, 0], sizes = [16, 64], strides = [1, 1]} : vector<32x64xbf16> to vector<16x64xbf16>
    %c2 = arith.constant 2 : index
    %c0_17 = arith.constant 0 : index
    %c0_18 = arith.constant 0 : index
    %28 = vector.load %arg3[%c2, %c0_17, %c0_18] : memref<9x64x64xbf16, #tpu.memory_space<vmem>>, vector<1x64x64xbf16>
    %29 = vector.shape_cast %28 : vector<1x64x64xbf16> to vector<64x64xbf16>
    %cst_19 = arith.constant dense<0.000000e+00> : vector<16x64xf32>
    %30 = tpu.matmul %27, %29, %cst_19 {dimension_numbers = #tpu.dot_dimension_numbers<[1], [0], [0], [1], [0, 0, 1, 1], [], []>} : vector<16x64xbf16>, vector<64x64xbf16>, vector<16x64xf32> -> vector<16x64xf32>
    %31 = arith.addf %21, %30 : vector<16x64xf32>
    %c0_i32_20 = arith.constant 0 : i32
    %32 = arith.addi %0, %c0_i32_20 : i32
    %33 = tpu.assume_multiple %32, 16 : i32
    %c0_21 = arith.constant 0 : index
    %c0_22 = arith.constant 0 : index
    %34 = arith.index_cast %33 : i32 to index
    %c0_23 = arith.constant 0 : index
    %35 = vector.load %arg2[%c0_21, %c0_22, %34, %c0_23] : memref<1x1x128x64xbf16, #tpu.memory_space<vmem>>, vector<1x1x32x64xbf16>
    %36 = vector.shape_cast %35 : vector<1x1x32x64xbf16> to vector<32x64xbf16>
    %37 = vector.extract_strided_slice %36 {offsets = [10, 0], sizes = [16, 64], strides = [1, 1]} : vector<32x64xbf16> to vector<16x64xbf16>
    %c3 = arith.constant 3 : index
    %c0_24 = arith.constant 0 : index
    %c0_25 = arith.constant 0 : index
    %38 = vector.load %arg3[%c3, %c0_24, %c0_25] : memref<9x64x64xbf16, #tpu.memory_space<vmem>>, vector<1x64x64xbf16>
    %39 = vector.shape_cast %38 : vector<1x64x64xbf16> to vector<64x64xbf16>
    %cst_26 = arith.constant dense<0.000000e+00> : vector<16x64xf32>
    %40 = tpu.matmul %37, %39, %cst_26 {dimension_numbers = #tpu.dot_dimension_numbers<[1], [0], [0], [1], [0, 0, 1, 1], [], []>} : vector<16x64xbf16>, vector<64x64xbf16>, vector<16x64xf32> -> vector<16x64xf32>
    %41 = arith.addf %31, %40 : vector<16x64xf32>
    %c0_i32_27 = arith.constant 0 : i32
    %42 = arith.addi %0, %c0_i32_27 : i32
    %43 = tpu.assume_multiple %42, 16 : i32
    %c0_28 = arith.constant 0 : index
    %c0_29 = arith.constant 0 : index
    %44 = arith.index_cast %43 : i32 to index
    %c0_30 = arith.constant 0 : index
    %45 = vector.load %arg2[%c0_28, %c0_29, %44, %c0_30] : memref<1x1x128x64xbf16, #tpu.memory_space<vmem>>, vector<1x1x32x64xbf16>
    %46 = vector.shape_cast %45 : vector<1x1x32x64xbf16> to vector<32x64xbf16>
    %47 = vector.extract_strided_slice %46 {offsets = [11, 0], sizes = [16, 64], strides = [1, 1]} : vector<32x64xbf16> to vector<16x64xbf16>
    %c4 = arith.constant 4 : index
    %c0_31 = arith.constant 0 : index
    %c0_32 = arith.constant 0 : index
    %48 = vector.load %arg3[%c4, %c0_31, %c0_32] : memref<9x64x64xbf16, #tpu.memory_space<vmem>>, vector<1x64x64xbf16>
    %49 = vector.shape_cast %48 : vector<1x64x64xbf16> to vector<64x64xbf16>
    %cst_33 = arith.constant dense<0.000000e+00> : vector<16x64xf32>
    %50 = tpu.matmul %47, %49, %cst_33 {dimension_numbers = #tpu.dot_dimension_numbers<[1], [0], [0], [1], [0, 0, 1, 1], [], []>} : vector<16x64xbf16>, vector<64x64xbf16>, vector<16x64xf32> -> vector<16x64xf32>
    %51 = arith.addf %41, %50 : vector<16x64xf32>
    %c0_i32_34 = arith.constant 0 : i32
    %52 = arith.addi %0, %c0_i32_34 : i32
    %53 = tpu.assume_multiple %52, 16 : i32
    %c0_35 = arith.constant 0 : index
    %c0_36 = arith.constant 0 : index
    %54 = arith.index_cast %53 : i32 to index
    %c0_37 = arith.constant 0 : index
    %55 = vector.load %arg2[%c0_35, %c0_36, %54, %c0_37] : memref<1x1x128x64xbf16, #tpu.memory_space<vmem>>, vector<1x1x32x64xbf16>
    %56 = vector.shape_cast %55 : vector<1x1x32x64xbf16> to vector<32x64xbf16>
    %57 = vector.extract_strided_slice %56 {offsets = [12, 0], sizes = [16, 64], strides = [1, 1]} : vector<32x64xbf16> to vector<16x64xbf16>
    %c5 = arith.constant 5 : index
    %c0_38 = arith.constant 0 : index
    %c0_39 = arith.constant 0 : index
    %58 = vector.load %arg3[%c5, %c0_38, %c0_39] : memref<9x64x64xbf16, #tpu.memory_space<vmem>>, vector<1x64x64xbf16>
    %59 = vector.shape_cast %58 : vector<1x64x64xbf16> to vector<64x64xbf16>
    %cst_40 = arith.constant dense<0.000000e+00> : vector<16x64xf32>
    %60 = tpu.matmul %57, %59, %cst_40 {dimension_numbers = #tpu.dot_dimension_numbers<[1], [0], [0], [1], [0, 0, 1, 1], [], []>} : vector<16x64xbf16>, vector<64x64xbf16>, vector<16x64xf32> -> vector<16x64xf32>
    %61 = arith.addf %51, %60 : vector<16x64xf32>
    %c16_i32_41 = arith.constant 16 : i32
    %62 = arith.addi %0, %c16_i32_41 : i32
    %63 = tpu.assume_multiple %62, 16 : i32
    %c0_42 = arith.constant 0 : index
    %c0_43 = arith.constant 0 : index
    %64 = arith.index_cast %63 : i32 to index
    %c0_44 = arith.constant 0 : index
    %65 = vector.load %arg2[%c0_42, %c0_43, %64, %c0_44] : memref<1x1x128x64xbf16, #tpu.memory_space<vmem>>, vector<1x1x32x64xbf16>
    %66 = vector.shape_cast %65 : vector<1x1x32x64xbf16> to vector<32x64xbf16>
    %67 = vector.extract_strided_slice %66 {offsets = [4, 0], sizes = [16, 64], strides = [1, 1]} : vector<32x64xbf16> to vector<16x64xbf16>
    %c6 = arith.constant 6 : index
    %c0_45 = arith.constant 0 : index
    %c0_46 = arith.constant 0 : index
    %68 = vector.load %arg3[%c6, %c0_45, %c0_46] : memref<9x64x64xbf16, #tpu.memory_space<vmem>>, vector<1x64x64xbf16>
    %69 = vector.shape_cast %68 : vector<1x64x64xbf16> to vector<64x64xbf16>
    %cst_47 = arith.constant dense<0.000000e+00> : vector<16x64xf32>
    %70 = tpu.matmul %67, %69, %cst_47 {dimension_numbers = #tpu.dot_dimension_numbers<[1], [0], [0], [1], [0, 0, 1, 1], [], []>} : vector<16x64xbf16>, vector<64x64xbf16>, vector<16x64xf32> -> vector<16x64xf32>
    %71 = arith.addf %61, %70 : vector<16x64xf32>
    %c16_i32_48 = arith.constant 16 : i32
    %72 = arith.addi %0, %c16_i32_48 : i32
    %73 = tpu.assume_multiple %72, 16 : i32
    %c0_49 = arith.constant 0 : index
    %c0_50 = arith.constant 0 : index
    %74 = arith.index_cast %73 : i32 to index
    %c0_51 = arith.constant 0 : index
    %75 = vector.load %arg2[%c0_49, %c0_50, %74, %c0_51] : memref<1x1x128x64xbf16, #tpu.memory_space<vmem>>, vector<1x1x32x64xbf16>
    %76 = vector.shape_cast %75 : vector<1x1x32x64xbf16> to vector<32x64xbf16>
    %77 = vector.extract_strided_slice %76 {offsets = [5, 0], sizes = [16, 64], strides = [1, 1]} : vector<32x64xbf16> to vector<16x64xbf16>
    %c7 = arith.constant 7 : index
    %c0_52 = arith.constant 0 : index
    %c0_53 = arith.constant 0 : index
    %78 = vector.load %arg3[%c7, %c0_52, %c0_53] : memref<9x64x64xbf16, #tpu.memory_space<vmem>>, vector<1x64x64xbf16>
    %79 = vector.shape_cast %78 : vector<1x64x64xbf16> to vector<64x64xbf16>
    %cst_54 = arith.constant dense<0.000000e+00> : vector<16x64xf32>
    %80 = tpu.matmul %77, %79, %cst_54 {dimension_numbers = #tpu.dot_dimension_numbers<[1], [0], [0], [1], [0, 0, 1, 1], [], []>} : vector<16x64xbf16>, vector<64x64xbf16>, vector<16x64xf32> -> vector<16x64xf32>
    %81 = arith.addf %71, %80 : vector<16x64xf32>
    %c16_i32_55 = arith.constant 16 : i32
    %82 = arith.addi %0, %c16_i32_55 : i32
    %83 = tpu.assume_multiple %82, 16 : i32
    %c0_56 = arith.constant 0 : index
    %c0_57 = arith.constant 0 : index
    %84 = arith.index_cast %83 : i32 to index
    %c0_58 = arith.constant 0 : index
    %85 = vector.load %arg2[%c0_56, %c0_57, %84, %c0_58] : memref<1x1x128x64xbf16, #tpu.memory_space<vmem>>, vector<1x1x32x64xbf16>
    %86 = vector.shape_cast %85 : vector<1x1x32x64xbf16> to vector<32x64xbf16>
    %87 = vector.extract_strided_slice %86 {offsets = [6, 0], sizes = [16, 64], strides = [1, 1]} : vector<32x64xbf16> to vector<16x64xbf16>
    %c8 = arith.constant 8 : index
    %c0_59 = arith.constant 0 : index
    %c0_60 = arith.constant 0 : index
    %88 = vector.load %arg3[%c8, %c0_59, %c0_60] : memref<9x64x64xbf16, #tpu.memory_space<vmem>>, vector<1x64x64xbf16>
    %89 = vector.shape_cast %88 : vector<1x64x64xbf16> to vector<64x64xbf16>
    %cst_61 = arith.constant dense<0.000000e+00> : vector<16x64xf32>
    %90 = tpu.matmul %87, %89, %cst_61 {dimension_numbers = #tpu.dot_dimension_numbers<[1], [0], [0], [1], [0, 0, 1, 1], [], []>} : vector<16x64xbf16>, vector<64x64xbf16>, vector<16x64xf32> -> vector<16x64xf32>
    %91 = arith.addf %81, %90 : vector<16x64xf32>
    %c0_62 = arith.constant 0 : index
    %c0_63 = arith.constant 0 : index
    %92 = vector.load %arg4[%c0_62, %c0_63] : memref<1x64xf32, #tpu.memory_space<vmem>>, vector<1x64xf32>
    %93 = vector.broadcast %92 : vector<1x64xf32> to vector<16x64xf32>
    %94 = arith.addf %91, %93 : vector<16x64xf32>
    %c0_64 = arith.constant 0 : index
    %c0_65 = arith.constant 0 : index
    %c0_66 = arith.constant 0 : index
    %95 = vector.load %arg5[%c0_64, %c0_65, %c0_66] : memref<1x16x64xbf16, #tpu.memory_space<vmem>>, vector<1x16x64xbf16>
    %96 = vector.shape_cast %95 : vector<1x16x64xbf16> to vector<16x64xbf16>
    %97 = arith.extf %96 : vector<16x64xbf16> to vector<16x64xf32>
    %98 = arith.addf %94, %97 : vector<16x64xf32>
    %cst_67 = arith.constant 0.000000e+00 : f32
    %99 = vector.broadcast %cst_67 : f32 to vector<16x64xf32>
    %100 = arith.maximumf %98, %99 : vector<16x64xf32>
    %101 = arith.truncf %100 : vector<16x64xf32> to vector<16x64xbf16>
    %c0_68 = arith.constant 0 : index
    %c0_69 = arith.constant 0 : index
    %c0_70 = arith.constant 0 : index
    %102 = vector.load %arg6[%c0_68, %c0_69, %c0_70] : memref<1x16x64xbf16, #tpu.memory_space<vmem>>, vector<1x16x64xbf16>
    %103 = vector.shape_cast %102 : vector<1x16x64xbf16> to vector<16x64xbf16>
    %104 = vector.shape_cast %101 : vector<16x64xbf16> to vector<1x16x64xbf16>
    tpu.vector_store %arg6[%c0_68, %c0_69, %c0_70], %104 {strides = array<i32>} : memref<1x16x64xbf16, #tpu.memory_space<vmem>>, vector<1x16x64xbf16>,
    return
  }
  func.func @transform_0(%arg0: i32, %arg1: i32) -> (i32, i32, i32, i32) {
    %c0_i32 = arith.constant 0 : i32
    %c0_i32_0 = arith.constant 0 : i32
    %c0_i32_1 = arith.constant 0 : i32
    %c0_i32_2 = arith.constant 0 : i32
    return %arg0, %c0_i32, %c0_i32_0, %c0_i32_1 : i32, i32, i32, i32
  }
  func.func @transform_1(%arg0: i32, %arg1: i32) -> (i32, i32, i32) {
    %c0_i32 = arith.constant 0 : i32
    %c0_i32_0 = arith.constant 0 : i32
    %c0_i32_1 = arith.constant 0 : i32
    %c0_i32_2 = arith.constant 0 : i32
    return %c0_i32, %c0_i32_0, %c0_i32_1 : i32, i32, i32
  }
  func.func @transform_2(%arg0: i32, %arg1: i32) -> (i32, i32) {
    %c0_i32 = arith.constant 0 : i32
    %c0_i32_0 = arith.constant 0 : i32
    %c0_i32_1 = arith.constant 0 : i32
    return %c0_i32, %c0_i32_0 : i32, i32
  }
  func.func @transform_3(%arg0: i32, %arg1: i32) -> (i32, i32, i32) {
    %c0_i32 = arith.constant 0 : i32
    %c0_i32_0 = arith.constant 0 : i32
    return %arg0, %arg1, %c0_i32 : i32, i32, i32
  }
  func.func @transform_4(%arg0: i32, %arg1: i32) -> (i32, i32, i32) {
    %c0_i32 = arith.constant 0 : i32
    %c0_i32_0 = arith.constant 0 : i32
    return %arg0, %arg1, %c0_i32 : i32, i32, i32
  }
}

module attributes {stable_mosaic.version = 11 : i64} {
  func.func @_tap_conv_kernel(%arg0: i32, %arg1: i32, %arg2: memref<1x4x64x64xbf16, #tpu.memory_space<vmem>>, %arg3: memref<9x64x128xbf16, #tpu.memory_space<vmem>>, %arg4: memref<1x128xf32, #tpu.memory_space<vmem>>, %arg5: memref<1x16x128xbf16, #tpu.memory_space<vmem>>) attributes {dimension_semantics = [#tpu.dimension_semantics<parallel>, #tpu.dimension_semantics<parallel>], iteration_bounds = array<i64: 2, 2>, scalar_prefetch = 0 : i64, scratch_operands = 0 : i64, tpu.core_type = #tpu.core_type<tc>, window_params = [{transform_indices = @transform_0, window_bounds = array<i64: 1, 4, 64, 64>}, {pipeline_mode = #tpu.pipeline_mode<synchronous>, transform_indices = @transform_1, window_bounds = array<i64: 9, 64, 128>}, {pipeline_mode = #tpu.pipeline_mode<synchronous>, transform_indices = @transform_2, window_bounds = array<i64: 1, 128>}, {transform_indices = @transform_3, window_bounds = array<i64: 1, 16, 128>}]} {
    %c16_i32 = arith.constant 16 : i32
    %0 = arith.muli %arg1, %c16_i32 : i32
    %cst = arith.constant 0.000000e+00 : f32
    %1 = vector.broadcast %cst : f32 to vector<16x128xf32>
    %c0_i32 = arith.constant 0 : i32
    %2 = arith.addi %0, %c0_i32 : i32
    %3 = tpu.assume_multiple %2, 16 : i32
    %c0 = arith.constant 0 : index
    %c0_0 = arith.constant 0 : index
    %4 = arith.index_cast %3 : i32 to index
    %c0_1 = arith.constant 0 : index
    %5 = vector.load %arg2[%c0, %c0_0, %4, %c0_1] : memref<1x4x64x64xbf16, #tpu.memory_space<vmem>>, vector<1x1x32x64xbf16>
    %6 = vector.shape_cast %5 : vector<1x1x32x64xbf16> to vector<32x64xbf16>
    %7 = vector.extract_strided_slice %6 {offsets = [0, 0], sizes = [16, 64], strides = [1, 1]} : vector<32x64xbf16> to vector<16x64xbf16>
    %c0_2 = arith.constant 0 : index
    %c0_3 = arith.constant 0 : index
    %c0_4 = arith.constant 0 : index
    %8 = vector.load %arg3[%c0_2, %c0_3, %c0_4] : memref<9x64x128xbf16, #tpu.memory_space<vmem>>, vector<1x64x128xbf16>
    %9 = vector.shape_cast %8 : vector<1x64x128xbf16> to vector<64x128xbf16>
    %cst_5 = arith.constant dense<0.000000e+00> : vector<16x128xf32>
    %10 = tpu.matmul %7, %9, %cst_5 {dimension_numbers = #tpu.dot_dimension_numbers<[1], [0], [0], [1], [0, 0, 1, 1], [], []>} : vector<16x64xbf16>, vector<64x128xbf16>, vector<16x128xf32> -> vector<16x128xf32>
    %11 = arith.addf %1, %10 : vector<16x128xf32>
    %c0_i32_6 = arith.constant 0 : i32
    %12 = arith.addi %0, %c0_i32_6 : i32
    %13 = tpu.assume_multiple %12, 16 : i32
    %c0_7 = arith.constant 0 : index
    %c1 = arith.constant 1 : index
    %14 = arith.index_cast %13 : i32 to index
    %c0_8 = arith.constant 0 : index
    %15 = vector.load %arg2[%c0_7, %c1, %14, %c0_8] : memref<1x4x64x64xbf16, #tpu.memory_space<vmem>>, vector<1x1x32x64xbf16>
    %16 = vector.shape_cast %15 : vector<1x1x32x64xbf16> to vector<32x64xbf16>
    %17 = vector.extract_strided_slice %16 {offsets = [0, 0], sizes = [16, 64], strides = [1, 1]} : vector<32x64xbf16> to vector<16x64xbf16>
    %c1_9 = arith.constant 1 : index
    %c0_10 = arith.constant 0 : index
    %c0_11 = arith.constant 0 : index
    %18 = vector.load %arg3[%c1_9, %c0_10, %c0_11] : memref<9x64x128xbf16, #tpu.memory_space<vmem>>, vector<1x64x128xbf16>
    %19 = vector.shape_cast %18 : vector<1x64x128xbf16> to vector<64x128xbf16>
    %cst_12 = arith.constant dense<0.000000e+00> : vector<16x128xf32>
    %20 = tpu.matmul %17, %19, %cst_12 {dimension_numbers = #tpu.dot_dimension_numbers<[1], [0], [0], [1], [0, 0, 1, 1], [], []>} : vector<16x64xbf16>, vector<64x128xbf16>, vector<16x128xf32> -> vector<16x128xf32>
    %21 = arith.addf %11, %20 : vector<16x128xf32>
    %c0_i32_13 = arith.constant 0 : i32
    %22 = arith.addi %0, %c0_i32_13 : i32
    %23 = tpu.assume_multiple %22, 16 : i32
    %c0_14 = arith.constant 0 : index
    %c0_15 = arith.constant 0 : index
    %24 = arith.index_cast %23 : i32 to index
    %c0_16 = arith.constant 0 : index
    %25 = vector.load %arg2[%c0_14, %c0_15, %24, %c0_16] : memref<1x4x64x64xbf16, #tpu.memory_space<vmem>>, vector<1x1x32x64xbf16>
    %26 = vector.shape_cast %25 : vector<1x1x32x64xbf16> to vector<32x64xbf16>
    %27 = vector.extract_strided_slice %26 {offsets = [1, 0], sizes = [16, 64], strides = [1, 1]} : vector<32x64xbf16> to vector<16x64xbf16>
    %c2 = arith.constant 2 : index
    %c0_17 = arith.constant 0 : index
    %c0_18 = arith.constant 0 : index
    %28 = vector.load %arg3[%c2, %c0_17, %c0_18] : memref<9x64x128xbf16, #tpu.memory_space<vmem>>, vector<1x64x128xbf16>
    %29 = vector.shape_cast %28 : vector<1x64x128xbf16> to vector<64x128xbf16>
    %cst_19 = arith.constant dense<0.000000e+00> : vector<16x128xf32>
    %30 = tpu.matmul %27, %29, %cst_19 {dimension_numbers = #tpu.dot_dimension_numbers<[1], [0], [0], [1], [0, 0, 1, 1], [], []>} : vector<16x64xbf16>, vector<64x128xbf16>, vector<16x128xf32> -> vector<16x128xf32>
    %31 = arith.addf %21, %30 : vector<16x128xf32>
    %c0_i32_20 = arith.constant 0 : i32
    %32 = arith.addi %0, %c0_i32_20 : i32
    %33 = tpu.assume_multiple %32, 16 : i32
    %c0_21 = arith.constant 0 : index
    %c2_22 = arith.constant 2 : index
    %34 = arith.index_cast %33 : i32 to index
    %c0_23 = arith.constant 0 : index
    %35 = vector.load %arg2[%c0_21, %c2_22, %34, %c0_23] : memref<1x4x64x64xbf16, #tpu.memory_space<vmem>>, vector<1x1x32x64xbf16>
    %36 = vector.shape_cast %35 : vector<1x1x32x64xbf16> to vector<32x64xbf16>
    %37 = vector.extract_strided_slice %36 {offsets = [0, 0], sizes = [16, 64], strides = [1, 1]} : vector<32x64xbf16> to vector<16x64xbf16>
    %c3 = arith.constant 3 : index
    %c0_24 = arith.constant 0 : index
    %c0_25 = arith.constant 0 : index
    %38 = vector.load %arg3[%c3, %c0_24, %c0_25] : memref<9x64x128xbf16, #tpu.memory_space<vmem>>, vector<1x64x128xbf16>
    %39 = vector.shape_cast %38 : vector<1x64x128xbf16> to vector<64x128xbf16>
    %cst_26 = arith.constant dense<0.000000e+00> : vector<16x128xf32>
    %40 = tpu.matmul %37, %39, %cst_26 {dimension_numbers = #tpu.dot_dimension_numbers<[1], [0], [0], [1], [0, 0, 1, 1], [], []>} : vector<16x64xbf16>, vector<64x128xbf16>, vector<16x128xf32> -> vector<16x128xf32>
    %41 = arith.addf %31, %40 : vector<16x128xf32>
    %c0_i32_27 = arith.constant 0 : i32
    %42 = arith.addi %0, %c0_i32_27 : i32
    %43 = tpu.assume_multiple %42, 16 : i32
    %c0_28 = arith.constant 0 : index
    %c3_29 = arith.constant 3 : index
    %44 = arith.index_cast %43 : i32 to index
    %c0_30 = arith.constant 0 : index
    %45 = vector.load %arg2[%c0_28, %c3_29, %44, %c0_30] : memref<1x4x64x64xbf16, #tpu.memory_space<vmem>>, vector<1x1x32x64xbf16>
    %46 = vector.shape_cast %45 : vector<1x1x32x64xbf16> to vector<32x64xbf16>
    %47 = vector.extract_strided_slice %46 {offsets = [0, 0], sizes = [16, 64], strides = [1, 1]} : vector<32x64xbf16> to vector<16x64xbf16>
    %c4 = arith.constant 4 : index
    %c0_31 = arith.constant 0 : index
    %c0_32 = arith.constant 0 : index
    %48 = vector.load %arg3[%c4, %c0_31, %c0_32] : memref<9x64x128xbf16, #tpu.memory_space<vmem>>, vector<1x64x128xbf16>
    %49 = vector.shape_cast %48 : vector<1x64x128xbf16> to vector<64x128xbf16>
    %cst_33 = arith.constant dense<0.000000e+00> : vector<16x128xf32>
    %50 = tpu.matmul %47, %49, %cst_33 {dimension_numbers = #tpu.dot_dimension_numbers<[1], [0], [0], [1], [0, 0, 1, 1], [], []>} : vector<16x64xbf16>, vector<64x128xbf16>, vector<16x128xf32> -> vector<16x128xf32>
    %51 = arith.addf %41, %50 : vector<16x128xf32>
    %c0_i32_34 = arith.constant 0 : i32
    %52 = arith.addi %0, %c0_i32_34 : i32
    %53 = tpu.assume_multiple %52, 16 : i32
    %c0_35 = arith.constant 0 : index
    %c2_36 = arith.constant 2 : index
    %54 = arith.index_cast %53 : i32 to index
    %c0_37 = arith.constant 0 : index
    %55 = vector.load %arg2[%c0_35, %c2_36, %54, %c0_37] : memref<1x4x64x64xbf16, #tpu.memory_space<vmem>>, vector<1x1x32x64xbf16>
    %56 = vector.shape_cast %55 : vector<1x1x32x64xbf16> to vector<32x64xbf16>
    %57 = vector.extract_strided_slice %56 {offsets = [1, 0], sizes = [16, 64], strides = [1, 1]} : vector<32x64xbf16> to vector<16x64xbf16>
    %c5 = arith.constant 5 : index
    %c0_38 = arith.constant 0 : index
    %c0_39 = arith.constant 0 : index
    %58 = vector.load %arg3[%c5, %c0_38, %c0_39] : memref<9x64x128xbf16, #tpu.memory_space<vmem>>, vector<1x64x128xbf16>
    %59 = vector.shape_cast %58 : vector<1x64x128xbf16> to vector<64x128xbf16>
    %cst_40 = arith.constant dense<0.000000e+00> : vector<16x128xf32>
    %60 = tpu.matmul %57, %59, %cst_40 {dimension_numbers = #tpu.dot_dimension_numbers<[1], [0], [0], [1], [0, 0, 1, 1], [], []>} : vector<16x64xbf16>, vector<64x128xbf16>, vector<16x128xf32> -> vector<16x128xf32>
    %61 = arith.addf %51, %60 : vector<16x128xf32>
    %c0_i32_41 = arith.constant 0 : i32
    %62 = arith.addi %0, %c0_i32_41 : i32
    %63 = tpu.assume_multiple %62, 16 : i32
    %c0_42 = arith.constant 0 : index
    %c0_43 = arith.constant 0 : index
    %64 = arith.index_cast %63 : i32 to index
    %c0_44 = arith.constant 0 : index
    %65 = vector.load %arg2[%c0_42, %c0_43, %64, %c0_44] : memref<1x4x64x64xbf16, #tpu.memory_space<vmem>>, vector<1x1x32x64xbf16>
    %66 = vector.shape_cast %65 : vector<1x1x32x64xbf16> to vector<32x64xbf16>
    %67 = vector.extract_strided_slice %66 {offsets = [5, 0], sizes = [16, 64], strides = [1, 1]} : vector<32x64xbf16> to vector<16x64xbf16>
    %c6 = arith.constant 6 : index
    %c0_45 = arith.constant 0 : index
    %c0_46 = arith.constant 0 : index
    %68 = vector.load %arg3[%c6, %c0_45, %c0_46] : memref<9x64x128xbf16, #tpu.memory_space<vmem>>, vector<1x64x128xbf16>
    %69 = vector.shape_cast %68 : vector<1x64x128xbf16> to vector<64x128xbf16>
    %cst_47 = arith.constant dense<0.000000e+00> : vector<16x128xf32>
    %70 = tpu.matmul %67, %69, %cst_47 {dimension_numbers = #tpu.dot_dimension_numbers<[1], [0], [0], [1], [0, 0, 1, 1], [], []>} : vector<16x64xbf16>, vector<64x128xbf16>, vector<16x128xf32> -> vector<16x128xf32>
    %71 = arith.addf %61, %70 : vector<16x128xf32>
    %c0_i32_48 = arith.constant 0 : i32
    %72 = arith.addi %0, %c0_i32_48 : i32
    %73 = tpu.assume_multiple %72, 16 : i32
    %c0_49 = arith.constant 0 : index
    %c1_50 = arith.constant 1 : index
    %74 = arith.index_cast %73 : i32 to index
    %c0_51 = arith.constant 0 : index
    %75 = vector.load %arg2[%c0_49, %c1_50, %74, %c0_51] : memref<1x4x64x64xbf16, #tpu.memory_space<vmem>>, vector<1x1x32x64xbf16>
    %76 = vector.shape_cast %75 : vector<1x1x32x64xbf16> to vector<32x64xbf16>
    %77 = vector.extract_strided_slice %76 {offsets = [5, 0], sizes = [16, 64], strides = [1, 1]} : vector<32x64xbf16> to vector<16x64xbf16>
    %c7 = arith.constant 7 : index
    %c0_52 = arith.constant 0 : index
    %c0_53 = arith.constant 0 : index
    %78 = vector.load %arg3[%c7, %c0_52, %c0_53] : memref<9x64x128xbf16, #tpu.memory_space<vmem>>, vector<1x64x128xbf16>
    %79 = vector.shape_cast %78 : vector<1x64x128xbf16> to vector<64x128xbf16>
    %cst_54 = arith.constant dense<0.000000e+00> : vector<16x128xf32>
    %80 = tpu.matmul %77, %79, %cst_54 {dimension_numbers = #tpu.dot_dimension_numbers<[1], [0], [0], [1], [0, 0, 1, 1], [], []>} : vector<16x64xbf16>, vector<64x128xbf16>, vector<16x128xf32> -> vector<16x128xf32>
    %81 = arith.addf %71, %80 : vector<16x128xf32>
    %c0_i32_55 = arith.constant 0 : i32
    %82 = arith.addi %0, %c0_i32_55 : i32
    %83 = tpu.assume_multiple %82, 16 : i32
    %c0_56 = arith.constant 0 : index
    %c0_57 = arith.constant 0 : index
    %84 = arith.index_cast %83 : i32 to index
    %c0_58 = arith.constant 0 : index
    %85 = vector.load %arg2[%c0_56, %c0_57, %84, %c0_58] : memref<1x4x64x64xbf16, #tpu.memory_space<vmem>>, vector<1x1x32x64xbf16>
    %86 = vector.shape_cast %85 : vector<1x1x32x64xbf16> to vector<32x64xbf16>
    %87 = vector.extract_strided_slice %86 {offsets = [6, 0], sizes = [16, 64], strides = [1, 1]} : vector<32x64xbf16> to vector<16x64xbf16>
    %c8 = arith.constant 8 : index
    %c0_59 = arith.constant 0 : index
    %c0_60 = arith.constant 0 : index
    %88 = vector.load %arg3[%c8, %c0_59, %c0_60] : memref<9x64x128xbf16, #tpu.memory_space<vmem>>, vector<1x64x128xbf16>
    %89 = vector.shape_cast %88 : vector<1x64x128xbf16> to vector<64x128xbf16>
    %cst_61 = arith.constant dense<0.000000e+00> : vector<16x128xf32>
    %90 = tpu.matmul %87, %89, %cst_61 {dimension_numbers = #tpu.dot_dimension_numbers<[1], [0], [0], [1], [0, 0, 1, 1], [], []>} : vector<16x64xbf16>, vector<64x128xbf16>, vector<16x128xf32> -> vector<16x128xf32>
    %91 = arith.addf %81, %90 : vector<16x128xf32>
    %c0_62 = arith.constant 0 : index
    %c0_63 = arith.constant 0 : index
    %92 = vector.load %arg4[%c0_62, %c0_63] : memref<1x128xf32, #tpu.memory_space<vmem>>, vector<1x128xf32>
    %93 = vector.broadcast %92 : vector<1x128xf32> to vector<16x128xf32>
    %94 = arith.addf %91, %93 : vector<16x128xf32>
    %cst_64 = arith.constant 0.000000e+00 : f32
    %95 = vector.broadcast %cst_64 : f32 to vector<16x128xf32>
    %96 = arith.maximumf %94, %95 : vector<16x128xf32>
    %97 = arith.truncf %96 : vector<16x128xf32> to vector<16x128xbf16>
    %c0_65 = arith.constant 0 : index
    %c0_66 = arith.constant 0 : index
    %c0_67 = arith.constant 0 : index
    %98 = vector.load %arg5[%c0_65, %c0_66, %c0_67] : memref<1x16x128xbf16, #tpu.memory_space<vmem>>, vector<1x16x128xbf16>
    %99 = vector.shape_cast %98 : vector<1x16x128xbf16> to vector<16x128xbf16>
    %100 = vector.shape_cast %97 : vector<16x128xbf16> to vector<1x16x128xbf16>
    tpu.vector_store %arg5[%c0_65, %c0_66, %c0_67], %100 {strides = array<i32>} : memref<1x16x128xbf16, #tpu.memory_space<vmem>>, vector<1x16x128xbf16>,
    return
  }
  func.func @transform_0(%arg0: i32, %arg1: i32) -> (i32, i32, i32, i32) {
    %c0_i32 = arith.constant 0 : i32
    %c0_i32_0 = arith.constant 0 : i32
    %c0_i32_1 = arith.constant 0 : i32
    %c0_i32_2 = arith.constant 0 : i32
    return %arg0, %c0_i32, %c0_i32_0, %c0_i32_1 : i32, i32, i32, i32
  }
  func.func @transform_1(%arg0: i32, %arg1: i32) -> (i32, i32, i32) {
    %c0_i32 = arith.constant 0 : i32
    %c0_i32_0 = arith.constant 0 : i32
    %c0_i32_1 = arith.constant 0 : i32
    %c0_i32_2 = arith.constant 0 : i32
    return %c0_i32, %c0_i32_0, %c0_i32_1 : i32, i32, i32
  }
  func.func @transform_2(%arg0: i32, %arg1: i32) -> (i32, i32) {
    %c0_i32 = arith.constant 0 : i32
    %c0_i32_0 = arith.constant 0 : i32
    %c0_i32_1 = arith.constant 0 : i32
    return %c0_i32, %c0_i32_0 : i32, i32
  }
  func.func @transform_3(%arg0: i32, %arg1: i32) -> (i32, i32, i32) {
    %c0_i32 = arith.constant 0 : i32
    %c0_i32_0 = arith.constant 0 : i32
    return %arg0, %arg1, %c0_i32 : i32, i32, i32
  }
}

module attributes {stable_mosaic.version = 11 : i64} {
  func.func @_tap_conv_kernel(%arg0: i32, %arg1: i32, %arg2: memref<1x4x64x64xbf16, #tpu.memory_space<vmem>>, %arg3: memref<1x64x128xbf16, #tpu.memory_space<vmem>>, %arg4: memref<1x128xf32, #tpu.memory_space<vmem>>, %arg5: memref<1x16x128xbf16, #tpu.memory_space<vmem>>) attributes {dimension_semantics = [#tpu.dimension_semantics<parallel>, #tpu.dimension_semantics<parallel>], iteration_bounds = array<i64: 2, 2>, scalar_prefetch = 0 : i64, scratch_operands = 0 : i64, tpu.core_type = #tpu.core_type<tc>, window_params = [{transform_indices = @transform_0, window_bounds = array<i64: 1, 4, 64, 64>}, {pipeline_mode = #tpu.pipeline_mode<synchronous>, transform_indices = @transform_1, window_bounds = array<i64: 1, 64, 128>}, {pipeline_mode = #tpu.pipeline_mode<synchronous>, transform_indices = @transform_2, window_bounds = array<i64: 1, 128>}, {transform_indices = @transform_3, window_bounds = array<i64: 1, 16, 128>}]} {
    %c16_i32 = arith.constant 16 : i32
    %0 = arith.muli %arg1, %c16_i32 : i32
    %cst = arith.constant 0.000000e+00 : f32
    %1 = vector.broadcast %cst : f32 to vector<16x128xf32>
    %c0_i32 = arith.constant 0 : i32
    %2 = arith.addi %0, %c0_i32 : i32
    %3 = tpu.assume_multiple %2, 16 : i32
    %c0 = arith.constant 0 : index
    %c3 = arith.constant 3 : index
    %4 = arith.index_cast %3 : i32 to index
    %c0_0 = arith.constant 0 : index
    %5 = vector.load %arg2[%c0, %c3, %4, %c0_0] : memref<1x4x64x64xbf16, #tpu.memory_space<vmem>>, vector<1x1x32x64xbf16>
    %6 = vector.shape_cast %5 : vector<1x1x32x64xbf16> to vector<32x64xbf16>
    %7 = vector.extract_strided_slice %6 {offsets = [0, 0], sizes = [16, 64], strides = [1, 1]} : vector<32x64xbf16> to vector<16x64xbf16>
    %c0_1 = arith.constant 0 : index
    %c0_2 = arith.constant 0 : index
    %c0_3 = arith.constant 0 : index
    %8 = vector.load %arg3[%c0_1, %c0_2, %c0_3] : memref<1x64x128xbf16, #tpu.memory_space<vmem>>, vector<1x64x128xbf16>
    %9 = vector.shape_cast %8 : vector<1x64x128xbf16> to vector<64x128xbf16>
    %cst_4 = arith.constant dense<0.000000e+00> : vector<16x128xf32>
    %10 = tpu.matmul %7, %9, %cst_4 {dimension_numbers = #tpu.dot_dimension_numbers<[1], [0], [0], [1], [0, 0, 1, 1], [], []>} : vector<16x64xbf16>, vector<64x128xbf16>, vector<16x128xf32> -> vector<16x128xf32>
    %11 = arith.addf %1, %10 : vector<16x128xf32>
    %c0_5 = arith.constant 0 : index
    %c0_6 = arith.constant 0 : index
    %12 = vector.load %arg4[%c0_5, %c0_6] : memref<1x128xf32, #tpu.memory_space<vmem>>, vector<1x128xf32>
    %13 = vector.broadcast %12 : vector<1x128xf32> to vector<16x128xf32>
    %14 = arith.addf %11, %13 : vector<16x128xf32>
    %15 = arith.truncf %14 : vector<16x128xf32> to vector<16x128xbf16>
    %c0_7 = arith.constant 0 : index
    %c0_8 = arith.constant 0 : index
    %c0_9 = arith.constant 0 : index
    %16 = vector.load %arg5[%c0_7, %c0_8, %c0_9] : memref<1x16x128xbf16, #tpu.memory_space<vmem>>, vector<1x16x128xbf16>
    %17 = vector.shape_cast %16 : vector<1x16x128xbf16> to vector<16x128xbf16>
    %18 = vector.shape_cast %15 : vector<16x128xbf16> to vector<1x16x128xbf16>
    tpu.vector_store %arg5[%c0_7, %c0_8, %c0_9], %18 {strides = array<i32>} : memref<1x16x128xbf16, #tpu.memory_space<vmem>>, vector<1x16x128xbf16>,
    return
  }
  func.func @transform_0(%arg0: i32, %arg1: i32) -> (i32, i32, i32, i32) {
    %c0_i32 = arith.constant 0 : i32
    %c0_i32_0 = arith.constant 0 : i32
    %c0_i32_1 = arith.constant 0 : i32
    %c0_i32_2 = arith.constant 0 : i32
    return %arg0, %c0_i32, %c0_i32_0, %c0_i32_1 : i32, i32, i32, i32
  }
  func.func @transform_1(%arg0: i32, %arg1: i32) -> (i32, i32, i32) {
    %c0_i32 = arith.constant 0 : i32
    %c0_i32_0 = arith.constant 0 : i32
    %c0_i32_1 = arith.constant 0 : i32
    %c0_i32_2 = arith.constant 0 : i32
    return %c0_i32, %c0_i32_0, %c0_i32_1 : i32, i32, i32
  }
  func.func @transform_2(%arg0: i32, %arg1: i32) -> (i32, i32) {
    %c0_i32 = arith.constant 0 : i32
    %c0_i32_0 = arith.constant 0 : i32
    %c0_i32_1 = arith.constant 0 : i32
    return %c0_i32, %c0_i32_0 : i32, i32
  }
  func.func @transform_3(%arg0: i32, %arg1: i32) -> (i32, i32, i32) {
    %c0_i32 = arith.constant 0 : i32
    %c0_i32_0 = arith.constant 0 : i32
    return %arg0, %arg1, %c0_i32 : i32, i32, i32
  }
}

module attributes {stable_mosaic.version = 11 : i64} {
  func.func @_tap_conv_res_kernel(%arg0: i32, %arg1: i32, %arg2: memref<1x1x64x128xbf16, #tpu.memory_space<vmem>>, %arg3: memref<9x128x128xbf16, #tpu.memory_space<vmem>>, %arg4: memref<1x128xf32, #tpu.memory_space<vmem>>, %arg5: memref<1x16x128xbf16, #tpu.memory_space<vmem>>, %arg6: memref<1x16x128xbf16, #tpu.memory_space<vmem>>) attributes {dimension_semantics = [#tpu.dimension_semantics<parallel>, #tpu.dimension_semantics<parallel>], iteration_bounds = array<i64: 2, 2>, scalar_prefetch = 0 : i64, scratch_operands = 0 : i64, tpu.core_type = #tpu.core_type<tc>, window_params = [{transform_indices = @transform_0, window_bounds = array<i64: 1, 1, 64, 128>}, {pipeline_mode = #tpu.pipeline_mode<synchronous>, transform_indices = @transform_1, window_bounds = array<i64: 9, 128, 128>}, {pipeline_mode = #tpu.pipeline_mode<synchronous>, transform_indices = @transform_2, window_bounds = array<i64: 1, 128>}, {transform_indices = @transform_3, window_bounds = array<i64: 1, 16, 128>}, {transform_indices = @transform_4, window_bounds = array<i64: 1, 16, 128>}]} {
    %c16_i32 = arith.constant 16 : i32
    %0 = arith.muli %arg1, %c16_i32 : i32
    %cst = arith.constant 0.000000e+00 : f32
    %1 = vector.broadcast %cst : f32 to vector<16x128xf32>
    %c0_i32 = arith.constant 0 : i32
    %2 = arith.addi %0, %c0_i32 : i32
    %3 = tpu.assume_multiple %2, 16 : i32
    %c0 = arith.constant 0 : index
    %c0_0 = arith.constant 0 : index
    %4 = arith.index_cast %3 : i32 to index
    %c0_1 = arith.constant 0 : index
    %5 = vector.load %arg2[%c0, %c0_0, %4, %c0_1] : memref<1x1x64x128xbf16, #tpu.memory_space<vmem>>, vector<1x1x32x128xbf16>
    %6 = vector.shape_cast %5 : vector<1x1x32x128xbf16> to vector<32x128xbf16>
    %7 = vector.extract_strided_slice %6 {offsets = [0, 0], sizes = [16, 128], strides = [1, 1]} : vector<32x128xbf16> to vector<16x128xbf16>
    %c0_2 = arith.constant 0 : index
    %c0_3 = arith.constant 0 : index
    %c0_4 = arith.constant 0 : index
    %8 = vector.load %arg3[%c0_2, %c0_3, %c0_4] : memref<9x128x128xbf16, #tpu.memory_space<vmem>>, vector<1x128x128xbf16>
    %9 = vector.shape_cast %8 : vector<1x128x128xbf16> to vector<128x128xbf16>
    %cst_5 = arith.constant dense<0.000000e+00> : vector<16x128xf32>
    %10 = tpu.matmul %7, %9, %cst_5 {dimension_numbers = #tpu.dot_dimension_numbers<[1], [0], [0], [1], [0, 0, 1, 1], [], []>} : vector<16x128xbf16>, vector<128x128xbf16>, vector<16x128xf32> -> vector<16x128xf32>
    %11 = arith.addf %1, %10 : vector<16x128xf32>
    %c0_i32_6 = arith.constant 0 : i32
    %12 = arith.addi %0, %c0_i32_6 : i32
    %13 = tpu.assume_multiple %12, 16 : i32
    %c0_7 = arith.constant 0 : index
    %c0_8 = arith.constant 0 : index
    %14 = arith.index_cast %13 : i32 to index
    %c0_9 = arith.constant 0 : index
    %15 = vector.load %arg2[%c0_7, %c0_8, %14, %c0_9] : memref<1x1x64x128xbf16, #tpu.memory_space<vmem>>, vector<1x1x32x128xbf16>
    %16 = vector.shape_cast %15 : vector<1x1x32x128xbf16> to vector<32x128xbf16>
    %17 = vector.extract_strided_slice %16 {offsets = [1, 0], sizes = [16, 128], strides = [1, 1]} : vector<32x128xbf16> to vector<16x128xbf16>
    %c1 = arith.constant 1 : index
    %c0_10 = arith.constant 0 : index
    %c0_11 = arith.constant 0 : index
    %18 = vector.load %arg3[%c1, %c0_10, %c0_11] : memref<9x128x128xbf16, #tpu.memory_space<vmem>>, vector<1x128x128xbf16>
    %19 = vector.shape_cast %18 : vector<1x128x128xbf16> to vector<128x128xbf16>
    %cst_12 = arith.constant dense<0.000000e+00> : vector<16x128xf32>
    %20 = tpu.matmul %17, %19, %cst_12 {dimension_numbers = #tpu.dot_dimension_numbers<[1], [0], [0], [1], [0, 0, 1, 1], [], []>} : vector<16x128xbf16>, vector<128x128xbf16>, vector<16x128xf32> -> vector<16x128xf32>
    %21 = arith.addf %11, %20 : vector<16x128xf32>
    %c0_i32_13 = arith.constant 0 : i32
    %22 = arith.addi %0, %c0_i32_13 : i32
    %23 = tpu.assume_multiple %22, 16 : i32
    %c0_14 = arith.constant 0 : index
    %c0_15 = arith.constant 0 : index
    %24 = arith.index_cast %23 : i32 to index
    %c0_16 = arith.constant 0 : index
    %25 = vector.load %arg2[%c0_14, %c0_15, %24, %c0_16] : memref<1x1x64x128xbf16, #tpu.memory_space<vmem>>, vector<1x1x32x128xbf16>
    %26 = vector.shape_cast %25 : vector<1x1x32x128xbf16> to vector<32x128xbf16>
    %27 = vector.extract_strided_slice %26 {offsets = [2, 0], sizes = [16, 128], strides = [1, 1]} : vector<32x128xbf16> to vector<16x128xbf16>
    %c2 = arith.constant 2 : index
    %c0_17 = arith.constant 0 : index
    %c0_18 = arith.constant 0 : index
    %28 = vector.load %arg3[%c2, %c0_17, %c0_18] : memref<9x128x128xbf16, #tpu.memory_space<vmem>>, vector<1x128x128xbf16>
    %29 = vector.shape_cast %28 : vector<1x128x128xbf16> to vector<128x128xbf16>
    %cst_19 = arith.constant dense<0.000000e+00> : vector<16x128xf32>
    %30 = tpu.matmul %27, %29, %cst_19 {dimension_numbers = #tpu.dot_dimension_numbers<[1], [0], [0], [1], [0, 0, 1, 1], [], []>} : vector<16x128xbf16>, vector<128x128xbf16>, vector<16x128xf32> -> vector<16x128xf32>
    %31 = arith.addf %21, %30 : vector<16x128xf32>
    %c0_i32_20 = arith.constant 0 : i32
    %32 = arith.addi %0, %c0_i32_20 : i32
    %33 = tpu.assume_multiple %32, 16 : i32
    %c0_21 = arith.constant 0 : index
    %c0_22 = arith.constant 0 : index
    %34 = arith.index_cast %33 : i32 to index
    %c0_23 = arith.constant 0 : index
    %35 = vector.load %arg2[%c0_21, %c0_22, %34, %c0_23] : memref<1x1x64x128xbf16, #tpu.memory_space<vmem>>, vector<1x1x32x128xbf16>
    %36 = vector.shape_cast %35 : vector<1x1x32x128xbf16> to vector<32x128xbf16>
    %37 = vector.extract_strided_slice %36 {offsets = [6, 0], sizes = [16, 128], strides = [1, 1]} : vector<32x128xbf16> to vector<16x128xbf16>
    %c3 = arith.constant 3 : index
    %c0_24 = arith.constant 0 : index
    %c0_25 = arith.constant 0 : index
    %38 = vector.load %arg3[%c3, %c0_24, %c0_25] : memref<9x128x128xbf16, #tpu.memory_space<vmem>>, vector<1x128x128xbf16>
    %39 = vector.shape_cast %38 : vector<1x128x128xbf16> to vector<128x128xbf16>
    %cst_26 = arith.constant dense<0.000000e+00> : vector<16x128xf32>
    %40 = tpu.matmul %37, %39, %cst_26 {dimension_numbers = #tpu.dot_dimension_numbers<[1], [0], [0], [1], [0, 0, 1, 1], [], []>} : vector<16x128xbf16>, vector<128x128xbf16>, vector<16x128xf32> -> vector<16x128xf32>
    %41 = arith.addf %31, %40 : vector<16x128xf32>
    %c0_i32_27 = arith.constant 0 : i32
    %42 = arith.addi %0, %c0_i32_27 : i32
    %43 = tpu.assume_multiple %42, 16 : i32
    %c0_28 = arith.constant 0 : index
    %c0_29 = arith.constant 0 : index
    %44 = arith.index_cast %43 : i32 to index
    %c0_30 = arith.constant 0 : index
    %45 = vector.load %arg2[%c0_28, %c0_29, %44, %c0_30] : memref<1x1x64x128xbf16, #tpu.memory_space<vmem>>, vector<1x1x32x128xbf16>
    %46 = vector.shape_cast %45 : vector<1x1x32x128xbf16> to vector<32x128xbf16>
    %47 = vector.extract_strided_slice %46 {offsets = [7, 0], sizes = [16, 128], strides = [1, 1]} : vector<32x128xbf16> to vector<16x128xbf16>
    %c4 = arith.constant 4 : index
    %c0_31 = arith.constant 0 : index
    %c0_32 = arith.constant 0 : index
    %48 = vector.load %arg3[%c4, %c0_31, %c0_32] : memref<9x128x128xbf16, #tpu.memory_space<vmem>>, vector<1x128x128xbf16>
    %49 = vector.shape_cast %48 : vector<1x128x128xbf16> to vector<128x128xbf16>
    %cst_33 = arith.constant dense<0.000000e+00> : vector<16x128xf32>
    %50 = tpu.matmul %47, %49, %cst_33 {dimension_numbers = #tpu.dot_dimension_numbers<[1], [0], [0], [1], [0, 0, 1, 1], [], []>} : vector<16x128xbf16>, vector<128x128xbf16>, vector<16x128xf32> -> vector<16x128xf32>
    %51 = arith.addf %41, %50 : vector<16x128xf32>
    %c0_i32_34 = arith.constant 0 : i32
    %52 = arith.addi %0, %c0_i32_34 : i32
    %53 = tpu.assume_multiple %52, 16 : i32
    %c0_35 = arith.constant 0 : index
    %c0_36 = arith.constant 0 : index
    %54 = arith.index_cast %53 : i32 to index
    %c0_37 = arith.constant 0 : index
    %55 = vector.load %arg2[%c0_35, %c0_36, %54, %c0_37] : memref<1x1x64x128xbf16, #tpu.memory_space<vmem>>, vector<1x1x32x128xbf16>
    %56 = vector.shape_cast %55 : vector<1x1x32x128xbf16> to vector<32x128xbf16>
    %57 = vector.extract_strided_slice %56 {offsets = [8, 0], sizes = [16, 128], strides = [1, 1]} : vector<32x128xbf16> to vector<16x128xbf16>
    %c5 = arith.constant 5 : index
    %c0_38 = arith.constant 0 : index
    %c0_39 = arith.constant 0 : index
    %58 = vector.load %arg3[%c5, %c0_38, %c0_39] : memref<9x128x128xbf16, #tpu.memory_space<vmem>>, vector<1x128x128xbf16>
    %59 = vector.shape_cast %58 : vector<1x128x128xbf16> to vector<128x128xbf16>
    %cst_40 = arith.constant dense<0.000000e+00> : vector<16x128xf32>
    %60 = tpu.matmul %57, %59, %cst_40 {dimension_numbers = #tpu.dot_dimension_numbers<[1], [0], [0], [1], [0, 0, 1, 1], [], []>} : vector<16x128xbf16>, vector<128x128xbf16>, vector<16x128xf32> -> vector<16x128xf32>
    %61 = arith.addf %51, %60 : vector<16x128xf32>
    %c0_i32_41 = arith.constant 0 : i32
    %62 = arith.addi %0, %c0_i32_41 : i32
    %63 = tpu.assume_multiple %62, 16 : i32
    %c0_42 = arith.constant 0 : index
    %c0_43 = arith.constant 0 : index
    %64 = arith.index_cast %63 : i32 to index
    %c0_44 = arith.constant 0 : index
    %65 = vector.load %arg2[%c0_42, %c0_43, %64, %c0_44] : memref<1x1x64x128xbf16, #tpu.memory_space<vmem>>, vector<1x1x32x128xbf16>
    %66 = vector.shape_cast %65 : vector<1x1x32x128xbf16> to vector<32x128xbf16>
    %67 = vector.extract_strided_slice %66 {offsets = [12, 0], sizes = [16, 128], strides = [1, 1]} : vector<32x128xbf16> to vector<16x128xbf16>
    %c6 = arith.constant 6 : index
    %c0_45 = arith.constant 0 : index
    %c0_46 = arith.constant 0 : index
    %68 = vector.load %arg3[%c6, %c0_45, %c0_46] : memref<9x128x128xbf16, #tpu.memory_space<vmem>>, vector<1x128x128xbf16>
    %69 = vector.shape_cast %68 : vector<1x128x128xbf16> to vector<128x128xbf16>
    %cst_47 = arith.constant dense<0.000000e+00> : vector<16x128xf32>
    %70 = tpu.matmul %67, %69, %cst_47 {dimension_numbers = #tpu.dot_dimension_numbers<[1], [0], [0], [1], [0, 0, 1, 1], [], []>} : vector<16x128xbf16>, vector<128x128xbf16>, vector<16x128xf32> -> vector<16x128xf32>
    %71 = arith.addf %61, %70 : vector<16x128xf32>
    %c0_i32_48 = arith.constant 0 : i32
    %72 = arith.addi %0, %c0_i32_48 : i32
    %73 = tpu.assume_multiple %72, 16 : i32
    %c0_49 = arith.constant 0 : index
    %c0_50 = arith.constant 0 : index
    %74 = arith.index_cast %73 : i32 to index
    %c0_51 = arith.constant 0 : index
    %75 = vector.load %arg2[%c0_49, %c0_50, %74, %c0_51] : memref<1x1x64x128xbf16, #tpu.memory_space<vmem>>, vector<1x1x32x128xbf16>
    %76 = vector.shape_cast %75 : vector<1x1x32x128xbf16> to vector<32x128xbf16>
    %77 = vector.extract_strided_slice %76 {offsets = [13, 0], sizes = [16, 128], strides = [1, 1]} : vector<32x128xbf16> to vector<16x128xbf16>
    %c7 = arith.constant 7 : index
    %c0_52 = arith.constant 0 : index
    %c0_53 = arith.constant 0 : index
    %78 = vector.load %arg3[%c7, %c0_52, %c0_53] : memref<9x128x128xbf16, #tpu.memory_space<vmem>>, vector<1x128x128xbf16>
    %79 = vector.shape_cast %78 : vector<1x128x128xbf16> to vector<128x128xbf16>
    %cst_54 = arith.constant dense<0.000000e+00> : vector<16x128xf32>
    %80 = tpu.matmul %77, %79, %cst_54 {dimension_numbers = #tpu.dot_dimension_numbers<[1], [0], [0], [1], [0, 0, 1, 1], [], []>} : vector<16x128xbf16>, vector<128x128xbf16>, vector<16x128xf32> -> vector<16x128xf32>
    %81 = arith.addf %71, %80 : vector<16x128xf32>
    %c0_i32_55 = arith.constant 0 : i32
    %82 = arith.addi %0, %c0_i32_55 : i32
    %83 = tpu.assume_multiple %82, 16 : i32
    %c0_56 = arith.constant 0 : index
    %c0_57 = arith.constant 0 : index
    %84 = arith.index_cast %83 : i32 to index
    %c0_58 = arith.constant 0 : index
    %85 = vector.load %arg2[%c0_56, %c0_57, %84, %c0_58] : memref<1x1x64x128xbf16, #tpu.memory_space<vmem>>, vector<1x1x32x128xbf16>
    %86 = vector.shape_cast %85 : vector<1x1x32x128xbf16> to vector<32x128xbf16>
    %87 = vector.extract_strided_slice %86 {offsets = [14, 0], sizes = [16, 128], strides = [1, 1]} : vector<32x128xbf16> to vector<16x128xbf16>
    %c8 = arith.constant 8 : index
    %c0_59 = arith.constant 0 : index
    %c0_60 = arith.constant 0 : index
    %88 = vector.load %arg3[%c8, %c0_59, %c0_60] : memref<9x128x128xbf16, #tpu.memory_space<vmem>>, vector<1x128x128xbf16>
    %89 = vector.shape_cast %88 : vector<1x128x128xbf16> to vector<128x128xbf16>
    %cst_61 = arith.constant dense<0.000000e+00> : vector<16x128xf32>
    %90 = tpu.matmul %87, %89, %cst_61 {dimension_numbers = #tpu.dot_dimension_numbers<[1], [0], [0], [1], [0, 0, 1, 1], [], []>} : vector<16x128xbf16>, vector<128x128xbf16>, vector<16x128xf32> -> vector<16x128xf32>
    %91 = arith.addf %81, %90 : vector<16x128xf32>
    %c0_62 = arith.constant 0 : index
    %c0_63 = arith.constant 0 : index
    %92 = vector.load %arg4[%c0_62, %c0_63] : memref<1x128xf32, #tpu.memory_space<vmem>>, vector<1x128xf32>
    %93 = vector.broadcast %92 : vector<1x128xf32> to vector<16x128xf32>
    %94 = arith.addf %91, %93 : vector<16x128xf32>
    %c0_64 = arith.constant 0 : index
    %c0_65 = arith.constant 0 : index
    %c0_66 = arith.constant 0 : index
    %95 = vector.load %arg5[%c0_64, %c0_65, %c0_66] : memref<1x16x128xbf16, #tpu.memory_space<vmem>>, vector<1x16x128xbf16>
    %96 = vector.shape_cast %95 : vector<1x16x128xbf16> to vector<16x128xbf16>
    %97 = arith.extf %96 : vector<16x128xbf16> to vector<16x128xf32>
    %98 = arith.addf %94, %97 : vector<16x128xf32>
    %cst_67 = arith.constant 0.000000e+00 : f32
    %99 = vector.broadcast %cst_67 : f32 to vector<16x128xf32>
    %100 = arith.maximumf %98, %99 : vector<16x128xf32>
    %101 = arith.truncf %100 : vector<16x128xf32> to vector<16x128xbf16>
    %c0_68 = arith.constant 0 : index
    %c0_69 = arith.constant 0 : index
    %c0_70 = arith.constant 0 : index
    %102 = vector.load %arg6[%c0_68, %c0_69, %c0_70] : memref<1x16x128xbf16, #tpu.memory_space<vmem>>, vector<1x16x128xbf16>
    %103 = vector.shape_cast %102 : vector<1x16x128xbf16> to vector<16x128xbf16>
    %104 = vector.shape_cast %101 : vector<16x128xbf16> to vector<1x16x128xbf16>
    tpu.vector_store %arg6[%c0_68, %c0_69, %c0_70], %104 {strides = array<i32>} : memref<1x16x128xbf16, #tpu.memory_space<vmem>>, vector<1x16x128xbf16>,
    return
  }
  func.func @transform_0(%arg0: i32, %arg1: i32) -> (i32, i32, i32, i32) {
    %c0_i32 = arith.constant 0 : i32
    %c0_i32_0 = arith.constant 0 : i32
    %c0_i32_1 = arith.constant 0 : i32
    %c0_i32_2 = arith.constant 0 : i32
    return %arg0, %c0_i32, %c0_i32_0, %c0_i32_1 : i32, i32, i32, i32
  }
  func.func @transform_1(%arg0: i32, %arg1: i32) -> (i32, i32, i32) {
    %c0_i32 = arith.constant 0 : i32
    %c0_i32_0 = arith.constant 0 : i32
    %c0_i32_1 = arith.constant 0 : i32
    %c0_i32_2 = arith.constant 0 : i32
    return %c0_i32, %c0_i32_0, %c0_i32_1 : i32, i32, i32
  }
  func.func @transform_2(%arg0: i32, %arg1: i32) -> (i32, i32) {
    %c0_i32 = arith.constant 0 : i32
    %c0_i32_0 = arith.constant 0 : i32
    %c0_i32_1 = arith.constant 0 : i32
    return %c0_i32, %c0_i32_0 : i32, i32
  }
  func.func @transform_3(%arg0: i32, %arg1: i32) -> (i32, i32, i32) {
    %c0_i32 = arith.constant 0 : i32
    %c0_i32_0 = arith.constant 0 : i32
    return %arg0, %arg1, %c0_i32 : i32, i32, i32
  }
  func.func @transform_4(%arg0: i32, %arg1: i32) -> (i32, i32, i32) {
    %c0_i32 = arith.constant 0 : i32
    %c0_i32_0 = arith.constant 0 : i32
    return %arg0, %arg1, %c0_i32 : i32, i32, i32
  }
}

module attributes {stable_mosaic.version = 11 : i64} {
  func.func @_tap_conv_kernel(%arg0: i32, %arg1: i32, %arg2: memref<1x1x64x128xbf16, #tpu.memory_space<vmem>>, %arg3: memref<9x128x128xbf16, #tpu.memory_space<vmem>>, %arg4: memref<1x128xf32, #tpu.memory_space<vmem>>, %arg5: memref<1x16x128xbf16, #tpu.memory_space<vmem>>) attributes {dimension_semantics = [#tpu.dimension_semantics<parallel>, #tpu.dimension_semantics<parallel>], iteration_bounds = array<i64: 2, 2>, scalar_prefetch = 0 : i64, scratch_operands = 0 : i64, tpu.core_type = #tpu.core_type<tc>, window_params = [{transform_indices = @transform_0, window_bounds = array<i64: 1, 1, 64, 128>}, {pipeline_mode = #tpu.pipeline_mode<synchronous>, transform_indices = @transform_1, window_bounds = array<i64: 9, 128, 128>}, {pipeline_mode = #tpu.pipeline_mode<synchronous>, transform_indices = @transform_2, window_bounds = array<i64: 1, 128>}, {transform_indices = @transform_3, window_bounds = array<i64: 1, 16, 128>}]} {
    %c16_i32 = arith.constant 16 : i32
    %0 = arith.muli %arg1, %c16_i32 : i32
    %cst = arith.constant 0.000000e+00 : f32
    %1 = vector.broadcast %cst : f32 to vector<16x128xf32>
    %c0_i32 = arith.constant 0 : i32
    %2 = arith.addi %0, %c0_i32 : i32
    %3 = tpu.assume_multiple %2, 16 : i32
    %c0 = arith.constant 0 : index
    %c0_0 = arith.constant 0 : index
    %4 = arith.index_cast %3 : i32 to index
    %c0_1 = arith.constant 0 : index
    %5 = vector.load %arg2[%c0, %c0_0, %4, %c0_1] : memref<1x1x64x128xbf16, #tpu.memory_space<vmem>>, vector<1x1x32x128xbf16>
    %6 = vector.shape_cast %5 : vector<1x1x32x128xbf16> to vector<32x128xbf16>
    %7 = vector.extract_strided_slice %6 {offsets = [0, 0], sizes = [16, 128], strides = [1, 1]} : vector<32x128xbf16> to vector<16x128xbf16>
    %c0_2 = arith.constant 0 : index
    %c0_3 = arith.constant 0 : index
    %c0_4 = arith.constant 0 : index
    %8 = vector.load %arg3[%c0_2, %c0_3, %c0_4] : memref<9x128x128xbf16, #tpu.memory_space<vmem>>, vector<1x128x128xbf16>
    %9 = vector.shape_cast %8 : vector<1x128x128xbf16> to vector<128x128xbf16>
    %cst_5 = arith.constant dense<0.000000e+00> : vector<16x128xf32>
    %10 = tpu.matmul %7, %9, %cst_5 {dimension_numbers = #tpu.dot_dimension_numbers<[1], [0], [0], [1], [0, 0, 1, 1], [], []>} : vector<16x128xbf16>, vector<128x128xbf16>, vector<16x128xf32> -> vector<16x128xf32>
    %11 = arith.addf %1, %10 : vector<16x128xf32>
    %c0_i32_6 = arith.constant 0 : i32
    %12 = arith.addi %0, %c0_i32_6 : i32
    %13 = tpu.assume_multiple %12, 16 : i32
    %c0_7 = arith.constant 0 : index
    %c0_8 = arith.constant 0 : index
    %14 = arith.index_cast %13 : i32 to index
    %c0_9 = arith.constant 0 : index
    %15 = vector.load %arg2[%c0_7, %c0_8, %14, %c0_9] : memref<1x1x64x128xbf16, #tpu.memory_space<vmem>>, vector<1x1x32x128xbf16>
    %16 = vector.shape_cast %15 : vector<1x1x32x128xbf16> to vector<32x128xbf16>
    %17 = vector.extract_strided_slice %16 {offsets = [1, 0], sizes = [16, 128], strides = [1, 1]} : vector<32x128xbf16> to vector<16x128xbf16>
    %c1 = arith.constant 1 : index
    %c0_10 = arith.constant 0 : index
    %c0_11 = arith.constant 0 : index
    %18 = vector.load %arg3[%c1, %c0_10, %c0_11] : memref<9x128x128xbf16, #tpu.memory_space<vmem>>, vector<1x128x128xbf16>
    %19 = vector.shape_cast %18 : vector<1x128x128xbf16> to vector<128x128xbf16>
    %cst_12 = arith.constant dense<0.000000e+00> : vector<16x128xf32>
    %20 = tpu.matmul %17, %19, %cst_12 {dimension_numbers = #tpu.dot_dimension_numbers<[1], [0], [0], [1], [0, 0, 1, 1], [], []>} : vector<16x128xbf16>, vector<128x128xbf16>, vector<16x128xf32> -> vector<16x128xf32>
    %21 = arith.addf %11, %20 : vector<16x128xf32>
    %c0_i32_13 = arith.constant 0 : i32
    %22 = arith.addi %0, %c0_i32_13 : i32
    %23 = tpu.assume_multiple %22, 16 : i32
    %c0_14 = arith.constant 0 : index
    %c0_15 = arith.constant 0 : index
    %24 = arith.index_cast %23 : i32 to index
    %c0_16 = arith.constant 0 : index
    %25 = vector.load %arg2[%c0_14, %c0_15, %24, %c0_16] : memref<1x1x64x128xbf16, #tpu.memory_space<vmem>>, vector<1x1x32x128xbf16>
    %26 = vector.shape_cast %25 : vector<1x1x32x128xbf16> to vector<32x128xbf16>
    %27 = vector.extract_strided_slice %26 {offsets = [2, 0], sizes = [16, 128], strides = [1, 1]} : vector<32x128xbf16> to vector<16x128xbf16>
    %c2 = arith.constant 2 : index
    %c0_17 = arith.constant 0 : index
    %c0_18 = arith.constant 0 : index
    %28 = vector.load %arg3[%c2, %c0_17, %c0_18] : memref<9x128x128xbf16, #tpu.memory_space<vmem>>, vector<1x128x128xbf16>
    %29 = vector.shape_cast %28 : vector<1x128x128xbf16> to vector<128x128xbf16>
    %cst_19 = arith.constant dense<0.000000e+00> : vector<16x128xf32>
    %30 = tpu.matmul %27, %29, %cst_19 {dimension_numbers = #tpu.dot_dimension_numbers<[1], [0], [0], [1], [0, 0, 1, 1], [], []>} : vector<16x128xbf16>, vector<128x128xbf16>, vector<16x128xf32> -> vector<16x128xf32>
    %31 = arith.addf %21, %30 : vector<16x128xf32>
    %c0_i32_20 = arith.constant 0 : i32
    %32 = arith.addi %0, %c0_i32_20 : i32
    %33 = tpu.assume_multiple %32, 16 : i32
    %c0_21 = arith.constant 0 : index
    %c0_22 = arith.constant 0 : index
    %34 = arith.index_cast %33 : i32 to index
    %c0_23 = arith.constant 0 : index
    %35 = vector.load %arg2[%c0_21, %c0_22, %34, %c0_23] : memref<1x1x64x128xbf16, #tpu.memory_space<vmem>>, vector<1x1x32x128xbf16>
    %36 = vector.shape_cast %35 : vector<1x1x32x128xbf16> to vector<32x128xbf16>
    %37 = vector.extract_strided_slice %36 {offsets = [6, 0], sizes = [16, 128], strides = [1, 1]} : vector<32x128xbf16> to vector<16x128xbf16>
    %c3 = arith.constant 3 : index
    %c0_24 = arith.constant 0 : index
    %c0_25 = arith.constant 0 : index
    %38 = vector.load %arg3[%c3, %c0_24, %c0_25] : memref<9x128x128xbf16, #tpu.memory_space<vmem>>, vector<1x128x128xbf16>
    %39 = vector.shape_cast %38 : vector<1x128x128xbf16> to vector<128x128xbf16>
    %cst_26 = arith.constant dense<0.000000e+00> : vector<16x128xf32>
    %40 = tpu.matmul %37, %39, %cst_26 {dimension_numbers = #tpu.dot_dimension_numbers<[1], [0], [0], [1], [0, 0, 1, 1], [], []>} : vector<16x128xbf16>, vector<128x128xbf16>, vector<16x128xf32> -> vector<16x128xf32>
    %41 = arith.addf %31, %40 : vector<16x128xf32>
    %c0_i32_27 = arith.constant 0 : i32
    %42 = arith.addi %0, %c0_i32_27 : i32
    %43 = tpu.assume_multiple %42, 16 : i32
    %c0_28 = arith.constant 0 : index
    %c0_29 = arith.constant 0 : index
    %44 = arith.index_cast %43 : i32 to index
    %c0_30 = arith.constant 0 : index
    %45 = vector.load %arg2[%c0_28, %c0_29, %44, %c0_30] : memref<1x1x64x128xbf16, #tpu.memory_space<vmem>>, vector<1x1x32x128xbf16>
    %46 = vector.shape_cast %45 : vector<1x1x32x128xbf16> to vector<32x128xbf16>
    %47 = vector.extract_strided_slice %46 {offsets = [7, 0], sizes = [16, 128], strides = [1, 1]} : vector<32x128xbf16> to vector<16x128xbf16>
    %c4 = arith.constant 4 : index
    %c0_31 = arith.constant 0 : index
    %c0_32 = arith.constant 0 : index
    %48 = vector.load %arg3[%c4, %c0_31, %c0_32] : memref<9x128x128xbf16, #tpu.memory_space<vmem>>, vector<1x128x128xbf16>
    %49 = vector.shape_cast %48 : vector<1x128x128xbf16> to vector<128x128xbf16>
    %cst_33 = arith.constant dense<0.000000e+00> : vector<16x128xf32>
    %50 = tpu.matmul %47, %49, %cst_33 {dimension_numbers = #tpu.dot_dimension_numbers<[1], [0], [0], [1], [0, 0, 1, 1], [], []>} : vector<16x128xbf16>, vector<128x128xbf16>, vector<16x128xf32> -> vector<16x128xf32>
    %51 = arith.addf %41, %50 : vector<16x128xf32>
    %c0_i32_34 = arith.constant 0 : i32
    %52 = arith.addi %0, %c0_i32_34 : i32
    %53 = tpu.assume_multiple %52, 16 : i32
    %c0_35 = arith.constant 0 : index
    %c0_36 = arith.constant 0 : index
    %54 = arith.index_cast %53 : i32 to index
    %c0_37 = arith.constant 0 : index
    %55 = vector.load %arg2[%c0_35, %c0_36, %54, %c0_37] : memref<1x1x64x128xbf16, #tpu.memory_space<vmem>>, vector<1x1x32x128xbf16>
    %56 = vector.shape_cast %55 : vector<1x1x32x128xbf16> to vector<32x128xbf16>
    %57 = vector.extract_strided_slice %56 {offsets = [8, 0], sizes = [16, 128], strides = [1, 1]} : vector<32x128xbf16> to vector<16x128xbf16>
    %c5 = arith.constant 5 : index
    %c0_38 = arith.constant 0 : index
    %c0_39 = arith.constant 0 : index
    %58 = vector.load %arg3[%c5, %c0_38, %c0_39] : memref<9x128x128xbf16, #tpu.memory_space<vmem>>, vector<1x128x128xbf16>
    %59 = vector.shape_cast %58 : vector<1x128x128xbf16> to vector<128x128xbf16>
    %cst_40 = arith.constant dense<0.000000e+00> : vector<16x128xf32>
    %60 = tpu.matmul %57, %59, %cst_40 {dimension_numbers = #tpu.dot_dimension_numbers<[1], [0], [0], [1], [0, 0, 1, 1], [], []>} : vector<16x128xbf16>, vector<128x128xbf16>, vector<16x128xf32> -> vector<16x128xf32>
    %61 = arith.addf %51, %60 : vector<16x128xf32>
    %c0_i32_41 = arith.constant 0 : i32
    %62 = arith.addi %0, %c0_i32_41 : i32
    %63 = tpu.assume_multiple %62, 16 : i32
    %c0_42 = arith.constant 0 : index
    %c0_43 = arith.constant 0 : index
    %64 = arith.index_cast %63 : i32 to index
    %c0_44 = arith.constant 0 : index
    %65 = vector.load %arg2[%c0_42, %c0_43, %64, %c0_44] : memref<1x1x64x128xbf16, #tpu.memory_space<vmem>>, vector<1x1x32x128xbf16>
    %66 = vector.shape_cast %65 : vector<1x1x32x128xbf16> to vector<32x128xbf16>
    %67 = vector.extract_strided_slice %66 {offsets = [12, 0], sizes = [16, 128], strides = [1, 1]} : vector<32x128xbf16> to vector<16x128xbf16>
    %c6 = arith.constant 6 : index
    %c0_45 = arith.constant 0 : index
    %c0_46 = arith.constant 0 : index
    %68 = vector.load %arg3[%c6, %c0_45, %c0_46] : memref<9x128x128xbf16, #tpu.memory_space<vmem>>, vector<1x128x128xbf16>
    %69 = vector.shape_cast %68 : vector<1x128x128xbf16> to vector<128x128xbf16>
    %cst_47 = arith.constant dense<0.000000e+00> : vector<16x128xf32>
    %70 = tpu.matmul %67, %69, %cst_47 {dimension_numbers = #tpu.dot_dimension_numbers<[1], [0], [0], [1], [0, 0, 1, 1], [], []>} : vector<16x128xbf16>, vector<128x128xbf16>, vector<16x128xf32> -> vector<16x128xf32>
    %71 = arith.addf %61, %70 : vector<16x128xf32>
    %c0_i32_48 = arith.constant 0 : i32
    %72 = arith.addi %0, %c0_i32_48 : i32
    %73 = tpu.assume_multiple %72, 16 : i32
    %c0_49 = arith.constant 0 : index
    %c0_50 = arith.constant 0 : index
    %74 = arith.index_cast %73 : i32 to index
    %c0_51 = arith.constant 0 : index
    %75 = vector.load %arg2[%c0_49, %c0_50, %74, %c0_51] : memref<1x1x64x128xbf16, #tpu.memory_space<vmem>>, vector<1x1x32x128xbf16>
    %76 = vector.shape_cast %75 : vector<1x1x32x128xbf16> to vector<32x128xbf16>
    %77 = vector.extract_strided_slice %76 {offsets = [13, 0], sizes = [16, 128], strides = [1, 1]} : vector<32x128xbf16> to vector<16x128xbf16>
    %c7 = arith.constant 7 : index
    %c0_52 = arith.constant 0 : index
    %c0_53 = arith.constant 0 : index
    %78 = vector.load %arg3[%c7, %c0_52, %c0_53] : memref<9x128x128xbf16, #tpu.memory_space<vmem>>, vector<1x128x128xbf16>
    %79 = vector.shape_cast %78 : vector<1x128x128xbf16> to vector<128x128xbf16>
    %cst_54 = arith.constant dense<0.000000e+00> : vector<16x128xf32>
    %80 = tpu.matmul %77, %79, %cst_54 {dimension_numbers = #tpu.dot_dimension_numbers<[1], [0], [0], [1], [0, 0, 1, 1], [], []>} : vector<16x128xbf16>, vector<128x128xbf16>, vector<16x128xf32> -> vector<16x128xf32>
    %81 = arith.addf %71, %80 : vector<16x128xf32>
    %c0_i32_55 = arith.constant 0 : i32
    %82 = arith.addi %0, %c0_i32_55 : i32
    %83 = tpu.assume_multiple %82, 16 : i32
    %c0_56 = arith.constant 0 : index
    %c0_57 = arith.constant 0 : index
    %84 = arith.index_cast %83 : i32 to index
    %c0_58 = arith.constant 0 : index
    %85 = vector.load %arg2[%c0_56, %c0_57, %84, %c0_58] : memref<1x1x64x128xbf16, #tpu.memory_space<vmem>>, vector<1x1x32x128xbf16>
    %86 = vector.shape_cast %85 : vector<1x1x32x128xbf16> to vector<32x128xbf16>
    %87 = vector.extract_strided_slice %86 {offsets = [14, 0], sizes = [16, 128], strides = [1, 1]} : vector<32x128xbf16> to vector<16x128xbf16>
    %c8 = arith.constant 8 : index
    %c0_59 = arith.constant 0 : index
    %c0_60 = arith.constant 0 : index
    %88 = vector.load %arg3[%c8, %c0_59, %c0_60] : memref<9x128x128xbf16, #tpu.memory_space<vmem>>, vector<1x128x128xbf16>
    %89 = vector.shape_cast %88 : vector<1x128x128xbf16> to vector<128x128xbf16>
    %cst_61 = arith.constant dense<0.000000e+00> : vector<16x128xf32>
    %90 = tpu.matmul %87, %89, %cst_61 {dimension_numbers = #tpu.dot_dimension_numbers<[1], [0], [0], [1], [0, 0, 1, 1], [], []>} : vector<16x128xbf16>, vector<128x128xbf16>, vector<16x128xf32> -> vector<16x128xf32>
    %91 = arith.addf %81, %90 : vector<16x128xf32>
    %c0_62 = arith.constant 0 : index
    %c0_63 = arith.constant 0 : index
    %92 = vector.load %arg4[%c0_62, %c0_63] : memref<1x128xf32, #tpu.memory_space<vmem>>, vector<1x128xf32>
    %93 = vector.broadcast %92 : vector<1x128xf32> to vector<16x128xf32>
    %94 = arith.addf %91, %93 : vector<16x128xf32>
    %cst_64 = arith.constant 0.000000e+00 : f32
    %95 = vector.broadcast %cst_64 : f32 to vector<16x128xf32>
    %96 = arith.maximumf %94, %95 : vector<16x128xf32>
    %97 = arith.truncf %96 : vector<16x128xf32> to vector<16x128xbf16>
    %c0_65 = arith.constant 0 : index
    %c0_66 = arith.constant 0 : index
    %c0_67 = arith.constant 0 : index
    %98 = vector.load %arg5[%c0_65, %c0_66, %c0_67] : memref<1x16x128xbf16, #tpu.memory_space<vmem>>, vector<1x16x128xbf16>
    %99 = vector.shape_cast %98 : vector<1x16x128xbf16> to vector<16x128xbf16>
    %100 = vector.shape_cast %97 : vector<16x128xbf16> to vector<1x16x128xbf16>
    tpu.vector_store %arg5[%c0_65, %c0_66, %c0_67], %100 {strides = array<i32>} : memref<1x16x128xbf16, #tpu.memory_space<vmem>>, vector<1x16x128xbf16>,
    return
  }
  func.func @transform_0(%arg0: i32, %arg1: i32) -> (i32, i32, i32, i32) {
    %c0_i32 = arith.constant 0 : i32
    %c0_i32_0 = arith.constant 0 : i32
    %c0_i32_1 = arith.constant 0 : i32
    %c0_i32_2 = arith.constant 0 : i32
    return %arg0, %c0_i32, %c0_i32_0, %c0_i32_1 : i32, i32, i32, i32
  }
  func.func @transform_1(%arg0: i32, %arg1: i32) -> (i32, i32, i32) {
    %c0_i32 = arith.constant 0 : i32
    %c0_i32_0 = arith.constant 0 : i32
    %c0_i32_1 = arith.constant 0 : i32
    %c0_i32_2 = arith.constant 0 : i32
    return %c0_i32, %c0_i32_0, %c0_i32_1 : i32, i32, i32
  }
  func.func @transform_2(%arg0: i32, %arg1: i32) -> (i32, i32) {
    %c0_i32 = arith.constant 0 : i32
    %c0_i32_0 = arith.constant 0 : i32
    %c0_i32_1 = arith.constant 0 : i32
    return %c0_i32, %c0_i32_0 : i32, i32
  }
  func.func @transform_3(%arg0: i32, %arg1: i32) -> (i32, i32, i32) {
    %c0_i32 = arith.constant 0 : i32
    %c0_i32_0 = arith.constant 0 : i32
    return %arg0, %arg1, %c0_i32 : i32, i32, i32
  }
}

module attributes {stable_mosaic.version = 11 : i64} {
  func.func @_tap_conv_kernel(%arg0: i32, %arg1: i32, %arg2: memref<1x4x48x128xbf16, #tpu.memory_space<vmem>>, %arg3: memref<9x128x256xbf16, #tpu.memory_space<vmem>>, %arg4: memref<1x256xf32, #tpu.memory_space<vmem>>, %arg5: memref<1x16x256xbf16, #tpu.memory_space<vmem>>) attributes {dimension_semantics = [#tpu.dimension_semantics<parallel>, #tpu.dimension_semantics<parallel>], iteration_bounds = array<i64: 2, 1>, scalar_prefetch = 0 : i64, scratch_operands = 0 : i64, tpu.core_type = #tpu.core_type<tc>, window_params = [{transform_indices = @transform_0, window_bounds = array<i64: 1, 4, 48, 128>}, {pipeline_mode = #tpu.pipeline_mode<synchronous>, transform_indices = @transform_1, window_bounds = array<i64: 9, 128, 256>}, {pipeline_mode = #tpu.pipeline_mode<synchronous>, transform_indices = @transform_2, window_bounds = array<i64: 1, 256>}, {transform_indices = @transform_3, window_bounds = array<i64: 1, 16, 256>}]} {
    %c16_i32 = arith.constant 16 : i32
    %0 = arith.muli %arg1, %c16_i32 : i32
    %cst = arith.constant 0.000000e+00 : f32
    %1 = vector.broadcast %cst : f32 to vector<16x256xf32>
    %c0_i32 = arith.constant 0 : i32
    %2 = arith.addi %0, %c0_i32 : i32
    %3 = tpu.assume_multiple %2, 16 : i32
    %c0 = arith.constant 0 : index
    %c0_0 = arith.constant 0 : index
    %4 = arith.index_cast %3 : i32 to index
    %c0_1 = arith.constant 0 : index
    %5 = vector.load %arg2[%c0, %c0_0, %4, %c0_1] : memref<1x4x48x128xbf16, #tpu.memory_space<vmem>>, vector<1x1x32x128xbf16>
    %6 = vector.shape_cast %5 : vector<1x1x32x128xbf16> to vector<32x128xbf16>
    %7 = vector.extract_strided_slice %6 {offsets = [0, 0], sizes = [16, 128], strides = [1, 1]} : vector<32x128xbf16> to vector<16x128xbf16>
    %c0_2 = arith.constant 0 : index
    %c0_3 = arith.constant 0 : index
    %c0_4 = arith.constant 0 : index
    %8 = vector.load %arg3[%c0_2, %c0_3, %c0_4] : memref<9x128x256xbf16, #tpu.memory_space<vmem>>, vector<1x128x256xbf16>
    %9 = vector.shape_cast %8 : vector<1x128x256xbf16> to vector<128x256xbf16>
    %cst_5 = arith.constant dense<0.000000e+00> : vector<16x256xf32>
    %10 = tpu.matmul %7, %9, %cst_5 {dimension_numbers = #tpu.dot_dimension_numbers<[1], [0], [0], [1], [0, 0, 1, 1], [], []>} : vector<16x128xbf16>, vector<128x256xbf16>, vector<16x256xf32> -> vector<16x256xf32>
    %11 = arith.addf %1, %10 : vector<16x256xf32>
    %c0_i32_6 = arith.constant 0 : i32
    %12 = arith.addi %0, %c0_i32_6 : i32
    %13 = tpu.assume_multiple %12, 16 : i32
    %c0_7 = arith.constant 0 : index
    %c1 = arith.constant 1 : index
    %14 = arith.index_cast %13 : i32 to index
    %c0_8 = arith.constant 0 : index
    %15 = vector.load %arg2[%c0_7, %c1, %14, %c0_8] : memref<1x4x48x128xbf16, #tpu.memory_space<vmem>>, vector<1x1x32x128xbf16>
    %16 = vector.shape_cast %15 : vector<1x1x32x128xbf16> to vector<32x128xbf16>
    %17 = vector.extract_strided_slice %16 {offsets = [0, 0], sizes = [16, 128], strides = [1, 1]} : vector<32x128xbf16> to vector<16x128xbf16>
    %c1_9 = arith.constant 1 : index
    %c0_10 = arith.constant 0 : index
    %c0_11 = arith.constant 0 : index
    %18 = vector.load %arg3[%c1_9, %c0_10, %c0_11] : memref<9x128x256xbf16, #tpu.memory_space<vmem>>, vector<1x128x256xbf16>
    %19 = vector.shape_cast %18 : vector<1x128x256xbf16> to vector<128x256xbf16>
    %cst_12 = arith.constant dense<0.000000e+00> : vector<16x256xf32>
    %20 = tpu.matmul %17, %19, %cst_12 {dimension_numbers = #tpu.dot_dimension_numbers<[1], [0], [0], [1], [0, 0, 1, 1], [], []>} : vector<16x128xbf16>, vector<128x256xbf16>, vector<16x256xf32> -> vector<16x256xf32>
    %21 = arith.addf %11, %20 : vector<16x256xf32>
    %c0_i32_13 = arith.constant 0 : i32
    %22 = arith.addi %0, %c0_i32_13 : i32
    %23 = tpu.assume_multiple %22, 16 : i32
    %c0_14 = arith.constant 0 : index
    %c0_15 = arith.constant 0 : index
    %24 = arith.index_cast %23 : i32 to index
    %c0_16 = arith.constant 0 : index
    %25 = vector.load %arg2[%c0_14, %c0_15, %24, %c0_16] : memref<1x4x48x128xbf16, #tpu.memory_space<vmem>>, vector<1x1x32x128xbf16>
    %26 = vector.shape_cast %25 : vector<1x1x32x128xbf16> to vector<32x128xbf16>
    %27 = vector.extract_strided_slice %26 {offsets = [1, 0], sizes = [16, 128], strides = [1, 1]} : vector<32x128xbf16> to vector<16x128xbf16>
    %c2 = arith.constant 2 : index
    %c0_17 = arith.constant 0 : index
    %c0_18 = arith.constant 0 : index
    %28 = vector.load %arg3[%c2, %c0_17, %c0_18] : memref<9x128x256xbf16, #tpu.memory_space<vmem>>, vector<1x128x256xbf16>
    %29 = vector.shape_cast %28 : vector<1x128x256xbf16> to vector<128x256xbf16>
    %cst_19 = arith.constant dense<0.000000e+00> : vector<16x256xf32>
    %30 = tpu.matmul %27, %29, %cst_19 {dimension_numbers = #tpu.dot_dimension_numbers<[1], [0], [0], [1], [0, 0, 1, 1], [], []>} : vector<16x128xbf16>, vector<128x256xbf16>, vector<16x256xf32> -> vector<16x256xf32>
    %31 = arith.addf %21, %30 : vector<16x256xf32>
    %c0_i32_20 = arith.constant 0 : i32
    %32 = arith.addi %0, %c0_i32_20 : i32
    %33 = tpu.assume_multiple %32, 16 : i32
    %c0_21 = arith.constant 0 : index
    %c2_22 = arith.constant 2 : index
    %34 = arith.index_cast %33 : i32 to index
    %c0_23 = arith.constant 0 : index
    %35 = vector.load %arg2[%c0_21, %c2_22, %34, %c0_23] : memref<1x4x48x128xbf16, #tpu.memory_space<vmem>>, vector<1x1x32x128xbf16>
    %36 = vector.shape_cast %35 : vector<1x1x32x128xbf16> to vector<32x128xbf16>
    %37 = vector.extract_strided_slice %36 {offsets = [0, 0], sizes = [16, 128], strides = [1, 1]} : vector<32x128xbf16> to vector<16x128xbf16>
    %c3 = arith.constant 3 : index
    %c0_24 = arith.constant 0 : index
    %c0_25 = arith.constant 0 : index
    %38 = vector.load %arg3[%c3, %c0_24, %c0_25] : memref<9x128x256xbf16, #tpu.memory_space<vmem>>, vector<1x128x256xbf16>
    %39 = vector.shape_cast %38 : vector<1x128x256xbf16> to vector<128x256xbf16>
    %cst_26 = arith.constant dense<0.000000e+00> : vector<16x256xf32>
    %40 = tpu.matmul %37, %39, %cst_26 {dimension_numbers = #tpu.dot_dimension_numbers<[1], [0], [0], [1], [0, 0, 1, 1], [], []>} : vector<16x128xbf16>, vector<128x256xbf16>, vector<16x256xf32> -> vector<16x256xf32>
    %41 = arith.addf %31, %40 : vector<16x256xf32>
    %c0_i32_27 = arith.constant 0 : i32
    %42 = arith.addi %0, %c0_i32_27 : i32
    %43 = tpu.assume_multiple %42, 16 : i32
    %c0_28 = arith.constant 0 : index
    %c3_29 = arith.constant 3 : index
    %44 = arith.index_cast %43 : i32 to index
    %c0_30 = arith.constant 0 : index
    %45 = vector.load %arg2[%c0_28, %c3_29, %44, %c0_30] : memref<1x4x48x128xbf16, #tpu.memory_space<vmem>>, vector<1x1x32x128xbf16>
    %46 = vector.shape_cast %45 : vector<1x1x32x128xbf16> to vector<32x128xbf16>
    %47 = vector.extract_strided_slice %46 {offsets = [0, 0], sizes = [16, 128], strides = [1, 1]} : vector<32x128xbf16> to vector<16x128xbf16>
    %c4 = arith.constant 4 : index
    %c0_31 = arith.constant 0 : index
    %c0_32 = arith.constant 0 : index
    %48 = vector.load %arg3[%c4, %c0_31, %c0_32] : memref<9x128x256xbf16, #tpu.memory_space<vmem>>, vector<1x128x256xbf16>
    %49 = vector.shape_cast %48 : vector<1x128x256xbf16> to vector<128x256xbf16>
    %cst_33 = arith.constant dense<0.000000e+00> : vector<16x256xf32>
    %50 = tpu.matmul %47, %49, %cst_33 {dimension_numbers = #tpu.dot_dimension_numbers<[1], [0], [0], [1], [0, 0, 1, 1], [], []>} : vector<16x128xbf16>, vector<128x256xbf16>, vector<16x256xf32> -> vector<16x256xf32>
    %51 = arith.addf %41, %50 : vector<16x256xf32>
    %c0_i32_34 = arith.constant 0 : i32
    %52 = arith.addi %0, %c0_i32_34 : i32
    %53 = tpu.assume_multiple %52, 16 : i32
    %c0_35 = arith.constant 0 : index
    %c2_36 = arith.constant 2 : index
    %54 = arith.index_cast %53 : i32 to index
    %c0_37 = arith.constant 0 : index
    %55 = vector.load %arg2[%c0_35, %c2_36, %54, %c0_37] : memref<1x4x48x128xbf16, #tpu.memory_space<vmem>>, vector<1x1x32x128xbf16>
    %56 = vector.shape_cast %55 : vector<1x1x32x128xbf16> to vector<32x128xbf16>
    %57 = vector.extract_strided_slice %56 {offsets = [1, 0], sizes = [16, 128], strides = [1, 1]} : vector<32x128xbf16> to vector<16x128xbf16>
    %c5 = arith.constant 5 : index
    %c0_38 = arith.constant 0 : index
    %c0_39 = arith.constant 0 : index
    %58 = vector.load %arg3[%c5, %c0_38, %c0_39] : memref<9x128x256xbf16, #tpu.memory_space<vmem>>, vector<1x128x256xbf16>
    %59 = vector.shape_cast %58 : vector<1x128x256xbf16> to vector<128x256xbf16>
    %cst_40 = arith.constant dense<0.000000e+00> : vector<16x256xf32>
    %60 = tpu.matmul %57, %59, %cst_40 {dimension_numbers = #tpu.dot_dimension_numbers<[1], [0], [0], [1], [0, 0, 1, 1], [], []>} : vector<16x128xbf16>, vector<128x256xbf16>, vector<16x256xf32> -> vector<16x256xf32>
    %61 = arith.addf %51, %60 : vector<16x256xf32>
    %c0_i32_41 = arith.constant 0 : i32
    %62 = arith.addi %0, %c0_i32_41 : i32
    %63 = tpu.assume_multiple %62, 16 : i32
    %c0_42 = arith.constant 0 : index
    %c0_43 = arith.constant 0 : index
    %64 = arith.index_cast %63 : i32 to index
    %c0_44 = arith.constant 0 : index
    %65 = vector.load %arg2[%c0_42, %c0_43, %64, %c0_44] : memref<1x4x48x128xbf16, #tpu.memory_space<vmem>>, vector<1x1x32x128xbf16>
    %66 = vector.shape_cast %65 : vector<1x1x32x128xbf16> to vector<32x128xbf16>
    %67 = vector.extract_strided_slice %66 {offsets = [3, 0], sizes = [16, 128], strides = [1, 1]} : vector<32x128xbf16> to vector<16x128xbf16>
    %c6 = arith.constant 6 : index
    %c0_45 = arith.constant 0 : index
    %c0_46 = arith.constant 0 : index
    %68 = vector.load %arg3[%c6, %c0_45, %c0_46] : memref<9x128x256xbf16, #tpu.memory_space<vmem>>, vector<1x128x256xbf16>
    %69 = vector.shape_cast %68 : vector<1x128x256xbf16> to vector<128x256xbf16>
    %cst_47 = arith.constant dense<0.000000e+00> : vector<16x256xf32>
    %70 = tpu.matmul %67, %69, %cst_47 {dimension_numbers = #tpu.dot_dimension_numbers<[1], [0], [0], [1], [0, 0, 1, 1], [], []>} : vector<16x128xbf16>, vector<128x256xbf16>, vector<16x256xf32> -> vector<16x256xf32>
    %71 = arith.addf %61, %70 : vector<16x256xf32>
    %c0_i32_48 = arith.constant 0 : i32
    %72 = arith.addi %0, %c0_i32_48 : i32
    %73 = tpu.assume_multiple %72, 16 : i32
    %c0_49 = arith.constant 0 : index
    %c1_50 = arith.constant 1 : index
    %74 = arith.index_cast %73 : i32 to index
    %c0_51 = arith.constant 0 : index
    %75 = vector.load %arg2[%c0_49, %c1_50, %74, %c0_51] : memref<1x4x48x128xbf16, #tpu.memory_space<vmem>>, vector<1x1x32x128xbf16>
    %76 = vector.shape_cast %75 : vector<1x1x32x128xbf16> to vector<32x128xbf16>
    %77 = vector.extract_strided_slice %76 {offsets = [3, 0], sizes = [16, 128], strides = [1, 1]} : vector<32x128xbf16> to vector<16x128xbf16>
    %c7 = arith.constant 7 : index
    %c0_52 = arith.constant 0 : index
    %c0_53 = arith.constant 0 : index
    %78 = vector.load %arg3[%c7, %c0_52, %c0_53] : memref<9x128x256xbf16, #tpu.memory_space<vmem>>, vector<1x128x256xbf16>
    %79 = vector.shape_cast %78 : vector<1x128x256xbf16> to vector<128x256xbf16>
    %cst_54 = arith.constant dense<0.000000e+00> : vector<16x256xf32>
    %80 = tpu.matmul %77, %79, %cst_54 {dimension_numbers = #tpu.dot_dimension_numbers<[1], [0], [0], [1], [0, 0, 1, 1], [], []>} : vector<16x128xbf16>, vector<128x256xbf16>, vector<16x256xf32> -> vector<16x256xf32>
    %81 = arith.addf %71, %80 : vector<16x256xf32>
    %c0_i32_55 = arith.constant 0 : i32
    %82 = arith.addi %0, %c0_i32_55 : i32
    %83 = tpu.assume_multiple %82, 16 : i32
    %c0_56 = arith.constant 0 : index
    %c0_57 = arith.constant 0 : index
    %84 = arith.index_cast %83 : i32 to index
    %c0_58 = arith.constant 0 : index
    %85 = vector.load %arg2[%c0_56, %c0_57, %84, %c0_58] : memref<1x4x48x128xbf16, #tpu.memory_space<vmem>>, vector<1x1x32x128xbf16>
    %86 = vector.shape_cast %85 : vector<1x1x32x128xbf16> to vector<32x128xbf16>
    %87 = vector.extract_strided_slice %86 {offsets = [4, 0], sizes = [16, 128], strides = [1, 1]} : vector<32x128xbf16> to vector<16x128xbf16>
    %c8 = arith.constant 8 : index
    %c0_59 = arith.constant 0 : index
    %c0_60 = arith.constant 0 : index
    %88 = vector.load %arg3[%c8, %c0_59, %c0_60] : memref<9x128x256xbf16, #tpu.memory_space<vmem>>, vector<1x128x256xbf16>
    %89 = vector.shape_cast %88 : vector<1x128x256xbf16> to vector<128x256xbf16>
    %cst_61 = arith.constant dense<0.000000e+00> : vector<16x256xf32>
    %90 = tpu.matmul %87, %89, %cst_61 {dimension_numbers = #tpu.dot_dimension_numbers<[1], [0], [0], [1], [0, 0, 1, 1], [], []>} : vector<16x128xbf16>, vector<128x256xbf16>, vector<16x256xf32> -> vector<16x256xf32>
    %91 = arith.addf %81, %90 : vector<16x256xf32>
    %c0_62 = arith.constant 0 : index
    %c0_63 = arith.constant 0 : index
    %92 = vector.load %arg4[%c0_62, %c0_63] : memref<1x256xf32, #tpu.memory_space<vmem>>, vector<1x256xf32>
    %93 = vector.broadcast %92 : vector<1x256xf32> to vector<16x256xf32>
    %94 = arith.addf %91, %93 : vector<16x256xf32>
    %cst_64 = arith.constant 0.000000e+00 : f32
    %95 = vector.broadcast %cst_64 : f32 to vector<16x256xf32>
    %96 = arith.maximumf %94, %95 : vector<16x256xf32>
    %97 = arith.truncf %96 : vector<16x256xf32> to vector<16x256xbf16>
    %c0_65 = arith.constant 0 : index
    %c0_66 = arith.constant 0 : index
    %c0_67 = arith.constant 0 : index
    %98 = vector.load %arg5[%c0_65, %c0_66, %c0_67] : memref<1x16x256xbf16, #tpu.memory_space<vmem>>, vector<1x16x256xbf16>
    %99 = vector.shape_cast %98 : vector<1x16x256xbf16> to vector<16x256xbf16>
    %100 = vector.shape_cast %97 : vector<16x256xbf16> to vector<1x16x256xbf16>
    tpu.vector_store %arg5[%c0_65, %c0_66, %c0_67], %100 {strides = array<i32>} : memref<1x16x256xbf16, #tpu.memory_space<vmem>>, vector<1x16x256xbf16>,
    return
  }
  func.func @transform_0(%arg0: i32, %arg1: i32) -> (i32, i32, i32, i32) {
    %c0_i32 = arith.constant 0 : i32
    %c0_i32_0 = arith.constant 0 : i32
    %c0_i32_1 = arith.constant 0 : i32
    %c0_i32_2 = arith.constant 0 : i32
    return %arg0, %c0_i32, %c0_i32_0, %c0_i32_1 : i32, i32, i32, i32
  }
  func.func @transform_1(%arg0: i32, %arg1: i32) -> (i32, i32, i32) {
    %c0_i32 = arith.constant 0 : i32
    %c0_i32_0 = arith.constant 0 : i32
    %c0_i32_1 = arith.constant 0 : i32
    %c0_i32_2 = arith.constant 0 : i32
    return %c0_i32, %c0_i32_0, %c0_i32_1 : i32, i32, i32
  }
  func.func @transform_2(%arg0: i32, %arg1: i32) -> (i32, i32) {
    %c0_i32 = arith.constant 0 : i32
    %c0_i32_0 = arith.constant 0 : i32
    %c0_i32_1 = arith.constant 0 : i32
    return %c0_i32, %c0_i32_0 : i32, i32
  }
  func.func @transform_3(%arg0: i32, %arg1: i32) -> (i32, i32, i32) {
    %c0_i32 = arith.constant 0 : i32
    %c0_i32_0 = arith.constant 0 : i32
    return %arg0, %arg1, %c0_i32 : i32, i32, i32
  }
}

module attributes {stable_mosaic.version = 11 : i64} {
  func.func @_tap_conv_kernel(%arg0: i32, %arg1: i32, %arg2: memref<1x4x48x128xbf16, #tpu.memory_space<vmem>>, %arg3: memref<1x128x256xbf16, #tpu.memory_space<vmem>>, %arg4: memref<1x256xf32, #tpu.memory_space<vmem>>, %arg5: memref<1x16x256xbf16, #tpu.memory_space<vmem>>) attributes {dimension_semantics = [#tpu.dimension_semantics<parallel>, #tpu.dimension_semantics<parallel>], iteration_bounds = array<i64: 2, 1>, scalar_prefetch = 0 : i64, scratch_operands = 0 : i64, tpu.core_type = #tpu.core_type<tc>, window_params = [{transform_indices = @transform_0, window_bounds = array<i64: 1, 4, 48, 128>}, {pipeline_mode = #tpu.pipeline_mode<synchronous>, transform_indices = @transform_1, window_bounds = array<i64: 1, 128, 256>}, {pipeline_mode = #tpu.pipeline_mode<synchronous>, transform_indices = @transform_2, window_bounds = array<i64: 1, 256>}, {transform_indices = @transform_3, window_bounds = array<i64: 1, 16, 256>}]} {
    %c16_i32 = arith.constant 16 : i32
    %0 = arith.muli %arg1, %c16_i32 : i32
    %cst = arith.constant 0.000000e+00 : f32
    %1 = vector.broadcast %cst : f32 to vector<16x256xf32>
    %c0_i32 = arith.constant 0 : i32
    %2 = arith.addi %0, %c0_i32 : i32
    %3 = tpu.assume_multiple %2, 16 : i32
    %c0 = arith.constant 0 : index
    %c3 = arith.constant 3 : index
    %4 = arith.index_cast %3 : i32 to index
    %c0_0 = arith.constant 0 : index
    %5 = vector.load %arg2[%c0, %c3, %4, %c0_0] : memref<1x4x48x128xbf16, #tpu.memory_space<vmem>>, vector<1x1x32x128xbf16>
    %6 = vector.shape_cast %5 : vector<1x1x32x128xbf16> to vector<32x128xbf16>
    %7 = vector.extract_strided_slice %6 {offsets = [0, 0], sizes = [16, 128], strides = [1, 1]} : vector<32x128xbf16> to vector<16x128xbf16>
    %c0_1 = arith.constant 0 : index
    %c0_2 = arith.constant 0 : index
    %c0_3 = arith.constant 0 : index
    %8 = vector.load %arg3[%c0_1, %c0_2, %c0_3] : memref<1x128x256xbf16, #tpu.memory_space<vmem>>, vector<1x128x256xbf16>
    %9 = vector.shape_cast %8 : vector<1x128x256xbf16> to vector<128x256xbf16>
    %cst_4 = arith.constant dense<0.000000e+00> : vector<16x256xf32>
    %10 = tpu.matmul %7, %9, %cst_4 {dimension_numbers = #tpu.dot_dimension_numbers<[1], [0], [0], [1], [0, 0, 1, 1], [], []>} : vector<16x128xbf16>, vector<128x256xbf16>, vector<16x256xf32> -> vector<16x256xf32>
    %11 = arith.addf %1, %10 : vector<16x256xf32>
    %c0_5 = arith.constant 0 : index
    %c0_6 = arith.constant 0 : index
    %12 = vector.load %arg4[%c0_5, %c0_6] : memref<1x256xf32, #tpu.memory_space<vmem>>, vector<1x256xf32>
    %13 = vector.broadcast %12 : vector<1x256xf32> to vector<16x256xf32>
    %14 = arith.addf %11, %13 : vector<16x256xf32>
    %15 = arith.truncf %14 : vector<16x256xf32> to vector<16x256xbf16>
    %c0_7 = arith.constant 0 : index
    %c0_8 = arith.constant 0 : index
    %c0_9 = arith.constant 0 : index
    %16 = vector.load %arg5[%c0_7, %c0_8, %c0_9] : memref<1x16x256xbf16, #tpu.memory_space<vmem>>, vector<1x16x256xbf16>
    %17 = vector.shape_cast %16 : vector<1x16x256xbf16> to vector<16x256xbf16>
    %18 = vector.shape_cast %15 : vector<16x256xbf16> to vector<1x16x256xbf16>
    tpu.vector_store %arg5[%c0_7, %c0_8, %c0_9], %18 {strides = array<i32>} : memref<1x16x256xbf16, #tpu.memory_space<vmem>>, vector<1x16x256xbf16>,
    return
  }
  func.func @transform_0(%arg0: i32, %arg1: i32) -> (i32, i32, i32, i32) {
    %c0_i32 = arith.constant 0 : i32
    %c0_i32_0 = arith.constant 0 : i32
    %c0_i32_1 = arith.constant 0 : i32
    %c0_i32_2 = arith.constant 0 : i32
    return %arg0, %c0_i32, %c0_i32_0, %c0_i32_1 : i32, i32, i32, i32
  }
  func.func @transform_1(%arg0: i32, %arg1: i32) -> (i32, i32, i32) {
    %c0_i32 = arith.constant 0 : i32
    %c0_i32_0 = arith.constant 0 : i32
    %c0_i32_1 = arith.constant 0 : i32
    %c0_i32_2 = arith.constant 0 : i32
    return %c0_i32, %c0_i32_0, %c0_i32_1 : i32, i32, i32
  }
  func.func @transform_2(%arg0: i32, %arg1: i32) -> (i32, i32) {
    %c0_i32 = arith.constant 0 : i32
    %c0_i32_0 = arith.constant 0 : i32
    %c0_i32_1 = arith.constant 0 : i32
    return %c0_i32, %c0_i32_0 : i32, i32
  }
  func.func @transform_3(%arg0: i32, %arg1: i32) -> (i32, i32, i32) {
    %c0_i32 = arith.constant 0 : i32
    %c0_i32_0 = arith.constant 0 : i32
    return %arg0, %arg1, %c0_i32 : i32, i32, i32
  }
}

module attributes {stable_mosaic.version = 11 : i64} {
  func.func @_tap_conv_res_kernel(%arg0: i32, %arg1: i32, %arg2: memref<1x1x48x256xbf16, #tpu.memory_space<vmem>>, %arg3: memref<9x256x256xbf16, #tpu.memory_space<vmem>>, %arg4: memref<1x256xf32, #tpu.memory_space<vmem>>, %arg5: memref<1x16x256xbf16, #tpu.memory_space<vmem>>, %arg6: memref<1x16x256xbf16, #tpu.memory_space<vmem>>) attributes {dimension_semantics = [#tpu.dimension_semantics<parallel>, #tpu.dimension_semantics<parallel>], iteration_bounds = array<i64: 2, 1>, scalar_prefetch = 0 : i64, scratch_operands = 0 : i64, tpu.core_type = #tpu.core_type<tc>, window_params = [{transform_indices = @transform_0, window_bounds = array<i64: 1, 1, 48, 256>}, {pipeline_mode = #tpu.pipeline_mode<synchronous>, transform_indices = @transform_1, window_bounds = array<i64: 9, 256, 256>}, {pipeline_mode = #tpu.pipeline_mode<synchronous>, transform_indices = @transform_2, window_bounds = array<i64: 1, 256>}, {transform_indices = @transform_3, window_bounds = array<i64: 1, 16, 256>}, {transform_indices = @transform_4, window_bounds = array<i64: 1, 16, 256>}]} {
    %c16_i32 = arith.constant 16 : i32
    %0 = arith.muli %arg1, %c16_i32 : i32
    %cst = arith.constant 0.000000e+00 : f32
    %1 = vector.broadcast %cst : f32 to vector<16x256xf32>
    %c0_i32 = arith.constant 0 : i32
    %2 = arith.addi %0, %c0_i32 : i32
    %3 = tpu.assume_multiple %2, 16 : i32
    %c0 = arith.constant 0 : index
    %c0_0 = arith.constant 0 : index
    %4 = arith.index_cast %3 : i32 to index
    %c0_1 = arith.constant 0 : index
    %5 = vector.load %arg2[%c0, %c0_0, %4, %c0_1] : memref<1x1x48x256xbf16, #tpu.memory_space<vmem>>, vector<1x1x32x256xbf16>
    %6 = vector.shape_cast %5 : vector<1x1x32x256xbf16> to vector<32x256xbf16>
    %7 = vector.extract_strided_slice %6 {offsets = [0, 0], sizes = [16, 256], strides = [1, 1]} : vector<32x256xbf16> to vector<16x256xbf16>
    %c0_2 = arith.constant 0 : index
    %c0_3 = arith.constant 0 : index
    %c0_4 = arith.constant 0 : index
    %8 = vector.load %arg3[%c0_2, %c0_3, %c0_4] : memref<9x256x256xbf16, #tpu.memory_space<vmem>>, vector<1x256x256xbf16>
    %9 = vector.shape_cast %8 : vector<1x256x256xbf16> to vector<256x256xbf16>
    %cst_5 = arith.constant dense<0.000000e+00> : vector<16x256xf32>
    %10 = tpu.matmul %7, %9, %cst_5 {dimension_numbers = #tpu.dot_dimension_numbers<[1], [0], [0], [1], [0, 0, 1, 1], [], []>} : vector<16x256xbf16>, vector<256x256xbf16>, vector<16x256xf32> -> vector<16x256xf32>
    %11 = arith.addf %1, %10 : vector<16x256xf32>
    %c0_i32_6 = arith.constant 0 : i32
    %12 = arith.addi %0, %c0_i32_6 : i32
    %13 = tpu.assume_multiple %12, 16 : i32
    %c0_7 = arith.constant 0 : index
    %c0_8 = arith.constant 0 : index
    %14 = arith.index_cast %13 : i32 to index
    %c0_9 = arith.constant 0 : index
    %15 = vector.load %arg2[%c0_7, %c0_8, %14, %c0_9] : memref<1x1x48x256xbf16, #tpu.memory_space<vmem>>, vector<1x1x32x256xbf16>
    %16 = vector.shape_cast %15 : vector<1x1x32x256xbf16> to vector<32x256xbf16>
    %17 = vector.extract_strided_slice %16 {offsets = [1, 0], sizes = [16, 256], strides = [1, 1]} : vector<32x256xbf16> to vector<16x256xbf16>
    %c1 = arith.constant 1 : index
    %c0_10 = arith.constant 0 : index
    %c0_11 = arith.constant 0 : index
    %18 = vector.load %arg3[%c1, %c0_10, %c0_11] : memref<9x256x256xbf16, #tpu.memory_space<vmem>>, vector<1x256x256xbf16>
    %19 = vector.shape_cast %18 : vector<1x256x256xbf16> to vector<256x256xbf16>
    %cst_12 = arith.constant dense<0.000000e+00> : vector<16x256xf32>
    %20 = tpu.matmul %17, %19, %cst_12 {dimension_numbers = #tpu.dot_dimension_numbers<[1], [0], [0], [1], [0, 0, 1, 1], [], []>} : vector<16x256xbf16>, vector<256x256xbf16>, vector<16x256xf32> -> vector<16x256xf32>
    %21 = arith.addf %11, %20 : vector<16x256xf32>
    %c0_i32_13 = arith.constant 0 : i32
    %22 = arith.addi %0, %c0_i32_13 : i32
    %23 = tpu.assume_multiple %22, 16 : i32
    %c0_14 = arith.constant 0 : index
    %c0_15 = arith.constant 0 : index
    %24 = arith.index_cast %23 : i32 to index
    %c0_16 = arith.constant 0 : index
    %25 = vector.load %arg2[%c0_14, %c0_15, %24, %c0_16] : memref<1x1x48x256xbf16, #tpu.memory_space<vmem>>, vector<1x1x32x256xbf16>
    %26 = vector.shape_cast %25 : vector<1x1x32x256xbf16> to vector<32x256xbf16>
    %27 = vector.extract_strided_slice %26 {offsets = [2, 0], sizes = [16, 256], strides = [1, 1]} : vector<32x256xbf16> to vector<16x256xbf16>
    %c2 = arith.constant 2 : index
    %c0_17 = arith.constant 0 : index
    %c0_18 = arith.constant 0 : index
    %28 = vector.load %arg3[%c2, %c0_17, %c0_18] : memref<9x256x256xbf16, #tpu.memory_space<vmem>>, vector<1x256x256xbf16>
    %29 = vector.shape_cast %28 : vector<1x256x256xbf16> to vector<256x256xbf16>
    %cst_19 = arith.constant dense<0.000000e+00> : vector<16x256xf32>
    %30 = tpu.matmul %27, %29, %cst_19 {dimension_numbers = #tpu.dot_dimension_numbers<[1], [0], [0], [1], [0, 0, 1, 1], [], []>} : vector<16x256xbf16>, vector<256x256xbf16>, vector<16x256xf32> -> vector<16x256xf32>
    %31 = arith.addf %21, %30 : vector<16x256xf32>
    %c0_i32_20 = arith.constant 0 : i32
    %32 = arith.addi %0, %c0_i32_20 : i32
    %33 = tpu.assume_multiple %32, 16 : i32
    %c0_21 = arith.constant 0 : index
    %c0_22 = arith.constant 0 : index
    %34 = arith.index_cast %33 : i32 to index
    %c0_23 = arith.constant 0 : index
    %35 = vector.load %arg2[%c0_21, %c0_22, %34, %c0_23] : memref<1x1x48x256xbf16, #tpu.memory_space<vmem>>, vector<1x1x32x256xbf16>
    %36 = vector.shape_cast %35 : vector<1x1x32x256xbf16> to vector<32x256xbf16>
    %37 = vector.extract_strided_slice %36 {offsets = [4, 0], sizes = [16, 256], strides = [1, 1]} : vector<32x256xbf16> to vector<16x256xbf16>
    %c3 = arith.constant 3 : index
    %c0_24 = arith.constant 0 : index
    %c0_25 = arith.constant 0 : index
    %38 = vector.load %arg3[%c3, %c0_24, %c0_25] : memref<9x256x256xbf16, #tpu.memory_space<vmem>>, vector<1x256x256xbf16>
    %39 = vector.shape_cast %38 : vector<1x256x256xbf16> to vector<256x256xbf16>
    %cst_26 = arith.constant dense<0.000000e+00> : vector<16x256xf32>
    %40 = tpu.matmul %37, %39, %cst_26 {dimension_numbers = #tpu.dot_dimension_numbers<[1], [0], [0], [1], [0, 0, 1, 1], [], []>} : vector<16x256xbf16>, vector<256x256xbf16>, vector<16x256xf32> -> vector<16x256xf32>
    %41 = arith.addf %31, %40 : vector<16x256xf32>
    %c0_i32_27 = arith.constant 0 : i32
    %42 = arith.addi %0, %c0_i32_27 : i32
    %43 = tpu.assume_multiple %42, 16 : i32
    %c0_28 = arith.constant 0 : index
    %c0_29 = arith.constant 0 : index
    %44 = arith.index_cast %43 : i32 to index
    %c0_30 = arith.constant 0 : index
    %45 = vector.load %arg2[%c0_28, %c0_29, %44, %c0_30] : memref<1x1x48x256xbf16, #tpu.memory_space<vmem>>, vector<1x1x32x256xbf16>
    %46 = vector.shape_cast %45 : vector<1x1x32x256xbf16> to vector<32x256xbf16>
    %47 = vector.extract_strided_slice %46 {offsets = [5, 0], sizes = [16, 256], strides = [1, 1]} : vector<32x256xbf16> to vector<16x256xbf16>
    %c4 = arith.constant 4 : index
    %c0_31 = arith.constant 0 : index
    %c0_32 = arith.constant 0 : index
    %48 = vector.load %arg3[%c4, %c0_31, %c0_32] : memref<9x256x256xbf16, #tpu.memory_space<vmem>>, vector<1x256x256xbf16>
    %49 = vector.shape_cast %48 : vector<1x256x256xbf16> to vector<256x256xbf16>
    %cst_33 = arith.constant dense<0.000000e+00> : vector<16x256xf32>
    %50 = tpu.matmul %47, %49, %cst_33 {dimension_numbers = #tpu.dot_dimension_numbers<[1], [0], [0], [1], [0, 0, 1, 1], [], []>} : vector<16x256xbf16>, vector<256x256xbf16>, vector<16x256xf32> -> vector<16x256xf32>
    %51 = arith.addf %41, %50 : vector<16x256xf32>
    %c0_i32_34 = arith.constant 0 : i32
    %52 = arith.addi %0, %c0_i32_34 : i32
    %53 = tpu.assume_multiple %52, 16 : i32
    %c0_35 = arith.constant 0 : index
    %c0_36 = arith.constant 0 : index
    %54 = arith.index_cast %53 : i32 to index
    %c0_37 = arith.constant 0 : index
    %55 = vector.load %arg2[%c0_35, %c0_36, %54, %c0_37] : memref<1x1x48x256xbf16, #tpu.memory_space<vmem>>, vector<1x1x32x256xbf16>
    %56 = vector.shape_cast %55 : vector<1x1x32x256xbf16> to vector<32x256xbf16>
    %57 = vector.extract_strided_slice %56 {offsets = [6, 0], sizes = [16, 256], strides = [1, 1]} : vector<32x256xbf16> to vector<16x256xbf16>
    %c5 = arith.constant 5 : index
    %c0_38 = arith.constant 0 : index
    %c0_39 = arith.constant 0 : index
    %58 = vector.load %arg3[%c5, %c0_38, %c0_39] : memref<9x256x256xbf16, #tpu.memory_space<vmem>>, vector<1x256x256xbf16>
    %59 = vector.shape_cast %58 : vector<1x256x256xbf16> to vector<256x256xbf16>
    %cst_40 = arith.constant dense<0.000000e+00> : vector<16x256xf32>
    %60 = tpu.matmul %57, %59, %cst_40 {dimension_numbers = #tpu.dot_dimension_numbers<[1], [0], [0], [1], [0, 0, 1, 1], [], []>} : vector<16x256xbf16>, vector<256x256xbf16>, vector<16x256xf32> -> vector<16x256xf32>
    %61 = arith.addf %51, %60 : vector<16x256xf32>
    %c0_i32_41 = arith.constant 0 : i32
    %62 = arith.addi %0, %c0_i32_41 : i32
    %63 = tpu.assume_multiple %62, 16 : i32
    %c0_42 = arith.constant 0 : index
    %c0_43 = arith.constant 0 : index
    %64 = arith.index_cast %63 : i32 to index
    %c0_44 = arith.constant 0 : index
    %65 = vector.load %arg2[%c0_42, %c0_43, %64, %c0_44] : memref<1x1x48x256xbf16, #tpu.memory_space<vmem>>, vector<1x1x32x256xbf16>
    %66 = vector.shape_cast %65 : vector<1x1x32x256xbf16> to vector<32x256xbf16>
    %67 = vector.extract_strided_slice %66 {offsets = [8, 0], sizes = [16, 256], strides = [1, 1]} : vector<32x256xbf16> to vector<16x256xbf16>
    %c6 = arith.constant 6 : index
    %c0_45 = arith.constant 0 : index
    %c0_46 = arith.constant 0 : index
    %68 = vector.load %arg3[%c6, %c0_45, %c0_46] : memref<9x256x256xbf16, #tpu.memory_space<vmem>>, vector<1x256x256xbf16>
    %69 = vector.shape_cast %68 : vector<1x256x256xbf16> to vector<256x256xbf16>
    %cst_47 = arith.constant dense<0.000000e+00> : vector<16x256xf32>
    %70 = tpu.matmul %67, %69, %cst_47 {dimension_numbers = #tpu.dot_dimension_numbers<[1], [0], [0], [1], [0, 0, 1, 1], [], []>} : vector<16x256xbf16>, vector<256x256xbf16>, vector<16x256xf32> -> vector<16x256xf32>
    %71 = arith.addf %61, %70 : vector<16x256xf32>
    %c0_i32_48 = arith.constant 0 : i32
    %72 = arith.addi %0, %c0_i32_48 : i32
    %73 = tpu.assume_multiple %72, 16 : i32
    %c0_49 = arith.constant 0 : index
    %c0_50 = arith.constant 0 : index
    %74 = arith.index_cast %73 : i32 to index
    %c0_51 = arith.constant 0 : index
    %75 = vector.load %arg2[%c0_49, %c0_50, %74, %c0_51] : memref<1x1x48x256xbf16, #tpu.memory_space<vmem>>, vector<1x1x32x256xbf16>
    %76 = vector.shape_cast %75 : vector<1x1x32x256xbf16> to vector<32x256xbf16>
    %77 = vector.extract_strided_slice %76 {offsets = [9, 0], sizes = [16, 256], strides = [1, 1]} : vector<32x256xbf16> to vector<16x256xbf16>
    %c7 = arith.constant 7 : index
    %c0_52 = arith.constant 0 : index
    %c0_53 = arith.constant 0 : index
    %78 = vector.load %arg3[%c7, %c0_52, %c0_53] : memref<9x256x256xbf16, #tpu.memory_space<vmem>>, vector<1x256x256xbf16>
    %79 = vector.shape_cast %78 : vector<1x256x256xbf16> to vector<256x256xbf16>
    %cst_54 = arith.constant dense<0.000000e+00> : vector<16x256xf32>
    %80 = tpu.matmul %77, %79, %cst_54 {dimension_numbers = #tpu.dot_dimension_numbers<[1], [0], [0], [1], [0, 0, 1, 1], [], []>} : vector<16x256xbf16>, vector<256x256xbf16>, vector<16x256xf32> -> vector<16x256xf32>
    %81 = arith.addf %71, %80 : vector<16x256xf32>
    %c0_i32_55 = arith.constant 0 : i32
    %82 = arith.addi %0, %c0_i32_55 : i32
    %83 = tpu.assume_multiple %82, 16 : i32
    %c0_56 = arith.constant 0 : index
    %c0_57 = arith.constant 0 : index
    %84 = arith.index_cast %83 : i32 to index
    %c0_58 = arith.constant 0 : index
    %85 = vector.load %arg2[%c0_56, %c0_57, %84, %c0_58] : memref<1x1x48x256xbf16, #tpu.memory_space<vmem>>, vector<1x1x32x256xbf16>
    %86 = vector.shape_cast %85 : vector<1x1x32x256xbf16> to vector<32x256xbf16>
    %87 = vector.extract_strided_slice %86 {offsets = [10, 0], sizes = [16, 256], strides = [1, 1]} : vector<32x256xbf16> to vector<16x256xbf16>
    %c8 = arith.constant 8 : index
    %c0_59 = arith.constant 0 : index
    %c0_60 = arith.constant 0 : index
    %88 = vector.load %arg3[%c8, %c0_59, %c0_60] : memref<9x256x256xbf16, #tpu.memory_space<vmem>>, vector<1x256x256xbf16>
    %89 = vector.shape_cast %88 : vector<1x256x256xbf16> to vector<256x256xbf16>
    %cst_61 = arith.constant dense<0.000000e+00> : vector<16x256xf32>
    %90 = tpu.matmul %87, %89, %cst_61 {dimension_numbers = #tpu.dot_dimension_numbers<[1], [0], [0], [1], [0, 0, 1, 1], [], []>} : vector<16x256xbf16>, vector<256x256xbf16>, vector<16x256xf32> -> vector<16x256xf32>
    %91 = arith.addf %81, %90 : vector<16x256xf32>
    %c0_62 = arith.constant 0 : index
    %c0_63 = arith.constant 0 : index
    %92 = vector.load %arg4[%c0_62, %c0_63] : memref<1x256xf32, #tpu.memory_space<vmem>>, vector<1x256xf32>
    %93 = vector.broadcast %92 : vector<1x256xf32> to vector<16x256xf32>
    %94 = arith.addf %91, %93 : vector<16x256xf32>
    %c0_64 = arith.constant 0 : index
    %c0_65 = arith.constant 0 : index
    %c0_66 = arith.constant 0 : index
    %95 = vector.load %arg5[%c0_64, %c0_65, %c0_66] : memref<1x16x256xbf16, #tpu.memory_space<vmem>>, vector<1x16x256xbf16>
    %96 = vector.shape_cast %95 : vector<1x16x256xbf16> to vector<16x256xbf16>
    %97 = arith.extf %96 : vector<16x256xbf16> to vector<16x256xf32>
    %98 = arith.addf %94, %97 : vector<16x256xf32>
    %cst_67 = arith.constant 0.000000e+00 : f32
    %99 = vector.broadcast %cst_67 : f32 to vector<16x256xf32>
    %100 = arith.maximumf %98, %99 : vector<16x256xf32>
    %101 = arith.truncf %100 : vector<16x256xf32> to vector<16x256xbf16>
    %c0_68 = arith.constant 0 : index
    %c0_69 = arith.constant 0 : index
    %c0_70 = arith.constant 0 : index
    %102 = vector.load %arg6[%c0_68, %c0_69, %c0_70] : memref<1x16x256xbf16, #tpu.memory_space<vmem>>, vector<1x16x256xbf16>
    %103 = vector.shape_cast %102 : vector<1x16x256xbf16> to vector<16x256xbf16>
    %104 = vector.shape_cast %101 : vector<16x256xbf16> to vector<1x16x256xbf16>
    tpu.vector_store %arg6[%c0_68, %c0_69, %c0_70], %104 {strides = array<i32>} : memref<1x16x256xbf16, #tpu.memory_space<vmem>>, vector<1x16x256xbf16>,
    return
  }
  func.func @transform_0(%arg0: i32, %arg1: i32) -> (i32, i32, i32, i32) {
    %c0_i32 = arith.constant 0 : i32
    %c0_i32_0 = arith.constant 0 : i32
    %c0_i32_1 = arith.constant 0 : i32
    %c0_i32_2 = arith.constant 0 : i32
    return %arg0, %c0_i32, %c0_i32_0, %c0_i32_1 : i32, i32, i32, i32
  }
  func.func @transform_1(%arg0: i32, %arg1: i32) -> (i32, i32, i32) {
    %c0_i32 = arith.constant 0 : i32
    %c0_i32_0 = arith.constant 0 : i32
    %c0_i32_1 = arith.constant 0 : i32
    %c0_i32_2 = arith.constant 0 : i32
    return %c0_i32, %c0_i32_0, %c0_i32_1 : i32, i32, i32
  }
  func.func @transform_2(%arg0: i32, %arg1: i32) -> (i32, i32) {
    %c0_i32 = arith.constant 0 : i32
    %c0_i32_0 = arith.constant 0 : i32
    %c0_i32_1 = arith.constant 0 : i32
    return %c0_i32, %c0_i32_0 : i32, i32
  }
  func.func @transform_3(%arg0: i32, %arg1: i32) -> (i32, i32, i32) {
    %c0_i32 = arith.constant 0 : i32
    %c0_i32_0 = arith.constant 0 : i32
    return %arg0, %arg1, %c0_i32 : i32, i32, i32
  }
  func.func @transform_4(%arg0: i32, %arg1: i32) -> (i32, i32, i32) {
    %c0_i32 = arith.constant 0 : i32
    %c0_i32_0 = arith.constant 0 : i32
    return %arg0, %arg1, %c0_i32 : i32, i32, i32
  }
}

module attributes {stable_mosaic.version = 11 : i64} {
  func.func @_tap_conv_kernel(%arg0: i32, %arg1: i32, %arg2: memref<1x1x48x256xbf16, #tpu.memory_space<vmem>>, %arg3: memref<9x256x256xbf16, #tpu.memory_space<vmem>>, %arg4: memref<1x256xf32, #tpu.memory_space<vmem>>, %arg5: memref<1x16x256xbf16, #tpu.memory_space<vmem>>) attributes {dimension_semantics = [#tpu.dimension_semantics<parallel>, #tpu.dimension_semantics<parallel>], iteration_bounds = array<i64: 2, 1>, scalar_prefetch = 0 : i64, scratch_operands = 0 : i64, tpu.core_type = #tpu.core_type<tc>, window_params = [{transform_indices = @transform_0, window_bounds = array<i64: 1, 1, 48, 256>}, {pipeline_mode = #tpu.pipeline_mode<synchronous>, transform_indices = @transform_1, window_bounds = array<i64: 9, 256, 256>}, {pipeline_mode = #tpu.pipeline_mode<synchronous>, transform_indices = @transform_2, window_bounds = array<i64: 1, 256>}, {transform_indices = @transform_3, window_bounds = array<i64: 1, 16, 256>}]} {
    %c16_i32 = arith.constant 16 : i32
    %0 = arith.muli %arg1, %c16_i32 : i32
    %cst = arith.constant 0.000000e+00 : f32
    %1 = vector.broadcast %cst : f32 to vector<16x256xf32>
    %c0_i32 = arith.constant 0 : i32
    %2 = arith.addi %0, %c0_i32 : i32
    %3 = tpu.assume_multiple %2, 16 : i32
    %c0 = arith.constant 0 : index
    %c0_0 = arith.constant 0 : index
    %4 = arith.index_cast %3 : i32 to index
    %c0_1 = arith.constant 0 : index
    %5 = vector.load %arg2[%c0, %c0_0, %4, %c0_1] : memref<1x1x48x256xbf16, #tpu.memory_space<vmem>>, vector<1x1x32x256xbf16>
    %6 = vector.shape_cast %5 : vector<1x1x32x256xbf16> to vector<32x256xbf16>
    %7 = vector.extract_strided_slice %6 {offsets = [0, 0], sizes = [16, 256], strides = [1, 1]} : vector<32x256xbf16> to vector<16x256xbf16>
    %c0_2 = arith.constant 0 : index
    %c0_3 = arith.constant 0 : index
    %c0_4 = arith.constant 0 : index
    %8 = vector.load %arg3[%c0_2, %c0_3, %c0_4] : memref<9x256x256xbf16, #tpu.memory_space<vmem>>, vector<1x256x256xbf16>
    %9 = vector.shape_cast %8 : vector<1x256x256xbf16> to vector<256x256xbf16>
    %cst_5 = arith.constant dense<0.000000e+00> : vector<16x256xf32>
    %10 = tpu.matmul %7, %9, %cst_5 {dimension_numbers = #tpu.dot_dimension_numbers<[1], [0], [0], [1], [0, 0, 1, 1], [], []>} : vector<16x256xbf16>, vector<256x256xbf16>, vector<16x256xf32> -> vector<16x256xf32>
    %11 = arith.addf %1, %10 : vector<16x256xf32>
    %c0_i32_6 = arith.constant 0 : i32
    %12 = arith.addi %0, %c0_i32_6 : i32
    %13 = tpu.assume_multiple %12, 16 : i32
    %c0_7 = arith.constant 0 : index
    %c0_8 = arith.constant 0 : index
    %14 = arith.index_cast %13 : i32 to index
    %c0_9 = arith.constant 0 : index
    %15 = vector.load %arg2[%c0_7, %c0_8, %14, %c0_9] : memref<1x1x48x256xbf16, #tpu.memory_space<vmem>>, vector<1x1x32x256xbf16>
    %16 = vector.shape_cast %15 : vector<1x1x32x256xbf16> to vector<32x256xbf16>
    %17 = vector.extract_strided_slice %16 {offsets = [1, 0], sizes = [16, 256], strides = [1, 1]} : vector<32x256xbf16> to vector<16x256xbf16>
    %c1 = arith.constant 1 : index
    %c0_10 = arith.constant 0 : index
    %c0_11 = arith.constant 0 : index
    %18 = vector.load %arg3[%c1, %c0_10, %c0_11] : memref<9x256x256xbf16, #tpu.memory_space<vmem>>, vector<1x256x256xbf16>
    %19 = vector.shape_cast %18 : vector<1x256x256xbf16> to vector<256x256xbf16>
    %cst_12 = arith.constant dense<0.000000e+00> : vector<16x256xf32>
    %20 = tpu.matmul %17, %19, %cst_12 {dimension_numbers = #tpu.dot_dimension_numbers<[1], [0], [0], [1], [0, 0, 1, 1], [], []>} : vector<16x256xbf16>, vector<256x256xbf16>, vector<16x256xf32> -> vector<16x256xf32>
    %21 = arith.addf %11, %20 : vector<16x256xf32>
    %c0_i32_13 = arith.constant 0 : i32
    %22 = arith.addi %0, %c0_i32_13 : i32
    %23 = tpu.assume_multiple %22, 16 : i32
    %c0_14 = arith.constant 0 : index
    %c0_15 = arith.constant 0 : index
    %24 = arith.index_cast %23 : i32 to index
    %c0_16 = arith.constant 0 : index
    %25 = vector.load %arg2[%c0_14, %c0_15, %24, %c0_16] : memref<1x1x48x256xbf16, #tpu.memory_space<vmem>>, vector<1x1x32x256xbf16>
    %26 = vector.shape_cast %25 : vector<1x1x32x256xbf16> to vector<32x256xbf16>
    %27 = vector.extract_strided_slice %26 {offsets = [2, 0], sizes = [16, 256], strides = [1, 1]} : vector<32x256xbf16> to vector<16x256xbf16>
    %c2 = arith.constant 2 : index
    %c0_17 = arith.constant 0 : index
    %c0_18 = arith.constant 0 : index
    %28 = vector.load %arg3[%c2, %c0_17, %c0_18] : memref<9x256x256xbf16, #tpu.memory_space<vmem>>, vector<1x256x256xbf16>
    %29 = vector.shape_cast %28 : vector<1x256x256xbf16> to vector<256x256xbf16>
    %cst_19 = arith.constant dense<0.000000e+00> : vector<16x256xf32>
    %30 = tpu.matmul %27, %29, %cst_19 {dimension_numbers = #tpu.dot_dimension_numbers<[1], [0], [0], [1], [0, 0, 1, 1], [], []>} : vector<16x256xbf16>, vector<256x256xbf16>, vector<16x256xf32> -> vector<16x256xf32>
    %31 = arith.addf %21, %30 : vector<16x256xf32>
    %c0_i32_20 = arith.constant 0 : i32
    %32 = arith.addi %0, %c0_i32_20 : i32
    %33 = tpu.assume_multiple %32, 16 : i32
    %c0_21 = arith.constant 0 : index
    %c0_22 = arith.constant 0 : index
    %34 = arith.index_cast %33 : i32 to index
    %c0_23 = arith.constant 0 : index
    %35 = vector.load %arg2[%c0_21, %c0_22, %34, %c0_23] : memref<1x1x48x256xbf16, #tpu.memory_space<vmem>>, vector<1x1x32x256xbf16>
    %36 = vector.shape_cast %35 : vector<1x1x32x256xbf16> to vector<32x256xbf16>
    %37 = vector.extract_strided_slice %36 {offsets = [4, 0], sizes = [16, 256], strides = [1, 1]} : vector<32x256xbf16> to vector<16x256xbf16>
    %c3 = arith.constant 3 : index
    %c0_24 = arith.constant 0 : index
    %c0_25 = arith.constant 0 : index
    %38 = vector.load %arg3[%c3, %c0_24, %c0_25] : memref<9x256x256xbf16, #tpu.memory_space<vmem>>, vector<1x256x256xbf16>
    %39 = vector.shape_cast %38 : vector<1x256x256xbf16> to vector<256x256xbf16>
    %cst_26 = arith.constant dense<0.000000e+00> : vector<16x256xf32>
    %40 = tpu.matmul %37, %39, %cst_26 {dimension_numbers = #tpu.dot_dimension_numbers<[1], [0], [0], [1], [0, 0, 1, 1], [], []>} : vector<16x256xbf16>, vector<256x256xbf16>, vector<16x256xf32> -> vector<16x256xf32>
    %41 = arith.addf %31, %40 : vector<16x256xf32>
    %c0_i32_27 = arith.constant 0 : i32
    %42 = arith.addi %0, %c0_i32_27 : i32
    %43 = tpu.assume_multiple %42, 16 : i32
    %c0_28 = arith.constant 0 : index
    %c0_29 = arith.constant 0 : index
    %44 = arith.index_cast %43 : i32 to index
    %c0_30 = arith.constant 0 : index
    %45 = vector.load %arg2[%c0_28, %c0_29, %44, %c0_30] : memref<1x1x48x256xbf16, #tpu.memory_space<vmem>>, vector<1x1x32x256xbf16>
    %46 = vector.shape_cast %45 : vector<1x1x32x256xbf16> to vector<32x256xbf16>
    %47 = vector.extract_strided_slice %46 {offsets = [5, 0], sizes = [16, 256], strides = [1, 1]} : vector<32x256xbf16> to vector<16x256xbf16>
    %c4 = arith.constant 4 : index
    %c0_31 = arith.constant 0 : index
    %c0_32 = arith.constant 0 : index
    %48 = vector.load %arg3[%c4, %c0_31, %c0_32] : memref<9x256x256xbf16, #tpu.memory_space<vmem>>, vector<1x256x256xbf16>
    %49 = vector.shape_cast %48 : vector<1x256x256xbf16> to vector<256x256xbf16>
    %cst_33 = arith.constant dense<0.000000e+00> : vector<16x256xf32>
    %50 = tpu.matmul %47, %49, %cst_33 {dimension_numbers = #tpu.dot_dimension_numbers<[1], [0], [0], [1], [0, 0, 1, 1], [], []>} : vector<16x256xbf16>, vector<256x256xbf16>, vector<16x256xf32> -> vector<16x256xf32>
    %51 = arith.addf %41, %50 : vector<16x256xf32>
    %c0_i32_34 = arith.constant 0 : i32
    %52 = arith.addi %0, %c0_i32_34 : i32
    %53 = tpu.assume_multiple %52, 16 : i32
    %c0_35 = arith.constant 0 : index
    %c0_36 = arith.constant 0 : index
    %54 = arith.index_cast %53 : i32 to index
    %c0_37 = arith.constant 0 : index
    %55 = vector.load %arg2[%c0_35, %c0_36, %54, %c0_37] : memref<1x1x48x256xbf16, #tpu.memory_space<vmem>>, vector<1x1x32x256xbf16>
    %56 = vector.shape_cast %55 : vector<1x1x32x256xbf16> to vector<32x256xbf16>
    %57 = vector.extract_strided_slice %56 {offsets = [6, 0], sizes = [16, 256], strides = [1, 1]} : vector<32x256xbf16> to vector<16x256xbf16>
    %c5 = arith.constant 5 : index
    %c0_38 = arith.constant 0 : index
    %c0_39 = arith.constant 0 : index
    %58 = vector.load %arg3[%c5, %c0_38, %c0_39] : memref<9x256x256xbf16, #tpu.memory_space<vmem>>, vector<1x256x256xbf16>
    %59 = vector.shape_cast %58 : vector<1x256x256xbf16> to vector<256x256xbf16>
    %cst_40 = arith.constant dense<0.000000e+00> : vector<16x256xf32>
    %60 = tpu.matmul %57, %59, %cst_40 {dimension_numbers = #tpu.dot_dimension_numbers<[1], [0], [0], [1], [0, 0, 1, 1], [], []>} : vector<16x256xbf16>, vector<256x256xbf16>, vector<16x256xf32> -> vector<16x256xf32>
    %61 = arith.addf %51, %60 : vector<16x256xf32>
    %c0_i32_41 = arith.constant 0 : i32
    %62 = arith.addi %0, %c0_i32_41 : i32
    %63 = tpu.assume_multiple %62, 16 : i32
    %c0_42 = arith.constant 0 : index
    %c0_43 = arith.constant 0 : index
    %64 = arith.index_cast %63 : i32 to index
    %c0_44 = arith.constant 0 : index
    %65 = vector.load %arg2[%c0_42, %c0_43, %64, %c0_44] : memref<1x1x48x256xbf16, #tpu.memory_space<vmem>>, vector<1x1x32x256xbf16>
    %66 = vector.shape_cast %65 : vector<1x1x32x256xbf16> to vector<32x256xbf16>
    %67 = vector.extract_strided_slice %66 {offsets = [8, 0], sizes = [16, 256], strides = [1, 1]} : vector<32x256xbf16> to vector<16x256xbf16>
    %c6 = arith.constant 6 : index
    %c0_45 = arith.constant 0 : index
    %c0_46 = arith.constant 0 : index
    %68 = vector.load %arg3[%c6, %c0_45, %c0_46] : memref<9x256x256xbf16, #tpu.memory_space<vmem>>, vector<1x256x256xbf16>
    %69 = vector.shape_cast %68 : vector<1x256x256xbf16> to vector<256x256xbf16>
    %cst_47 = arith.constant dense<0.000000e+00> : vector<16x256xf32>
    %70 = tpu.matmul %67, %69, %cst_47 {dimension_numbers = #tpu.dot_dimension_numbers<[1], [0], [0], [1], [0, 0, 1, 1], [], []>} : vector<16x256xbf16>, vector<256x256xbf16>, vector<16x256xf32> -> vector<16x256xf32>
    %71 = arith.addf %61, %70 : vector<16x256xf32>
    %c0_i32_48 = arith.constant 0 : i32
    %72 = arith.addi %0, %c0_i32_48 : i32
    %73 = tpu.assume_multiple %72, 16 : i32
    %c0_49 = arith.constant 0 : index
    %c0_50 = arith.constant 0 : index
    %74 = arith.index_cast %73 : i32 to index
    %c0_51 = arith.constant 0 : index
    %75 = vector.load %arg2[%c0_49, %c0_50, %74, %c0_51] : memref<1x1x48x256xbf16, #tpu.memory_space<vmem>>, vector<1x1x32x256xbf16>
    %76 = vector.shape_cast %75 : vector<1x1x32x256xbf16> to vector<32x256xbf16>
    %77 = vector.extract_strided_slice %76 {offsets = [9, 0], sizes = [16, 256], strides = [1, 1]} : vector<32x256xbf16> to vector<16x256xbf16>
    %c7 = arith.constant 7 : index
    %c0_52 = arith.constant 0 : index
    %c0_53 = arith.constant 0 : index
    %78 = vector.load %arg3[%c7, %c0_52, %c0_53] : memref<9x256x256xbf16, #tpu.memory_space<vmem>>, vector<1x256x256xbf16>
    %79 = vector.shape_cast %78 : vector<1x256x256xbf16> to vector<256x256xbf16>
    %cst_54 = arith.constant dense<0.000000e+00> : vector<16x256xf32>
    %80 = tpu.matmul %77, %79, %cst_54 {dimension_numbers = #tpu.dot_dimension_numbers<[1], [0], [0], [1], [0, 0, 1, 1], [], []>} : vector<16x256xbf16>, vector<256x256xbf16>, vector<16x256xf32> -> vector<16x256xf32>
    %81 = arith.addf %71, %80 : vector<16x256xf32>
    %c0_i32_55 = arith.constant 0 : i32
    %82 = arith.addi %0, %c0_i32_55 : i32
    %83 = tpu.assume_multiple %82, 16 : i32
    %c0_56 = arith.constant 0 : index
    %c0_57 = arith.constant 0 : index
    %84 = arith.index_cast %83 : i32 to index
    %c0_58 = arith.constant 0 : index
    %85 = vector.load %arg2[%c0_56, %c0_57, %84, %c0_58] : memref<1x1x48x256xbf16, #tpu.memory_space<vmem>>, vector<1x1x32x256xbf16>
    %86 = vector.shape_cast %85 : vector<1x1x32x256xbf16> to vector<32x256xbf16>
    %87 = vector.extract_strided_slice %86 {offsets = [10, 0], sizes = [16, 256], strides = [1, 1]} : vector<32x256xbf16> to vector<16x256xbf16>
    %c8 = arith.constant 8 : index
    %c0_59 = arith.constant 0 : index
    %c0_60 = arith.constant 0 : index
    %88 = vector.load %arg3[%c8, %c0_59, %c0_60] : memref<9x256x256xbf16, #tpu.memory_space<vmem>>, vector<1x256x256xbf16>
    %89 = vector.shape_cast %88 : vector<1x256x256xbf16> to vector<256x256xbf16>
    %cst_61 = arith.constant dense<0.000000e+00> : vector<16x256xf32>
    %90 = tpu.matmul %87, %89, %cst_61 {dimension_numbers = #tpu.dot_dimension_numbers<[1], [0], [0], [1], [0, 0, 1, 1], [], []>} : vector<16x256xbf16>, vector<256x256xbf16>, vector<16x256xf32> -> vector<16x256xf32>
    %91 = arith.addf %81, %90 : vector<16x256xf32>
    %c0_62 = arith.constant 0 : index
    %c0_63 = arith.constant 0 : index
    %92 = vector.load %arg4[%c0_62, %c0_63] : memref<1x256xf32, #tpu.memory_space<vmem>>, vector<1x256xf32>
    %93 = vector.broadcast %92 : vector<1x256xf32> to vector<16x256xf32>
    %94 = arith.addf %91, %93 : vector<16x256xf32>
    %cst_64 = arith.constant 0.000000e+00 : f32
    %95 = vector.broadcast %cst_64 : f32 to vector<16x256xf32>
    %96 = arith.maximumf %94, %95 : vector<16x256xf32>
    %97 = arith.truncf %96 : vector<16x256xf32> to vector<16x256xbf16>
    %c0_65 = arith.constant 0 : index
    %c0_66 = arith.constant 0 : index
    %c0_67 = arith.constant 0 : index
    %98 = vector.load %arg5[%c0_65, %c0_66, %c0_67] : memref<1x16x256xbf16, #tpu.memory_space<vmem>>, vector<1x16x256xbf16>
    %99 = vector.shape_cast %98 : vector<1x16x256xbf16> to vector<16x256xbf16>
    %100 = vector.shape_cast %97 : vector<16x256xbf16> to vector<1x16x256xbf16>
    tpu.vector_store %arg5[%c0_65, %c0_66, %c0_67], %100 {strides = array<i32>} : memref<1x16x256xbf16, #tpu.memory_space<vmem>>, vector<1x16x256xbf16>,
    return
  }
  func.func @transform_0(%arg0: i32, %arg1: i32) -> (i32, i32, i32, i32) {
    %c0_i32 = arith.constant 0 : i32
    %c0_i32_0 = arith.constant 0 : i32
    %c0_i32_1 = arith.constant 0 : i32
    %c0_i32_2 = arith.constant 0 : i32
    return %arg0, %c0_i32, %c0_i32_0, %c0_i32_1 : i32, i32, i32, i32
  }
  func.func @transform_1(%arg0: i32, %arg1: i32) -> (i32, i32, i32) {
    %c0_i32 = arith.constant 0 : i32
    %c0_i32_0 = arith.constant 0 : i32
    %c0_i32_1 = arith.constant 0 : i32
    %c0_i32_2 = arith.constant 0 : i32
    return %c0_i32, %c0_i32_0, %c0_i32_1 : i32, i32, i32
  }
  func.func @transform_2(%arg0: i32, %arg1: i32) -> (i32, i32) {
    %c0_i32 = arith.constant 0 : i32
    %c0_i32_0 = arith.constant 0 : i32
    %c0_i32_1 = arith.constant 0 : i32
    return %c0_i32, %c0_i32_0 : i32, i32
  }
  func.func @transform_3(%arg0: i32, %arg1: i32) -> (i32, i32, i32) {
    %c0_i32 = arith.constant 0 : i32
    %c0_i32_0 = arith.constant 0 : i32
    return %arg0, %arg1, %c0_i32 : i32, i32, i32
  }
}

</mosaic_0001>

<bundles_post_ra>
// kernel: resnet_backbone_forward.30
= control target key start
LH: loop header
LB: loop body
LE: loop exit
PB: predicated region body
PF: predicated region fallthrough
CT: control target
= control target key end

     0   :  { %s701_s12 = smov 0   ;;  %s782_s0 = inlined_call_operand.vmem [shape: bf16[512,64], index: 0, kind: input, shape index: {}]   ;;  %s783_s1 = inlined_call_operand.vmem [shape: bf16[64,64], index: 1, kind: input, shape index: {}]   ;;  %s784_s2 = inlined_call_operand.vmem [shape: f32[1,64], index: 2, kind: input, shape index: {}]   ;;  %s785_s3 = inlined_call_operand.vmem [shape: bf16[512,64], index: 3, kind: output, shape index: {}]  }
   0x1 LB: > { %s545_s13 = sadd.s32 4294967295, %s679_s12   ;;  %p549_p0 = scmp.ge.s32.totalorder %s679_s12, 1  ;;  %s679_s12 = sphi %s701_s12, %s13_s12  }
   0x2   : > { %p138_p1 = scmp.lt.s32.totalorder %s679_s12, 5 }
   0x4   : > { %p139_p2 = pnand %p549_p0, %p138_p1 }
   0x5   : > { %v661_v0 = vld [vmem:[%s783_s1] sm:$0xff] (!%p139_p2)   ;;  %s550_s16 = sshll.u32 (!%p139_p2), %s545_s13, 4  ;;  %v662_v1 = vld [vmem:[%s783_s1 + $0x8] sm:$0xff] (!%p139_p2)   ;;  %v663_v2 = vld [vmem:[%s783_s1 + $0x10] sm:$0xff] (!%p139_p2)   ;;  %vm270_vm0 = vcmask (!%p139_p2), 523264   ;;  %vm472_vm1 = vcmask (!%p139_p2), 519168  }
   0x6   : > { %142 = sbr.rel (%p139_p2) target bundleno = 252 (0xfc), region = 32  ;;  %p163_p3 = scmp.lt.s32.totalorder (!%p139_p2), %s550_s16, 63  ;;  %621 = vmatprep.subr.bf16.mxu0 (!%p139_p2), %v661_v0  ;;  %645 = vmatprep.subr.bf16.mxu1 (!%p139_p2), %v661_v0  ;;  %v664_v3 = vld [vmem:[%s783_s1 + $0x18] sm:$0xff] (!%p139_p2)   ;;  %v554_v12 = vld [vmem:[%s784_s2] ss:$0 sm:$0xff] (!%p139_p2) }
   0x7   : > { %622 = vmatpush3.bf16.msra.mxu0 (!%p139_p2), %v661_v0  ;;  %649 = vmatpush3.bf16.msra.mxu1 (!%p139_p2), %v661_v0 }
   0x8   : > { %623 = vmatprep.subr.bf16.mxu0 (!%p139_p2), %v662_v1  ;;  %646 = vmatprep.subr.bf16.mxu1 (!%p139_p2), %v662_v1 }
   0xb   : > { %624 = vmatpush3.bf16.msra.mxu0 (!%p139_p2), %v662_v1  ;;  %650 = vmatpush3.bf16.msra.mxu1 (!%p139_p2), %v662_v1 }
   0xc   : > { %625 = vmatprep.subr.bf16.mxu0 (!%p139_p2), %v663_v2  ;;  %647 = vmatprep.subr.bf16.mxu1 (!%p139_p2), %v663_v2 }
   0xd   : > { %s787_s16 = smov (!%p163_p3, %s550_s16), 63 }
   0xe   : > { %s551_s21 = sshll.u32 %s787_s16, 2 }
   0xf   : > { %s166_s26 = scalar_lea.vmem %s782_s0, %s551_s21  ;;  %626 = vmatpush3.bf16.msra.mxu0 %v663_v2  ;;  %651 = vmatpush3.bf16.msra.mxu1 %v663_v2  ;;  %s745_s4 = scalar_lea.vmem %s785_s3, %s551_s21 }
  0x10   : > { %v665_v4 = vld [vmem:[%s166_s26] sm:$0xff]   ;;  %627 = vmatprep.subr.bf16.mxu0 %v664_v3  ;;  %648 = vmatprep.subr.bf16.mxu1 %v664_v3  ;;  %v667_v6 = vld [vmem:[%s166_s26 + $0x8] sm:$0xff]   ;;  %v669_v8 = vld [vmem:[%s166_s26 + $0x10] sm:$0xff]  }
  0x11   : > { %v666_v5 = vld [vmem:[%s166_s26 + $0x20] sm:$0xff]   ;;  %629 = vmatprep.mubr.msk.bf16.mxu0 %vm270_vm0, %v665_v4  ;;  %v668_v7 = vld [vmem:[%s166_s26 + $0x28] sm:$0xff]   ;;  %v670_v9 = vld [vmem:[%s166_s26 + $0x30] sm:$0xff]  }
  0x12   : > { %637 = vmatprep.mubr.msk.bf16.mxu1 %vm270_vm0, %v666_v5  ;;  %v671_v10 = vld [vmem:[%s166_s26 + $0x18] sm:$0xff]  }
  0x13   : > { %628 = vmatpush3.bf16.msra.mxu0 %v664_v3  ;;  %652 = vmatpush3.bf16.msra.mxu1 %v664_v3  ;;  %v672_v11 = vld [vmem:[%s166_s26 + $0x38] sm:$0xff]  }
  0x16   : > { %630 = vmatmul.mubr.msk.bf16.vlgmr.msra.gmra.mrb[0].mxu0 %vm270_vm0, %v667_v6  ;;  %638 = vmatmul.mubr.msk.bf16.vlgmr.msra.gmra.mrb[0].mxu1 %vm270_vm0, %v668_v7 }
  0x17   : > { %633 = vmatprep.mubr.msk.bf16.mxu0 %vm270_vm0, %v669_v8  ;;  %641 = vmatprep.mubr.msk.bf16.mxu1 %vm270_vm0, %v670_v9 }
  0x1e   : > { %634 = vmatmul.mubr.msk.bf16.gmra.mrb[4].mxu0 %vm270_vm0, %v671_v10  ;;  %642 = vmatmul.mubr.msk.bf16.gmra.mrb[4].mxu1 %vm270_vm0, %v672_v11 }
  0xe9   : > { %v631_v13 = vpop.f32.mrb[0].mxu0  ;;  %v639_v14 = vpop.f32.mrb[0].mxu1 }
  0xea   : > { %v338_v15 = vadd.f32 %v631_v13, %v554_v12  ;;  %v370_v16 = vadd.f32 %v639_v14, %v554_v12  ;;  %v329_v17 = vpop.f32.mrb[1].mxu0  ;;  %v361_v18 = vpop.f32.mrb[1].mxu1 }
  0xeb   : > { %v330_v19 = vadd.f32 %v554_v12, %v329_v17  ;;  %v362_v20 = vadd.f32 %v554_v12, %v361_v18  ;;  %v632_v21 = vpop.f32.mrb[2].mxu0  ;;  %v640_v22 = vpop.f32.mrb[2].mxu1 }
  0xec   : > { %v394_v23 = vmax.f32 %v338_v15, 0.0  ;;  %v402_v24 = vmax.f32 %v370_v16, 0.0  ;;  %v341_v25 = vadd.f32 %v632_v21, %v554_v12  ;;  %v373_v26 = vadd.f32 %v640_v22, %v554_v12  ;;  %v332_v27 = vpop.f32.mrb[3].mxu0  ;;  %v364_v28 = vpop.f32.mrb[3].mxu1 }
  0xed   : > { %v392_v29 = vmax.f32 %v330_v19, 0.0  ;;  %v400_v30 = vmax.f32 %v362_v20, 0.0  ;;  %v333_v31 = vadd.f32 %v554_v12, %v332_v27  ;;  %v365_v32 = vadd.f32 %v554_v12, %v364_v28 }
  0xee   : > { %v595_v33 = vpack.c.bf16 %v394_v23, %v394_v23  ;;  %v603_v34 = vpack.c.bf16 %v402_v24, %v402_v24  ;;  %v395_v35 = vmax.f32 %v341_v25, 0.0  ;;  %v403_v36 = vmax.f32 %v373_v26, 0.0 }
  0xef   : > { %v593_v37 = vpack.c.bf16 %v392_v29, %v392_v29  ;;  %v601_v38 = vpack.c.bf16 %v400_v30, %v400_v30  ;;  %v393_v39 = vmax.f32 %v333_v31, 0.0  ;;  %v401_v40 = vmax.f32 %v365_v32, 0.0 }
  0xf0   : > { %475 = vst.msk [vmem:[%s745_s4 + $0x8] sm:$0xf] %vm472_vm1, %v595_v33  ;;  %483 = vst.msk [vmem:[%s745_s4 + $0x28] sm:$0xf] %vm472_vm1, %v603_v34  ;;  %v596_v41 = vpack.c.bf16 %v395_v35, %v395_v35  ;;  %v604_v42 = vpack.c.bf16 %v403_v36, %v403_v36 }
  0xf1   : > { %473 = vst.msk [vmem:[%s745_s4] sm:$0xf] %vm472_vm1, %v593_v37  ;;  %481 = vst.msk [vmem:[%s745_s4 + $0x20] sm:$0xf] %vm472_vm1, %v601_v38  ;;  %v594_v43 = vpack.c.bf16 %v393_v39, %v393_v39  ;;  %v602_v44 = vpack.c.bf16 %v401_v40, %v401_v40  ;;  %v635_v45 = vpop.f32.mrb[4].mxu0  ;;  %v643_v46 = vpop.f32.mrb[4].mxu1 }
  0xf2   : > { %476 = vst.msk [vmem:[%s745_s4 + $0xc] sm:$0xf] %vm472_vm1, %v596_v41  ;;  %484 = vst.msk [vmem:[%s745_s4 + $0x2c] sm:$0xf] %vm472_vm1, %v604_v42  ;;  %v354_v47 = vadd.f32 %v635_v45, %v554_v12  ;;  %v386_v48 = vadd.f32 %v643_v46, %v554_v12  ;;  %v345_v49 = vpop.f32.mrb[5].mxu0  ;;  %v377_v50 = vpop.f32.mrb[5].mxu1 }
  0xf3   : > { %474 = vst.msk [vmem:[%s745_s4 + $0x4] sm:$0xf] %vm472_vm1, %v594_v43  ;;  %482 = vst.msk [vmem:[%s745_s4 + $0x24] sm:$0xf] %vm472_vm1, %v602_v44  ;;  %v346_v51 = vadd.f32 %v554_v12, %v345_v49  ;;  %v378_v52 = vadd.f32 %v554_v12, %v377_v50  ;;  %v636_v53 = vpop.f32.mrb[6].mxu0  ;;  %v644_v54 = vpop.f32.mrb[6].mxu1 }
  0xf4   : > { %v398_v55 = vmax.f32 %v354_v47, 0.0  ;;  %v406_v56 = vmax.f32 %v386_v48, 0.0  ;;  %v357_v57 = vadd.f32 %v636_v53, %v554_v12  ;;  %v389_v58 = vadd.f32 %v644_v54, %v554_v12  ;;  %v348_v59 = vpop.f32.mrb[7].mxu0  ;;  %v380_v60 = vpop.f32.mrb[7].mxu1 }
  0xf5   : > { %v396_v61 = vmax.f32 %v346_v51, 0.0  ;;  %v404_v62 = vmax.f32 %v378_v52, 0.0  ;;  %v349_v63 = vadd.f32 %v554_v12, %v348_v59  ;;  %v381_v0 = vadd.f32 %v554_v12, %v380_v60 }
  0xf6   : > { %v599_v1 = vpack.c.bf16 %v398_v55, %v398_v55  ;;  %v607_v2 = vpack.c.bf16 %v406_v56, %v406_v56  ;;  %v399_v3 = vmax.f32 %v357_v57, 0.0  ;;  %v407_v4 = vmax.f32 %v389_v58, 0.0 }
  0xf7   : > { %v597_v5 = vpack.c.bf16 %v396_v61, %v396_v61  ;;  %v605_v6 = vpack.c.bf16 %v404_v62, %v404_v62  ;;  %v397_v7 = vmax.f32 %v349_v63, 0.0  ;;  %v405_v8 = vmax.f32 %v381_v0, 0.0 }
  0xf8   : > { %479 = vst.msk [vmem:[%s745_s4 + $0x18] sm:$0xf] %vm472_vm1, %v599_v1  ;;  %487 = vst.msk [vmem:[%s745_s4 + $0x38] sm:$0xf] %vm472_vm1, %v607_v2  ;;  %v600_v9 = vpack.c.bf16 %v399_v3, %v399_v3  ;;  %v608_v10 = vpack.c.bf16 %v407_v4, %v407_v4 }
  0xf9   : > { %477 = vst.msk [vmem:[%s745_s4 + $0x10] sm:$0xf] %vm472_vm1, %v597_v5  ;;  %485 = vst.msk [vmem:[%s745_s4 + $0x30] sm:$0xf] %vm472_vm1, %v605_v6  ;;  %v598_v11 = vpack.c.bf16 %v397_v7, %v397_v7  ;;  %v606_v12 = vpack.c.bf16 %v405_v8, %v405_v8 }
  0xfa   : > { %480 = vst.msk [vmem:[%s745_s4 + $0x1c] sm:$0xf] %vm472_vm1, %v600_v9  ;;  %488 = vst.msk [vmem:[%s745_s4 + $0x3c] sm:$0xf] %vm472_vm1, %v608_v10 }
  0xfb   : > { %478 = vst.msk [vmem:[%s745_s4 + $0x14] sm:$0xf] %vm472_vm1, %v598_v11  ;;  %486 = vst.msk [vmem:[%s745_s4 + $0x34] sm:$0xf] %vm472_vm1, %v606_v12 }
  0xfc PF: > { %s13_s12 = sadd.s32 1, %s679_s12  }
  0xfd   : > { %p10_p4 = scmp.ge.s32.totalorder %s13_s12, 6  }
  0xff   :  { %12 = sbr.rel (!%p10_p4) target bundleno = 1 (0x1), region = 62 }

// kernel: resnet_backbone_forward.31
= control target key start
LH: loop header
LB: loop body
LE: loop exit
PB: predicated region body
PF: predicated region fallthrough
CT: control target
= control target key end

     0   :  { %s505_s6 = smov 0   ;;  %s507_s7 = smov 0   ;;  %s640_s0 = inlined_call_operand.vmem [shape: bf16[2,4,112,64], index: 0, kind: input, shape index: {}]   ;;  %s641_s1 = inlined_call_operand.vmem [shape: bf16[2,80,64], index: 1, kind: output, shape index: {}]  }
   0x1   :  { %s509_s8 = smov 0   ;;  %s511_s9 = smov 0  }
   0x2   :  { %s513_s10 = smov 0  }
   0x3 LB: > { %s20_s11 = sadd.s32 1, %s485_s8  ;;  %s23_s12 = sadd.s32 1, %s489_s9  ;;  %s493_s10 = sphi %s513_s10, %s11_s10   ;;  %s489_s9 = sphi %s511_s9, %s650_s9   ;;  %s485_s8 = sphi %s509_s8, %s649_s8   ;;  %s481_s7 = sphi %s507_s7, %s648_s7   ;;  %s477_s6 = sphi %s505_s6, %s647_s6  }
   0x4   : > { %p21_p0 = scmp.ge.s32.totalorder %s20_s11, 5  ;;  %p392_p1 = scmp.ge.s32.totalorder %s493_s10, 1 }
   0x5   : > { %p101_p2 = scmp.lt.s32.totalorder %s493_s10, 11 }
   0x6   : > { %s652_s11 = smov (%p21_p0, %s20_s11), 0  ;;  %s654_s12 = smov (!%p21_p0, %s23_s12), %s489_s9 }
   0x7   : > { %p102_p3 = pnand %p392_p1, %p101_p2  ;;  %p25_p4 = scmp.ge.s32.totalorder %s654_s12, 2 }
   0x8   : > { %p125_p5 = scmp.lt.s32.totalorder (!%p102_p3), %s481_s7, 1  ;;  %s396_s13 = sshll.u32 (!%p102_p3), %s477_s6, 4  ;;  %vm158_vm0 = vsmask.f32 (!%p102_p3), 3328  ;;  %vm159_vm1 = vsmask.f32 (!%p102_p3), 7440 }
   0x9   : > { %s656_s12 = smov (%p25_p4, %s654_s12), 0  ;;  %105 = sbr.rel (%p102_p3) target bundleno = 48 (0x30), region = 24 }
   0xa   : > { %s141_s15 = sshra.s32 (!%p102_p3), %s396_s13, 3  ;;  %s394_s21 = sshll.u32 (!%p102_p3), %s477_s6, 1  ;;  %vm276_vm2 = vcmask (!%p102_p3), 1042432   ;;  %vm579_vm3 = vmor (!%p102_p3), %vm158_vm0, %vm159_vm1  ;;  %vm277_vm4 = vcmask (!%p102_p3), 1046532   ;;  %vm290_vm6 = vcmask (!%p102_p3), 519168  }
   0xb   : > { %s397_s16 = sshll.u32 (!%p102_p3), %s141_s15, 2  ;;  %p573_p6 = scmp.lt.s32.totalorder (!%p102_p3), %s394_s21, 9  ;;  %vm608_vm5 = vmor (!%p102_p3), %vm276_vm2, %vm277_vm4 }
  0x10   : > { %s658_s7 = smov (!%p125_p5, %s481_s7), 1  ;;  %s660_s21 = smov (!%p573_p6, %s394_s21), 9 }
  0x11   : > { %s413_s14 = smul.u32 224, %s658_s7 }
  0x12   : > { %s414_s23 = smul.u32 10, %s658_s7 }
  0x13   : > { %s129_s19 = scalar_lea.vmem %s640_s0, %s413_s14 }
  0x14   : > { %s544_s20 = scalar_lea.vmem %s129_s19, %s397_s16  ;;  %s136_s24 = sadd.s32 %s414_s23, %s660_s21 }
  0x15   : > { %v145_v0 = vld [vmem:[%s544_s20] sm:$0xf]  ;;  %v548_v1 = vld [vmem:[%s544_s20 + $0x4] sm:$0xf]  ;;  %v551_v2 = vld [vmem:[%s544_s20 + $0x8] sm:$0xf] }
  0x16   : > { %v399_v3 = vld [vmem:[%s544_s20 + $0x38] sm:$0xf]  ;;  %v400_v4 = vld [vmem:[%s544_s20 + $0x3c] sm:$0xf]  ;;  %v162_v7 = vshrl.u32 %v145_v0, 16  ;;  %v165_v8 = vshll.u32 %v145_v0, 16 }
  0x17   : > { %v156_v5 = vmax.bf16 %v399_v3, %v145_v0  ;;  %v157_v6 = vmax.bf16 %v400_v4, %v548_v1  ;;  %v557_v9 = vld [vmem:[%s544_s20 + $0x70] sm:$0xf]  ;;  %v171_v10 = vshll.u32 %v548_v1, 16  ;;  %v175_v11 = vshrl.u32 %v548_v1, 16  ;;  %v563_v13 = vld [vmem:[%s544_s20 + $0x74] sm:$0xf] }
  0x18   : > { %v181_v12 = vshll.u32 %v551_v2, 16  ;;  %v205_v14 = vshrl.u32 %v557_v9, 16  ;;  %v164_v15 = vrot.slane %v162_v7, 4  ;;  %v167_v16 = vrot.slane %v165_v8, 5  ;;  %v401_v19 = vld [vmem:[%s544_s20 + $0x40] sm:$0xf] }
  0x19   : > { %v208_v17 = vshll.u32 %v557_v9, 16  ;;  %v214_v18 = vshll.u32 %v563_v13, 16  ;;  %v173_v20 = vrot.slane %v171_v10, 5  ;;  %v177_v21 = vrot.slane %v175_v11, 4  ;;  %v406_v44 = vld [vmem:[%s544_s20 + $0x78] sm:$0xf] }
  0x1a   : > { %v183_v22 = vrot.slane %v181_v12, 5  ;;  %v207_v23 = vrot.slane %v205_v14, 4  ;;  %v168_v24 = vor.u32 %v167_v16, %v164_v15  ;;  %v218_v27 = vshrl.u32 %v563_v13, 16  ;;  %v148_v49 = vld [vmem:[%s544_s20 + $0xc] sm:$0xf]  ;;  %s395_s25 = sshll.u32 %s136_s24, 2 }
  0x1b   : > { %v210_v25 = vrot.slane %v208_v17, 5  ;;  %v216_v26 = vrot.slane %v214_v18, 5  ;;  %v178_v29 = vor.u32 %v177_v21, %v173_v20  ;;  %v232_v30 = vshrl.u32 %v551_v2, 16  ;;  %v408_v51 = vld [vmem:[%s544_s20 + $0xa8] sm:$0xf]  ;;  %s138_s28 = scalar_lea.vmem %s641_s1, %s395_s25 }
  0x1c   : > { %v246_v31 = vshrl.u32 %v400_v4, 16  ;;  %v249_v32 = vshll.u32 %v400_v4, 16  ;;  %v169_v33 = vrot.slane %v168_v24, 4  ;;  %v220_v35 = vrot.slane %v218_v27, 4  ;;  %v402_v57 = vld [vmem:[%s544_s20 + $0x44] sm:$0xf] }
  0x1d   : > { %v211_v34 = vor.u32 %v210_v25, %v207_v23  ;;  %v255_v36 = vshll.u32 %v401_v19, 16  ;;  %v179_v37 = vrot.slane %v178_v29, 4  ;;  %v234_v38 = vrot.slane %v232_v30, 4  ;;  %v409_v58 = vld [vmem:[%s544_s20 + $0xac] sm:$0xf] }
  0x1e   : > { %v248_v39 = vrot.slane %v246_v31, 4  ;;  %v251_v40 = vrot.slane %v249_v32, 5  ;;  %v174_v41 = vsel %vm579_vm3, %v169_v33, %v173_v20  ;;  %v259_v48 = vshrl.u32 %v401_v19, 16 }
  0x1f   : > { %v212_v42 = vrot.slane %v211_v34, 4  ;;  %v257_v43 = vrot.slane %v255_v36, 5  ;;  %v184_v45 = vsel %vm579_vm3, %v179_v37, %v183_v22  ;;  %v187_v46 = vmax.bf16 %v174_v41, %v156_v5 }
  0x20   : > { %v252_v47 = vor.u32 %v251_v40, %v248_v39  ;;  %v188_v50 = vmax.bf16 %v184_v45, %v157_v6  ;;  %v410_v52 = vrot.slane %v548_v1, 9  ;;  %v281_v53 = vrot.slane %v551_v2, 5 }
  0x21   : > { %v221_v54 = vor.u32 %v220_v35, %v216_v26  ;;  %v195_v55 = vmax.bf16 %v557_v9, %v187_v46  ;;  %v224_v59 = vshll.u32 %v406_v44, 16  ;;  %v235_v60 = vor.u32 %v234_v38, %v183_v22 }
  0x22   : > { %v253_v56 = vrot.slane %v252_v47, 4  ;;  %v196_v61 = vmax.bf16 %v563_v13, %v188_v50  ;;  %v217_v62 = vsel %vm579_vm3, %v212_v42, %v216_v26  ;;  %v238_v0 = vshll.u32 %v148_v49, 16 }
  0x23   : > { %v222_v63 = vrot.slane %v221_v54, 4  ;;  %v202_v3 = vmax.bf16 %v408_v51, %v195_v55  ;;  %v226_v2 = vrot.slane %v224_v59, 5  ;;  %v236_v4 = vrot.slane %v235_v60, 4 }
  0x24   : > { %v258_v1 = vsel %vm579_vm3, %v253_v56, %v257_v43  ;;  %v203_v5 = vmax.bf16 %v409_v58, %v196_v61  ;;  %v240_v6 = vrot.slane %v238_v0, 5  ;;  %v261_v7 = vrot.slane %v259_v48, 4 }
  0x25   : > { %v265_v8 = vshll.u32 %v402_v57, 16  ;;  %v230_v9 = vmax.bf16 %v217_v62, %v202_v3  ;;  %v227_v11 = vsel %vm579_vm3, %v222_v63, %v226_v2  ;;  %v283_v12 = vrot.slane %v281_v53, 4 }
  0x26   : > { %v284_v13 = vrot.slane %v148_v49, 5  ;;  %v231_v14 = vmax.bf16 %v227_v11, %v203_v5  ;;  %v241_v15 = vsel %vm579_vm3, %v236_v4, %v240_v6  ;;  %v262_v16 = vor.u32 %v261_v7, %v257_v43 }
  0x27   : > { %v267_v17 = vrot.slane %v265_v8, 5  ;;  %v243_v18 = vmax.bf16 %v230_v9, %v184_v45  ;;  %v282_v19 = vsel %vm608_vm5, %v410_v52, %v281_v53 }
  0x28   : > { %v244_v20 = vmax.bf16 %v241_v15, %v231_v14  ;;  %v263_v21 = vrot.slane %v262_v16, 4  ;;  %v285_v24 = vsel %vm608_vm5, %v283_v12, %v284_v13 }
  0x29   : > { %v271_v22 = vmax.bf16 %v258_v1, %v243_v18 }
  0x2a   : > { %v268_v23 = vsel %vm579_vm3, %v263_v21, %v267_v17 }
  0x2b   : > { %v288_v25 = vmax.bf16 %v282_v19, %v271_v22  ;;  %v272_v26 = vmax.bf16 %v268_v23, %v244_v20 }
  0x2d   : > { %291 = vst.msk [vmem:[%s138_s28] sm:$0xf] %vm290_vm6, %v288_v25  ;;  %v289_v27 = vmax.bf16 %v285_v24, %v272_v26 }
  0x2f   : > { %292 = vst.msk [vmem:[%s138_s28 + $0x4] sm:$0xf] %vm290_vm6, %v289_v27 }
  0x30 PF: > { %s11_s10 = sadd.s32 1, %s493_s10   ;;  %s647_s6 = smov %s485_s8 }
  0x31   : > { %p8_p7 = scmp.ge.s32.totalorder %s11_s10, 12   ;;  %s648_s7 = smov %s489_s9 }
  0x32   : > { %s649_s8 = smov %s652_s11  ;;  %s650_s9 = smov %s656_s12 }
  0x33   :  { %10 = sbr.rel (!%p8_p7) target bundleno = 3 (0x3), region = 58 }

// kernel: resnet_backbone_forward.32
= control target key start
LH: loop header
LB: loop body
LE: loop exit
PB: predicated region body
PF: predicated region fallthrough
CT: control target
= control target key end

     0   :  { %s1550_s12 = smov 0   ;;  %s1552_s13 = smov 0   ;;  %s1831_s0 = inlined_call_operand.vmem [shape: bf16[2,1,128,64], index: 0, kind: input, shape index: {}]   ;;  %s1832_s1 = inlined_call_operand.vmem [shape: bf16[9,64,64], index: 1, kind: input, shape index: {}]   ;;  %s1833_s2 = inlined_call_operand.vmem [shape: f32[1,64], index: 2, kind: input, shape index: {}]   ;;  %s1834_s3 = inlined_call_operand.vmem [shape: bf16[2,80,64], index: 3, kind: output, shape index: {}]  }
   0x1   :  { %s1554_s14 = smov 0   ;;  %s1556_s15 = smov 0  }
   0x2   :  { %s1558_s16 = smov 0  }
   0x3 LB: > { %s22_s17 = sadd.s32 1, %s1518_s14  ;;  %s25_s18 = sadd.s32 1, %s1522_s15  ;;  %s1526_s16 = sphi %s1558_s16, %s13_s16   ;;  %s1522_s15 = sphi %s1556_s15, %s1838_s15   ;;  %s1518_s14 = sphi %s1554_s14, %s1837_s14   ;;  %s1514_s13 = sphi %s1552_s13, %s1836_s13   ;;  %s1510_s12 = sphi %s1550_s12, %s1835_s12  }
   0x4   : > { %p23_p0 = scmp.ge.s32.totalorder %s22_s17, 5  ;;  %p1119_p1 = scmp.ge.s32.totalorder %s1526_s16, 1 }
   0x5   : > { %p151_p2 = scmp.lt.s32.totalorder %s1526_s16, 11 }
   0x6   : > { %s1840_s17 = smov (%p23_p0, %s22_s17), 0  ;;  %s1842_s18 = smov (!%p23_p0, %s25_s18), %s1522_s15 }
   0x7   : > { %p152_p3 = pnand %p1119_p1, %p151_p2  ;;  %p27_p4 = scmp.ge.s32.totalorder %s1842_s18, 2 }
   0x8   : > { %v1446_v0 = vld [vmem:[%s1832_s1 + $0x20] sm:$0xff] (!%p152_p3)   ;;  %v1528_v1 = vmov (!%p152_p3), 0.0   ;;  %v1448_v3 = vld [vmem:[%s1832_s1 + $0x28] sm:$0xff] (!%p152_p3)   ;;  %vm1529_vm0 = vmmov (!%p152_p3), 0   ;;  %p179_p5 = scmp.lt.s32.totalorder (!%p152_p3), %s1514_s13, 1  ;;  %s1124_s27 = sshll.u32 (!%p152_p3), %s1510_s12, 4 }
   0x9   : > { %s1844_s18 = smov (%p27_p4, %s1842_s18), 0  ;;  %155 = sbr.rel (%p152_p3) target bundleno = 317 (0x13d), region = 32 }
   0xa   : > { %1295 = vmatprep.subr.bf16.mxu0 (!%p152_p3), %v1528_v1  ;;  %1307 = vmatprep.subr.bf16.mxu1 (!%p152_p3), %v1528_v1  ;;  %v1447_v2 = vld [vmem:[%s1832_s1] sm:$0xff] (!%p152_p3)   ;;  %v1449_v4 = vld [vmem:[%s1832_s1 + $0x8] sm:$0xff] (!%p152_p3)   ;;  %s196_s28 = sshra.s32 (!%p152_p3), %s1124_s27, 3  ;;  %v1450_v5 = vld [vmem:[%s1832_s1 + $0x30] sm:$0xff] (!%p152_p3)   ;;  %vm229_vm1 = vsmask.f32 (!%p152_p3), 7424 }
   0xb   : > { %1296 = vmatpush3.bf16.msra.mxu0 (!%p152_p3), %v1446_v0  ;;  %1303 = vmatprep.mubr.msk.bf16.mxu0 (!%p152_p3), %vm1529_vm0, %v1528_v1  ;;  %v1451_v6 = vld [vmem:[%s1832_s1 + $0x10] sm:$0xff] (!%p152_p3)   ;;  %s1125_s10 = sshll.u32 (!%p152_p3), %s196_s28, 2  ;;  %v1452_v10 = vld [vmem:[%s1832_s1 + $0x38] sm:$0xff] (!%p152_p3)   ;;  %vm266_vm2 = vcmask (!%p152_p3), 523264   ;;  %v1458_v19 = vld [vmem:[%s1832_s1 + $0x60] sm:$0xff] (!%p152_p3)   ;;  %vm387_vm3 = vcmask (!%p152_p3), 1046528  }
   0xc   : > { %1308 = vmatpush3.bf16.msra.mxu1 (!%p152_p3), %v1447_v2  ;;  %1297 = vmatprep.subr.bf16.mxu0 (!%p152_p3), %v1528_v1  ;;  %v1453_v13 = vld [vmem:[%s1832_s1 + $0x18] sm:$0xff] (!%p152_p3)   ;;  %v1457_v21 = vld [vmem:[%s1832_s1 + $0x40] sm:$0xff] (!%p152_p3)   ;;  %v1460_v23 = vld [vmem:[%s1832_s1 + $0x68] sm:$0xff] (!%p152_p3)   ;;  %vm653_vm4 = vcmask (!%p152_p3), 1045504   ;;  %vm556_vm5 = vsmask.f32 (!%p152_p3), 6400 }
   0xd   : > { %1309 = vmatprep.subr.bf16.mxu1 (!%p152_p3), %v1528_v1  ;;  %1315 = vmatprep.mubr.msk.bf16.mxu1 (!%p152_p3), %vm1529_vm0, %v1528_v1  ;;  %v1459_v24 = vld [vmem:[%s1832_s1 + $0x48] sm:$0xff] (!%p152_p3)   ;;  %v1462_v26 = vld [vmem:[%s1832_s1 + $0x70] sm:$0xff] (!%p152_p3)   ;;  %v1464_v30 = vld [vmem:[%s1832_s1 + $0x78] sm:$0xff] (!%p152_p3)   ;;  %vm834_vm6 = vsmask.f32 (!%p152_p3), 5376  ;;  %vm931_vm7 = vcmask (!%p152_p3), 1044480  }
   0xe   : > { %v1461_v28 = vld [vmem:[%s1832_s1 + $0x50] sm:$0xff] (!%p152_p3)   ;;  %v1463_v32 = vld [vmem:[%s1832_s1 + $0x58] sm:$0xff] (!%p152_p3)   ;;  %v1467_v36 = vld [vmem:[%s1832_s1 + $0xa0] sm:$0xff] (!%p152_p3)   ;;  %s1122_s24 = sshll.u32 (!%p152_p3), %s1510_s12, 1  ;;  %vm1024_vm8 = vcmask (!%p152_p3), 519168  }
   0xf   : > { %1298 = vmatpush3.bf16.msra.mxu0 (!%p152_p3), %v1448_v3  ;;  %v1465_v38 = vld [vmem:[%s1832_s1 + $0x80] sm:$0xff] (!%p152_p3)   ;;  %v1468_v39 = vld [vmem:[%s1832_s1 + $0x88] sm:$0xff] (!%p152_p3)   ;;  %v1470_v45 = vld [vmem:[%s1832_s1 + $0x90] sm:$0xff] (!%p152_p3)   ;;  %p187_p6 = scmp.lt.s32.totalorder (!%p152_p3), %s1122_s24, 9 }
  0x10   : > { %s1846_s13 = smov (!%p179_p5, %s1514_s13), 1  ;;  %1310 = vmatpush3.bf16.msra.mxu1 %v1449_v4  ;;  %1299 = vmatprep.subr.bf16.mxu0 %v1528_v1  ;;  %v1469_v41 = vld [vmem:[%s1832_s1 + $0xa8] sm:$0xff]   ;;  %v1471_v46 = vld [vmem:[%s1832_s1 + $0xb0] sm:$0xff]   ;;  %v1473_v51 = vld [vmem:[%s1832_s1 + $0xb8] sm:$0xff]  }
  0x11   : > { %s1247_s4 = sshll.u32 %s1846_s13, 6  ;;  %1311 = vmatprep.subr.bf16.mxu1 %v1528_v1  ;;  %v1472_v54 = vld [vmem:[%s1832_s1 + $0x98] sm:$0xff]   ;;  %v1475_v58 = vld [vmem:[%s1832_s1 + $0xe0] sm:$0xff]   ;;  %v1477_v63 = vld [vmem:[%s1832_s1 + $0xe8] sm:$0xff]   ;;  %s1403_s25 = smul.u32 10, %s1846_s13 }
  0x12   : > { %s1622_s9 = scalar_lea.vmem %s1831_s0, %s1247_s4  ;;  %v1474_v62 = vld [vmem:[%s1832_s1 + $0xc0] sm:$0xff]   ;;  %s1848_s24 = smov (!%p187_p6, %s1122_s24), 9 }
  0x13   : > { %s1626_s11 = scalar_lea.vmem %s1622_s9, %s1125_s10  ;;  %1300 = vmatpush3.bf16.msra.mxu0 %v1450_v5  ;;  %s727_s10 = sadd.s32 16, %s1124_s27  ;;  %v1476_v5 = vld [vmem:[%s1832_s1 + $0xc8] sm:$0xff]  }
  0x14   : > { %v200_v7 = vld [vmem:[%s1626_s11] sm:$0xf]  ;;  %v201_v8 = vld [vmem:[%s1626_s11 + $0x4] sm:$0xf]  ;;  %v202_v9 = vld [vmem:[%s1626_s11 + $0x8] sm:$0xf]  ;;  %1312 = vmatpush3.bf16.msra.mxu1 %v1451_v6  ;;  %1301 = vmatprep.subr.bf16.mxu0 %v1528_v1  ;;  %s190_s26 = sadd.s32 %s1403_s25, %s1848_s24 }
  0x15   : > { %v1134_v11 = vcombine.low %v200_v7, %v201_v8  ;;  %v1135_v12 = vcombine.low %v202_v9, %v202_v9  ;;  %1313 = vmatprep.subr.bf16.mxu1 %v1528_v1  ;;  %v1659_v25 = vcombine.low %v201_v8, %v202_v9  ;;  %v1667_v27 = vld [vmem:[%s1626_s11 + $0xc] ss:$0 sps:$4 sm:$0xff]   ;;  %s728_s11 = sshra.s32 %s727_s10, 3  ;;  %v1479_v6 = vld [vmem:[%s1832_s1 + $0xf0] sm:$0xff]   ;;  %s1123_s30 = sshll.u32 %s190_s26, 2 }
  0x16   : > { %v475_v31 = vrot.slane %v1667_v27, 1  ;;  %s1200_s27 = sshll.u32 %s728_s11, 2  ;;  %v566_v43 = vshrl.u32 %v1667_v27, 16  ;;  %v569_v44 = vshll.u32 %v1667_v27, 16  ;;  %v655_v53 = vrot.slane %v1667_v27, 2  ;;  %s192_s13 = scalar_lea.vmem %s1834_s3, %s1123_s30 }
  0x17   : > { %v231_v14 = vshrl.u32 %v1134_v11, 16  ;;  %v233_v15 = vshll.u32 %v1134_v11, 16  ;;  %v238_v16 = vshll.u32 %v1135_v12, 16  ;;  %1302 = vmatpush3.bf16.msra.mxu0 %v1452_v10  ;;  %v474_v29 = vrot.slane %v1659_v25, 1  ;;  %s1695_s28 = scalar_lea.vmem %s1622_s9, %s1200_s27 }
  0x18   : > { %1314 = vmatpush3.bf16.msra.mxu1 %v1453_v13  ;;  %1319 = vmatprep.subr.bf16.mxu0 %v1528_v1  ;;  %v388_v33 = vrot.slane %v1134_v11, 1  ;;  %v389_v34 = vrot.slane %v1135_v12, 1  ;;  %v558_v40 = vshrl.u32 %v1659_v25, 16  ;;  %v561_v42 = vshll.u32 %v1659_v25, 16  ;;  %v1738_v59 = vld [vmem:[%s1695_s28] sm:$0xff]   ;;  %v1481_v12 = vld [vmem:[%s1832_s1 + $0xf8] sm:$0xff]  }
  0x19   : > { %v235_v17 = vrot.slane %v233_v15, 1  ;;  %v240_v18 = vrot.slane %v238_v16, 1  ;;  %1331 = vmatprep.subr.bf16.mxu1 %v1528_v1  ;;  %v476_v35 = vsel %vm387_vm3, %v474_v29, %v475_v31  ;;  %v568_v49 = vrot.slane %v566_v43, 1  ;;  %v1741_v60 = vld [vmem:[%s1695_s28 + $0x8] ss:$0 sps:$4 sm:$0xff]   ;;  %v1480_v15 = vld [vmem:[%s1832_s1 + $0xd8] sm:$0xff]  }
  0x1a   : > { %v390_v37 = vsel %vm387_vm3, %v388_v33, %v389_v34  ;;  %v560_v47 = vrot.slane %v558_v40, 1  ;;  %v563_v48 = vrot.slane %v561_v42, 2  ;;  %v571_v50 = vrot.slane %v569_v44, 2 }
  0x1b   : > { %v236_v20 = vor.u32 %v235_v17, %v231_v14  ;;  %1316 = vmatmul.mubr.msk.bf16.vlgmr.msra.gmra.mrb[0].mxu1 %vm266_vm2, %v1134_v11  ;;  %v654_v52 = vrot.slane %v1659_v25, 2  ;;  %v836_v0 = vshrl.u32 %v1738_v59, 16  ;;  %v839_v2 = vshll.u32 %v1738_v59, 16  ;;  %v1478_v11 = vld [vmem:[%s1832_s1 + $0xd0] sm:$0xff]  }
  0x1c   : > { %1332 = vmatpush3.bf16.msra.mxu1 %v1458_v19  ;;  %1339 = vmatprep.mubr.msk.bf16.mxu1 %vm1529_vm0, %v1528_v1  ;;  %v564_v55 = vor.u32 %v563_v48, %v560_v47  ;;  %v572_v56 = vor.u32 %v571_v50, %v568_v49  ;;  %v844_v3 = vshrl.u32 %v1741_v60, 16  ;;  %v847_v4 = vshll.u32 %v1741_v60, 16 }
  0x1d   : > { %v241_v22 = vsel %vm229_vm1, %v236_v20, %v240_v18  ;;  %1333 = vmatprep.subr.bf16.mxu1 %v1528_v1  ;;  %v656_v57 = vsel %vm653_vm4, %v654_v52, %v655_v53  ;;  %v838_v7 = vrot.slane %v836_v0, 2  ;;  %v841_v8 = vrot.slane %v839_v2, 3  ;;  %v1484_v20 = vld [vmem:[%s1832_s1 + $0x100] sm:$0xff]  }
  0x1e   : > { %1304 = vmatmul.mubr.msk.bf16.vlgmr.msra.gmra.mrb[0].mxu0 %vm266_vm2, %v241_v22  ;;  %v573_v61 = vsel %vm556_vm5, %v564_v55, %v572_v56  ;;  %v846_v9 = vrot.slane %v844_v3, 2  ;;  %v849_v10 = vrot.slane %v847_v4, 3  ;;  %v752_v16 = vrot.slane %v1738_v59, 2  ;;  %v1486_v22 = vld [vmem:[%s1832_s1 + $0x110] sm:$0xff]  }
  0x1f   : > { %1320 = vmatpush3.bf16.msra.mxu0 %v1457_v21  ;;  %1327 = vmatprep.mubr.msk.bf16.mxu0 %vm1529_vm0, %v1528_v1  ;;  %v842_v13 = vor.u32 %v841_v8, %v838_v7  ;;  %v753_v17 = vrot.slane %v1741_v60, 2  ;;  %v1485_v21 = vld [vmem:[%s1832_s1 + $0x108] sm:$0xff]   ;;  %v933_v25 = vrot.slane %v1741_v60, 3 }
  0x20   : > { %1321 = vmatprep.subr.bf16.mxu0 %v1528_v1  ;;  %1334 = vmatpush3.bf16.msra.mxu1 %v1460_v23  ;;  %v850_v14 = vor.u32 %v849_v10, %v846_v9  ;;  %v1487_v23 = vld [vmem:[%s1832_s1 + $0x118] sm:$0xff]   ;;  %v1242_v10 = vld [vmem:[%s1833_s2] ss:$0 sm:$0xff] }
  0x21   : > { %1335 = vmatprep.subr.bf16.mxu1 %v1528_v1  ;;  %v754_v19 = vsel %vm653_vm4, %v752_v16, %v753_v17 }
  0x22   : > { %v851_v18 = vsel %vm834_vm6, %v842_v13, %v850_v14 }
  0x23   : > { %1322 = vmatpush3.bf16.msra.mxu0 %v1459_v24  ;;  %v932_v24 = vrot.slane %v1738_v59, 3 }
  0x24   : > { %1323 = vmatprep.subr.bf16.mxu0 %v1528_v1  ;;  %1336 = vmatpush3.bf16.msra.mxu1 %v1462_v26 }
  0x25   : > { %1337 = vmatprep.subr.bf16.mxu1 %v1528_v1  ;;  %v934_v26 = vsel %vm931_vm7, %v932_v24, %v933_v25 }
  0x27   : > { %1324 = vmatpush3.bf16.msra.mxu0 %v1461_v28 }
  0x28   : > { %1325 = vmatprep.subr.bf16.mxu0 %v1528_v1  ;;  %1338 = vmatpush3.bf16.msra.mxu1 %v1464_v30 }
  0x29   : > { %1355 = vmatprep.subr.bf16.mxu1 %v1528_v1 }
  0x2b   : > { %1326 = vmatpush3.bf16.msra.mxu0 %v1463_v32  ;;  %1340 = vmatmul.mubr.msk.bf16.vlgmr.msra.gmra.mrb[4].mxu1 %vm266_vm2, %v476_v35 }
  0x2c   : > { %1343 = vmatprep.subr.bf16.mxu0 %v1528_v1  ;;  %1356 = vmatpush3.bf16.msra.mxu1 %v1467_v36 }
  0x2d   : > { %1357 = vmatprep.subr.bf16.mxu1 %v1528_v1  ;;  %1363 = vmatprep.mubr.msk.bf16.mxu1 %vm1529_vm0, %v1528_v1 }
  0x2e   : > { %1328 = vmatmul.mubr.msk.bf16.vlgmr.msra.gmra.mrb[4].mxu0 %vm266_vm2, %v390_v37 }
  0x2f   : > { %1344 = vmatpush3.bf16.msra.mxu0 %v1465_v38  ;;  %1351 = vmatprep.mubr.msk.bf16.mxu0 %vm1529_vm0, %v1528_v1 }
  0x30   : > { %1345 = vmatprep.subr.bf16.mxu0 %v1528_v1  ;;  %1358 = vmatpush3.bf16.msra.mxu1 %v1469_v41 }
  0x31   : > { %1359 = vmatprep.subr.bf16.mxu1 %v1528_v1 }
  0x33   : > { %1346 = vmatpush3.bf16.msra.mxu0 %v1468_v39 }
  0x34   : > { %1347 = vmatprep.subr.bf16.mxu0 %v1528_v1  ;;  %1360 = vmatpush3.bf16.msra.mxu1 %v1471_v46 }
  0x35   : > { %1361 = vmatprep.subr.bf16.mxu1 %v1528_v1 }
  0x37   : > { %1348 = vmatpush3.bf16.msra.mxu0 %v1470_v45 }
  0x38   : > { %1349 = vmatprep.subr.bf16.mxu0 %v1528_v1  ;;  %1362 = vmatpush3.bf16.msra.mxu1 %v1473_v51 }
  0x39   : > { %1379 = vmatprep.subr.bf16.mxu1 %v1528_v1 }
  0x3b   : > { %1350 = vmatpush3.bf16.msra.mxu0 %v1472_v54  ;;  %1364 = vmatmul.mubr.msk.bf16.vlgmr.msra.gmra.mrb[8].mxu1 %vm266_vm2, %v656_v57 }
  0x3c   : > { %1367 = vmatprep.subr.bf16.mxu0 %v1528_v1  ;;  %1380 = vmatpush3.bf16.msra.mxu1 %v1475_v58 }
  0x3d   : > { %1381 = vmatprep.subr.bf16.mxu1 %v1528_v1  ;;  %1387 = vmatprep.mubr.msk.bf16.mxu1 %vm1529_vm0, %v1528_v1 }
  0x3e   : > { %1352 = vmatmul.mubr.msk.bf16.vlgmr.msra.gmra.mrb[8].mxu0 %vm266_vm2, %v573_v61 }
  0x3f   : > { %1368 = vmatpush3.bf16.msra.mxu0 %v1474_v62  ;;  %1375 = vmatprep.mubr.msk.bf16.mxu0 %vm1529_vm0, %v1528_v1 }
  0x40   : > { %1369 = vmatprep.subr.bf16.mxu0 %v1528_v1  ;;  %1382 = vmatpush3.bf16.msra.mxu1 %v1477_v63 }
  0x41   : > { %1383 = vmatprep.subr.bf16.mxu1 %v1528_v1 }
  0x43   : > { %1370 = vmatpush3.bf16.msra.mxu0 %v1476_v5 }
  0x44   : > { %1371 = vmatprep.subr.bf16.mxu0 %v1528_v1  ;;  %1384 = vmatpush3.bf16.msra.mxu1 %v1479_v6 }
  0x45   : > { %1385 = vmatprep.subr.bf16.mxu1 %v1528_v1 }
  0x47   : > { %1372 = vmatpush3.bf16.msra.mxu0 %v1478_v11 }
  0x48   : > { %1373 = vmatprep.subr.bf16.mxu0 %v1528_v1  ;;  %1386 = vmatpush3.bf16.msra.mxu1 %v1481_v12 }
  0x4b   : > { %1374 = vmatpush3.bf16.msra.mxu0 %v1480_v15  ;;  %1388 = vmatmul.mubr.msk.bf16.vlgmr.msra.gmra.mrb[12].mxu1 %vm266_vm2, %v851_v18 }
  0x4c   : > { %1391 = vmatprep.subr.bf16.mxu0 %v1528_v1 }
  0x4e   : > { %1376 = vmatmul.mubr.msk.bf16.vlgmr.msra.gmra.mrb[12].mxu0 %vm266_vm2, %v754_v19 }
  0x4f   : > { %1392 = vmatpush3.bf16.msra.mxu0 %v1484_v20  ;;  %1399 = vmatprep.mubr.msk.bf16.mxu0 %vm1529_vm0, %v1528_v1 }
  0x50   : > { %1393 = vmatprep.subr.bf16.mxu0 %v1528_v1 }
  0x53   : > { %1394 = vmatpush3.bf16.msra.mxu0 %v1485_v21 }
  0x54   : > { %1395 = vmatprep.subr.bf16.mxu0 %v1528_v1 }
  0x57   : > { %1396 = vmatpush3.bf16.msra.mxu0 %v1486_v22 }
  0x58   : > { %1397 = vmatprep.subr.bf16.mxu0 %v1528_v1 }
  0x5b   : > { %1398 = vmatpush3.bf16.msra.mxu0 %v1487_v23 }
  0x5e   : > { %1400 = vmatmul.mubr.msk.bf16.vlgmr.msra.gmra.mrb[16].mxu0 %vm266_vm2, %v934_v26 }
  0xee   : > { %v371_v27 = vpop.f32.mrb[0].mxu1 }
  0xef   : > { %v1317_v29 = vpop.f32.mrb[1].mxu1 }
  0xf0   : > { %v374_v32 = vpop.f32.mrb[2].mxu1 }
  0xf1   : > { %v304_v28 = vpop.f32.mrb[0].mxu0  ;;  %v1318_v34 = vpop.f32.mrb[3].mxu1 }
  0xf2   : > { %v372_v30 = vadd.f32 %v371_v27, %v304_v28  ;;  %v1305_v31 = vpop.f32.mrb[1].mxu0 }
  0xf3   : > { %v307_v33 = vpop.f32.mrb[2].mxu0 }
  0xf4   : > { %v375_v35 = vadd.f32 %v374_v32, %v307_v33  ;;  %v1306_v36 = vpop.f32.mrb[3].mxu0 }
  0xfe   : > { %v538_v37 = vpop.f32.mrb[4].mxu1 }
  0xff   : > { %v1341_v39 = vpop.f32.mrb[5].mxu1 }
 0x100   : > { %v541_v41 = vpop.f32.mrb[6].mxu1 }
 0x101   : > { %v452_v38 = vpop.f32.mrb[4].mxu0  ;;  %v1342_v43 = vpop.f32.mrb[7].mxu1 }
 0x102   : > { %v459_v40 = vadd.f32 %v452_v38, %v372_v30  ;;  %v1329_v1 = vpop.f32.mrb[5].mxu0 }
 0x103   : > { %v455_v42 = vpop.f32.mrb[6].mxu0 }
 0x104   : > { %v460_v44 = vadd.f32 %v455_v42, %v375_v35  ;;  %v545_v45 = vadd.f32 %v538_v37, %v459_v40  ;;  %v1330_v46 = vpop.f32.mrb[7].mxu0 }
 0x106   : > { %v546_v47 = vadd.f32 %v541_v41, %v460_v44 }
 0x10e   : > { %v718_v48 = vpop.f32.mrb[8].mxu1 }
 0x10f   : > { %v1365_v50 = vpop.f32.mrb[9].mxu1 }
 0x110   : > { %v721_v53 = vpop.f32.mrb[10].mxu1 }
 0x111   : > { %v635_v49 = vpop.f32.mrb[8].mxu0  ;;  %v1366_v55 = vpop.f32.mrb[11].mxu1 }
 0x112   : > { %v642_v51 = vadd.f32 %v635_v49, %v545_v45  ;;  %v1353_v52 = vpop.f32.mrb[9].mxu0 }
 0x113   : > { %v638_v54 = vpop.f32.mrb[10].mxu0 }
 0x114   : > { %v643_v56 = vadd.f32 %v638_v54, %v546_v47  ;;  %v725_v57 = vadd.f32 %v718_v48, %v642_v51  ;;  %v1354_v58 = vpop.f32.mrb[11].mxu0 }
 0x116   : > { %v726_v59 = vadd.f32 %v721_v53, %v643_v56 }
 0x11e   : > { %v913_v60 = vpop.f32.mrb[12].mxu1 }
 0x11f   : > { %v1389_v62 = vpop.f32.mrb[13].mxu1 }
 0x120   : > { %v916_v2 = vpop.f32.mrb[14].mxu1 }
 0x121   : > { %v816_v61 = vpop.f32.mrb[12].mxu0  ;;  %v1390_v4 = vpop.f32.mrb[15].mxu1 }
 0x122   : > { %v823_v63 = vadd.f32 %v816_v61, %v725_v57  ;;  %v1377_v0 = vpop.f32.mrb[13].mxu0 }
 0x123   : > { %v819_v3 = vpop.f32.mrb[14].mxu0 }
 0x124   : > { %v824_v5 = vadd.f32 %v819_v3, %v726_v59  ;;  %v920_v6 = vadd.f32 %v913_v60, %v823_v63  ;;  %v1378_v7 = vpop.f32.mrb[15].mxu0 }
 0x126   : > { %v921_v8 = vadd.f32 %v916_v2, %v824_v5 }
 0x131   : > { %v996_v9 = vpop.f32.mrb[16].mxu0 }
 0x132   : > { %v1003_v11 = vadd.f32 %v996_v9, %v920_v6  ;;  %v1401_v12 = vpop.f32.mrb[17].mxu0 }
 0x133   : > { %v999_v13 = vpop.f32.mrb[18].mxu0 }
 0x134   : > { %v1012_v14 = vadd.f32 %v1242_v10, %v1003_v11  ;;  %v1004_v15 = vadd.f32 %v999_v13, %v921_v8  ;;  %v1402_v16 = vpop.f32.mrb[19].mxu0 }
 0x136   : > { %v1014_v17 = vmax.f32 %v1012_v14, 0.0  ;;  %v1013_v18 = vadd.f32 %v1242_v10, %v1004_v15 }
 0x138   : > { %v1248_v19 = vpack.c.bf16 %v1014_v17, %v1014_v17  ;;  %v1015_v20 = vmax.f32 %v1013_v18, 0.0 }
 0x13a   : > { %1025 = vst.msk [vmem:[%s192_s13] sm:$0xf] %vm1024_vm8, %v1248_v19  ;;  %v1249_v21 = vpack.c.bf16 %v1015_v20, %v1015_v20 }
 0x13c   : > { %1026 = vst.msk [vmem:[%s192_s13 + $0x4] sm:$0xf] %vm1024_vm8, %v1249_v21 }
 0x13d PF: > { %s13_s16 = sadd.s32 1, %s1526_s16   ;;  %s1835_s12 = smov %s1518_s14 }
 0x13e   : > { %p10_p7 = scmp.ge.s32.totalorder %s13_s16, 12   ;;  %s1836_s13 = smov %s1522_s15 }
 0x13f   : > { %s1837_s14 = smov %s1840_s17  ;;  %s1838_s15 = smov %s1844_s18 }
 0x140   :  { %12 = sbr.rel (!%p10_p7) target bundleno = 3 (0x3), region = 72 }

// kernel: resnet_backbone_forward.33
= control target key start
LH: loop header
LB: loop body
LE: loop exit
PB: predicated region body
PF: predicated region fallthrough
CT: control target
= control target key end

     0   :  { %s1648_s15 = smov 0   ;;  %s1650_s16 = smov 0   ;;  %s1932_s0 = inlined_call_operand.vmem [shape: bf16[2,1,128,64], index: 0, kind: input, shape index: {}]   ;;  %s1933_s1 = inlined_call_operand.vmem [shape: bf16[9,64,64], index: 1, kind: input, shape index: {}]   ;;  %s1934_s2 = inlined_call_operand.vmem [shape: f32[1,64], index: 2, kind: input, shape index: {}]   ;;  %s1935_s3 = inlined_call_operand.vmem [shape: bf16[2,80,64], index: 3, kind: input, shape index: {}]   ;;  %s1936_s4 = inlined_call_operand.vmem [shape: bf16[2,80,64], index: 4, kind: output, shape index: {}]  }
   0x1   :  { %s1652_s17 = smov 0   ;;  %s1654_s18 = smov 0  }
   0x2   :  { %s1656_s19 = smov 0  }
   0x3 LB: > { %s23_s20 = sadd.s32 1, %s1611_s17  ;;  %s26_s21 = sadd.s32 1, %s1615_s18  ;;  %s1619_s19 = sphi %s1656_s19, %s14_s19   ;;  %s1615_s18 = sphi %s1654_s18, %s1940_s18   ;;  %s1611_s17 = sphi %s1652_s17, %s1939_s17   ;;  %s1607_s16 = sphi %s1650_s16, %s1938_s16   ;;  %s1603_s15 = sphi %s1648_s15, %s1937_s15  }
   0x4   : > { %p24_p0 = scmp.ge.s32.totalorder %s23_s20, 5  ;;  %p1206_p1 = scmp.ge.s32.totalorder %s1619_s19, 1 }
   0x5   : > { %p193_p2 = scmp.lt.s32.totalorder %s1619_s19, 11 }
   0x6   : > { %s1942_s20 = smov (%p24_p0, %s23_s20), 0  ;;  %s1944_s21 = smov (!%p24_p0, %s26_s21), %s1615_s18 }
   0x7   : > { %p194_p3 = pnand %p1206_p1, %p193_p2  ;;  %p28_p4 = scmp.ge.s32.totalorder %s1944_s21, 2 }
   0x8   : > { %v1539_v0 = vld [vmem:[%s1933_s1 + $0x20] sm:$0xff] (!%p194_p3)   ;;  %v1621_v1 = vmov (!%p194_p3), 0.0   ;;  %v1541_v3 = vld [vmem:[%s1933_s1 + $0x28] sm:$0xff] (!%p194_p3)   ;;  %vm1622_vm0 = vmmov (!%p194_p3), 0   ;;  %p232_p5 = scmp.lt.s32.totalorder (!%p194_p3), %s1607_s16, 1  ;;  %s1213_s30 = sshll.u32 (!%p194_p3), %s1603_s15, 4 }
   0x9   : > { %s1946_s21 = smov (%p28_p4, %s1944_s21), 0  ;;  %197 = sbr.rel (%p194_p3) target bundleno = 319 (0x13f), region = 36 }
   0xa   : > { %1388 = vmatprep.subr.bf16.mxu0 (!%p194_p3), %v1621_v1  ;;  %1400 = vmatprep.subr.bf16.mxu1 (!%p194_p3), %v1621_v1  ;;  %v1540_v2 = vld [vmem:[%s1933_s1] sm:$0xff] (!%p194_p3)   ;;  %v1542_v4 = vld [vmem:[%s1933_s1 + $0x8] sm:$0xff] (!%p194_p3)   ;;  %s259_s5 = sshra.s32 (!%p194_p3), %s1213_s30, 3  ;;  %v1543_v5 = vld [vmem:[%s1933_s1 + $0x30] sm:$0xff] (!%p194_p3)   ;;  %vm292_vm1 = vsmask.f32 (!%p194_p3), 7424 }
   0xb   : > { %1389 = vmatpush3.bf16.msra.mxu0 (!%p194_p3), %v1539_v0  ;;  %1396 = vmatprep.mubr.msk.bf16.mxu0 (!%p194_p3), %vm1622_vm0, %v1621_v1  ;;  %v1544_v6 = vld [vmem:[%s1933_s1 + $0x10] sm:$0xff] (!%p194_p3)   ;;  %s1214_s14 = sshll.u32 (!%p194_p3), %s259_s5, 2  ;;  %v1545_v10 = vld [vmem:[%s1933_s1 + $0x38] sm:$0xff] (!%p194_p3)   ;;  %vm329_vm2 = vcmask (!%p194_p3), 523264   ;;  %v1551_v19 = vld [vmem:[%s1933_s1 + $0x60] sm:$0xff] (!%p194_p3)   ;;  %s790_s23 = sadd.s32 (!%p194_p3), 16, %s1213_s30 }
   0xc   : > { %1401 = vmatpush3.bf16.msra.mxu1 (!%p194_p3), %v1540_v2  ;;  %1390 = vmatprep.subr.bf16.mxu0 (!%p194_p3), %v1621_v1  ;;  %v1546_v13 = vld [vmem:[%s1933_s1 + $0x18] sm:$0xff] (!%p194_p3)   ;;  %v1550_v21 = vld [vmem:[%s1933_s1 + $0x40] sm:$0xff] (!%p194_p3)   ;;  %v1553_v23 = vld [vmem:[%s1933_s1 + $0x68] sm:$0xff] (!%p194_p3)   ;;  %vm450_vm3 = vcmask (!%p194_p3), 1046528   ;;  %vm716_vm4 = vcmask (!%p194_p3), 1045504   ;;  %vm994_vm7 = vcmask (!%p194_p3), 1044480  }
   0xd   : > { %1402 = vmatprep.subr.bf16.mxu1 (!%p194_p3), %v1621_v1  ;;  %1408 = vmatprep.mubr.msk.bf16.mxu1 (!%p194_p3), %vm1622_vm0, %v1621_v1  ;;  %v1552_v24 = vld [vmem:[%s1933_s1 + $0x48] sm:$0xff] (!%p194_p3)   ;;  %v1555_v26 = vld [vmem:[%s1933_s1 + $0x70] sm:$0xff] (!%p194_p3)   ;;  %v1557_v30 = vld [vmem:[%s1933_s1 + $0x78] sm:$0xff] (!%p194_p3)   ;;  %vm619_vm5 = vsmask.f32 (!%p194_p3), 6400  ;;  %s1209_s6 = sshll.u32 (!%p194_p3), %s1603_s15, 1 }
   0xe   : > { %v1554_v28 = vld [vmem:[%s1933_s1 + $0x50] sm:$0xff] (!%p194_p3)   ;;  %v1556_v32 = vld [vmem:[%s1933_s1 + $0x58] sm:$0xff] (!%p194_p3)   ;;  %v1560_v36 = vld [vmem:[%s1933_s1 + $0xa0] sm:$0xff] (!%p194_p3)   ;;  %vm897_vm6 = vsmask.f32 (!%p194_p3), 5376  ;;  %p240_p6 = scmp.lt.s32.totalorder (!%p194_p3), %s1209_s6, 9 }
   0xf   : > { %1391 = vmatpush3.bf16.msra.mxu0 (!%p194_p3), %v1541_v3  ;;  %v1558_v38 = vld [vmem:[%s1933_s1 + $0x80] sm:$0xff] (!%p194_p3)   ;;  %v1561_v39 = vld [vmem:[%s1933_s1 + $0x88] sm:$0xff] (!%p194_p3)   ;;  %v1563_v45 = vld [vmem:[%s1933_s1 + $0x90] sm:$0xff] (!%p194_p3)   ;;  %vm1093_vm8 = vcmask (!%p194_p3), 519168  }
  0x10   : > { %s1948_s16 = smov (!%p232_p5, %s1607_s16), 1  ;;  %1403 = vmatpush3.bf16.msra.mxu1 %v1542_v4  ;;  %1392 = vmatprep.subr.bf16.mxu0 %v1621_v1  ;;  %v1562_v41 = vld [vmem:[%s1933_s1 + $0xa8] sm:$0xff]   ;;  %v1564_v46 = vld [vmem:[%s1933_s1 + $0xb0] sm:$0xff]   ;;  %v1566_v51 = vld [vmem:[%s1933_s1 + $0xb8] sm:$0xff]   ;;  %s1950_s6 = smov (!%p240_p6, %s1209_s6), 9 }
  0x11   : > { %s1336_s8 = sshll.u32 %s1948_s16, 6  ;;  %1404 = vmatprep.subr.bf16.mxu1 %v1621_v1  ;;  %v1565_v54 = vld [vmem:[%s1933_s1 + $0x98] sm:$0xff]   ;;  %v1568_v58 = vld [vmem:[%s1933_s1 + $0xe0] sm:$0xff]   ;;  %v1570_v63 = vld [vmem:[%s1933_s1 + $0xe8] sm:$0xff]  }
  0x12   : > { %s1720_s13 = scalar_lea.vmem %s1932_s0, %s1336_s8  ;;  %v1567_v62 = vld [vmem:[%s1933_s1 + $0xc0] sm:$0xff]  }
  0x13   : > { %s1724_s22 = scalar_lea.vmem %s1720_s13, %s1214_s14  ;;  %1393 = vmatpush3.bf16.msra.mxu0 %v1543_v5  ;;  %v1569_v5 = vld [vmem:[%s1933_s1 + $0xc8] sm:$0xff]  }
  0x14   : > { %v263_v7 = vld [vmem:[%s1724_s22] sm:$0xf]  ;;  %v264_v8 = vld [vmem:[%s1724_s22 + $0x4] sm:$0xf]  ;;  %v265_v9 = vld [vmem:[%s1724_s22 + $0x8] sm:$0xf]  ;;  %1405 = vmatpush3.bf16.msra.mxu1 %v1544_v6  ;;  %1394 = vmatprep.subr.bf16.mxu0 %v1621_v1 }
  0x15   : > { %v1223_v11 = vcombine.low %v263_v7, %v264_v8  ;;  %v1224_v12 = vcombine.low %v265_v9, %v265_v9  ;;  %1406 = vmatprep.subr.bf16.mxu1 %v1621_v1  ;;  %v1757_v25 = vcombine.low %v264_v8, %v265_v9  ;;  %v1765_v27 = vld [vmem:[%s1724_s22 + $0xc] ss:$0 sps:$4 sm:$0xff]   ;;  %s791_s22 = sshra.s32 %s790_s23, 3  ;;  %v1572_v6 = vld [vmem:[%s1933_s1 + $0xf0] sm:$0xff]  }
  0x16   : > { %v538_v31 = vrot.slane %v1765_v27, 1  ;;  %s1289_s30 = sshll.u32 %s791_s22, 2  ;;  %v629_v43 = vshrl.u32 %v1765_v27, 16  ;;  %v632_v44 = vshll.u32 %v1765_v27, 16  ;;  %v718_v53 = vrot.slane %v1765_v27, 2 }
  0x17   : > { %v294_v14 = vshrl.u32 %v1223_v11, 16  ;;  %v296_v15 = vshll.u32 %v1223_v11, 16  ;;  %v301_v16 = vshll.u32 %v1224_v12, 16  ;;  %1395 = vmatpush3.bf16.msra.mxu0 %v1545_v10  ;;  %v537_v29 = vrot.slane %v1757_v25, 1  ;;  %s1793_s7 = scalar_lea.vmem %s1720_s13, %s1289_s30 }
  0x18   : > { %1407 = vmatpush3.bf16.msra.mxu1 %v1546_v13  ;;  %1412 = vmatprep.subr.bf16.mxu0 %v1621_v1  ;;  %v451_v33 = vrot.slane %v1223_v11, 1  ;;  %v452_v34 = vrot.slane %v1224_v12, 1  ;;  %v621_v40 = vshrl.u32 %v1757_v25, 16  ;;  %v624_v42 = vshll.u32 %v1757_v25, 16  ;;  %v1836_v59 = vld [vmem:[%s1793_s7] sm:$0xff]   ;;  %v1574_v12 = vld [vmem:[%s1933_s1 + $0xf8] sm:$0xff]  }
  0x19   : > { %v298_v17 = vrot.slane %v296_v15, 1  ;;  %v303_v18 = vrot.slane %v301_v16, 1  ;;  %1424 = vmatprep.subr.bf16.mxu1 %v1621_v1  ;;  %v539_v35 = vsel %vm450_vm3, %v537_v29, %v538_v31  ;;  %v631_v49 = vrot.slane %v629_v43, 1  ;;  %v1839_v60 = vld [vmem:[%s1793_s7 + $0x8] ss:$0 sps:$4 sm:$0xff]   ;;  %v1573_v15 = vld [vmem:[%s1933_s1 + $0xd8] sm:$0xff]  }
  0x1a   : > { %v453_v37 = vsel %vm450_vm3, %v451_v33, %v452_v34  ;;  %v623_v47 = vrot.slane %v621_v40, 1  ;;  %v626_v48 = vrot.slane %v624_v42, 2  ;;  %v634_v50 = vrot.slane %v632_v44, 2  ;;  %s1496_s7 = smul.u32 10, %s1948_s16 }
  0x1b   : > { %v299_v20 = vor.u32 %v298_v17, %v294_v14  ;;  %1409 = vmatmul.mubr.msk.bf16.vlgmr.msra.gmra.mrb[0].mxu1 %vm329_vm2, %v1223_v11  ;;  %v717_v52 = vrot.slane %v1757_v25, 2  ;;  %v899_v0 = vshrl.u32 %v1836_v59, 16  ;;  %v902_v2 = vshll.u32 %v1836_v59, 16  ;;  %v1571_v11 = vld [vmem:[%s1933_s1 + $0xd0] sm:$0xff]  }
  0x1c   : > { %1425 = vmatpush3.bf16.msra.mxu1 %v1551_v19  ;;  %1432 = vmatprep.mubr.msk.bf16.mxu1 %vm1622_vm0, %v1621_v1  ;;  %v627_v55 = vor.u32 %v626_v48, %v623_v47  ;;  %v635_v56 = vor.u32 %v634_v50, %v631_v49  ;;  %v907_v3 = vshrl.u32 %v1839_v60, 16  ;;  %v910_v4 = vshll.u32 %v1839_v60, 16  ;;  %s243_s8 = sadd.s32 %s1496_s7, %s1950_s6 }
  0x1d   : > { %v304_v22 = vsel %vm292_vm1, %v299_v20, %v303_v18  ;;  %1426 = vmatprep.subr.bf16.mxu1 %v1621_v1  ;;  %v719_v57 = vsel %vm716_vm4, %v717_v52, %v718_v53  ;;  %v901_v7 = vrot.slane %v899_v0, 2  ;;  %v904_v8 = vrot.slane %v902_v2, 3  ;;  %v1577_v20 = vld [vmem:[%s1933_s1 + $0x100] sm:$0xff]   ;;  %s1210_s9 = sshll.u32 %s243_s8, 2 }
  0x1e   : > { %1397 = vmatmul.mubr.msk.bf16.vlgmr.msra.gmra.mrb[0].mxu0 %vm329_vm2, %v304_v22  ;;  %v636_v61 = vsel %vm619_vm5, %v627_v55, %v635_v56  ;;  %v909_v9 = vrot.slane %v907_v3, 2  ;;  %v912_v10 = vrot.slane %v910_v4, 3  ;;  %v815_v16 = vrot.slane %v1836_v59, 2  ;;  %v1579_v22 = vld [vmem:[%s1933_s1 + $0x110] sm:$0xff]   ;;  %s245_s15 = scalar_lea.vmem %s1935_s3, %s1210_s9  ;;  %s255_s23 = scalar_lea.vmem %s1936_s4, %s1210_s9 }
  0x1f   : > { %1413 = vmatpush3.bf16.msra.mxu0 %v1550_v21  ;;  %1420 = vmatprep.mubr.msk.bf16.mxu0 %vm1622_vm0, %v1621_v1  ;;  %v905_v13 = vor.u32 %v904_v8, %v901_v7  ;;  %v816_v17 = vrot.slane %v1839_v60, 2  ;;  %v1578_v21 = vld [vmem:[%s1933_s1 + $0x108] sm:$0xff]   ;;  %v996_v25 = vrot.slane %v1839_v60, 3 }
  0x20   : > { %1414 = vmatprep.subr.bf16.mxu0 %v1621_v1  ;;  %1427 = vmatpush3.bf16.msra.mxu1 %v1553_v23  ;;  %v913_v14 = vor.u32 %v912_v10, %v909_v9  ;;  %v1580_v23 = vld [vmem:[%s1933_s1 + $0x118] sm:$0xff]   ;;  %v1340_v9 = vld [vmem:[%s245_s15] sm:$0xff]  }
  0x21   : > { %1428 = vmatprep.subr.bf16.mxu1 %v1621_v1  ;;  %v817_v19 = vsel %vm716_vm4, %v815_v16, %v816_v17 }
  0x22   : > { %v914_v18 = vsel %vm897_vm6, %v905_v13, %v913_v14  ;;  %v1341_v13 = vunpack.c.l.bf16 %v1340_v9 }
  0x23   : > { %1415 = vmatpush3.bf16.msra.mxu0 %v1552_v24  ;;  %v995_v24 = vrot.slane %v1836_v59, 3 }
  0x24   : > { %1416 = vmatprep.subr.bf16.mxu0 %v1621_v1  ;;  %1429 = vmatpush3.bf16.msra.mxu1 %v1555_v26 }
  0x25   : > { %1430 = vmatprep.subr.bf16.mxu1 %v1621_v1  ;;  %v997_v26 = vsel %vm994_vm7, %v995_v24, %v996_v25 }
  0x27   : > { %1417 = vmatpush3.bf16.msra.mxu0 %v1554_v28 }
  0x28   : > { %1418 = vmatprep.subr.bf16.mxu0 %v1621_v1  ;;  %1431 = vmatpush3.bf16.msra.mxu1 %v1557_v30 }
  0x29   : > { %1448 = vmatprep.subr.bf16.mxu1 %v1621_v1 }
  0x2b   : > { %1419 = vmatpush3.bf16.msra.mxu0 %v1556_v32  ;;  %1433 = vmatmul.mubr.msk.bf16.vlgmr.msra.gmra.mrb[4].mxu1 %vm329_vm2, %v539_v35 }
  0x2c   : > { %1436 = vmatprep.subr.bf16.mxu0 %v1621_v1  ;;  %1449 = vmatpush3.bf16.msra.mxu1 %v1560_v36 }
  0x2d   : > { %1450 = vmatprep.subr.bf16.mxu1 %v1621_v1  ;;  %1456 = vmatprep.mubr.msk.bf16.mxu1 %vm1622_vm0, %v1621_v1 }
  0x2e   : > { %1421 = vmatmul.mubr.msk.bf16.vlgmr.msra.gmra.mrb[4].mxu0 %vm329_vm2, %v453_v37 }
  0x2f   : > { %1437 = vmatpush3.bf16.msra.mxu0 %v1558_v38  ;;  %1444 = vmatprep.mubr.msk.bf16.mxu0 %vm1622_vm0, %v1621_v1 }
  0x30   : > { %1438 = vmatprep.subr.bf16.mxu0 %v1621_v1  ;;  %1451 = vmatpush3.bf16.msra.mxu1 %v1562_v41 }
  0x31   : > { %1452 = vmatprep.subr.bf16.mxu1 %v1621_v1 }
  0x33   : > { %1439 = vmatpush3.bf16.msra.mxu0 %v1561_v39 }
  0x34   : > { %1440 = vmatprep.subr.bf16.mxu0 %v1621_v1  ;;  %1453 = vmatpush3.bf16.msra.mxu1 %v1564_v46 }
  0x35   : > { %1454 = vmatprep.subr.bf16.mxu1 %v1621_v1 }
  0x37   : > { %1441 = vmatpush3.bf16.msra.mxu0 %v1563_v45 }
  0x38   : > { %1442 = vmatprep.subr.bf16.mxu0 %v1621_v1  ;;  %1455 = vmatpush3.bf16.msra.mxu1 %v1566_v51 }
  0x39   : > { %1472 = vmatprep.subr.bf16.mxu1 %v1621_v1 }
  0x3b   : > { %1443 = vmatpush3.bf16.msra.mxu0 %v1565_v54  ;;  %1457 = vmatmul.mubr.msk.bf16.vlgmr.msra.gmra.mrb[8].mxu1 %vm329_vm2, %v719_v57 }
  0x3c   : > { %1460 = vmatprep.subr.bf16.mxu0 %v1621_v1  ;;  %1473 = vmatpush3.bf16.msra.mxu1 %v1568_v58 }
  0x3d   : > { %1474 = vmatprep.subr.bf16.mxu1 %v1621_v1  ;;  %1480 = vmatprep.mubr.msk.bf16.mxu1 %vm1622_vm0, %v1621_v1 }
  0x3e   : > { %1445 = vmatmul.mubr.msk.bf16.vlgmr.msra.gmra.mrb[8].mxu0 %vm329_vm2, %v636_v61 }
  0x3f   : > { %1461 = vmatpush3.bf16.msra.mxu0 %v1567_v62  ;;  %1468 = vmatprep.mubr.msk.bf16.mxu0 %vm1622_vm0, %v1621_v1 }
  0x40   : > { %1462 = vmatprep.subr.bf16.mxu0 %v1621_v1  ;;  %1475 = vmatpush3.bf16.msra.mxu1 %v1570_v63 }
  0x41   : > { %1476 = vmatprep.subr.bf16.mxu1 %v1621_v1 }
  0x43   : > { %1463 = vmatpush3.bf16.msra.mxu0 %v1569_v5 }
  0x44   : > { %1464 = vmatprep.subr.bf16.mxu0 %v1621_v1  ;;  %1477 = vmatpush3.bf16.msra.mxu1 %v1572_v6 }
  0x45   : > { %1478 = vmatprep.subr.bf16.mxu1 %v1621_v1 }
  0x47   : > { %1465 = vmatpush3.bf16.msra.mxu0 %v1571_v11  ;;  %v1331_v11 = vld [vmem:[%s1934_s2] ss:$0 sm:$0xff] }
  0x48   : > { %1466 = vmatprep.subr.bf16.mxu0 %v1621_v1  ;;  %1479 = vmatpush3.bf16.msra.mxu1 %v1574_v12 }
  0x4b   : > { %1467 = vmatpush3.bf16.msra.mxu0 %v1573_v15  ;;  %1481 = vmatmul.mubr.msk.bf16.vlgmr.msra.gmra.mrb[12].mxu1 %vm329_vm2, %v914_v18  ;;  %v1342_v18 = vunpack.c.h.bf16 %v1340_v9 }
  0x4c   : > { %1484 = vmatprep.subr.bf16.mxu0 %v1621_v1 }
  0x4e   : > { %1469 = vmatmul.mubr.msk.bf16.vlgmr.msra.gmra.mrb[12].mxu0 %vm329_vm2, %v817_v19 }
  0x4f   : > { %1485 = vmatpush3.bf16.msra.mxu0 %v1577_v20  ;;  %1492 = vmatprep.mubr.msk.bf16.mxu0 %vm1622_vm0, %v1621_v1 }
  0x50   : > { %1486 = vmatprep.subr.bf16.mxu0 %v1621_v1 }
  0x53   : > { %1487 = vmatpush3.bf16.msra.mxu0 %v1578_v21 }
  0x54   : > { %1488 = vmatprep.subr.bf16.mxu0 %v1621_v1 }
  0x57   : > { %1489 = vmatpush3.bf16.msra.mxu0 %v1579_v22 }
  0x58   : > { %1490 = vmatprep.subr.bf16.mxu0 %v1621_v1 }
  0x5b   : > { %1491 = vmatpush3.bf16.msra.mxu0 %v1580_v23 }
  0x5e   : > { %1493 = vmatmul.mubr.msk.bf16.vlgmr.msra.gmra.mrb[16].mxu0 %vm329_vm2, %v997_v26 }
  0xee   : > { %v434_v27 = vpop.f32.mrb[0].mxu1 }
  0xef   : > { %v1410_v29 = vpop.f32.mrb[1].mxu1 }
  0xf0   : > { %v437_v32 = vpop.f32.mrb[2].mxu1 }
  0xf1   : > { %v367_v28 = vpop.f32.mrb[0].mxu0  ;;  %v1411_v34 = vpop.f32.mrb[3].mxu1 }
  0xf2   : > { %v435_v30 = vadd.f32 %v434_v27, %v367_v28  ;;  %v1398_v31 = vpop.f32.mrb[1].mxu0 }
  0xf3   : > { %v370_v33 = vpop.f32.mrb[2].mxu0 }
  0xf4   : > { %v438_v35 = vadd.f32 %v437_v32, %v370_v33  ;;  %v1399_v36 = vpop.f32.mrb[3].mxu0 }
  0xfe   : > { %v601_v37 = vpop.f32.mrb[4].mxu1 }
  0xff   : > { %v1434_v39 = vpop.f32.mrb[5].mxu1 }
 0x100   : > { %v604_v41 = vpop.f32.mrb[6].mxu1 }
 0x101   : > { %v515_v38 = vpop.f32.mrb[4].mxu0  ;;  %v1435_v43 = vpop.f32.mrb[7].mxu1 }
 0x102   : > { %v522_v40 = vadd.f32 %v515_v38, %v435_v30  ;;  %v1422_v1 = vpop.f32.mrb[5].mxu0 }
 0x103   : > { %v518_v42 = vpop.f32.mrb[6].mxu0 }
 0x104   : > { %v523_v44 = vadd.f32 %v518_v42, %v438_v35  ;;  %v608_v45 = vadd.f32 %v601_v37, %v522_v40  ;;  %v1423_v46 = vpop.f32.mrb[7].mxu0 }
 0x106   : > { %v609_v47 = vadd.f32 %v604_v41, %v523_v44 }
 0x10e   : > { %v781_v48 = vpop.f32.mrb[8].mxu1 }
 0x10f   : > { %v1458_v50 = vpop.f32.mrb[9].mxu1 }
 0x110   : > { %v784_v53 = vpop.f32.mrb[10].mxu1 }
 0x111   : > { %v698_v49 = vpop.f32.mrb[8].mxu0  ;;  %v1459_v55 = vpop.f32.mrb[11].mxu1 }
 0x112   : > { %v705_v51 = vadd.f32 %v698_v49, %v608_v45  ;;  %v1446_v52 = vpop.f32.mrb[9].mxu0 }
 0x113   : > { %v701_v54 = vpop.f32.mrb[10].mxu0 }
 0x114   : > { %v706_v56 = vadd.f32 %v701_v54, %v609_v47  ;;  %v788_v57 = vadd.f32 %v781_v48, %v705_v51  ;;  %v1447_v58 = vpop.f32.mrb[11].mxu0 }
 0x116   : > { %v789_v59 = vadd.f32 %v784_v53, %v706_v56 }
 0x11e   : > { %v976_v60 = vpop.f32.mrb[12].mxu1 }
 0x11f   : > { %v1482_v62 = vpop.f32.mrb[13].mxu1 }
 0x120   : > { %v979_v2 = vpop.f32.mrb[14].mxu1 }
 0x121   : > { %v879_v61 = vpop.f32.mrb[12].mxu0  ;;  %v1483_v4 = vpop.f32.mrb[15].mxu1 }
 0x122   : > { %v886_v63 = vadd.f32 %v879_v61, %v788_v57  ;;  %v1470_v0 = vpop.f32.mrb[13].mxu0 }
 0x123   : > { %v882_v3 = vpop.f32.mrb[14].mxu0 }
 0x124   : > { %v887_v5 = vadd.f32 %v882_v3, %v789_v59  ;;  %v983_v6 = vadd.f32 %v976_v60, %v886_v63  ;;  %v1471_v7 = vpop.f32.mrb[15].mxu0 }
 0x126   : > { %v984_v8 = vadd.f32 %v979_v2, %v887_v5 }
 0x131   : > { %v1059_v10 = vpop.f32.mrb[16].mxu0 }
 0x132   : > { %v1066_v12 = vadd.f32 %v1059_v10, %v983_v6  ;;  %v1494_v14 = vpop.f32.mrb[17].mxu0 }
 0x133   : > { %v1062_v15 = vpop.f32.mrb[18].mxu0 }
 0x134   : > { %v1075_v16 = vadd.f32 %v1331_v11, %v1066_v12  ;;  %v1067_v17 = vadd.f32 %v1062_v15, %v984_v8  ;;  %v1495_v19 = vpop.f32.mrb[19].mxu0 }
 0x136   : > { %v1081_v20 = vadd.f32 %v1341_v13, %v1075_v16  ;;  %v1076_v21 = vadd.f32 %v1331_v11, %v1067_v17 }
 0x138   : > { %v1083_v22 = vmax.f32 %v1081_v20, 0.0  ;;  %v1082_v23 = vadd.f32 %v1342_v18, %v1076_v21 }
 0x13a   : > { %v1337_v24 = vpack.c.bf16 %v1083_v22, %v1083_v22  ;;  %v1084_v25 = vmax.f32 %v1082_v23, 0.0 }
 0x13c   : > { %1094 = vst.msk [vmem:[%s255_s23] sm:$0xf] %vm1093_vm8, %v1337_v24  ;;  %v1338_v26 = vpack.c.bf16 %v1084_v25, %v1084_v25 }
 0x13e   : > { %1095 = vst.msk [vmem:[%s255_s23 + $0x4] sm:$0xf] %vm1093_vm8, %v1338_v26 }
 0x13f PF: > { %s14_s19 = sadd.s32 1, %s1619_s19   ;;  %s1937_s15 = smov %s1611_s17 }
 0x140   : > { %p11_p7 = scmp.ge.s32.totalorder %s14_s19, 12   ;;  %s1938_s16 = smov %s1615_s18 }
 0x141   : > { %s1939_s17 = smov %s1942_s20  ;;  %s1940_s18 = smov %s1946_s21 }
 0x142   :  { %13 = sbr.rel (!%p11_p7) target bundleno = 3 (0x3), region = 79 }

// kernel: resnet_backbone_forward.38
= control target key start
LH: loop header
LB: loop body
LE: loop exit
PB: predicated region body
PF: predicated region fallthrough
CT: control target
= control target key end

     0   :  { %s1577_s12 = smov 0   ;;  %s1579_s13 = smov 0   ;;  %s1853_s0 = inlined_call_operand.vmem [shape: bf16[2,4,64,64], index: 0, kind: input, shape index: {}]   ;;  %s1854_s1 = inlined_call_operand.vmem [shape: bf16[9,64,128], index: 1, kind: input, shape index: {}]   ;;  %s1855_s2 = inlined_call_operand.vmem [shape: f32[1,128], index: 2, kind: input, shape index: {}]   ;;  %s1856_s3 = inlined_call_operand.vmem [shape: bf16[2,32,128], index: 3, kind: output, shape index: {}]  }
   0x1   :  { %s1581_s14 = smov 0   ;;  %s1583_s15 = smov 0  }
   0x2   :  { %s1585_s16 = smov 0  }
   0x3 LB: > { %s22_s17 = sadd.s32 1, %s1545_s14  ;;  %s25_s18 = sadd.s32 1, %s1549_s15  ;;  %s1553_s16 = sphi %s1585_s16, %s13_s16   ;;  %s1549_s15 = sphi %s1583_s15, %s1860_s15   ;;  %s1545_s14 = sphi %s1581_s14, %s1859_s14   ;;  %s1541_s13 = sphi %s1579_s13, %s1858_s13   ;;  %s1537_s12 = sphi %s1577_s12, %s1857_s12  }
   0x4   : > { %p23_p0 = scmp.ge.s32.totalorder %s22_s17, 2  ;;  %p1129_p1 = scmp.ge.s32.totalorder %s1553_s16, 1 }
   0x5   : > { %p151_p2 = scmp.lt.s32.totalorder %s1553_s16, 5 }
   0x6   : > { %s1862_s17 = smov (%p23_p0, %s22_s17), 0  ;;  %s1864_s18 = smov (!%p23_p0, %s25_s18), %s1549_s15 }
   0x7   : > { %p152_p3 = pnand %p1129_p1, %p151_p2  ;;  %p27_p4 = scmp.ge.s32.totalorder %s1864_s18, 2 }
   0x8   : > { %v1472_v0 = vld [vmem:[%s1854_s1 + $0x20] sm:$0xff] (!%p152_p3)   ;;  %v1555_v1 = vmov (!%p152_p3), 0.0   ;;  %v1474_v3 = vld [vmem:[%s1854_s1 + $0x28] sm:$0xff] (!%p152_p3)   ;;  %vm1556_vm0 = vmmov (!%p152_p3), 0   ;;  %p179_p5 = scmp.lt.s32.totalorder (!%p152_p3), %s1541_s13, 1  ;;  %s1135_s27 = sshll.u32 (!%p152_p3), %s1537_s12, 4 }
   0x9   : > { %s1866_s18 = smov (%p27_p4, %s1864_s18), 0  ;;  %155 = sbr.rel (%p152_p3) target bundleno = 313 (0x139), region = 32 }
   0xa   : > { %1322 = vmatprep.subr.bf16.mxu0 (!%p152_p3), %v1555_v1  ;;  %1334 = vmatprep.subr.bf16.mxu1 (!%p152_p3), %v1555_v1  ;;  %v1473_v2 = vld [vmem:[%s1854_s1] sm:$0xff] (!%p152_p3)   ;;  %v1475_v4 = vld [vmem:[%s1854_s1 + $0x8] sm:$0xff] (!%p152_p3)   ;;  %s196_s28 = sshra.s32 (!%p152_p3), %s1135_s27, 3  ;;  %v1476_v5 = vld [vmem:[%s1854_s1 + $0x30] sm:$0xff] (!%p152_p3)   ;;  %vm255_vm1 = vcmask (!%p152_p3), 523264   ;;  %vm935_vm4 = vcmask (!%p152_p3), 1044480  }
   0xb   : > { %1323 = vmatpush3.bf16.msra.mxu0 (!%p152_p3), %v1472_v0  ;;  %1330 = vmatprep.mubr.msk.bf16.mxu0 (!%p152_p3), %vm1556_vm0, %v1555_v1  ;;  %v1477_v6 = vld [vmem:[%s1854_s1 + $0x10] sm:$0xff] (!%p152_p3)   ;;  %s1136_s10 = sshll.u32 (!%p152_p3), %s196_s28, 2  ;;  %v1478_v7 = vld [vmem:[%s1854_s1 + $0x38] sm:$0xff] (!%p152_p3)   ;;  %v1482_v9 = vld [vmem:[%s1854_s1 + $0x40] sm:$0xff] (!%p152_p3)   ;;  %vm385_vm2 = vsmask.f32 (!%p152_p3), 7424 }
   0xc   : > { %1335 = vmatpush3.bf16.msra.mxu1 (!%p152_p3), %v1473_v2  ;;  %1324 = vmatprep.subr.bf16.mxu0 (!%p152_p3), %v1555_v1  ;;  %v1479_v8 = vld [vmem:[%s1854_s1 + $0x18] sm:$0xff] (!%p152_p3)   ;;  %v1483_v12 = vld [vmem:[%s1854_s1 + $0x60] sm:$0xff] (!%p152_p3)   ;;  %v1484_v13 = vld [vmem:[%s1854_s1 + $0x48] sm:$0xff] (!%p152_p3)   ;;  %vm748_vm3 = vsmask.f32 (!%p152_p3), 5376  ;;  %s1132_s21 = sshll.u32 (!%p152_p3), %s1537_s12, 1 }
   0xd   : > { %1336 = vmatprep.subr.bf16.mxu1 (!%p152_p3), %v1555_v1  ;;  %1342 = vmatprep.mubr.msk.bf16.mxu1 (!%p152_p3), %vm1556_vm0, %v1555_v1  ;;  %v1485_v16 = vld [vmem:[%s1854_s1 + $0x68] sm:$0xff] (!%p152_p3)   ;;  %v1486_v17 = vld [vmem:[%s1854_s1 + $0x50] sm:$0xff] (!%p152_p3)   ;;  %v1488_v22 = vld [vmem:[%s1854_s1 + $0x58] sm:$0xff] (!%p152_p3)   ;;  %p187_p6 = scmp.lt.s32.totalorder (!%p152_p3), %s1132_s21, 3 }
   0xe   : > { %v1487_v21 = vld [vmem:[%s1854_s1 + $0x70] sm:$0xff] (!%p152_p3)   ;;  %v1489_v23 = vld [vmem:[%s1854_s1 + $0x78] sm:$0xff] (!%p152_p3)   ;;  %v1491_v27 = vld [vmem:[%s1854_s1 + $0x80] sm:$0xff] (!%p152_p3)  }
   0xf   : > { %1325 = vmatpush3.bf16.msra.mxu0 (!%p152_p3), %v1474_v3  ;;  %v1493_v29 = vld [vmem:[%s1854_s1 + $0xa0] sm:$0xff] (!%p152_p3)   ;;  %v1494_v30 = vld [vmem:[%s1854_s1 + $0x88] sm:$0xff] (!%p152_p3)   ;;  %v1496_v34 = vld [vmem:[%s1854_s1 + $0x90] sm:$0xff] (!%p152_p3)  }
  0x10   : > { %s1868_s13 = smov (!%p179_p5, %s1541_s13), 1  ;;  %1337 = vmatpush3.bf16.msra.mxu1 %v1475_v4  ;;  %1326 = vmatprep.subr.bf16.mxu0 %v1555_v1  ;;  %v1495_v31 = vld [vmem:[%s1854_s1 + $0xa8] sm:$0xff]   ;;  %v1497_v35 = vld [vmem:[%s1854_s1 + $0xb0] sm:$0xff]   ;;  %v1498_v39 = vld [vmem:[%s1854_s1 + $0x98] sm:$0xff]   ;;  %s1870_s21 = smov (!%p187_p6, %s1132_s21), 3 }
  0x11   : > { %s1269_s4 = sshll.u32 %s1868_s13, 7  ;;  %1338 = vmatprep.subr.bf16.mxu1 %v1555_v1  ;;  %v1499_v40 = vld [vmem:[%s1854_s1 + $0xb8] sm:$0xff]   ;;  %v1501_v44 = vld [vmem:[%s1854_s1 + $0xc0] sm:$0xff]   ;;  %v1504_v48 = vld [vmem:[%s1854_s1 + $0xc8] sm:$0xff]   ;;  %s1133_s22 = sshll.u32 %s1868_s13, 2 }
  0x12   : > { %s183_s9 = scalar_lea.vmem %s1853_s0, %s1269_s4  ;;  %v1503_v46 = vld [vmem:[%s1854_s1 + $0xe0] sm:$0xff]   ;;  %v1505_v52 = vld [vmem:[%s1854_s1 + $0xe8] sm:$0xff]   ;;  %v1506_v55 = vld [vmem:[%s1854_s1 + $0xd0] sm:$0xff]   ;;  %s190_s24 = sadd.s32 %s1133_s22, %s1870_s21 }
  0x13   : > { %s1648_s11 = scalar_lea.vmem %s183_s9, %s1136_s10  ;;  %1327 = vmatpush3.bf16.msra.mxu0 %v1476_v5  ;;  %v1507_v60 = vld [vmem:[%s1854_s1 + $0xf0] sm:$0xff]   ;;  %v1508_v2 = vld [vmem:[%s1854_s1 + $0xd8] sm:$0xff]   ;;  %s1134_s25 = sshll.u32 %s190_s24, 2 }
  0x14   : > { %1339 = vmatpush3.bf16.msra.mxu1 %v1477_v6  ;;  %1328 = vmatprep.subr.bf16.mxu0 %v1555_v1  ;;  %v1662_v10 = vld [vmem:[%s1648_s11 + $0x20] sm:$0xff]   ;;  %v1680_v14 = vld [vmem:[%s1648_s11 + $0x8] ss:$0 sps:$4 sm:$0xff]   ;;  %v1509_v5 = vld [vmem:[%s1854_s1 + $0xf8] sm:$0xff]   ;;  %s192_s13 = scalar_lea.vmem %s1856_s3, %s1134_s25 }
  0x15   : > { %1340 = vmatprep.subr.bf16.mxu1 %v1555_v1  ;;  %v1665_v11 = vld [vmem:[%s1648_s11] sm:$0xff]   ;;  %v393_v20 = vshll.u32 %v1680_v14, 16  ;;  %v1502_v33 = vld [vmem:[%s1648_s11 + $0x48] ss:$0 sps:$4 sm:$0xff]   ;;  %v752_v49 = vshrl.u32 %v1680_v14, 16  ;;  %v840_v50 = vshrl.u32 %v1662_v10, 16 }
  0x16   : > { %v388_v15 = vshll.u32 %v1665_v11, 16  ;;  %v386_v18 = vshrl.u32 %v1665_v11, 16  ;;  %v1492_v28 = vld [vmem:[%s1648_s11 + $0x40] sm:$0xff]   ;;  %v665_v38 = vshll.u32 %v1502_v33, 16  ;;  %v1511_v47 = vld [vmem:[%s1648_s11 + $0x28] ss:$0 sps:$4 sm:$0xff]  }
  0x17   : > { %1329 = vmatpush3.bf16.msra.mxu0 %v1478_v7  ;;  %v395_v25 = vrot.slane %v393_v20, 1  ;;  %v660_v32 = vshll.u32 %v1492_v28, 16  ;;  %v658_v36 = vshrl.u32 %v1492_v28, 16  ;;  %v1500_v43 = vld [vmem:[%s1648_s11 + $0x60] sm:$0xff]   ;;  %v843_v51 = vshll.u32 %v1662_v10, 16 }
  0x18   : > { %1341 = vmatpush3.bf16.msra.mxu1 %v1479_v8  ;;  %1346 = vmatprep.subr.bf16.mxu0 %v1555_v1  ;;  %v390_v19 = vrot.slane %v388_v15, 1  ;;  %v667_v42 = vrot.slane %v665_v38, 1  ;;  %v848_v53 = vshrl.u32 %v1511_v47, 16  ;;  %v851_v54 = vshll.u32 %v1511_v47, 16 }
  0x19   : > { %1358 = vmatprep.subr.bf16.mxu1 %v1555_v1  ;;  %v662_v37 = vrot.slane %v660_v32, 1  ;;  %v749_v56 = vrot.slane %v386_v18, 2  ;;  %v750_v57 = vrot.slane %v388_v15, 3  ;;  %v754_v58 = vrot.slane %v752_v49, 2  ;;  %v1514_v15 = vld [vmem:[%s1854_s1 + $0x118] sm:$0xff]  }
  0x1a   : > { %1331 = vmatmul.mubr.msk.bf16.vlgmr.msra.gmra.mrb[0].mxu0 %vm255_vm1, %v1662_v10  ;;  %v391_v24 = vor.u32 %v390_v19, %v386_v18  ;;  %v755_v59 = vrot.slane %v393_v20, 3  ;;  %v842_v61 = vrot.slane %v840_v50, 2  ;;  %v845_v62 = vrot.slane %v843_v51, 3 }
  0x1b   : > { %1343 = vmatmul.mubr.msk.bf16.vlgmr.msra.gmra.mrb[0].mxu1 %vm255_vm1, %v1665_v11  ;;  %1347 = vmatpush3.bf16.msra.mxu0 %v1482_v9  ;;  %v663_v41 = vor.u32 %v662_v37, %v658_v36  ;;  %v850_v63 = vrot.slane %v848_v53, 2  ;;  %v853_v0 = vrot.slane %v851_v54, 3  ;;  %v751_v3 = vor.u32 %v750_v57, %v749_v56  ;;  %v1510_v9 = vld [vmem:[%s1854_s1 + $0x100] sm:$0xff]  }
  0x1c   : > { %1359 = vmatpush3.bf16.msra.mxu1 %v1483_v12  ;;  %1348 = vmatprep.subr.bf16.mxu0 %v1555_v1  ;;  %v396_v26 = vsel %vm385_vm2, %v391_v24, %v395_v25  ;;  %v756_v4 = vor.u32 %v755_v59, %v754_v58  ;;  %v846_v6 = vor.u32 %v845_v62, %v842_v61  ;;  %v1512_v12 = vld [vmem:[%s1854_s1 + $0x108] sm:$0xff]  }
  0x1d   : > { %1360 = vmatprep.subr.bf16.mxu1 %v1555_v1  ;;  %1354 = vmatprep.mubr.msk.bf16.mxu0 %vm1556_vm0, %v1555_v1  ;;  %v668_v45 = vsel %vm385_vm2, %v663_v41, %v667_v42  ;;  %v854_v7 = vor.u32 %v853_v0, %v850_v63  ;;  %v1264_v63 = vld [vmem:[%s1855_s2] ss:$0 sm:$0xff] }
  0x1e   : > { %1366 = vmatprep.mubr.msk.bf16.mxu1 %vm1556_vm0, %v1555_v1  ;;  %v757_v8 = vsel %vm748_vm3, %v751_v3, %v756_v4 }
  0x1f   : > { %1349 = vmatpush3.bf16.msra.mxu0 %v1484_v13  ;;  %v855_v10 = vsel %vm748_vm3, %v846_v6, %v854_v7  ;;  %v1513_v13 = vld [vmem:[%s1854_s1 + $0x110] sm:$0xff]  }
  0x20   : > { %1361 = vmatpush3.bf16.msra.mxu1 %v1485_v16  ;;  %1350 = vmatprep.subr.bf16.mxu0 %v1555_v1  ;;  %v936_v16 = vrot.slane %v1665_v11, 3 }
  0x21   : > { %1362 = vmatprep.subr.bf16.mxu1 %v1555_v1 }
  0x23   : > { %1351 = vmatpush3.bf16.msra.mxu0 %v1486_v17  ;;  %v937_v17 = vrot.slane %v1680_v14, 3 }
  0x24   : > { %1363 = vmatpush3.bf16.msra.mxu1 %v1487_v21  ;;  %1352 = vmatprep.subr.bf16.mxu0 %v1555_v1 }
  0x25   : > { %1364 = vmatprep.subr.bf16.mxu1 %v1555_v1  ;;  %v938_v18 = vsel %vm935_vm4, %v936_v16, %v937_v17 }
  0x27   : > { %1353 = vmatpush3.bf16.msra.mxu0 %v1488_v22 }
  0x28   : > { %1365 = vmatpush3.bf16.msra.mxu1 %v1489_v23  ;;  %1370 = vmatprep.subr.bf16.mxu0 %v1555_v1 }
  0x29   : > { %1382 = vmatprep.subr.bf16.mxu1 %v1555_v1 }
  0x2a   : > { %1355 = vmatmul.mubr.msk.bf16.vlgmr.msra.gmra.mrb[4].mxu0 %vm255_vm1, %v396_v26 }
  0x2b   : > { %1371 = vmatpush3.bf16.msra.mxu0 %v1491_v27  ;;  %1367 = vmatmul.mubr.msk.bf16.vlgmr.msra.gmra.mrb[4].mxu1 %vm255_vm1, %v1492_v28 }
  0x2c   : > { %1383 = vmatpush3.bf16.msra.mxu1 %v1493_v29  ;;  %1372 = vmatprep.subr.bf16.mxu0 %v1555_v1 }
  0x2d   : > { %1384 = vmatprep.subr.bf16.mxu1 %v1555_v1  ;;  %1378 = vmatprep.mubr.msk.bf16.mxu0 %vm1556_vm0, %v1555_v1 }
  0x2e   : > { %1390 = vmatprep.mubr.msk.bf16.mxu1 %vm1556_vm0, %v1555_v1 }
  0x2f   : > { %1373 = vmatpush3.bf16.msra.mxu0 %v1494_v30 }
  0x30   : > { %1385 = vmatpush3.bf16.msra.mxu1 %v1495_v31  ;;  %1374 = vmatprep.subr.bf16.mxu0 %v1555_v1 }
  0x31   : > { %1386 = vmatprep.subr.bf16.mxu1 %v1555_v1 }
  0x33   : > { %1375 = vmatpush3.bf16.msra.mxu0 %v1496_v34 }
  0x34   : > { %1387 = vmatpush3.bf16.msra.mxu1 %v1497_v35  ;;  %1376 = vmatprep.subr.bf16.mxu0 %v1555_v1 }
  0x35   : > { %1388 = vmatprep.subr.bf16.mxu1 %v1555_v1 }
  0x37   : > { %1377 = vmatpush3.bf16.msra.mxu0 %v1498_v39 }
  0x38   : > { %1389 = vmatpush3.bf16.msra.mxu1 %v1499_v40  ;;  %1394 = vmatprep.subr.bf16.mxu0 %v1555_v1 }
  0x39   : > { %1406 = vmatprep.subr.bf16.mxu1 %v1555_v1 }
  0x3a   : > { %1379 = vmatmul.mubr.msk.bf16.vlgmr.msra.gmra.mrb[8].mxu0 %vm255_vm1, %v1500_v43 }
  0x3b   : > { %1395 = vmatpush3.bf16.msra.mxu0 %v1501_v44  ;;  %1391 = vmatmul.mubr.msk.bf16.vlgmr.msra.gmra.mrb[8].mxu1 %vm255_vm1, %v668_v45 }
  0x3c   : > { %1407 = vmatpush3.bf16.msra.mxu1 %v1503_v46  ;;  %1396 = vmatprep.subr.bf16.mxu0 %v1555_v1 }
  0x3d   : > { %1408 = vmatprep.subr.bf16.mxu1 %v1555_v1  ;;  %1402 = vmatprep.mubr.msk.bf16.mxu0 %vm1556_vm0, %v1555_v1 }
  0x3e   : > { %1414 = vmatprep.mubr.msk.bf16.mxu1 %vm1556_vm0, %v1555_v1 }
  0x3f   : > { %1397 = vmatpush3.bf16.msra.mxu0 %v1504_v48 }
  0x40   : > { %1409 = vmatpush3.bf16.msra.mxu1 %v1505_v52  ;;  %1398 = vmatprep.subr.bf16.mxu0 %v1555_v1 }
  0x41   : > { %1410 = vmatprep.subr.bf16.mxu1 %v1555_v1 }
  0x43   : > { %1399 = vmatpush3.bf16.msra.mxu0 %v1506_v55 }
  0x44   : > { %1411 = vmatpush3.bf16.msra.mxu1 %v1507_v60  ;;  %1400 = vmatprep.subr.bf16.mxu0 %v1555_v1 }
  0x45   : > { %1412 = vmatprep.subr.bf16.mxu1 %v1555_v1 }
  0x47   : > { %1401 = vmatpush3.bf16.msra.mxu0 %v1508_v2 }
  0x48   : > { %1413 = vmatpush3.bf16.msra.mxu1 %v1509_v5  ;;  %1418 = vmatprep.subr.bf16.mxu0 %v1555_v1 }
  0x4a   : > { %1403 = vmatmul.mubr.msk.bf16.vlgmr.msra.gmra.mrb[12].mxu0 %vm255_vm1, %v757_v8 }
  0x4b   : > { %1419 = vmatpush3.bf16.msra.mxu0 %v1510_v9  ;;  %1415 = vmatmul.mubr.msk.bf16.vlgmr.msra.gmra.mrb[12].mxu1 %vm255_vm1, %v855_v10 }
  0x4c   : > { %1420 = vmatprep.subr.bf16.mxu0 %v1555_v1  ;;  %1426 = vmatprep.mubr.msk.bf16.mxu0 %vm1556_vm0, %v1555_v1 }
  0x4f   : > { %1421 = vmatpush3.bf16.msra.mxu0 %v1512_v12 }
  0x50   : > { %1422 = vmatprep.subr.bf16.mxu0 %v1555_v1 }
  0x53   : > { %1423 = vmatpush3.bf16.msra.mxu0 %v1513_v13 }
  0x54   : > { %1424 = vmatprep.subr.bf16.mxu0 %v1555_v1 }
  0x57   : > { %1425 = vmatpush3.bf16.msra.mxu0 %v1514_v15 }
  0x5a   : > { %1427 = vmatmul.mubr.msk.bf16.vlgmr.msra.gmra.mrb[16].mxu0 %vm255_vm1, %v938_v18 }
  0xed   : > { %v293_v19 = vpop.f32.mrb[0].mxu0 }
  0xee   : > { %v366_v20 = vpop.f32.mrb[0].mxu1  ;;  %v1332_v21 = vpop.f32.mrb[1].mxu0 }
  0xef   : > { %v367_v22 = vadd.f32 %v366_v20, %v293_v19  ;;  %v1344_v23 = vpop.f32.mrb[1].mxu1  ;;  %v296_v24 = vpop.f32.mrb[2].mxu0 }
  0xf0   : > { %v369_v25 = vpop.f32.mrb[2].mxu1  ;;  %v1333_v26 = vpop.f32.mrb[3].mxu0 }
  0xf1   : > { %v370_v27 = vadd.f32 %v369_v25, %v296_v24  ;;  %v1345_v28 = vpop.f32.mrb[3].mxu1 }
  0xfd   : > { %v458_v11 = vpop.f32.mrb[4].mxu0 }
  0xfe   : > { %v465_v29 = vadd.f32 %v458_v11, %v367_v22  ;;  %v1356_v14 = vpop.f32.mrb[5].mxu0  ;;  %v548_v30 = vpop.f32.mrb[4].mxu1 }
  0xff   : > { %v461_v1 = vpop.f32.mrb[6].mxu0  ;;  %v1368_v31 = vpop.f32.mrb[5].mxu1 }
 0x100   : > { %v466_v32 = vadd.f32 %v461_v1, %v370_v27  ;;  %v555_v33 = vadd.f32 %v548_v30, %v465_v29  ;;  %v1357_v34 = vpop.f32.mrb[7].mxu0  ;;  %v551_v35 = vpop.f32.mrb[6].mxu1 }
 0x101   : > { %v1369_v36 = vpop.f32.mrb[7].mxu1 }
 0x102   : > { %v556_v37 = vadd.f32 %v551_v35, %v466_v32 }
 0x10d   : > { %v637_v38 = vpop.f32.mrb[8].mxu0 }
 0x10e   : > { %v644_v39 = vadd.f32 %v637_v38, %v555_v33  ;;  %v1380_v40 = vpop.f32.mrb[9].mxu0  ;;  %v730_v41 = vpop.f32.mrb[8].mxu1 }
 0x10f   : > { %v640_v42 = vpop.f32.mrb[10].mxu0  ;;  %v1392_v43 = vpop.f32.mrb[9].mxu1 }
 0x110   : > { %v645_v44 = vadd.f32 %v640_v42, %v556_v37  ;;  %v737_v45 = vadd.f32 %v730_v41, %v644_v39  ;;  %v1381_v46 = vpop.f32.mrb[11].mxu0  ;;  %v733_v47 = vpop.f32.mrb[10].mxu1 }
 0x111   : > { %v1393_v48 = vpop.f32.mrb[11].mxu1 }
 0x112   : > { %v738_v49 = vadd.f32 %v733_v47, %v645_v44 }
 0x11d   : > { %v819_v50 = vpop.f32.mrb[12].mxu0 }
 0x11e   : > { %v826_v51 = vadd.f32 %v819_v50, %v737_v45  ;;  %v1404_v52 = vpop.f32.mrb[13].mxu0  ;;  %v917_v53 = vpop.f32.mrb[12].mxu1 }
 0x11f   : > { %v822_v54 = vpop.f32.mrb[14].mxu0  ;;  %v1416_v55 = vpop.f32.mrb[13].mxu1 }
 0x120   : > { %v827_v56 = vadd.f32 %v822_v54, %v738_v49  ;;  %v924_v57 = vadd.f32 %v917_v53, %v826_v51  ;;  %v1405_v58 = vpop.f32.mrb[15].mxu0  ;;  %v920_v59 = vpop.f32.mrb[14].mxu1 }
 0x121   : > { %v1417_v60 = vpop.f32.mrb[15].mxu1 }
 0x122   : > { %v925_v61 = vadd.f32 %v920_v59, %v827_v56 }
 0x12d   : > { %v1000_v62 = vpop.f32.mrb[16].mxu0 }
 0x12e   : > { %v1007_v0 = vadd.f32 %v1000_v62, %v924_v57  ;;  %v1428_v2 = vpop.f32.mrb[17].mxu0 }
 0x12f   : > { %v1003_v3 = vpop.f32.mrb[18].mxu0 }
 0x130   : > { %v1016_v4 = vadd.f32 %v1264_v63, %v1007_v0  ;;  %v1008_v5 = vadd.f32 %v1003_v3, %v925_v61  ;;  %v1429_v6 = vpop.f32.mrb[19].mxu0 }
 0x132   : > { %v1017_v7 = vadd.f32 %v1264_v63, %v1008_v5  ;;  %v1018_v8 = vmax.f32 %v1016_v4, 0.0 }
 0x134   : > { %v1019_v9 = vmax.f32 %v1017_v7, 0.0 }
 0x136   : > { %v1275_v10 = vpack.c.bf16 %v1019_v9, %v1018_v8 }
 0x138   : > { %1276 = vst [vmem:[%s192_s13] sm:$0xff] %v1275_v10  }
 0x139 PF: > { %s13_s16 = sadd.s32 1, %s1553_s16   ;;  %s1857_s12 = smov %s1545_s14 }
 0x13a   : > { %p10_p7 = scmp.ge.s32.totalorder %s13_s16, 6   ;;  %s1858_s13 = smov %s1549_s15 }
 0x13b   : > { %s1859_s14 = smov %s1862_s17  ;;  %s1860_s15 = smov %s1866_s18 }
 0x13c   :  { %12 = sbr.rel (!%p10_p7) target bundleno = 3 (0x3), region = 74 }

// kernel: resnet_backbone_forward.39
= control target key start
LH: loop header
LB: loop body
LE: loop exit
PB: predicated region body
PF: predicated region fallthrough
CT: control target
= control target key end

     0   :  { %s548_s12 = smov 0   ;;  %s550_s13 = smov 0   ;;  %s618_s0 = inlined_call_operand.vmem [shape: bf16[2,4,64,64], index: 0, kind: input, shape index: {}]   ;;  %s619_s1 = inlined_call_operand.vmem [shape: bf16[1,64,128], index: 1, kind: input, shape index: {}]   ;;  %s620_s2 = inlined_call_operand.vmem [shape: f32[1,128], index: 2, kind: input, shape index: {}]   ;;  %s621_s3 = inlined_call_operand.vmem [shape: bf16[2,32,128], index: 3, kind: output, shape index: {}]  }
   0x1   :  { %s552_s14 = smov 0   ;;  %s554_s15 = smov 0  }
   0x2   :  { %s556_s16 = smov 0  }
   0x3 LB: > { %s22_s17 = sadd.s32 1, %s516_s14  ;;  %s25_s18 = sadd.s32 1, %s520_s15  ;;  %s524_s16 = sphi %s556_s16, %s13_s16   ;;  %s520_s15 = sphi %s554_s15, %s625_s15   ;;  %s516_s14 = sphi %s552_s14, %s624_s14   ;;  %s512_s13 = sphi %s550_s13, %s623_s13   ;;  %s508_s12 = sphi %s548_s12, %s622_s12  }
   0x4   : > { %p23_p0 = scmp.ge.s32.totalorder %s22_s17, 2  ;;  %p393_p1 = scmp.ge.s32.totalorder %s524_s16, 1 }
   0x5   : > { %p151_p2 = scmp.lt.s32.totalorder %s524_s16, 5 }
   0x6   : > { %s627_s17 = smov (%p23_p0, %s22_s17), 0  ;;  %s629_s18 = smov (!%p23_p0, %s25_s18), %s520_s15 }
   0x7   : > { %p152_p3 = pnand %p393_p1, %p151_p2  ;;  %p27_p4 = scmp.ge.s32.totalorder %s629_s18, 2 }
   0x8   : > { %v481_v0 = vld [vmem:[%s619_s1] sm:$0xff] (!%p152_p3)   ;;  %v526_v1 = vmov (!%p152_p3), 0.0   ;;  %v482_v2 = vld [vmem:[%s619_s1 + $0x8] sm:$0xff] (!%p152_p3)   ;;  %vm527_vm0 = vmmov (!%p152_p3), 0   ;;  %p179_p5 = scmp.lt.s32.totalorder (!%p152_p3), %s512_s13, 1  ;;  %s399_s23 = sshll.u32 (!%p152_p3), %s508_s12, 4 }
   0x9   : > { %s631_s18 = smov (%p27_p4, %s629_s18), 0  ;;  %155 = sbr.rel (%p152_p3) target bundleno = 245 (0xf5), region = 32 }
   0xa   : > { %427 = vmatprep.subr.bf16.mxu0 (!%p152_p3), %v526_v1  ;;  %435 = vmatprep.mubr.msk.bf16.mxu0 (!%p152_p3), %vm527_vm0, %v526_v1  ;;  %s196_s24 = sshra.s32 (!%p152_p3), %s399_s23, 3  ;;  %v483_v3 = vld [vmem:[%s619_s1 + $0x10] sm:$0xff] (!%p152_p3)   ;;  %v484_v4 = vld [vmem:[%s619_s1 + $0x18] sm:$0xff] (!%p152_p3)   ;;  %vm247_vm1 = vcmask (!%p152_p3), 523264   ;;  %s396_s8 = sshll.u32 (!%p152_p3), %s508_s12, 1 }
   0xb   : > { %428 = vmatpush3.bf16.msra.mxu0 (!%p152_p3), %v481_v0  ;;  %s400_s28 = sshll.u32 (!%p152_p3), %s196_s24, 2  ;;  %p187_p6 = scmp.lt.s32.totalorder (!%p152_p3), %s396_s8, 3  ;;  %v403_v6 = vld [vmem:[%s620_s2] ss:$0 sm:$0xff] (!%p152_p3) }
   0xc   : > { %429 = vmatprep.subr.bf16.mxu0 (!%p152_p3), %v526_v1 }
   0xf   : > { %430 = vmatpush3.bf16.msra.mxu0 (!%p152_p3), %v482_v2 }
  0x10   : > { %s633_s13 = smov (!%p179_p5, %s512_s13), 1  ;;  %431 = vmatprep.subr.bf16.mxu0 %v526_v1  ;;  %s635_s8 = smov (!%p187_p6, %s396_s8), 3 }
  0x11   : > { %s414_s27 = sshll.u32 %s633_s13, 7  ;;  %s397_s9 = sshll.u32 %s633_s13, 2 }
  0x12   : > { %s183_s4 = scalar_lea.vmem %s618_s0, %s414_s27  ;;  %s190_s10 = sadd.s32 %s397_s9, %s635_s8 }
  0x13   : > { %s347_s5 = scalar_lea.vmem %s183_s4, %s400_s28  ;;  %432 = vmatpush3.bf16.msra.mxu0 %v483_v3  ;;  %s398_s20 = sshll.u32 %s190_s10, 2 }
  0x14   : > { %433 = vmatprep.subr.bf16.mxu0 %v526_v1  ;;  %v485_v5 = vld [vmem:[%s347_s5 + $0x60] sm:$0xff]   ;;  %s192_s23 = scalar_lea.vmem %s621_s3, %s398_s20 }
  0x17   : > { %434 = vmatpush3.bf16.msra.mxu0 %v484_v4 }
  0x1a   : > { %436 = vmatmul.mubr.msk.bf16.vlgmr.msra.gmra.mrb[0].mxu0 %vm247_vm1, %v485_v5 }
  0xed   : > { %v285_v7 = vpop.f32.mrb[0].mxu0 }
  0xee   : > { %v437_v8 = vpop.f32.mrb[1].mxu0  ;;  %v286_v10 = vadd.f32 %v403_v6, %v285_v7 }
  0xef   : > { %v288_v9 = vpop.f32.mrb[2].mxu0 }
  0xf0   : > { %v289_v11 = vadd.f32 %v403_v6, %v288_v9  ;;  %v438_v12 = vpop.f32.mrb[3].mxu0 }
  0xf2   : > { %v420_v13 = vpack.c.bf16 %v289_v11, %v286_v10 }
  0xf4   : > { %421 = vst [vmem:[%s192_s23] sm:$0xff] %v420_v13  }
  0xf5 PF: > { %s13_s16 = sadd.s32 1, %s524_s16   ;;  %s622_s12 = smov %s516_s14 }
  0xf6   : > { %p10_p7 = scmp.ge.s32.totalorder %s13_s16, 6   ;;  %s623_s13 = smov %s520_s15 }
  0xf7   : > { %s624_s14 = smov %s627_s17  ;;  %s625_s15 = smov %s631_s18 }
  0xf8   :  { %12 = sbr.rel (!%p10_p7) target bundleno = 3 (0x3), region = 63 }

// kernel: resnet_backbone_forward.40
= control target key start
LH: loop header
LB: loop body
LE: loop exit
PB: predicated region body
PF: predicated region fallthrough
CT: control target
= control target key end

     0   :  { %s2124_s15 = smov 0   ;;  %s2126_s16 = smov 0   ;;  %s2548_s0 = inlined_call_operand.vmem [shape: bf16[2,1,64,128], index: 0, kind: input, shape index: {}]   ;;  %s2549_s1 = inlined_call_operand.vmem [shape: bf16[9,128,128], index: 1, kind: input, shape index: {}]   ;;  %s2550_s2 = inlined_call_operand.vmem [shape: f32[1,128], index: 2, kind: input, shape index: {}]   ;;  %s2551_s3 = inlined_call_operand.vmem [shape: bf16[2,32,128], index: 3, kind: input, shape index: {}]   ;;  %s2552_s4 = inlined_call_operand.vmem [shape: bf16[2,32,128], index: 4, kind: output, shape index: {}]  }
   0x1   :  { %s2128_s17 = smov 0   ;;  %s2130_s18 = smov 0  }
   0x2   :  { %s2132_s19 = smov 0  }
   0x3 LB: > { %s23_s20 = sadd.s32 1, %s2087_s17  ;;  %s26_s21 = sadd.s32 1, %s2091_s18  ;;  %s2095_s19 = sphi %s2132_s19, %s14_s19   ;;  %s2091_s18 = sphi %s2130_s18, %s2556_s18   ;;  %s2087_s17 = sphi %s2128_s17, %s2555_s17   ;;  %s2083_s16 = sphi %s2126_s16, %s2554_s16   ;;  %s2079_s15 = sphi %s2124_s15, %s2553_s15  }
   0x4   : > { %p24_p0 = scmp.ge.s32.totalorder %s23_s20, 2  ;;  %p1446_p1 = scmp.ge.s32.totalorder %s2095_s19, 1 }
   0x5   : > { %p193_p2 = scmp.lt.s32.totalorder %s2095_s19, 5 }
   0x6   : > { %s2558_s20 = smov (%p24_p0, %s23_s20), 0  ;;  %s2560_s21 = smov (!%p24_p0, %s26_s21), %s2091_s18 }
   0x7   : > { %p194_p3 = pnand %p1446_p1, %p193_p2  ;;  %p28_p4 = scmp.ge.s32.totalorder %s2560_s21, 2 }
   0x8   : > { %v1981_v0 = vld [vmem:[%s2549_s1 + $0x40] sm:$0xff] (!%p194_p3)   ;;  %v2097_v1 = vmov (!%p194_p3), 0.0   ;;  %v1983_v3 = vld [vmem:[%s2549_s1 + $0x48] sm:$0xff] (!%p194_p3)   ;;  %vm2098_vm0 = vmmov (!%p194_p3), 0   ;;  %p232_p5 = scmp.lt.s32.totalorder (!%p194_p3), %s2083_s16, 1  ;;  %s1455_s30 = sshll.u32 (!%p194_p3), %s2079_s15, 4 }
   0x9   : > { %s2562_s21 = smov (%p28_p4, %s2560_s21), 0  ;;  %197 = sbr.rel (%p194_p3) target bundleno = 395 (0x18b), region = 36 }
   0xa   : > { %1759 = vmatprep.subr.bf16.mxu0 (!%p194_p3), %v2097_v1  ;;  %1779 = vmatprep.subr.bf16.mxu1 (!%p194_p3), %v2097_v1  ;;  %v1982_v2 = vld [vmem:[%s2549_s1] sm:$0xff] (!%p194_p3)   ;;  %v1984_v4 = vld [vmem:[%s2549_s1 + $0x8] sm:$0xff] (!%p194_p3)   ;;  %v1985_v5 = vld [vmem:[%s2549_s1 + $0x50] sm:$0xff] (!%p194_p3)   ;;  %s259_s10 = sshra.s32 (!%p194_p3), %s1455_s30, 3  ;;  %vm308_vm1 = vsmask.f32 (!%p194_p3), 7424 }
   0xb   : > { %1760 = vmatpush3.bf16.msra.mxu0 (!%p194_p3), %v1981_v0  ;;  %1775 = vmatprep.mubr.msk.bf16.mxu0 (!%p194_p3), %vm2098_vm0, %v2097_v1  ;;  %v1986_v6 = vld [vmem:[%s2549_s1 + $0x10] sm:$0xff] (!%p194_p3)   ;;  %v1987_v7 = vld [vmem:[%s2549_s1 + $0x58] sm:$0xff] (!%p194_p3)   ;;  %s1456_s23 = sshll.u32 (!%p194_p3), %s259_s10, 2  ;;  %v1989_v9 = vld [vmem:[%s2549_s1 + $0x60] sm:$0xff] (!%p194_p3)   ;;  %vm518_vm2 = vcmask (!%p194_p3), 1046528   ;;  %vm631_vm3 = vcmask (!%p194_p3), 1044480  }
   0xc   : > { %1780 = vmatpush3.bf16.msra.mxu1 (!%p194_p3), %v1982_v2  ;;  %1761 = vmatprep.subr.bf16.mxu0 (!%p194_p3), %v2097_v1  ;;  %v1988_v8 = vld [vmem:[%s2549_s1 + $0x18] sm:$0xff] (!%p194_p3)   ;;  %v1990_v10 = vld [vmem:[%s2549_s1 + $0x20] sm:$0xff] (!%p194_p3)   ;;  %v1991_v17 = vld [vmem:[%s2549_s1 + $0x68] sm:$0xff] (!%p194_p3)   ;;  %vm976_vm4 = vcmask (!%p194_p3), 1045504   ;;  %vm1089_vm5 = vsmask.f32 (!%p194_p3), 5376 }
   0xd   : > { %1781 = vmatprep.subr.bf16.mxu1 (!%p194_p3), %v2097_v1  ;;  %1795 = vmatprep.mubr.msk.bf16.mxu1 (!%p194_p3), %vm2098_vm0, %v2097_v1  ;;  %v1992_v18 = vld [vmem:[%s2549_s1 + $0x28] sm:$0xff] (!%p194_p3)   ;;  %v1993_v20 = vld [vmem:[%s2549_s1 + $0x70] sm:$0xff] (!%p194_p3)   ;;  %v1995_v25 = vld [vmem:[%s2549_s1 + $0x78] sm:$0xff] (!%p194_p3)   ;;  %vm744_vm6 = vsmask.f32 (!%p194_p3), 4352  ;;  %s1449_s24 = sshll.u32 (!%p194_p3), %s2079_s15, 1 }
   0xe   : > { %v1994_v24 = vld [vmem:[%s2549_s1 + $0x30] sm:$0xff] (!%p194_p3)   ;;  %v1996_v26 = vld [vmem:[%s2549_s1 + $0x38] sm:$0xff] (!%p194_p3)   ;;  %v1999_v30 = vld [vmem:[%s2549_s1 + $0x80] sm:$0xff] (!%p194_p3)   ;;  %p240_p6 = scmp.lt.s32.totalorder (!%p194_p3), %s1449_s24, 3 }
   0xf   : > { %1762 = vmatpush3.bf16.msra.mxu0 (!%p194_p3), %v1983_v3  ;;  %v2000_v31 = vld [vmem:[%s2549_s1 + $0xc0] sm:$0xff] (!%p194_p3)   ;;  %v2001_v32 = vld [vmem:[%s2549_s1 + $0x88] sm:$0xff] (!%p194_p3)   ;;  %v2003_v34 = vld [vmem:[%s2549_s1 + $0x90] sm:$0xff] (!%p194_p3)  }
  0x10   : > { %s2564_s16 = smov (!%p232_p5, %s2083_s16), 1  ;;  %1782 = vmatpush3.bf16.msra.mxu1 %v1984_v4  ;;  %1763 = vmatprep.subr.bf16.mxu0 %v2097_v1  ;;  %v2002_v33 = vld [vmem:[%s2549_s1 + $0xc8] sm:$0xff]   ;;  %v2004_v35 = vld [vmem:[%s2549_s1 + $0xd0] sm:$0xff]   ;;  %v2005_v36 = vld [vmem:[%s2549_s1 + $0x98] sm:$0xff]   ;;  %s2566_s24 = smov (!%p240_p6, %s1449_s24), 3 }
  0x11   : > { %s1666_s9 = sshll.u32 %s2564_s16, 5  ;;  %1783 = vmatprep.subr.bf16.mxu1 %v2097_v1  ;;  %v2006_v37 = vld [vmem:[%s2549_s1 + $0xd8] sm:$0xff]   ;;  %v2007_v38 = vld [vmem:[%s2549_s1 + $0xa0] sm:$0xff]   ;;  %v2009_v40 = vld [vmem:[%s2549_s1 + $0xa8] sm:$0xff]   ;;  %s1450_s25 = sshll.u32 %s2564_s16, 2 }
  0x12   : > { %s236_s22 = scalar_lea.vmem %s2548_s0, %s1666_s9  ;;  %v2008_v39 = vld [vmem:[%s2549_s1 + $0xe0] sm:$0xff]   ;;  %v2010_v41 = vld [vmem:[%s2549_s1 + $0xe8] sm:$0xff]   ;;  %v2011_v42 = vld [vmem:[%s2549_s1 + $0xb0] sm:$0xff]   ;;  %s243_s27 = sadd.s32 %s1450_s25, %s2566_s24 }
  0x13   : > { %1764 = vmatpush3.bf16.msra.mxu0 %v1985_v5  ;;  %s2203_s26 = scalar_lea.vmem %s236_s22, %s1456_s23  ;;  %v2012_v43 = vld [vmem:[%s2549_s1 + $0xf0] sm:$0xff]   ;;  %v2013_v46 = vld [vmem:[%s2549_s1 + $0xb8] sm:$0xff]   ;;  %v2015_v53 = vld [vmem:[%s2549_s1 + $0x100] sm:$0xff]   ;;  %s1451_s28 = sshll.u32 %s243_s27, 2 }
  0x14   : > { %1784 = vmatpush3.bf16.msra.mxu1 %v1986_v6  ;;  %1765 = vmatprep.subr.bf16.mxu0 %v2097_v1  ;;  %v263_v11 = vld [vmem:[%s2203_s26] sm:$0xf]  ;;  %v264_v12 = vld [vmem:[%s2203_s26 + $0x4] sm:$0xf]  ;;  %v265_v13 = vld [vmem:[%s2203_s26 + $0x8] sm:$0xf]  ;;  %s255_s7 = scalar_lea.vmem %s2552_s4, %s1451_s28 }
  0x15   : > { %1785 = vmatprep.subr.bf16.mxu1 %v2097_v1  ;;  %v2216_v14 = vcombine.low %v263_v11, %v264_v12  ;;  %v2218_v15 = vcombine.low %v265_v13, %v265_v13  ;;  %v2220_v16 = vcombine.low %v264_v12, %v265_v13  ;;  %v2014_v48 = vld [vmem:[%s2549_s1 + $0xf8] sm:$0xff]   ;;  %v2016_v55 = vld [vmem:[%s2549_s1 + $0x140] sm:$0xff]   ;;  %v2017_v58 = vld [vmem:[%s2549_s1 + $0x108] sm:$0xff]  }
  0x16   : > { %v2048_v60 = vld [vmem:[%s2203_s26 + $0xc] ss:$0 sps:$4 sm:$0xff]   ;;  %v2019_v63 = vld [vmem:[%s2549_s1 + $0x110] sm:$0xff]   ;;  %v2021_v11 = vld [vmem:[%s2549_s1 + $0x118] sm:$0xff]   ;;  %s245_s26 = scalar_lea.vmem %s2551_s3, %s1451_s28 }
  0x17   : > { %1766 = vmatpush3.bf16.msra.mxu0 %v1987_v7  ;;  %v312_v19 = vshll.u32 %v2216_v14, 16  ;;  %v310_v21 = vshrl.u32 %v2216_v14, 16  ;;  %v317_v23 = vshll.u32 %v2218_v15, 16  ;;  %v519_v44 = vrot.slane %v2216_v14, 1  ;;  %v2018_v61 = vld [vmem:[%s2549_s1 + $0x148] sm:$0xff]   ;;  %v2020_v4 = vld [vmem:[%s2549_s1 + $0x150] sm:$0xff]  }
  0x18   : > { %1786 = vmatpush3.bf16.msra.mxu1 %v1988_v8  ;;  %1767 = vmatprep.subr.bf16.mxu0 %v2097_v1  ;;  %v520_v45 = vrot.slane %v2218_v15, 1  ;;  %v632_v47 = vrot.slane %v2216_v14, 3  ;;  %v633_v49 = vrot.slane %v2218_v15, 3  ;;  %v1091_v50 = vshrl.u32 %v2220_v16, 16 }
  0x19   : > { %1787 = vmatprep.subr.bf16.mxu1 %v2097_v1  ;;  %v314_v22 = vrot.slane %v312_v19, 1  ;;  %v319_v28 = vrot.slane %v317_v23, 1  ;;  %v1094_v51 = vshll.u32 %v2220_v16, 16  ;;  %v977_v56 = vrot.slane %v2220_v16, 2 }
  0x1a   : > { %v521_v52 = vsel %vm518_vm2, %v519_v44, %v520_v45  ;;  %v634_v54 = vsel %vm631_vm3, %v632_v47, %v633_v49  ;;  %v1093_v57 = vrot.slane %v1091_v50, 2  ;;  %v1216_v62 = vrot.slane %v2220_v16, 3  ;;  %v2045_v44 = vld [vmem:[%s2549_s1 + $0x1f0] sm:$0xff]   ;;  %v2046_v45 = vld [vmem:[%s2549_s1 + $0x1b8] sm:$0xff]   ;;  %v2049_v47 = vld [vmem:[%s2549_s1 + $0x200] sm:$0xff]  }
  0x1b   : > { %1768 = vmatpush3.bf16.msra.mxu0 %v1989_v9  ;;  %v315_v27 = vor.u32 %v314_v22, %v310_v21  ;;  %v1096_v59 = vrot.slane %v1094_v51, 3  ;;  %v978_v0 = vrot.slane %v2048_v60, 2  ;;  %v1099_v2 = vshrl.u32 %v2048_v60, 16  ;;  %v2025_v22 = vld [vmem:[%s2549_s1 + $0x128] sm:$0xff]   ;;  %v2051_v49 = vld [vmem:[%s2549_s1 + $0x210] sm:$0xff]   ;;  %v2052_v50 = vld [vmem:[%s2549_s1 + $0x218] sm:$0xff]  }
  0x1c   : > { %1788 = vmatpush3.bf16.msra.mxu1 %v1990_v10  ;;  %1769 = vmatprep.subr.bf16.mxu0 %v2097_v1  ;;  %v1102_v3 = vshll.u32 %v2048_v60, 16  ;;  %v1217_v10 = vrot.slane %v2048_v60, 3  ;;  %v2053_v51 = vld [vmem:[%s2549_s1 + $0x220] sm:$0xff]  }
  0x1d   : > { %1789 = vmatprep.subr.bf16.mxu1 %v2097_v1  ;;  %v320_v29 = vsel %vm308_vm1, %v315_v27, %v319_v28  ;;  %v1097_v5 = vor.u32 %v1096_v59, %v1093_v57  ;;  %v2360_v6 = vsel %vm976_vm4, %v977_v56, %v978_v0  ;;  %v1101_v7 = vrot.slane %v1099_v2, 2 }
  0x1e   : > { %v1104_v8 = vrot.slane %v1102_v3, 3  ;;  %v2370_v13 = vsel %vm631_vm3, %v1216_v62, %v1217_v10  ;;  %v745_v27 = vrot.slane %v310_v21, 3  ;;  %v746_v28 = vrot.slane %v312_v19, 4  ;;  %v2029_v21 = vld [vmem:[%s2549_s1 + $0x138] sm:$0xff]  }
  0x1f   : > { %1770 = vmatpush3.bf16.msra.mxu0 %v1991_v17  ;;  %v2022_v17 = vld [vmem:[%s2549_s1 + $0x158] sm:$0xff]  }
  0x20   : > { %1790 = vmatpush3.bf16.msra.mxu1 %v1992_v18  ;;  %1771 = vmatprep.subr.bf16.mxu0 %v2097_v1  ;;  %v1105_v9 = vor.u32 %v1104_v8, %v1101_v7  ;;  %v2023_v18 = vld [vmem:[%s2549_s1 + $0x120] sm:$0xff]  }
  0x21   : > { %1791 = vmatprep.subr.bf16.mxu1 %v2097_v1 }
  0x22   : > { %v2367_v12 = vsel %vm1089_vm5, %v1097_v5, %v1105_v9 }
  0x23   : > { %1772 = vmatpush3.bf16.msra.mxu0 %v1993_v20  ;;  %v2024_v20 = vld [vmem:[%s2549_s1 + $0x160] sm:$0xff]  }
  0x24   : > { %1792 = vmatpush3.bf16.msra.mxu1 %v1994_v24  ;;  %1773 = vmatprep.subr.bf16.mxu0 %v2097_v1  ;;  %v748_v24 = vshrl.u32 %v2218_v15, 16  ;;  %v2030_v15 = vld [vmem:[%s2549_s1 + $0x178] sm:$0xff]  }
  0x25   : > { %1793 = vmatprep.subr.bf16.mxu1 %v2097_v1 }
  0x27   : > { %1774 = vmatpush3.bf16.msra.mxu0 %v1995_v25  ;;  %v2026_v25 = vld [vmem:[%s2549_s1 + $0x168] sm:$0xff]  }
  0x28   : > { %1794 = vmatpush3.bf16.msra.mxu1 %v1996_v26  ;;  %1799 = vmatprep.subr.bf16.mxu0 %v2097_v1  ;;  %v2027_v26 = vld [vmem:[%s2549_s1 + $0x130] sm:$0xff]  }
  0x29   : > { %1819 = vmatprep.subr.bf16.mxu1 %v2097_v1 }
  0x2a   : > { %1776 = vmatmul.mubr.bf16.vlgmr.msra.gmra.mrb[0].mxu0 %v320_v29  ;;  %v750_v29 = vrot.slane %v748_v24, 3 }
  0x2b   : > { %1796 = vmatmul.mubr.bf16.vlgmr.msra.gmra.mrb[0].mxu1 %v2216_v14  ;;  %1800 = vmatpush3.bf16.msra.mxu0 %v1999_v30  ;;  %v751_v30 = vrot.slane %v317_v23, 4  ;;  %v747_v14 = vor.u32 %v746_v28, %v745_v27 }
  0x2c   : > { %1820 = vmatpush3.bf16.msra.mxu1 %v2000_v31  ;;  %1801 = vmatprep.subr.bf16.mxu0 %v2097_v1  ;;  %v2028_v31 = vld [vmem:[%s2549_s1 + $0x170] sm:$0xff]  }
  0x2d   : > { %1821 = vmatprep.subr.bf16.mxu1 %v2097_v1  ;;  %1815 = vmatprep.mubr.msk.bf16.mxu0 %vm2098_vm0, %v2097_v1  ;;  %v752_v19 = vor.u32 %v751_v30, %v750_v29 }
  0x2e   : > { %1835 = vmatprep.mubr.msk.bf16.mxu1 %vm2098_vm0, %v2097_v1 }
  0x2f   : > { %1802 = vmatpush3.bf16.msra.mxu0 %v2001_v32  ;;  %v753_v23 = vsel %vm744_vm6, %v747_v14, %v752_v19  ;;  %v2031_v32 = vld [vmem:[%s2549_s1 + $0x180] sm:$0xff]  }
  0x30   : > { %1822 = vmatpush3.bf16.msra.mxu1 %v2002_v33  ;;  %1803 = vmatprep.subr.bf16.mxu0 %v2097_v1  ;;  %v2033_v33 = vld [vmem:[%s2549_s1 + $0x1c0] sm:$0xff]  }
  0x31   : > { %1823 = vmatprep.subr.bf16.mxu1 %v2097_v1 }
  0x33   : > { %1804 = vmatpush3.bf16.msra.mxu0 %v2003_v34  ;;  %v2034_v34 = vld [vmem:[%s2549_s1 + $0x188] sm:$0xff]  }
  0x34   : > { %1824 = vmatpush3.bf16.msra.mxu1 %v2004_v35  ;;  %1805 = vmatprep.subr.bf16.mxu0 %v2097_v1  ;;  %v2035_v35 = vld [vmem:[%s2549_s1 + $0x1c8] sm:$0xff]  }
  0x35   : > { %1825 = vmatprep.subr.bf16.mxu1 %v2097_v1 }
  0x37   : > { %1806 = vmatpush3.bf16.msra.mxu0 %v2005_v36  ;;  %v2037_v36 = vld [vmem:[%s2549_s1 + $0x1d0] sm:$0xff]  }
  0x38   : > { %1826 = vmatpush3.bf16.msra.mxu1 %v2006_v37  ;;  %1807 = vmatprep.subr.bf16.mxu0 %v2097_v1  ;;  %v2038_v37 = vld [vmem:[%s2549_s1 + $0x198] sm:$0xff]  }
  0x39   : > { %1827 = vmatprep.subr.bf16.mxu1 %v2097_v1 }
  0x3b   : > { %1808 = vmatpush3.bf16.msra.mxu0 %v2007_v38  ;;  %v2039_v38 = vld [vmem:[%s2549_s1 + $0x1d8] sm:$0xff]  }
  0x3c   : > { %1828 = vmatpush3.bf16.msra.mxu1 %v2008_v39  ;;  %1809 = vmatprep.subr.bf16.mxu0 %v2097_v1  ;;  %v2040_v39 = vld [vmem:[%s2549_s1 + $0x1a0] sm:$0xff]  }
  0x3d   : > { %1829 = vmatprep.subr.bf16.mxu1 %v2097_v1 }
  0x3f   : > { %1810 = vmatpush3.bf16.msra.mxu0 %v2009_v40  ;;  %v2041_v40 = vld [vmem:[%s2549_s1 + $0x1e0] sm:$0xff]  }
  0x40   : > { %1830 = vmatpush3.bf16.msra.mxu1 %v2010_v41  ;;  %1811 = vmatprep.subr.bf16.mxu0 %v2097_v1  ;;  %v2042_v41 = vld [vmem:[%s2549_s1 + $0x1a8] sm:$0xff]  }
  0x41   : > { %1831 = vmatprep.subr.bf16.mxu1 %v2097_v1 }
  0x43   : > { %1812 = vmatpush3.bf16.msra.mxu0 %v2011_v42  ;;  %v2043_v42 = vld [vmem:[%s2549_s1 + $0x1e8] sm:$0xff]  }
  0x44   : > { %1832 = vmatpush3.bf16.msra.mxu1 %v2012_v43  ;;  %1813 = vmatprep.subr.bf16.mxu0 %v2097_v1  ;;  %v2044_v43 = vld [vmem:[%s2549_s1 + $0x1b0] sm:$0xff]  }
  0x45   : > { %1833 = vmatprep.subr.bf16.mxu1 %v2097_v1 }
  0x47   : > { %1814 = vmatpush3.bf16.msra.mxu0 %v2013_v46  ;;  %v2047_v46 = vld [vmem:[%s2549_s1 + $0x1f8] sm:$0xff]  }
  0x48   : > { %1834 = vmatpush3.bf16.msra.mxu1 %v2014_v48  ;;  %1839 = vmatprep.subr.bf16.mxu0 %v2097_v1  ;;  %v2050_v48 = vld [vmem:[%s2549_s1 + $0x208] sm:$0xff]  }
  0x49   : > { %1859 = vmatprep.subr.bf16.mxu1 %v2097_v1 }
  0x4a   : > { %1816 = vmatmul.mubr.bf16.vlgmr.msra.gmra.mrb[4].mxu0 %v521_v52  ;;  %v2054_v52 = vld [vmem:[%s2549_s1 + $0x228] sm:$0xff]  }
  0x4b   : > { %1840 = vmatpush3.bf16.msra.mxu0 %v2015_v53  ;;  %1836 = vmatmul.mubr.bf16.vlgmr.msra.gmra.mrb[4].mxu1 %v634_v54  ;;  %v2055_v53 = vld [vmem:[%s2549_s1 + $0x230] sm:$0xff]   ;;  %v2056_v54 = vld [vmem:[%s2549_s1 + $0x238] sm:$0xff]  }
  0x4c   : > { %1860 = vmatpush3.bf16.msra.mxu1 %v2016_v55  ;;  %1841 = vmatprep.subr.bf16.mxu0 %v2097_v1 }
  0x4d   : > { %1861 = vmatprep.subr.bf16.mxu1 %v2097_v1  ;;  %1855 = vmatprep.mubr.msk.bf16.mxu0 %vm2098_vm0, %v2097_v1 }
  0x4e   : > { %1875 = vmatprep.mubr.msk.bf16.mxu1 %vm2098_vm0, %v2097_v1 }
  0x4f   : > { %1842 = vmatpush3.bf16.msra.mxu0 %v2017_v58 }
  0x50   : > { %1862 = vmatpush3.bf16.msra.mxu1 %v2018_v61  ;;  %1843 = vmatprep.subr.bf16.mxu0 %v2097_v1 }
  0x51   : > { %1863 = vmatprep.subr.bf16.mxu1 %v2097_v1 }
  0x53   : > { %1844 = vmatpush3.bf16.msra.mxu0 %v2019_v63 }
  0x54   : > { %1864 = vmatpush3.bf16.msra.mxu1 %v2020_v4  ;;  %1845 = vmatprep.subr.bf16.mxu0 %v2097_v1 }
  0x55   : > { %1865 = vmatprep.subr.bf16.mxu1 %v2097_v1 }
  0x57   : > { %1846 = vmatpush3.bf16.msra.mxu0 %v2021_v11 }
  0x58   : > { %1866 = vmatpush3.bf16.msra.mxu1 %v2022_v17  ;;  %1847 = vmatprep.subr.bf16.mxu0 %v2097_v1 }
  0x59   : > { %1867 = vmatprep.subr.bf16.mxu1 %v2097_v1 }
  0x5b   : > { %1848 = vmatpush3.bf16.msra.mxu0 %v2023_v18 }
  0x5c   : > { %1868 = vmatpush3.bf16.msra.mxu1 %v2024_v20  ;;  %1849 = vmatprep.subr.bf16.mxu0 %v2097_v1 }
  0x5d   : > { %1869 = vmatprep.subr.bf16.mxu1 %v2097_v1 }
  0x5f   : > { %1850 = vmatpush3.bf16.msra.mxu0 %v2025_v22 }
  0x60   : > { %1870 = vmatpush3.bf16.msra.mxu1 %v2026_v25  ;;  %1851 = vmatprep.subr.bf16.mxu0 %v2097_v1 }
  0x61   : > { %1871 = vmatprep.subr.bf16.mxu1 %v2097_v1 }
  0x63   : > { %1852 = vmatpush3.bf16.msra.mxu0 %v2027_v26 }
  0x64   : > { %1872 = vmatpush3.bf16.msra.mxu1 %v2028_v31  ;;  %1853 = vmatprep.subr.bf16.mxu0 %v2097_v1 }
  0x65   : > { %1873 = vmatprep.subr.bf16.mxu1 %v2097_v1 }
  0x67   : > { %1854 = vmatpush3.bf16.msra.mxu0 %v2029_v21 }
  0x68   : > { %1874 = vmatpush3.bf16.msra.mxu1 %v2030_v15  ;;  %1879 = vmatprep.subr.bf16.mxu0 %v2097_v1 }
  0x69   : > { %1899 = vmatprep.subr.bf16.mxu1 %v2097_v1 }
  0x6a   : > { %1856 = vmatmul.mubr.bf16.vlgmr.msra.gmra.mrb[8].mxu0 %v753_v23 }
  0x6b   : > { %1880 = vmatpush3.bf16.msra.mxu0 %v2031_v32  ;;  %1876 = vmatmul.mubr.bf16.vlgmr.msra.gmra.mrb[8].mxu1 %v2220_v16  ;;  %v2036_v16 = vld [vmem:[%s2549_s1 + $0x190] sm:$0xff]  }
  0x6c   : > { %1900 = vmatpush3.bf16.msra.mxu1 %v2033_v33  ;;  %1881 = vmatprep.subr.bf16.mxu0 %v2097_v1 }
  0x6d   : > { %1901 = vmatprep.subr.bf16.mxu1 %v2097_v1  ;;  %1895 = vmatprep.mubr.msk.bf16.mxu0 %vm2098_vm0, %v2097_v1 }
  0x6e   : > { %1915 = vmatprep.mubr.msk.bf16.mxu1 %vm2098_vm0, %v2097_v1 }
  0x6f   : > { %1882 = vmatpush3.bf16.msra.mxu0 %v2034_v34 }
  0x70   : > { %1902 = vmatpush3.bf16.msra.mxu1 %v2035_v35  ;;  %1883 = vmatprep.subr.bf16.mxu0 %v2097_v1 }
  0x71   : > { %1903 = vmatprep.subr.bf16.mxu1 %v2097_v1 }
  0x73   : > { %1884 = vmatpush3.bf16.msra.mxu0 %v2036_v16 }
  0x74   : > { %1904 = vmatpush3.bf16.msra.mxu1 %v2037_v36  ;;  %1885 = vmatprep.subr.bf16.mxu0 %v2097_v1 }
  0x75   : > { %1905 = vmatprep.subr.bf16.mxu1 %v2097_v1 }
  0x77   : > { %1886 = vmatpush3.bf16.msra.mxu0 %v2038_v37  ;;  %v1670_v37 = vld [vmem:[%s245_s26] sm:$0xff]  }
  0x78   : > { %1906 = vmatpush3.bf16.msra.mxu1 %v2039_v38  ;;  %1887 = vmatprep.subr.bf16.mxu0 %v2097_v1 }
  0x79   : > { %1907 = vmatprep.subr.bf16.mxu1 %v2097_v1 }
  0x7b   : > { %1888 = vmatpush3.bf16.msra.mxu0 %v2040_v39  ;;  %v1661_v39 = vld [vmem:[%s2550_s2] ss:$0 sm:$0xff] }
  0x7c   : > { %1908 = vmatpush3.bf16.msra.mxu1 %v2041_v40  ;;  %1889 = vmatprep.subr.bf16.mxu0 %v2097_v1 }
  0x7d   : > { %1909 = vmatprep.subr.bf16.mxu1 %v2097_v1 }
  0x7f   : > { %1890 = vmatpush3.bf16.msra.mxu0 %v2042_v41  ;;  %v1671_v41 = vunpack.c.l.bf16 %v1670_v37 }
  0x80   : > { %1910 = vmatpush3.bf16.msra.mxu1 %v2043_v42  ;;  %1891 = vmatprep.subr.bf16.mxu0 %v2097_v1 }
  0x81   : > { %1911 = vmatprep.subr.bf16.mxu1 %v2097_v1 }
  0x83   : > { %1892 = vmatpush3.bf16.msra.mxu0 %v2044_v43 }
  0x84   : > { %1912 = vmatpush3.bf16.msra.mxu1 %v2045_v44  ;;  %1893 = vmatprep.subr.bf16.mxu0 %v2097_v1 }
  0x85   : > { %1913 = vmatprep.subr.bf16.mxu1 %v2097_v1 }
  0x87   : > { %1894 = vmatpush3.bf16.msra.mxu0 %v2046_v45 }
  0x88   : > { %1914 = vmatpush3.bf16.msra.mxu1 %v2047_v46  ;;  %1919 = vmatprep.subr.bf16.mxu0 %v2097_v1  ;;  %v1672_v46 = vunpack.c.h.bf16 %v1670_v37 }
  0x8a   : > { %1896 = vmatmul.mubr.bf16.vlgmr.msra.gmra.mrb[12].mxu0 %v2360_v6 }
  0x8b   : > { %1920 = vmatpush3.bf16.msra.mxu0 %v2049_v47  ;;  %1916 = vmatmul.mubr.bf16.vlgmr.msra.gmra.mrb[12].mxu1 %v2367_v12 }
  0x8c   : > { %1921 = vmatprep.subr.bf16.mxu0 %v2097_v1  ;;  %1935 = vmatprep.mubr.msk.bf16.mxu0 %vm2098_vm0, %v2097_v1 }
  0x8f   : > { %1922 = vmatpush3.bf16.msra.mxu0 %v2050_v48 }
  0x90   : > { %1923 = vmatprep.subr.bf16.mxu0 %v2097_v1 }
  0x93   : > { %1924 = vmatpush3.bf16.msra.mxu0 %v2051_v49 }
  0x94   : > { %1925 = vmatprep.subr.bf16.mxu0 %v2097_v1 }
  0x97   : > { %1926 = vmatpush3.bf16.msra.mxu0 %v2052_v50 }
  0x98   : > { %1927 = vmatprep.subr.bf16.mxu0 %v2097_v1 }
  0x9b   : > { %1928 = vmatpush3.bf16.msra.mxu0 %v2053_v51 }
  0x9c   : > { %1929 = vmatprep.subr.bf16.mxu0 %v2097_v1 }
  0x9f   : > { %1930 = vmatpush3.bf16.msra.mxu0 %v2054_v52 }
  0xa0   : > { %1931 = vmatprep.subr.bf16.mxu0 %v2097_v1 }
  0xa3   : > { %1932 = vmatpush3.bf16.msra.mxu0 %v2055_v53 }
  0xa4   : > { %1933 = vmatprep.subr.bf16.mxu0 %v2097_v1 }
  0xa7   : > { %1934 = vmatpush3.bf16.msra.mxu0 %v2056_v54 }
  0xaa   : > { %1936 = vmatmul.mubr.bf16.vlgmr.msra.gmra.mrb[16].mxu0 %v2370_v13 }
  0xfd   : > { %v404_v55 = vpop.f32.mrb[0].mxu0 }
  0xfe   : > { %v494_v56 = vpop.f32.mrb[0].mxu1  ;;  %v1777_v57 = vpop.f32.mrb[1].mxu0 }
  0xff   : > { %v495_v58 = vadd.f32 %v494_v56, %v404_v55  ;;  %v1797_v59 = vpop.f32.mrb[1].mxu1  ;;  %v407_v60 = vpop.f32.mrb[2].mxu0 }
 0x100   : > { %v497_v61 = vpop.f32.mrb[2].mxu1  ;;  %v1778_v62 = vpop.f32.mrb[3].mxu0 }
 0x101   : > { %v498_v63 = vadd.f32 %v497_v61, %v407_v60  ;;  %v1798_v0 = vpop.f32.mrb[3].mxu1 }
 0x11d   : > { %v605_v2 = vpop.f32.mrb[4].mxu0 }
 0x11e   : > { %v612_v3 = vadd.f32 %v605_v2, %v495_v58  ;;  %v1817_v4 = vpop.f32.mrb[5].mxu0  ;;  %v718_v5 = vpop.f32.mrb[4].mxu1 }
 0x11f   : > { %v608_v6 = vpop.f32.mrb[6].mxu0  ;;  %v1837_v7 = vpop.f32.mrb[5].mxu1 }
 0x120   : > { %v613_v1 = vadd.f32 %v608_v6, %v498_v63  ;;  %v725_v8 = vadd.f32 %v718_v5, %v612_v3  ;;  %v1818_v9 = vpop.f32.mrb[7].mxu0  ;;  %v721_v10 = vpop.f32.mrb[6].mxu1 }
 0x121   : > { %v1838_v11 = vpop.f32.mrb[7].mxu1 }
 0x122   : > { %v726_v12 = vadd.f32 %v721_v10, %v613_v1 }
 0x13d   : > { %v837_v13 = vpop.f32.mrb[8].mxu0 }
 0x13e   : > { %v844_v17 = vadd.f32 %v837_v13, %v725_v8  ;;  %v1857_v18 = vpop.f32.mrb[9].mxu0  ;;  %v947_v20 = vpop.f32.mrb[8].mxu1 }
 0x13f   : > { %v840_v22 = vpop.f32.mrb[10].mxu0  ;;  %v1877_v24 = vpop.f32.mrb[9].mxu1 }
 0x140   : > { %v845_v25 = vadd.f32 %v840_v22, %v726_v12  ;;  %v954_v26 = vadd.f32 %v947_v20, %v844_v17  ;;  %v1858_v27 = vpop.f32.mrb[11].mxu0  ;;  %v950_v28 = vpop.f32.mrb[10].mxu1 }
 0x141   : > { %v1878_v29 = vpop.f32.mrb[11].mxu1 }
 0x142   : > { %v955_v30 = vadd.f32 %v950_v28, %v845_v25 }
 0x15d   : > { %v1063_v31 = vpop.f32.mrb[12].mxu0 }
 0x15e   : > { %v1070_v21 = vadd.f32 %v1063_v31, %v954_v26  ;;  %v1897_v14 = vpop.f32.mrb[13].mxu0  ;;  %v1190_v19 = vpop.f32.mrb[12].mxu1 }
 0x15f   : > { %v1066_v15 = vpop.f32.mrb[14].mxu0  ;;  %v1917_v23 = vpop.f32.mrb[13].mxu1 }
 0x160   : > { %v1071_v32 = vadd.f32 %v1066_v15, %v955_v30  ;;  %v1197_v33 = vadd.f32 %v1190_v19, %v1070_v21  ;;  %v1898_v34 = vpop.f32.mrb[15].mxu0  ;;  %v1193_v35 = vpop.f32.mrb[14].mxu1 }
 0x161   : > { %v1918_v16 = vpop.f32.mrb[15].mxu1 }
 0x162   : > { %v1198_v36 = vadd.f32 %v1193_v35, %v1071_v32 }
 0x17d   : > { %v1302_v38 = vpop.f32.mrb[16].mxu0 }
 0x17e   : > { %v1309_v40 = vadd.f32 %v1302_v38, %v1197_v33  ;;  %v1937_v42 = vpop.f32.mrb[17].mxu0 }
 0x17f   : > { %v1305_v43 = vpop.f32.mrb[18].mxu0 }
 0x180   : > { %v1318_v44 = vadd.f32 %v1661_v39, %v1309_v40  ;;  %v1310_v45 = vadd.f32 %v1305_v43, %v1198_v36  ;;  %v1938_v47 = vpop.f32.mrb[19].mxu0 }
 0x182   : > { %v1324_v48 = vadd.f32 %v1671_v41, %v1318_v44  ;;  %v1319_v49 = vadd.f32 %v1661_v39, %v1310_v45 }
 0x184   : > { %v1325_v50 = vadd.f32 %v1672_v46, %v1319_v49  ;;  %v1326_v51 = vmax.f32 %v1324_v48, 0.0 }
 0x186   : > { %v1327_v52 = vmax.f32 %v1325_v50, 0.0 }
 0x188   : > { %v1676_v53 = vpack.c.bf16 %v1327_v52, %v1326_v51 }
 0x18a   : > { %1677 = vst [vmem:[%s255_s7] sm:$0xff] %v1676_v53  }
 0x18b PF: > { %s14_s19 = sadd.s32 1, %s2095_s19   ;;  %s2553_s15 = smov %s2087_s17 }
 0x18c   : > { %p11_p7 = scmp.ge.s32.totalorder %s14_s19, 6   ;;  %s2554_s16 = smov %s2091_s18 }
 0x18d   : > { %s2555_s17 = smov %s2558_s20  ;;  %s2556_s18 = smov %s2562_s21 }
 0x18e   :  { %13 = sbr.rel (!%p11_p7) target bundleno = 3 (0x3), region = 78 }

// kernel: resnet_backbone_forward.48
= control target key start
LH: loop header
LB: loop body
LE: loop exit
PB: predicated region body
PF: predicated region fallthrough
CT: control target
= control target key end

     0   :  { %s596_s12 = smov 0   ;;  %s598_s13 = smov 0   ;;  %s684_s0 = inlined_call_operand.vmem [shape: bf16[2,4,48,128], index: 0, kind: input, shape index: {}]   ;;  %s685_s1 = inlined_call_operand.vmem [shape: bf16[1,128,256], index: 1, kind: input, shape index: {}]   ;;  %s686_s2 = inlined_call_operand.vmem [shape: f32[1,256], index: 2, kind: input, shape index: {}]   ;;  %s687_s3 = inlined_call_operand.vmem [shape: bf16[2,16,256], index: 3, kind: output, shape index: {}]  }
   0x1   :  { %s600_s14 = smov 0  }
   0x2 LB: > { %s25_s15 = sadd.s32 1, %s569_s13  ;;  %p470_p0 = scmp.ge.s32.totalorder %s573_s14, 1  ;;  %s573_s14 = sphi %s600_s14, %s13_s14   ;;  %s569_s13 = sphi %s598_s13, %s689_s13   ;;  %s565_s12 = sphi %s596_s12, %s688_s12  }
   0x3   : > { %p27_p1 = scmp.ge.s32.totalorder %s25_s15, 2  ;;  %p151_p2 = scmp.lt.s32.totalorder %s573_s14, 3 }
   0x5   : > { %s691_s15 = smov (%p27_p1, %s25_s15), 0  ;;  %p152_p3 = pnand %p470_p0, %p151_p2 }
   0x6   : > { %v526_v0 = vld [vmem:[%s685_s1 + $0x4] ss:$8 sps:$4 sm:$0xff] (!%p152_p3)   ;;  %p180_p4 = scmp.lt.s32.totalorder (!%p152_p3), %s565_s12, 1  ;;  %v528_v1 = vld [vmem:[%s685_s1] ss:$8 sps:$4 sm:$0xff] (!%p152_p3)   ;;  %v575_v2 = vmov (!%p152_p3), 0   ;;  %v223_v18 = vlaneseq (!%p152_p3) }
   0x7   : > { %155 = sbr.rel (%p152_p3) target bundleno = 259 (0x103), region = 32  ;;  %351 = vmatprep.mubr.bf16.mxu0 (!%p152_p3), %v575_v2  ;;  %319 = vmatprep.subr.bf16.mxu0 (!%p152_p3), %v526_v0  ;;  %v529_v3 = vld [vmem:[%s685_s1 + $0x14] ss:$8 sps:$4 sm:$0xff] (!%p152_p3)   ;;  %v531_v4 = vld [vmem:[%s685_s1 + $0x10] ss:$8 sps:$4 sm:$0xff] (!%p152_p3)  }
   0x8   : > { %320 = vmatpush1.bf16.msra.mxu0 (!%p152_p3), %v528_v1  ;;  %v532_v5 = vld [vmem:[%s685_s1 + $0x24] ss:$8 sps:$4 sm:$0xff] (!%p152_p3)   ;;  %v534_v6 = vld [vmem:[%s685_s1 + $0x20] ss:$8 sps:$4 sm:$0xff] (!%p152_p3)   ;;  %v535_v7 = vld [vmem:[%s685_s1 + $0x34] ss:$8 sps:$4 sm:$0xff] (!%p152_p3)  }
   0x9   : > { %321 = vmatprep.subr.bf16.mxu0 (!%p152_p3), %v529_v3  ;;  %v537_v8 = vld [vmem:[%s685_s1 + $0x30] ss:$8 sps:$4 sm:$0xff] (!%p152_p3)   ;;  %v538_v9 = vld [vmem:[%s685_s1 + $0x44] ss:$8 sps:$4 sm:$0xff] (!%p152_p3)   ;;  %v540_v10 = vld [vmem:[%s685_s1 + $0x40] ss:$8 sps:$4 sm:$0xff] (!%p152_p3)  }
   0xa   : > { %v541_v11 = vld [vmem:[%s685_s1 + $0x54] ss:$8 sps:$4 sm:$0xff] (!%p152_p3)   ;;  %v543_v12 = vld [vmem:[%s685_s1 + $0x50] ss:$8 sps:$4 sm:$0xff] (!%p152_p3)   ;;  %v544_v13 = vld [vmem:[%s685_s1 + $0x64] ss:$8 sps:$4 sm:$0xff] (!%p152_p3)  }
   0xb   : > { %v546_v14 = vld [vmem:[%s685_s1 + $0x60] ss:$8 sps:$4 sm:$0xff] (!%p152_p3)   ;;  %v547_v15 = vld [vmem:[%s685_s1 + $0x74] ss:$8 sps:$4 sm:$0xff] (!%p152_p3)   ;;  %v549_v16 = vld [vmem:[%s685_s1 + $0x70] ss:$8 sps:$4 sm:$0xff] (!%p152_p3)  }
   0xc   : > { %322 = vmatpush1.bf16.msra.mxu0 (!%p152_p3), %v531_v4  ;;  %v224_v19 = vshrl.u32 (!%p152_p3), %v223_v18, 7  ;;  %v221_v21 = vld [vmem:[%s686_s2] sm:$0x3] (!%p152_p3) }
   0xd   : > { %323 = vmatprep.subr.bf16.mxu0 (!%p152_p3), %v532_v5 }
   0xe   : > { %s693_s12 = smov (!%p180_p4, %s565_s12), 1  ;;  %v225_v20 = vsub.s32 0, %v224_v19  ;;  %v229_v22 = vsub.s32 1, %v224_v19 }
   0xf   : > { %s500_s26 = smul.u32 96, %s693_s12  ;;  %s497_s4 = sshll.u32 %s693_s12, 4 }
  0x10   : > { %324 = vmatpush1.bf16.msra.mxu0 %v534_v6  ;;  %v226_v23 = vrot.slane %v221_v21, %v225_v20  ;;  %v230_v24 = vrot.slane %v221_v21, %v229_v22  ;;  %s194_s7 = scalar_lea.vmem %s687_s3, %s497_s4 }
  0x11   : > { %s184_s6 = scalar_lea.vmem %s684_s0, %s500_s26  ;;  %325 = vmatprep.subr.bf16.mxu0 %v535_v7 }
  0x12   : > { %v550_v17 = vld [vmem:[%s184_s6 + $0x48] sm:$0xff]  }
  0x14   : > { %326 = vmatpush1.bf16.msra.mxu0 %v537_v8 }
  0x15   : > { %327 = vmatprep.subr.bf16.mxu0 %v538_v9 }
  0x18   : > { %328 = vmatpush1.bf16.msra.mxu0 %v540_v10 }
  0x19   : > { %329 = vmatprep.subr.bf16.mxu0 %v541_v11 }
  0x1c   : > { %330 = vmatpush1.bf16.msra.mxu0 %v543_v12 }
  0x1d   : > { %331 = vmatprep.subr.bf16.mxu0 %v544_v13 }
  0x20   : > { %332 = vmatpush1.bf16.msra.mxu0 %v546_v14 }
  0x21   : > { %333 = vmatprep.subr.bf16.mxu0 %v547_v15 }
  0x24   : > { %334 = vmatpush1.bf16.msra.mxu0 %v549_v16 }
  0x27   : > { %352 = vmatmul.mubr.bf16.vlgmr.msra.gmra.mrb[0].mxu0 %v550_v17 }
  0xfa   : > { %v353_v25 = vpop.f32.mrb[0].mxu0 }
  0xfb   : > { %v354_v26 = vadd.f32 %v353_v25, %v226_v23  ;;  %v355_v27 = vpop.f32.mrb[1].mxu0 }
  0xfc   : > { %v356_v28 = vadd.f32 %v355_v27, %v230_v24  ;;  %v357_v29 = vpop.f32.mrb[2].mxu0 }
  0xfd   : > { %v358_v30 = vadd.f32 %v357_v29, %v226_v23  ;;  %v359_v31 = vpop.f32.mrb[3].mxu0 }
  0xfe   : > { %v498_v32 = vpack.c.bf16 %v356_v28, %v354_v26  ;;  %v360_v33 = vadd.f32 %v359_v31, %v230_v24 }
 0x100   : > { %374 = vst [vmem:[%s194_s7] sm:$0xff] %v498_v32  ;;  %v499_v34 = vpack.c.bf16 %v360_v33, %v358_v30 }
 0x102   : > { %375 = vst [vmem:[%s194_s7 + $0x8] sm:$0xff] %v499_v34 }
 0x103 PF: > { %s13_s14 = sadd.s32 1, %s573_s14   ;;  %s688_s12 = smov %s569_s13 }
 0x104   : > { %p10_p5 = scmp.ge.s32.totalorder %s13_s14, 4   ;;  %s689_s13 = smov %s691_s15 }
 0x106   :  { %12 = sbr.rel (!%p10_p5) target bundleno = 2 (0x2), region = 63 }

// kernel: resnet_backbone_forward.41
= control target key start
LH: loop header
LB: loop body
LE: loop exit
PB: predicated region body
PF: predicated region fallthrough
CT: control target
= control target key end

     0   :  { %s2025_s12 = smov 0   ;;  %s2027_s13 = smov 0   ;;  %s2446_s0 = inlined_call_operand.vmem [shape: bf16[2,1,64,128], index: 0, kind: input, shape index: {}]   ;;  %s2447_s1 = inlined_call_operand.vmem [shape: bf16[9,128,128], index: 1, kind: input, shape index: {}]   ;;  %s2448_s2 = inlined_call_operand.vmem [shape: f32[1,128], index: 2, kind: input, shape index: {}]   ;;  %s2449_s3 = inlined_call_operand.vmem [shape: bf16[2,32,128], index: 3, kind: output, shape index: {}]  }
   0x1   :  { %s2029_s14 = smov 0   ;;  %s2031_s15 = smov 0  }
   0x2   :  { %s2033_s16 = smov 0  }
   0x3 LB: > { %s22_s17 = sadd.s32 1, %s1993_s14  ;;  %s25_s18 = sadd.s32 1, %s1997_s15  ;;  %s2001_s16 = sphi %s2033_s16, %s13_s16   ;;  %s1997_s15 = sphi %s2031_s15, %s2453_s15   ;;  %s1993_s14 = sphi %s2029_s14, %s2452_s14   ;;  %s1989_s13 = sphi %s2027_s13, %s2451_s13   ;;  %s1985_s12 = sphi %s2025_s12, %s2450_s12  }
   0x4   : > { %p23_p0 = scmp.ge.s32.totalorder %s22_s17, 2  ;;  %p1359_p1 = scmp.ge.s32.totalorder %s2001_s16, 1 }
   0x5   : > { %p151_p2 = scmp.lt.s32.totalorder %s2001_s16, 5 }
   0x6   : > { %s2455_s17 = smov (%p23_p0, %s22_s17), 0  ;;  %s2457_s18 = smov (!%p23_p0, %s25_s18), %s1997_s15 }
   0x7   : > { %p152_p3 = pnand %p1359_p1, %p151_p2  ;;  %p27_p4 = scmp.ge.s32.totalorder %s2457_s18, 2 }
   0x8   : > { %v1887_v0 = vld [vmem:[%s2447_s1 + $0x40] sm:$0xff] (!%p152_p3)   ;;  %v2003_v1 = vmov (!%p152_p3), 0.0   ;;  %v1889_v3 = vld [vmem:[%s2447_s1 + $0x48] sm:$0xff] (!%p152_p3)   ;;  %vm2004_vm0 = vmmov (!%p152_p3), 0   ;;  %p179_p5 = scmp.lt.s32.totalorder (!%p152_p3), %s1989_s13, 1  ;;  %s1365_s27 = sshll.u32 (!%p152_p3), %s1985_s12, 4 }
   0x9   : > { %s2459_s18 = smov (%p27_p4, %s2457_s18), 0  ;;  %155 = sbr.rel (%p152_p3) target bundleno = 393 (0x189), region = 32 }
   0xa   : > { %1665 = vmatprep.subr.bf16.mxu0 (!%p152_p3), %v2003_v1  ;;  %1685 = vmatprep.subr.bf16.mxu1 (!%p152_p3), %v2003_v1  ;;  %v1888_v2 = vld [vmem:[%s2447_s1] sm:$0xff] (!%p152_p3)   ;;  %v1890_v4 = vld [vmem:[%s2447_s1 + $0x8] sm:$0xff] (!%p152_p3)   ;;  %v1891_v5 = vld [vmem:[%s2447_s1 + $0x50] sm:$0xff] (!%p152_p3)   ;;  %s196_s6 = sshra.s32 (!%p152_p3), %s1365_s27, 3  ;;  %vm245_vm1 = vsmask.f32 (!%p152_p3), 7424 }
   0xb   : > { %1666 = vmatpush3.bf16.msra.mxu0 (!%p152_p3), %v1887_v0  ;;  %1681 = vmatprep.mubr.msk.bf16.mxu0 (!%p152_p3), %vm2004_vm0, %v2003_v1  ;;  %v1892_v6 = vld [vmem:[%s2447_s1 + $0x10] sm:$0xff] (!%p152_p3)   ;;  %v1893_v7 = vld [vmem:[%s2447_s1 + $0x58] sm:$0xff] (!%p152_p3)   ;;  %s1366_s19 = sshll.u32 (!%p152_p3), %s196_s6, 2  ;;  %v1895_v9 = vld [vmem:[%s2447_s1 + $0x60] sm:$0xff] (!%p152_p3)   ;;  %vm455_vm2 = vcmask (!%p152_p3), 1046528   ;;  %vm568_vm3 = vcmask (!%p152_p3), 1044480  }
   0xc   : > { %1686 = vmatpush3.bf16.msra.mxu1 (!%p152_p3), %v1888_v2  ;;  %1667 = vmatprep.subr.bf16.mxu0 (!%p152_p3), %v2003_v1  ;;  %v1894_v8 = vld [vmem:[%s2447_s1 + $0x18] sm:$0xff] (!%p152_p3)   ;;  %v1896_v10 = vld [vmem:[%s2447_s1 + $0x20] sm:$0xff] (!%p152_p3)   ;;  %v1897_v17 = vld [vmem:[%s2447_s1 + $0x68] sm:$0xff] (!%p152_p3)   ;;  %vm913_vm4 = vcmask (!%p152_p3), 1045504   ;;  %vm1026_vm5 = vsmask.f32 (!%p152_p3), 5376 }
   0xd   : > { %1687 = vmatprep.subr.bf16.mxu1 (!%p152_p3), %v2003_v1  ;;  %1701 = vmatprep.mubr.msk.bf16.mxu1 (!%p152_p3), %vm2004_vm0, %v2003_v1  ;;  %v1898_v18 = vld [vmem:[%s2447_s1 + $0x28] sm:$0xff] (!%p152_p3)   ;;  %v1899_v20 = vld [vmem:[%s2447_s1 + $0x70] sm:$0xff] (!%p152_p3)   ;;  %v1901_v25 = vld [vmem:[%s2447_s1 + $0x78] sm:$0xff] (!%p152_p3)   ;;  %vm681_vm6 = vsmask.f32 (!%p152_p3), 4352  ;;  %s1362_s6 = sshll.u32 (!%p152_p3), %s1985_s12, 1 }
   0xe   : > { %v1900_v24 = vld [vmem:[%s2447_s1 + $0x30] sm:$0xff] (!%p152_p3)   ;;  %v1902_v26 = vld [vmem:[%s2447_s1 + $0x38] sm:$0xff] (!%p152_p3)   ;;  %v1905_v30 = vld [vmem:[%s2447_s1 + $0x80] sm:$0xff] (!%p152_p3)   ;;  %p187_p6 = scmp.lt.s32.totalorder (!%p152_p3), %s1362_s6, 3 }
   0xf   : > { %1668 = vmatpush3.bf16.msra.mxu0 (!%p152_p3), %v1889_v3  ;;  %v1906_v31 = vld [vmem:[%s2447_s1 + $0xc0] sm:$0xff] (!%p152_p3)   ;;  %v1907_v32 = vld [vmem:[%s2447_s1 + $0x88] sm:$0xff] (!%p152_p3)   ;;  %v1909_v34 = vld [vmem:[%s2447_s1 + $0x90] sm:$0xff] (!%p152_p3)  }
  0x10   : > { %s2461_s13 = smov (!%p179_p5, %s1989_s13), 1  ;;  %1688 = vmatpush3.bf16.msra.mxu1 %v1890_v4  ;;  %1669 = vmatprep.subr.bf16.mxu0 %v2003_v1  ;;  %v1908_v33 = vld [vmem:[%s2447_s1 + $0xc8] sm:$0xff]   ;;  %v1910_v35 = vld [vmem:[%s2447_s1 + $0xd0] sm:$0xff]   ;;  %v1911_v36 = vld [vmem:[%s2447_s1 + $0x98] sm:$0xff]   ;;  %s2463_s6 = smov (!%p187_p6, %s1362_s6), 3 }
  0x11   : > { %s1576_s5 = sshll.u32 %s2461_s13, 5  ;;  %1689 = vmatprep.subr.bf16.mxu1 %v2003_v1  ;;  %v1912_v37 = vld [vmem:[%s2447_s1 + $0xd8] sm:$0xff]   ;;  %v1913_v38 = vld [vmem:[%s2447_s1 + $0xa0] sm:$0xff]   ;;  %v1915_v40 = vld [vmem:[%s2447_s1 + $0xa8] sm:$0xff]   ;;  %s1363_s7 = sshll.u32 %s2461_s13, 2 }
  0x12   : > { %s183_s11 = scalar_lea.vmem %s2446_s0, %s1576_s5  ;;  %v1914_v39 = vld [vmem:[%s2447_s1 + $0xe0] sm:$0xff]   ;;  %v1916_v41 = vld [vmem:[%s2447_s1 + $0xe8] sm:$0xff]   ;;  %v1917_v42 = vld [vmem:[%s2447_s1 + $0xb0] sm:$0xff]   ;;  %s190_s10 = sadd.s32 %s1363_s7, %s2463_s6 }
  0x13   : > { %1670 = vmatpush3.bf16.msra.mxu0 %v1891_v5  ;;  %s2104_s22 = scalar_lea.vmem %s183_s11, %s1366_s19  ;;  %v1918_v43 = vld [vmem:[%s2447_s1 + $0xf0] sm:$0xff]   ;;  %v1919_v46 = vld [vmem:[%s2447_s1 + $0xb8] sm:$0xff]   ;;  %v1921_v53 = vld [vmem:[%s2447_s1 + $0x100] sm:$0xff]   ;;  %s1364_s11 = sshll.u32 %s190_s10, 2 }
  0x14   : > { %1690 = vmatpush3.bf16.msra.mxu1 %v1892_v6  ;;  %1671 = vmatprep.subr.bf16.mxu0 %v2003_v1  ;;  %v200_v11 = vld [vmem:[%s2104_s22] sm:$0xf]  ;;  %v201_v12 = vld [vmem:[%s2104_s22 + $0x4] sm:$0xf]  ;;  %v202_v13 = vld [vmem:[%s2104_s22 + $0x8] sm:$0xf]  ;;  %s192_s13 = scalar_lea.vmem %s2449_s3, %s1364_s11 }
  0x15   : > { %1691 = vmatprep.subr.bf16.mxu1 %v2003_v1  ;;  %v2117_v14 = vcombine.low %v200_v11, %v201_v12  ;;  %v2119_v15 = vcombine.low %v202_v13, %v202_v13  ;;  %v2121_v16 = vcombine.low %v201_v12, %v202_v13  ;;  %v1920_v48 = vld [vmem:[%s2447_s1 + $0xf8] sm:$0xff]   ;;  %v1922_v55 = vld [vmem:[%s2447_s1 + $0x140] sm:$0xff]   ;;  %v1923_v58 = vld [vmem:[%s2447_s1 + $0x108] sm:$0xff]  }
  0x16   : > { %v1954_v60 = vld [vmem:[%s2104_s22 + $0xc] ss:$0 sps:$4 sm:$0xff]   ;;  %v1925_v63 = vld [vmem:[%s2447_s1 + $0x110] sm:$0xff]   ;;  %v1927_v11 = vld [vmem:[%s2447_s1 + $0x118] sm:$0xff]  }
  0x17   : > { %1672 = vmatpush3.bf16.msra.mxu0 %v1893_v7  ;;  %v249_v19 = vshll.u32 %v2117_v14, 16  ;;  %v247_v21 = vshrl.u32 %v2117_v14, 16  ;;  %v254_v23 = vshll.u32 %v2119_v15, 16  ;;  %v456_v44 = vrot.slane %v2117_v14, 1  ;;  %v1924_v61 = vld [vmem:[%s2447_s1 + $0x148] sm:$0xff]   ;;  %v1926_v4 = vld [vmem:[%s2447_s1 + $0x150] sm:$0xff]  }
  0x18   : > { %1692 = vmatpush3.bf16.msra.mxu1 %v1894_v8  ;;  %1673 = vmatprep.subr.bf16.mxu0 %v2003_v1  ;;  %v457_v45 = vrot.slane %v2119_v15, 1  ;;  %v569_v47 = vrot.slane %v2117_v14, 3  ;;  %v570_v49 = vrot.slane %v2119_v15, 3  ;;  %v1028_v50 = vshrl.u32 %v2121_v16, 16 }
  0x19   : > { %1693 = vmatprep.subr.bf16.mxu1 %v2003_v1  ;;  %v251_v22 = vrot.slane %v249_v19, 1  ;;  %v256_v28 = vrot.slane %v254_v23, 1  ;;  %v1031_v51 = vshll.u32 %v2121_v16, 16  ;;  %v914_v56 = vrot.slane %v2121_v16, 2 }
  0x1a   : > { %v458_v52 = vsel %vm455_vm2, %v456_v44, %v457_v45  ;;  %v571_v54 = vsel %vm568_vm3, %v569_v47, %v570_v49  ;;  %v1030_v57 = vrot.slane %v1028_v50, 2  ;;  %v1153_v62 = vrot.slane %v2121_v16, 3  ;;  %v1951_v44 = vld [vmem:[%s2447_s1 + $0x1f0] sm:$0xff]   ;;  %v1952_v45 = vld [vmem:[%s2447_s1 + $0x1b8] sm:$0xff]   ;;  %v1955_v47 = vld [vmem:[%s2447_s1 + $0x200] sm:$0xff]  }
  0x1b   : > { %1674 = vmatpush3.bf16.msra.mxu0 %v1895_v9  ;;  %v252_v27 = vor.u32 %v251_v22, %v247_v21  ;;  %v1033_v59 = vrot.slane %v1031_v51, 3  ;;  %v915_v0 = vrot.slane %v1954_v60, 2  ;;  %v1036_v2 = vshrl.u32 %v1954_v60, 16  ;;  %v1931_v22 = vld [vmem:[%s2447_s1 + $0x128] sm:$0xff]   ;;  %v1957_v49 = vld [vmem:[%s2447_s1 + $0x210] sm:$0xff]   ;;  %v1958_v50 = vld [vmem:[%s2447_s1 + $0x218] sm:$0xff]  }
  0x1c   : > { %1694 = vmatpush3.bf16.msra.mxu1 %v1896_v10  ;;  %1675 = vmatprep.subr.bf16.mxu0 %v2003_v1  ;;  %v1039_v3 = vshll.u32 %v1954_v60, 16  ;;  %v1154_v10 = vrot.slane %v1954_v60, 3  ;;  %v1959_v51 = vld [vmem:[%s2447_s1 + $0x220] sm:$0xff]  }
  0x1d   : > { %1695 = vmatprep.subr.bf16.mxu1 %v2003_v1  ;;  %v257_v29 = vsel %vm245_vm1, %v252_v27, %v256_v28  ;;  %v1034_v5 = vor.u32 %v1033_v59, %v1030_v57  ;;  %v2261_v6 = vsel %vm913_vm4, %v914_v56, %v915_v0  ;;  %v1038_v7 = vrot.slane %v1036_v2, 2 }
  0x1e   : > { %v1041_v8 = vrot.slane %v1039_v3, 3  ;;  %v2271_v13 = vsel %vm568_vm3, %v1153_v62, %v1154_v10  ;;  %v682_v27 = vrot.slane %v247_v21, 3  ;;  %v683_v28 = vrot.slane %v249_v19, 4  ;;  %v1935_v21 = vld [vmem:[%s2447_s1 + $0x138] sm:$0xff]  }
  0x1f   : > { %1676 = vmatpush3.bf16.msra.mxu0 %v1897_v17  ;;  %v1928_v17 = vld [vmem:[%s2447_s1 + $0x158] sm:$0xff]  }
  0x20   : > { %1696 = vmatpush3.bf16.msra.mxu1 %v1898_v18  ;;  %1677 = vmatprep.subr.bf16.mxu0 %v2003_v1  ;;  %v1042_v9 = vor.u32 %v1041_v8, %v1038_v7  ;;  %v1929_v18 = vld [vmem:[%s2447_s1 + $0x120] sm:$0xff]  }
  0x21   : > { %1697 = vmatprep.subr.bf16.mxu1 %v2003_v1 }
  0x22   : > { %v2268_v12 = vsel %vm1026_vm5, %v1034_v5, %v1042_v9 }
  0x23   : > { %1678 = vmatpush3.bf16.msra.mxu0 %v1899_v20  ;;  %v1930_v20 = vld [vmem:[%s2447_s1 + $0x160] sm:$0xff]  }
  0x24   : > { %1698 = vmatpush3.bf16.msra.mxu1 %v1900_v24  ;;  %1679 = vmatprep.subr.bf16.mxu0 %v2003_v1  ;;  %v685_v24 = vshrl.u32 %v2119_v15, 16  ;;  %v1936_v15 = vld [vmem:[%s2447_s1 + $0x178] sm:$0xff]  }
  0x25   : > { %1699 = vmatprep.subr.bf16.mxu1 %v2003_v1 }
  0x27   : > { %1680 = vmatpush3.bf16.msra.mxu0 %v1901_v25  ;;  %v1932_v25 = vld [vmem:[%s2447_s1 + $0x168] sm:$0xff]  }
  0x28   : > { %1700 = vmatpush3.bf16.msra.mxu1 %v1902_v26  ;;  %1705 = vmatprep.subr.bf16.mxu0 %v2003_v1  ;;  %v1933_v26 = vld [vmem:[%s2447_s1 + $0x130] sm:$0xff]  }
  0x29   : > { %1725 = vmatprep.subr.bf16.mxu1 %v2003_v1 }
  0x2a   : > { %1682 = vmatmul.mubr.bf16.vlgmr.msra.gmra.mrb[0].mxu0 %v257_v29  ;;  %v687_v29 = vrot.slane %v685_v24, 3 }
  0x2b   : > { %1702 = vmatmul.mubr.bf16.vlgmr.msra.gmra.mrb[0].mxu1 %v2117_v14  ;;  %1706 = vmatpush3.bf16.msra.mxu0 %v1905_v30  ;;  %v688_v30 = vrot.slane %v254_v23, 4  ;;  %v684_v14 = vor.u32 %v683_v28, %v682_v27 }
  0x2c   : > { %1726 = vmatpush3.bf16.msra.mxu1 %v1906_v31  ;;  %1707 = vmatprep.subr.bf16.mxu0 %v2003_v1  ;;  %v1934_v31 = vld [vmem:[%s2447_s1 + $0x170] sm:$0xff]  }
  0x2d   : > { %1727 = vmatprep.subr.bf16.mxu1 %v2003_v1  ;;  %1721 = vmatprep.mubr.msk.bf16.mxu0 %vm2004_vm0, %v2003_v1  ;;  %v689_v19 = vor.u32 %v688_v30, %v687_v29 }
  0x2e   : > { %1741 = vmatprep.mubr.msk.bf16.mxu1 %vm2004_vm0, %v2003_v1 }
  0x2f   : > { %1708 = vmatpush3.bf16.msra.mxu0 %v1907_v32  ;;  %v690_v23 = vsel %vm681_vm6, %v684_v14, %v689_v19  ;;  %v1937_v32 = vld [vmem:[%s2447_s1 + $0x180] sm:$0xff]  }
  0x30   : > { %1728 = vmatpush3.bf16.msra.mxu1 %v1908_v33  ;;  %1709 = vmatprep.subr.bf16.mxu0 %v2003_v1  ;;  %v1939_v33 = vld [vmem:[%s2447_s1 + $0x1c0] sm:$0xff]  }
  0x31   : > { %1729 = vmatprep.subr.bf16.mxu1 %v2003_v1 }
  0x33   : > { %1710 = vmatpush3.bf16.msra.mxu0 %v1909_v34  ;;  %v1940_v34 = vld [vmem:[%s2447_s1 + $0x188] sm:$0xff]  }
  0x34   : > { %1730 = vmatpush3.bf16.msra.mxu1 %v1910_v35  ;;  %1711 = vmatprep.subr.bf16.mxu0 %v2003_v1  ;;  %v1941_v35 = vld [vmem:[%s2447_s1 + $0x1c8] sm:$0xff]  }
  0x35   : > { %1731 = vmatprep.subr.bf16.mxu1 %v2003_v1 }
  0x37   : > { %1712 = vmatpush3.bf16.msra.mxu0 %v1911_v36  ;;  %v1943_v36 = vld [vmem:[%s2447_s1 + $0x1d0] sm:$0xff]  }
  0x38   : > { %1732 = vmatpush3.bf16.msra.mxu1 %v1912_v37  ;;  %1713 = vmatprep.subr.bf16.mxu0 %v2003_v1  ;;  %v1944_v37 = vld [vmem:[%s2447_s1 + $0x198] sm:$0xff]  }
  0x39   : > { %1733 = vmatprep.subr.bf16.mxu1 %v2003_v1 }
  0x3b   : > { %1714 = vmatpush3.bf16.msra.mxu0 %v1913_v38  ;;  %v1945_v38 = vld [vmem:[%s2447_s1 + $0x1d8] sm:$0xff]  }
  0x3c   : > { %1734 = vmatpush3.bf16.msra.mxu1 %v1914_v39  ;;  %1715 = vmatprep.subr.bf16.mxu0 %v2003_v1  ;;  %v1946_v39 = vld [vmem:[%s2447_s1 + $0x1a0] sm:$0xff]  }
  0x3d   : > { %1735 = vmatprep.subr.bf16.mxu1 %v2003_v1 }
  0x3f   : > { %1716 = vmatpush3.bf16.msra.mxu0 %v1915_v40  ;;  %v1947_v40 = vld [vmem:[%s2447_s1 + $0x1e0] sm:$0xff]  }
  0x40   : > { %1736 = vmatpush3.bf16.msra.mxu1 %v1916_v41  ;;  %1717 = vmatprep.subr.bf16.mxu0 %v2003_v1  ;;  %v1948_v41 = vld [vmem:[%s2447_s1 + $0x1a8] sm:$0xff]  }
  0x41   : > { %1737 = vmatprep.subr.bf16.mxu1 %v2003_v1 }
  0x43   : > { %1718 = vmatpush3.bf16.msra.mxu0 %v1917_v42  ;;  %v1949_v42 = vld [vmem:[%s2447_s1 + $0x1e8] sm:$0xff]  }
  0x44   : > { %1738 = vmatpush3.bf16.msra.mxu1 %v1918_v43  ;;  %1719 = vmatprep.subr.bf16.mxu0 %v2003_v1  ;;  %v1950_v43 = vld [vmem:[%s2447_s1 + $0x1b0] sm:$0xff]  }
  0x45   : > { %1739 = vmatprep.subr.bf16.mxu1 %v2003_v1 }
  0x47   : > { %1720 = vmatpush3.bf16.msra.mxu0 %v1919_v46  ;;  %v1953_v46 = vld [vmem:[%s2447_s1 + $0x1f8] sm:$0xff]  }
  0x48   : > { %1740 = vmatpush3.bf16.msra.mxu1 %v1920_v48  ;;  %1745 = vmatprep.subr.bf16.mxu0 %v2003_v1  ;;  %v1956_v48 = vld [vmem:[%s2447_s1 + $0x208] sm:$0xff]  }
  0x49   : > { %1765 = vmatprep.subr.bf16.mxu1 %v2003_v1 }
  0x4a   : > { %1722 = vmatmul.mubr.bf16.vlgmr.msra.gmra.mrb[4].mxu0 %v458_v52  ;;  %v1960_v52 = vld [vmem:[%s2447_s1 + $0x228] sm:$0xff]  }
  0x4b   : > { %1746 = vmatpush3.bf16.msra.mxu0 %v1921_v53  ;;  %1742 = vmatmul.mubr.bf16.vlgmr.msra.gmra.mrb[4].mxu1 %v571_v54  ;;  %v1961_v53 = vld [vmem:[%s2447_s1 + $0x230] sm:$0xff]   ;;  %v1962_v54 = vld [vmem:[%s2447_s1 + $0x238] sm:$0xff]  }
  0x4c   : > { %1766 = vmatpush3.bf16.msra.mxu1 %v1922_v55  ;;  %1747 = vmatprep.subr.bf16.mxu0 %v2003_v1 }
  0x4d   : > { %1767 = vmatprep.subr.bf16.mxu1 %v2003_v1  ;;  %1761 = vmatprep.mubr.msk.bf16.mxu0 %vm2004_vm0, %v2003_v1 }
  0x4e   : > { %1781 = vmatprep.mubr.msk.bf16.mxu1 %vm2004_vm0, %v2003_v1 }
  0x4f   : > { %1748 = vmatpush3.bf16.msra.mxu0 %v1923_v58 }
  0x50   : > { %1768 = vmatpush3.bf16.msra.mxu1 %v1924_v61  ;;  %1749 = vmatprep.subr.bf16.mxu0 %v2003_v1 }
  0x51   : > { %1769 = vmatprep.subr.bf16.mxu1 %v2003_v1 }
  0x53   : > { %1750 = vmatpush3.bf16.msra.mxu0 %v1925_v63 }
  0x54   : > { %1770 = vmatpush3.bf16.msra.mxu1 %v1926_v4  ;;  %1751 = vmatprep.subr.bf16.mxu0 %v2003_v1 }
  0x55   : > { %1771 = vmatprep.subr.bf16.mxu1 %v2003_v1 }
  0x57   : > { %1752 = vmatpush3.bf16.msra.mxu0 %v1927_v11 }
  0x58   : > { %1772 = vmatpush3.bf16.msra.mxu1 %v1928_v17  ;;  %1753 = vmatprep.subr.bf16.mxu0 %v2003_v1 }
  0x59   : > { %1773 = vmatprep.subr.bf16.mxu1 %v2003_v1 }
  0x5b   : > { %1754 = vmatpush3.bf16.msra.mxu0 %v1929_v18 }
  0x5c   : > { %1774 = vmatpush3.bf16.msra.mxu1 %v1930_v20  ;;  %1755 = vmatprep.subr.bf16.mxu0 %v2003_v1 }
  0x5d   : > { %1775 = vmatprep.subr.bf16.mxu1 %v2003_v1 }
  0x5f   : > { %1756 = vmatpush3.bf16.msra.mxu0 %v1931_v22 }
  0x60   : > { %1776 = vmatpush3.bf16.msra.mxu1 %v1932_v25  ;;  %1757 = vmatprep.subr.bf16.mxu0 %v2003_v1 }
  0x61   : > { %1777 = vmatprep.subr.bf16.mxu1 %v2003_v1 }
  0x63   : > { %1758 = vmatpush3.bf16.msra.mxu0 %v1933_v26 }
  0x64   : > { %1778 = vmatpush3.bf16.msra.mxu1 %v1934_v31  ;;  %1759 = vmatprep.subr.bf16.mxu0 %v2003_v1 }
  0x65   : > { %1779 = vmatprep.subr.bf16.mxu1 %v2003_v1 }
  0x67   : > { %1760 = vmatpush3.bf16.msra.mxu0 %v1935_v21 }
  0x68   : > { %1780 = vmatpush3.bf16.msra.mxu1 %v1936_v15  ;;  %1785 = vmatprep.subr.bf16.mxu0 %v2003_v1 }
  0x69   : > { %1805 = vmatprep.subr.bf16.mxu1 %v2003_v1 }
  0x6a   : > { %1762 = vmatmul.mubr.bf16.vlgmr.msra.gmra.mrb[8].mxu0 %v690_v23 }
  0x6b   : > { %1786 = vmatpush3.bf16.msra.mxu0 %v1937_v32  ;;  %1782 = vmatmul.mubr.bf16.vlgmr.msra.gmra.mrb[8].mxu1 %v2121_v16  ;;  %v1942_v16 = vld [vmem:[%s2447_s1 + $0x190] sm:$0xff]  }
  0x6c   : > { %1806 = vmatpush3.bf16.msra.mxu1 %v1939_v33  ;;  %1787 = vmatprep.subr.bf16.mxu0 %v2003_v1 }
  0x6d   : > { %1807 = vmatprep.subr.bf16.mxu1 %v2003_v1  ;;  %1801 = vmatprep.mubr.msk.bf16.mxu0 %vm2004_vm0, %v2003_v1 }
  0x6e   : > { %1821 = vmatprep.mubr.msk.bf16.mxu1 %vm2004_vm0, %v2003_v1 }
  0x6f   : > { %1788 = vmatpush3.bf16.msra.mxu0 %v1940_v34 }
  0x70   : > { %1808 = vmatpush3.bf16.msra.mxu1 %v1941_v35  ;;  %1789 = vmatprep.subr.bf16.mxu0 %v2003_v1 }
  0x71   : > { %1809 = vmatprep.subr.bf16.mxu1 %v2003_v1 }
  0x73   : > { %1790 = vmatpush3.bf16.msra.mxu0 %v1942_v16 }
  0x74   : > { %1810 = vmatpush3.bf16.msra.mxu1 %v1943_v36  ;;  %1791 = vmatprep.subr.bf16.mxu0 %v2003_v1 }
  0x75   : > { %1811 = vmatprep.subr.bf16.mxu1 %v2003_v1 }
  0x77   : > { %1792 = vmatpush3.bf16.msra.mxu0 %v1944_v37 }
  0x78   : > { %1812 = vmatpush3.bf16.msra.mxu1 %v1945_v38  ;;  %1793 = vmatprep.subr.bf16.mxu0 %v2003_v1  ;;  %v1571_v38 = vld [vmem:[%s2448_s2] ss:$0 sm:$0xff] }
  0x79   : > { %1813 = vmatprep.subr.bf16.mxu1 %v2003_v1 }
  0x7b   : > { %1794 = vmatpush3.bf16.msra.mxu0 %v1946_v39 }
  0x7c   : > { %1814 = vmatpush3.bf16.msra.mxu1 %v1947_v40  ;;  %1795 = vmatprep.subr.bf16.mxu0 %v2003_v1 }
  0x7d   : > { %1815 = vmatprep.subr.bf16.mxu1 %v2003_v1 }
  0x7f   : > { %1796 = vmatpush3.bf16.msra.mxu0 %v1948_v41 }
  0x80   : > { %1816 = vmatpush3.bf16.msra.mxu1 %v1949_v42  ;;  %1797 = vmatprep.subr.bf16.mxu0 %v2003_v1 }
  0x81   : > { %1817 = vmatprep.subr.bf16.mxu1 %v2003_v1 }
  0x83   : > { %1798 = vmatpush3.bf16.msra.mxu0 %v1950_v43 }
  0x84   : > { %1818 = vmatpush3.bf16.msra.mxu1 %v1951_v44  ;;  %1799 = vmatprep.subr.bf16.mxu0 %v2003_v1 }
  0x85   : > { %1819 = vmatprep.subr.bf16.mxu1 %v2003_v1 }
  0x87   : > { %1800 = vmatpush3.bf16.msra.mxu0 %v1952_v45 }
  0x88   : > { %1820 = vmatpush3.bf16.msra.mxu1 %v1953_v46  ;;  %1825 = vmatprep.subr.bf16.mxu0 %v2003_v1 }
  0x8a   : > { %1802 = vmatmul.mubr.bf16.vlgmr.msra.gmra.mrb[12].mxu0 %v2261_v6 }
  0x8b   : > { %1826 = vmatpush3.bf16.msra.mxu0 %v1955_v47  ;;  %1822 = vmatmul.mubr.bf16.vlgmr.msra.gmra.mrb[12].mxu1 %v2268_v12 }
  0x8c   : > { %1827 = vmatprep.subr.bf16.mxu0 %v2003_v1  ;;  %1841 = vmatprep.mubr.msk.bf16.mxu0 %vm2004_vm0, %v2003_v1 }
  0x8f   : > { %1828 = vmatpush3.bf16.msra.mxu0 %v1956_v48 }
  0x90   : > { %1829 = vmatprep.subr.bf16.mxu0 %v2003_v1 }
  0x93   : > { %1830 = vmatpush3.bf16.msra.mxu0 %v1957_v49 }
  0x94   : > { %1831 = vmatprep.subr.bf16.mxu0 %v2003_v1 }
  0x97   : > { %1832 = vmatpush3.bf16.msra.mxu0 %v1958_v50 }
  0x98   : > { %1833 = vmatprep.subr.bf16.mxu0 %v2003_v1 }
  0x9b   : > { %1834 = vmatpush3.bf16.msra.mxu0 %v1959_v51 }
  0x9c   : > { %1835 = vmatprep.subr.bf16.mxu0 %v2003_v1 }
  0x9f   : > { %1836 = vmatpush3.bf16.msra.mxu0 %v1960_v52 }
  0xa0   : > { %1837 = vmatprep.subr.bf16.mxu0 %v2003_v1 }
  0xa3   : > { %1838 = vmatpush3.bf16.msra.mxu0 %v1961_v53 }
  0xa4   : > { %1839 = vmatprep.subr.bf16.mxu0 %v2003_v1 }
  0xa7   : > { %1840 = vmatpush3.bf16.msra.mxu0 %v1962_v54 }
  0xaa   : > { %1842 = vmatmul.mubr.bf16.vlgmr.msra.gmra.mrb[16].mxu0 %v2271_v13 }
  0xfd   : > { %v341_v55 = vpop.f32.mrb[0].mxu0 }
  0xfe   : > { %v431_v56 = vpop.f32.mrb[0].mxu1  ;;  %v1683_v57 = vpop.f32.mrb[1].mxu0 }
  0xff   : > { %v432_v58 = vadd.f32 %v431_v56, %v341_v55  ;;  %v1703_v59 = vpop.f32.mrb[1].mxu1  ;;  %v344_v60 = vpop.f32.mrb[2].mxu0 }
 0x100   : > { %v434_v61 = vpop.f32.mrb[2].mxu1  ;;  %v1684_v62 = vpop.f32.mrb[3].mxu0 }
 0x101   : > { %v435_v63 = vadd.f32 %v434_v61, %v344_v60  ;;  %v1704_v0 = vpop.f32.mrb[3].mxu1 }
 0x11d   : > { %v542_v2 = vpop.f32.mrb[4].mxu0 }
 0x11e   : > { %v549_v3 = vadd.f32 %v542_v2, %v432_v58  ;;  %v1723_v4 = vpop.f32.mrb[5].mxu0  ;;  %v655_v5 = vpop.f32.mrb[4].mxu1 }
 0x11f   : > { %v545_v6 = vpop.f32.mrb[6].mxu0  ;;  %v1743_v7 = vpop.f32.mrb[5].mxu1 }
 0x120   : > { %v550_v1 = vadd.f32 %v545_v6, %v435_v63  ;;  %v662_v8 = vadd.f32 %v655_v5, %v549_v3  ;;  %v1724_v9 = vpop.f32.mrb[7].mxu0  ;;  %v658_v10 = vpop.f32.mrb[6].mxu1 }
 0x121   : > { %v1744_v11 = vpop.f32.mrb[7].mxu1 }
 0x122   : > { %v663_v12 = vadd.f32 %v658_v10, %v550_v1 }
 0x13d   : > { %v774_v13 = vpop.f32.mrb[8].mxu0 }
 0x13e   : > { %v781_v17 = vadd.f32 %v774_v13, %v662_v8  ;;  %v1763_v18 = vpop.f32.mrb[9].mxu0  ;;  %v884_v20 = vpop.f32.mrb[8].mxu1 }
 0x13f   : > { %v777_v22 = vpop.f32.mrb[10].mxu0  ;;  %v1783_v24 = vpop.f32.mrb[9].mxu1 }
 0x140   : > { %v782_v25 = vadd.f32 %v777_v22, %v663_v12  ;;  %v891_v26 = vadd.f32 %v884_v20, %v781_v17  ;;  %v1764_v27 = vpop.f32.mrb[11].mxu0  ;;  %v887_v28 = vpop.f32.mrb[10].mxu1 }
 0x141   : > { %v1784_v29 = vpop.f32.mrb[11].mxu1 }
 0x142   : > { %v892_v30 = vadd.f32 %v887_v28, %v782_v25 }
 0x15d   : > { %v1000_v31 = vpop.f32.mrb[12].mxu0 }
 0x15e   : > { %v1007_v21 = vadd.f32 %v1000_v31, %v891_v26  ;;  %v1803_v14 = vpop.f32.mrb[13].mxu0  ;;  %v1127_v19 = vpop.f32.mrb[12].mxu1 }
 0x15f   : > { %v1003_v15 = vpop.f32.mrb[14].mxu0  ;;  %v1823_v23 = vpop.f32.mrb[13].mxu1 }
 0x160   : > { %v1008_v32 = vadd.f32 %v1003_v15, %v892_v30  ;;  %v1134_v33 = vadd.f32 %v1127_v19, %v1007_v21  ;;  %v1804_v34 = vpop.f32.mrb[15].mxu0  ;;  %v1130_v35 = vpop.f32.mrb[14].mxu1 }
 0x161   : > { %v1824_v16 = vpop.f32.mrb[15].mxu1 }
 0x162   : > { %v1135_v36 = vadd.f32 %v1130_v35, %v1008_v32 }
 0x17d   : > { %v1239_v37 = vpop.f32.mrb[16].mxu0 }
 0x17e   : > { %v1246_v39 = vadd.f32 %v1239_v37, %v1134_v33  ;;  %v1843_v40 = vpop.f32.mrb[17].mxu0 }
 0x17f   : > { %v1242_v41 = vpop.f32.mrb[18].mxu0 }
 0x180   : > { %v1255_v42 = vadd.f32 %v1571_v38, %v1246_v39  ;;  %v1247_v43 = vadd.f32 %v1242_v41, %v1135_v36  ;;  %v1844_v44 = vpop.f32.mrb[19].mxu0 }
 0x182   : > { %v1256_v45 = vadd.f32 %v1571_v38, %v1247_v43  ;;  %v1257_v46 = vmax.f32 %v1255_v42, 0.0 }
 0x184   : > { %v1258_v47 = vmax.f32 %v1256_v45, 0.0 }
 0x186   : > { %v1582_v48 = vpack.c.bf16 %v1258_v47, %v1257_v46 }
 0x188   : > { %1583 = vst [vmem:[%s192_s13] sm:$0xff] %v1582_v48  }
 0x189 PF: > { %s13_s16 = sadd.s32 1, %s2001_s16   ;;  %s2450_s12 = smov %s1993_s14 }
 0x18a   : > { %p10_p7 = scmp.ge.s32.totalorder %s13_s16, 6   ;;  %s2451_s13 = smov %s1997_s15 }
 0x18b   : > { %s2452_s14 = smov %s2455_s17  ;;  %s2453_s15 = smov %s2459_s18 }
 0x18c   :  { %12 = sbr.rel (!%p10_p7) target bundleno = 3 (0x3), region = 71 }

// kernel: resnet_backbone_forward.47
= control target key start
LH: loop header
LB: loop body
LE: loop exit
PB: predicated region body
PF: predicated region fallthrough
CT: control target
= control target key end

     0   :  { %s2363_s12 = smov 0   ;;  %s2365_s13 = smov 0   ;;  %s2880_s0 = inlined_call_operand.vmem [shape: bf16[2,4,48,128], index: 0, kind: input, shape index: {}]   ;;  %s2881_s1 = inlined_call_operand.vmem [shape: bf16[9,128,256], index: 1, kind: input, shape index: {}]   ;;  %s2882_s2 = inlined_call_operand.vmem [shape: f32[1,256], index: 2, kind: input, shape index: {}]   ;;  %s2883_s3 = inlined_call_operand.vmem [shape: bf16[2,16,256], index: 3, kind: output, shape index: {}]  }
   0x1   :  { %s2367_s14 = smov 0  }
   0x2 LB: > { %s25_s15 = sadd.s32 1, %s2336_s13  ;;  %p1739_p0 = scmp.ge.s32.totalorder %s2340_s14, 1  ;;  %s2340_s14 = sphi %s2367_s14, %s13_s14   ;;  %s2336_s13 = sphi %s2365_s13, %s2885_s13   ;;  %s2332_s12 = sphi %s2363_s12, %s2884_s12  }
   0x3   : > { %p27_p1 = scmp.ge.s32.totalorder %s25_s15, 2  ;;  %p151_p2 = scmp.lt.s32.totalorder %s2340_s14, 3 }
   0x5   : > { %s2887_s15 = smov (%p27_p1, %s25_s15), 0  ;;  %p152_p3 = pnand %p1739_p0, %p151_p2 }
   0x6   : > { %v2095_v0 = vld [vmem:[%s2881_s1 + $0x84] ss:$8 sps:$4 sm:$0xff] (!%p152_p3)   ;;  %v2342_v2 = vmov (!%p152_p3), 0   ;;  %v2099_v3 = vld [vmem:[%s2881_s1 + $0x80] ss:$8 sps:$4 sm:$0xff] (!%p152_p3)   ;;  %p180_p4 = scmp.lt.s32.totalorder (!%p152_p3), %s2332_s12, 1 }
   0x7   : > { %155 = sbr.rel (%p152_p3) target bundleno = 392 (0x188), region = 32  ;;  %v2097_v1 = vld [vmem:[%s2881_s1 + $0x204] ss:$8 sps:$4 sm:$0xff] (!%p152_p3)   ;;  %362 = vmatprep.mubr.bf16.mxu1 (!%p152_p3), %v2342_v2  ;;  %959 = vmatprep.mubr.bf16.mxu0 (!%p152_p3), %v2342_v2  ;;  %v2100_v4 = vld [vmem:[%s2881_s1 + $0x200] ss:$8 sps:$4 sm:$0xff] (!%p152_p3)   ;;  %vm1471_vm1 = vcmask (!%p152_p3), 1045504  }
   0x8   : > { %330 = vmatprep.subr.bf16.mxu1 (!%p152_p3), %v2095_v0  ;;  %927 = vmatprep.subr.bf16.mxu0 (!%p152_p3), %v2097_v1  ;;  %v2101_v5 = vld [vmem:[%s2881_s1 + $0x94] ss:$8 sps:$4 sm:$0xff] (!%p152_p3)   ;;  %v2105_v7 = vld [vmem:[%s2881_s1 + $0x90] ss:$8 sps:$4 sm:$0xff] (!%p152_p3)   ;;  %v2107_v9 = vld [vmem:[%s2881_s1 + $0xa4] ss:$8 sps:$4 sm:$0xff] (!%p152_p3)  }
   0x9   : > { %331 = vmatpush1.bf16.msra.mxu1 (!%p152_p3), %v2099_v3  ;;  %928 = vmatpush1.bf16.msra.mxu0 (!%p152_p3), %v2100_v4  ;;  %v2103_v6 = vld [vmem:[%s2881_s1 + $0x214] ss:$8 sps:$4 sm:$0xff] (!%p152_p3)   ;;  %v2106_v8 = vld [vmem:[%s2881_s1 + $0x210] ss:$8 sps:$4 sm:$0xff] (!%p152_p3)   ;;  %v2109_v10 = vld [vmem:[%s2881_s1 + $0x224] ss:$8 sps:$4 sm:$0xff] (!%p152_p3)  }
   0xa   : > { %332 = vmatprep.subr.bf16.mxu1 (!%p152_p3), %v2101_v5  ;;  %929 = vmatprep.subr.bf16.mxu0 (!%p152_p3), %v2103_v6  ;;  %v2111_v11 = vld [vmem:[%s2881_s1 + $0xa0] ss:$8 sps:$4 sm:$0xff] (!%p152_p3)   ;;  %v2113_v13 = vld [vmem:[%s2881_s1 + $0xb4] ss:$8 sps:$4 sm:$0xff] (!%p152_p3)   ;;  %v2117_v15 = vld [vmem:[%s2881_s1 + $0xb0] ss:$8 sps:$4 sm:$0xff] (!%p152_p3)  }
   0xb   : > { %v2112_v12 = vld [vmem:[%s2881_s1 + $0x220] ss:$8 sps:$4 sm:$0xff] (!%p152_p3)   ;;  %v2115_v14 = vld [vmem:[%s2881_s1 + $0x234] ss:$8 sps:$4 sm:$0xff] (!%p152_p3)   ;;  %v2118_v16 = vld [vmem:[%s2881_s1 + $0x230] ss:$8 sps:$4 sm:$0xff] (!%p152_p3)  }
   0xc   : > { %v2119_v17 = vld [vmem:[%s2881_s1 + $0xc4] ss:$8 sps:$4 sm:$0xff] (!%p152_p3)   ;;  %v2123_v19 = vld [vmem:[%s2881_s1 + $0xc0] ss:$8 sps:$4 sm:$0xff] (!%p152_p3)   ;;  %v2125_v21 = vld [vmem:[%s2881_s1 + $0xd4] ss:$8 sps:$4 sm:$0xff] (!%p152_p3)  }
   0xd   : > { %333 = vmatpush1.bf16.msra.mxu1 (!%p152_p3), %v2105_v7  ;;  %930 = vmatpush1.bf16.msra.mxu0 (!%p152_p3), %v2106_v8  ;;  %v2121_v18 = vld [vmem:[%s2881_s1 + $0x244] ss:$8 sps:$4 sm:$0xff] (!%p152_p3)   ;;  %v2124_v20 = vld [vmem:[%s2881_s1 + $0x240] ss:$8 sps:$4 sm:$0xff] (!%p152_p3)   ;;  %v2127_v22 = vld [vmem:[%s2881_s1 + $0x254] ss:$8 sps:$4 sm:$0xff] (!%p152_p3)  }
   0xe   : > { %334 = vmatprep.subr.bf16.mxu1 %v2107_v9  ;;  %931 = vmatprep.subr.bf16.mxu0 %v2109_v10  ;;  %s2889_s12 = smov (!%p180_p4, %s2332_s12), 1  ;;  %v2129_v23 = vld [vmem:[%s2881_s1 + $0xd0] ss:$8 sps:$4 sm:$0xff]   ;;  %v2131_v25 = vld [vmem:[%s2881_s1 + $0xe4] ss:$8 sps:$4 sm:$0xff]  }
   0xf   : > { %s2069_s16 = smul.u32 96, %s2889_s12  ;;  %v2130_v24 = vld [vmem:[%s2881_s1 + $0x250] ss:$8 sps:$4 sm:$0xff]   ;;  %v2133_v26 = vld [vmem:[%s2881_s1 + $0x264] ss:$8 sps:$4 sm:$0xff]   ;;  %s2034_s18 = sshll.u32 %s2889_s12, 4 }
  0x10   : > { %v2135_v27 = vld [vmem:[%s2881_s1 + $0xe0] ss:$8 sps:$4 sm:$0xff]   ;;  %v2137_v29 = vld [vmem:[%s2881_s1 + $0xf4] ss:$8 sps:$4 sm:$0xff]   ;;  %v2141_v31 = vld [vmem:[%s2881_s1 + $0xf0] ss:$8 sps:$4 sm:$0xff]   ;;  %s194_s21 = scalar_lea.vmem %s2883_s3, %s2034_s18 }
  0x11   : > { %335 = vmatpush1.bf16.msra.mxu1 %v2111_v11  ;;  %932 = vmatpush1.bf16.msra.mxu0 %v2112_v12  ;;  %v2136_v28 = vld [vmem:[%s2881_s1 + $0x260] ss:$8 sps:$4 sm:$0xff]   ;;  %s2477_s29 = scalar_lea.vmem %s2880_s0, %s2069_s16  ;;  %v2139_v30 = vld [vmem:[%s2881_s1 + $0x274] ss:$8 sps:$4 sm:$0xff]   ;;  %v2142_v32 = vld [vmem:[%s2881_s1 + $0x270] ss:$8 sps:$4 sm:$0xff]  }
  0x12   : > { %336 = vmatprep.subr.bf16.mxu1 %v2113_v13  ;;  %933 = vmatprep.subr.bf16.mxu0 %v2115_v14  ;;  %v2145_v33 = vld [vmem:[%s2881_s1 + $0x4] ss:$8 sps:$4 sm:$0xff]   ;;  %v2143_v35 = vld [vmem:[%s2881_s1] ss:$8 sps:$4 sm:$0xff]   ;;  %v2501_v36 = vld [vmem:[%s2477_s29 + $0x18] sm:$0xff]  }
  0x13   : > { %v2148_v34 = vld [vmem:[%s2881_s1 + $0x284] ss:$8 sps:$4 sm:$0xff]   ;;  %v2146_v38 = vld [vmem:[%s2881_s1 + $0x280] ss:$8 sps:$4 sm:$0xff]   ;;  %v2153_v39 = vld [vmem:[%s2881_s1 + $0x14] ss:$8 sps:$4 sm:$0xff]  }
  0x14   : > { %v2150_v37 = vld [vmem:[%s2477_s29 + $0x48] sm:$0xff]   ;;  %v2156_v40 = vld [vmem:[%s2881_s1 + $0x294] ss:$8 sps:$4 sm:$0xff]   ;;  %v2151_v41 = vld [vmem:[%s2881_s1 + $0x10] ss:$8 sps:$4 sm:$0xff]  }
  0x15   : > { %337 = vmatpush1.bf16.msra.mxu1 %v2117_v15  ;;  %934 = vmatpush1.bf16.msra.mxu0 %v2118_v16  ;;  %v2154_v42 = vld [vmem:[%s2881_s1 + $0x290] ss:$8 sps:$4 sm:$0xff]   ;;  %v2159_v43 = vld [vmem:[%s2881_s1 + $0x24] ss:$8 sps:$4 sm:$0xff]   ;;  %v2157_v45 = vld [vmem:[%s2881_s1 + $0x20] ss:$8 sps:$4 sm:$0xff]  }
  0x16   : > { %338 = vmatprep.subr.bf16.mxu1 %v2119_v17  ;;  %935 = vmatprep.subr.bf16.mxu0 %v2121_v18  ;;  %v2162_v44 = vld [vmem:[%s2881_s1 + $0x2a4] ss:$8 sps:$4 sm:$0xff]   ;;  %v2160_v46 = vld [vmem:[%s2881_s1 + $0x2a0] ss:$8 sps:$4 sm:$0xff]   ;;  %v2165_v47 = vld [vmem:[%s2881_s1 + $0x34] ss:$8 sps:$4 sm:$0xff]  }
  0x17   : > { %v2168_v48 = vld [vmem:[%s2881_s1 + $0x2b4] ss:$8 sps:$4 sm:$0xff]   ;;  %v2163_v49 = vld [vmem:[%s2881_s1 + $0x30] ss:$8 sps:$4 sm:$0xff]   ;;  %v2171_v51 = vld [vmem:[%s2881_s1 + $0x44] ss:$8 sps:$4 sm:$0xff]  }
  0x18   : > { %v2166_v50 = vld [vmem:[%s2881_s1 + $0x2b0] ss:$8 sps:$4 sm:$0xff]   ;;  %v2174_v52 = vld [vmem:[%s2881_s1 + $0x2c4] ss:$8 sps:$4 sm:$0xff]   ;;  %v2169_v53 = vld [vmem:[%s2881_s1 + $0x40] ss:$8 sps:$4 sm:$0xff]  }
  0x19   : > { %339 = vmatpush1.bf16.msra.mxu1 %v2123_v19  ;;  %936 = vmatpush1.bf16.msra.mxu0 %v2124_v20  ;;  %v2172_v54 = vld [vmem:[%s2881_s1 + $0x2c0] ss:$8 sps:$4 sm:$0xff]   ;;  %v2177_v55 = vld [vmem:[%s2881_s1 + $0x54] ss:$8 sps:$4 sm:$0xff]   ;;  %v2175_v58 = vld [vmem:[%s2881_s1 + $0x50] ss:$8 sps:$4 sm:$0xff]  }
  0x1a   : > { %340 = vmatprep.subr.bf16.mxu1 %v2125_v21  ;;  %937 = vmatprep.subr.bf16.mxu0 %v2127_v22  ;;  %v2180_v56 = vld [vmem:[%s2881_s1 + $0x2d4] ss:$8 sps:$4 sm:$0xff]   ;;  %v2178_v59 = vld [vmem:[%s2881_s1 + $0x2d0] ss:$8 sps:$4 sm:$0xff]   ;;  %v2183_v60 = vld [vmem:[%s2881_s1 + $0x64] ss:$8 sps:$4 sm:$0xff]  }
  0x1b   : > { %v2565_v57 = vld [vmem:[%s2477_s29 + $0x30] sm:$0xff]   ;;  %v2201_v61 = vld [vmem:[%s2477_s29 + $0x38] ss:$0 sps:$4 sm:$0xff]   ;;  %v2186_v63 = vld [vmem:[%s2881_s1 + $0x2e4] ss:$8 sps:$4 sm:$0xff]  }
  0x1c   : > { %v997_v62 = vshll.u32 %v2565_v57, 16  ;;  %v2181_v0 = vld [vmem:[%s2881_s1 + $0x60] ss:$8 sps:$4 sm:$0xff]   ;;  %v2189_v3 = vld [vmem:[%s2881_s1 + $0x74] ss:$8 sps:$4 sm:$0xff]   ;;  %v995_v4 = vshrl.u32 %v2565_v57, 16 }
  0x1d   : > { %341 = vmatpush1.bf16.msra.mxu1 %v2129_v23  ;;  %938 = vmatpush1.bf16.msra.mxu0 %v2130_v24  ;;  %v2184_v1 = vld [vmem:[%s2881_s1 + $0x2e0] ss:$8 sps:$4 sm:$0xff]   ;;  %v1002_v6 = vshll.u32 %v2201_v61, 16  ;;  %v2192_v7 = vld [vmem:[%s2881_s1 + $0x2f4] ss:$8 sps:$4 sm:$0xff]  }
  0x1e   : > { %342 = vmatprep.subr.bf16.mxu1 %v2131_v25  ;;  %939 = vmatprep.subr.bf16.mxu0 %v2133_v26  ;;  %v999_v5 = vrot.slane %v997_v62, 1  ;;  %v2187_v8 = vld [vmem:[%s2881_s1 + $0x70] ss:$8 sps:$4 sm:$0xff]   ;;  %v2195_v10 = vld [vmem:[%s2881_s1 + $0x104] ss:$8 sps:$4 sm:$0xff]  }
  0x1f   : > { %v2190_v9 = vld [vmem:[%s2881_s1 + $0x2f0] ss:$8 sps:$4 sm:$0xff]   ;;  %v1004_v12 = vrot.slane %v1002_v6, 1  ;;  %v2198_v13 = vld [vmem:[%s2881_s1 + $0x304] ss:$8 sps:$4 sm:$0xff]  }
  0x20   : > { %v1000_v11 = vor.u32 %v999_v5, %v995_v4  ;;  %vm522_vm0 = vsmask.f32 7424  ;;  %v2193_v14 = vld [vmem:[%s2881_s1 + $0x100] ss:$8 sps:$4 sm:$0xff]   ;;  %v2204_v18 = vld [vmem:[%s2881_s1 + $0x114] ss:$8 sps:$4 sm:$0xff]  }
  0x21   : > { %343 = vmatpush1.bf16.msra.mxu1 %v2135_v27  ;;  %940 = vmatpush1.bf16.msra.mxu0 %v2136_v28  ;;  %v2196_v15 = vld [vmem:[%s2881_s1 + $0x300] ss:$8 sps:$4 sm:$0xff]   ;;  %v2207_v19 = vld [vmem:[%s2881_s1 + $0x314] ss:$8 sps:$4 sm:$0xff]   ;;  %v2202_v20 = vld [vmem:[%s2881_s1 + $0x110] ss:$8 sps:$4 sm:$0xff]  }
  0x22   : > { %344 = vmatprep.subr.bf16.mxu1 %v2137_v29  ;;  %941 = vmatprep.subr.bf16.mxu0 %v2139_v30  ;;  %v2613_v16 = vld [vmem:[%s2477_s29] sm:$0xff]   ;;  %v1005_v17 = vsel %vm522_vm0, %v1000_v11, %v1004_v12  ;;  %v2205_v21 = vld [vmem:[%s2881_s1 + $0x310] ss:$8 sps:$4 sm:$0xff]   ;;  %v2216_v26 = vld [vmem:[%s2881_s1 + $0x134] ss:$8 sps:$4 sm:$0xff]  }
  0x23   : > { %v2210_v22 = vld [vmem:[%s2881_s1 + $0x124] ss:$8 sps:$4 sm:$0xff]   ;;  %v2208_v24 = vld [vmem:[%s2881_s1 + $0x120] ss:$8 sps:$4 sm:$0xff]   ;;  %v2219_v27 = vld [vmem:[%s2881_s1 + $0x334] ss:$8 sps:$4 sm:$0xff]  }
  0x24   : > { %v2213_v23 = vld [vmem:[%s2881_s1 + $0x324] ss:$8 sps:$4 sm:$0xff]   ;;  %v2211_v25 = vld [vmem:[%s2881_s1 + $0x320] ss:$8 sps:$4 sm:$0xff]   ;;  %v1472_v29 = vrot.slane %v2613_v16, 2 }
  0x25   : > { %345 = vmatpush1.bf16.msra.mxu1 %v2141_v31  ;;  %942 = vmatpush1.bf16.msra.mxu0 %v2142_v32  ;;  %v2250_v28 = vld [vmem:[%s2477_s29 + $0x8] ss:$0 sps:$4 sm:$0xff]   ;;  %v2214_v31 = vld [vmem:[%s2881_s1 + $0x130] ss:$8 sps:$4 sm:$0xff]   ;;  %vm1151_vm2 = vsmask.f32 6400 }
  0x26   : > { %459 = vmatprep.subr.bf16.mxu1 %v2145_v33  ;;  %1087 = vmatprep.subr.bf16.mxu0 %v2148_v34  ;;  %v1473_v30 = vrot.slane %v2250_v28, 2  ;;  %v2217_v32 = vld [vmem:[%s2881_s1 + $0x330] ss:$8 sps:$4 sm:$0xff]   ;;  %v2222_v33 = vld [vmem:[%s2881_s1 + $0x144] ss:$8 sps:$4 sm:$0xff]  }
  0x27   : > { %v2225_v34 = vld [vmem:[%s2881_s1 + $0x344] ss:$8 sps:$4 sm:$0xff]   ;;  %v2244_v4 = vld [vmem:[%s2881_s1 + $0x180] ss:$8 sps:$4 sm:$0xff]   ;;  %v2254_v11 = vld [vmem:[%s2881_s1 + $0x390] ss:$8 sps:$4 sm:$0xff]  }
  0x28   : > { %363 = vmatmul.mubr.bf16.vlgmr.msra.gmra.mrb[0].mxu1 %v2501_v36  ;;  %960 = vmatmul.mubr.bf16.vlgmr.msra.gmra.mrb[0].mxu0 %v2150_v37  ;;  %v2220_v37 = vld [vmem:[%s2881_s1 + $0x140] ss:$8 sps:$4 sm:$0xff]   ;;  %v2246_v61 = vld [vmem:[%s2881_s1 + $0x184] ss:$8 sps:$4 sm:$0xff]  }
  0x29   : > { %460 = vmatpush1.bf16.msra.mxu1 %v2143_v35  ;;  %1088 = vmatpush1.bf16.msra.mxu0 %v2146_v38  ;;  %v2663_v35 = vsel %vm1471_vm1, %v1472_v29, %v1473_v30  ;;  %v2223_v38 = vld [vmem:[%s2881_s1 + $0x340] ss:$8 sps:$4 sm:$0xff]   ;;  %v2259_v12 = vld [vmem:[%s2881_s1 + $0x1a4] ss:$8 sps:$4 sm:$0xff]   ;;  %v2275_v29 = vld [vmem:[%s2881_s1 + $0x1d0] ss:$8 sps:$4 sm:$0xff]  }
  0x2a   : > { %461 = vmatprep.subr.bf16.mxu1 %v2153_v39  ;;  %1089 = vmatprep.subr.bf16.mxu0 %v2156_v40  ;;  %v2228_v39 = vld [vmem:[%s2881_s1 + $0x154] ss:$8 sps:$4 sm:$0xff]   ;;  %v2247_v5 = vld [vmem:[%s2881_s1 + $0x380] ss:$8 sps:$4 sm:$0xff]   ;;  %v2278_v30 = vld [vmem:[%s2881_s1 + $0x3d0] ss:$8 sps:$4 sm:$0xff]  }
  0x2b   : > { %491 = vmatprep.mubr.bf16.mxu1 %v2342_v2  ;;  %1119 = vmatprep.mubr.bf16.mxu0 %v2342_v2  ;;  %v2231_v40 = vld [vmem:[%s2881_s1 + $0x354] ss:$8 sps:$4 sm:$0xff]  }
  0x2d   : > { %462 = vmatpush1.bf16.msra.mxu1 %v2151_v41  ;;  %1090 = vmatpush1.bf16.msra.mxu0 %v2154_v42  ;;  %v526_v41 = vshll.u32 %v2613_v16, 16  ;;  %v2226_v42 = vld [vmem:[%s2881_s1 + $0x150] ss:$8 sps:$4 sm:$0xff]  }
  0x2e   : > { %463 = vmatprep.subr.bf16.mxu1 %v2159_v43  ;;  %1091 = vmatprep.subr.bf16.mxu0 %v2162_v44  ;;  %v2229_v43 = vld [vmem:[%s2881_s1 + $0x350] ss:$8 sps:$4 sm:$0xff]   ;;  %v524_v44 = vshrl.u32 %v2613_v16, 16 }
  0x31   : > { %464 = vmatpush1.bf16.msra.mxu1 %v2157_v45  ;;  %1092 = vmatpush1.bf16.msra.mxu0 %v2160_v46  ;;  %v2234_v45 = vld [vmem:[%s2881_s1 + $0x164] ss:$8 sps:$4 sm:$0xff]   ;;  %v531_v46 = vshll.u32 %v2250_v28, 16 }
  0x32   : > { %465 = vmatprep.subr.bf16.mxu1 %v2165_v47  ;;  %1093 = vmatprep.subr.bf16.mxu0 %v2168_v48  ;;  %v1155_v47 = vshrl.u32 %v2250_v28, 16  ;;  %v2237_v48 = vld [vmem:[%s2881_s1 + $0x364] ss:$8 sps:$4 sm:$0xff]   ;;  %v1313_v28 = vshll.u32 %v2501_v36, 16 }
  0x35   : > { %466 = vmatpush1.bf16.msra.mxu1 %v2163_v49  ;;  %1094 = vmatpush1.bf16.msra.mxu0 %v2166_v50  ;;  %v528_v49 = vrot.slane %v526_v41, 1  ;;  %v2232_v50 = vld [vmem:[%s2881_s1 + $0x160] ss:$8 sps:$4 sm:$0xff]  }
  0x36   : > { %467 = vmatprep.subr.bf16.mxu1 %v2171_v51  ;;  %1095 = vmatprep.subr.bf16.mxu0 %v2174_v52  ;;  %v2235_v51 = vld [vmem:[%s2881_s1 + $0x360] ss:$8 sps:$4 sm:$0xff]   ;;  %v1152_v52 = vrot.slane %v524_v44, 1 }
  0x37   : > { %v529_v62 = vor.u32 %v528_v49, %v524_v44  ;;  %v2287_v44 = vld [vmem:[%s2881_s1 + $0x1f0] ss:$8 sps:$4 sm:$0xff]   ;;  %v2293_v49 = vld [vmem:[%s2881_s1 + $0x400] ss:$8 sps:$4 sm:$0xff]  }
  0x39   : > { %468 = vmatpush1.bf16.msra.mxu1 %v2169_v53  ;;  %1096 = vmatpush1.bf16.msra.mxu0 %v2172_v54  ;;  %v2240_v53 = vld [vmem:[%s2881_s1 + $0x174] ss:$8 sps:$4 sm:$0xff]   ;;  %v1153_v54 = vrot.slane %v526_v41, 2 }
  0x3a   : > { %469 = vmatprep.subr.bf16.mxu1 %v2177_v55  ;;  %1097 = vmatprep.subr.bf16.mxu0 %v2180_v56  ;;  %v1157_v55 = vrot.slane %v1155_v47, 1  ;;  %v1158_v56 = vrot.slane %v531_v46, 2 }
  0x3d   : > { %470 = vmatpush1.bf16.msra.mxu1 %v2175_v58  ;;  %1098 = vmatpush1.bf16.msra.mxu0 %v2178_v59  ;;  %v2243_v58 = vld [vmem:[%s2881_s1 + $0x374] ss:$8 sps:$4 sm:$0xff]   ;;  %v2238_v59 = vld [vmem:[%s2881_s1 + $0x170] ss:$8 sps:$4 sm:$0xff]  }
  0x3e   : > { %471 = vmatprep.subr.bf16.mxu1 %v2183_v60  ;;  %1099 = vmatprep.subr.bf16.mxu0 %v2186_v63  ;;  %v2241_v60 = vld [vmem:[%s2881_s1 + $0x370] ss:$8 sps:$4 sm:$0xff]   ;;  %v533_v63 = vrot.slane %v531_v46, 1 }
  0x40   : > { %v534_v6 = vsel %vm522_vm0, %v529_v62, %v533_v63  ;;  %v2317_v62 = vld [vmem:[%s2881_s1 + $0x474] ss:$8 sps:$4 sm:$0xff]   ;;  %v2315_v63 = vld [vmem:[%s2881_s1 + $0x470] ss:$8 sps:$4 sm:$0xff]  }
  0x41   : > { %472 = vmatpush1.bf16.msra.mxu1 %v2181_v0  ;;  %1100 = vmatpush1.bf16.msra.mxu0 %v2184_v1  ;;  %v1154_v0 = vor.u32 %v1153_v54, %v1152_v52  ;;  %v1159_v1 = vor.u32 %v1158_v56, %v1157_v55  ;;  %v2297_v52 = vld [vmem:[%s2881_s1 + $0x410] ss:$8 sps:$4 sm:$0xff]   ;;  %v2300_v54 = vld [vmem:[%s2881_s1 + $0x420] ss:$8 sps:$4 sm:$0xff]   ;;  %v2308_v55 = vld [vmem:[%s2881_s1 + $0x444] ss:$8 sps:$4 sm:$0xff]  }
  0x42   : > { %473 = vmatprep.subr.bf16.mxu1 %v2189_v3  ;;  %1101 = vmatprep.subr.bf16.mxu0 %v2192_v7  ;;  %v2249_v3 = vld [vmem:[%s2881_s1 + $0x384] ss:$8 sps:$4 sm:$0xff]   ;;  %v2306_v56 = vld [vmem:[%s2881_s1 + $0x440] ss:$8 sps:$4 sm:$0xff]  }
  0x43   : > { %v1160_v7 = vsel %vm1151_vm2, %v1154_v0, %v1159_v1 }
  0x45   : > { %474 = vmatpush1.bf16.msra.mxu1 %v2187_v8  ;;  %1102 = vmatpush1.bf16.msra.mxu0 %v2190_v9  ;;  %v2253_v8 = vld [vmem:[%s2881_s1 + $0x194] ss:$8 sps:$4 sm:$0xff]  }
  0x46   : > { %616 = vmatprep.subr.bf16.mxu1 %v2195_v10  ;;  %1242 = vmatprep.subr.bf16.mxu0 %v2198_v13  ;;  %v2256_v9 = vld [vmem:[%s2881_s1 + $0x394] ss:$8 sps:$4 sm:$0xff]   ;;  %v2251_v10 = vld [vmem:[%s2881_s1 + $0x190] ss:$8 sps:$4 sm:$0xff]   ;;  %v2262_v13 = vld [vmem:[%s2881_s1 + $0x3a4] ss:$8 sps:$4 sm:$0xff]  }
  0x48   : > { %492 = vmatmul.mubr.bf16.vlgmr.msra.gmra.mrb[0].mxu1 %v2613_v16  ;;  %1120 = vmatmul.mubr.bf16.vlgmr.msra.gmra.mrb[0].mxu0 %v1005_v17  ;;  %v2265_v16 = vld [vmem:[%s2881_s1 + $0x1b4] ss:$8 sps:$4 sm:$0xff]  }
  0x49   : > { %617 = vmatpush1.bf16.msra.mxu1 %v2193_v14  ;;  %1243 = vmatpush1.bf16.msra.mxu0 %v2196_v15  ;;  %v2257_v14 = vld [vmem:[%s2881_s1 + $0x1a0] ss:$8 sps:$4 sm:$0xff]   ;;  %v2268_v17 = vld [vmem:[%s2881_s1 + $0x3b4] ss:$8 sps:$4 sm:$0xff]  }
  0x4a   : > { %618 = vmatprep.subr.bf16.mxu1 %v2204_v18  ;;  %1244 = vmatprep.subr.bf16.mxu0 %v2207_v19  ;;  %v2260_v15 = vld [vmem:[%s2881_s1 + $0x3a0] ss:$8 sps:$4 sm:$0xff]   ;;  %v2263_v18 = vld [vmem:[%s2881_s1 + $0x1b0] ss:$8 sps:$4 sm:$0xff]  }
  0x4b   : > { %648 = vmatprep.mubr.bf16.mxu1 %v2342_v2  ;;  %1274 = vmatprep.mubr.bf16.mxu0 %v2342_v2  ;;  %v2266_v19 = vld [vmem:[%s2881_s1 + $0x3b0] ss:$8 sps:$4 sm:$0xff]  }
  0x4d   : > { %619 = vmatpush1.bf16.msra.mxu1 %v2202_v20  ;;  %1245 = vmatpush1.bf16.msra.mxu0 %v2205_v21  ;;  %v2271_v20 = vld [vmem:[%s2881_s1 + $0x1c4] ss:$8 sps:$4 sm:$0xff]  }
  0x4e   : > { %620 = vmatprep.subr.bf16.mxu1 %v2210_v22  ;;  %1246 = vmatprep.subr.bf16.mxu0 %v2213_v23  ;;  %v2274_v21 = vld [vmem:[%s2881_s1 + $0x3c4] ss:$8 sps:$4 sm:$0xff]   ;;  %v2269_v22 = vld [vmem:[%s2881_s1 + $0x1c0] ss:$8 sps:$4 sm:$0xff]  }
  0x4f   : > { %v2272_v23 = vld [vmem:[%s2881_s1 + $0x3c0] ss:$8 sps:$4 sm:$0xff]  }
  0x51   : > { %621 = vmatpush1.bf16.msra.mxu1 %v2208_v24  ;;  %1247 = vmatpush1.bf16.msra.mxu0 %v2211_v25  ;;  %v2296_v24 = vld [vmem:[%s2477_s29 + $0x20] ss:$0 sps:$4 sm:$0xff]   ;;  %v2277_v25 = vld [vmem:[%s2881_s1 + $0x1d4] ss:$8 sps:$4 sm:$0xff]  }
  0x52   : > { %622 = vmatprep.subr.bf16.mxu1 %v2216_v26  ;;  %1248 = vmatprep.subr.bf16.mxu0 %v2219_v27  ;;  %v2280_v26 = vld [vmem:[%s2881_s1 + $0x3d4] ss:$8 sps:$4 sm:$0xff]   ;;  %v1310_v27 = vshrl.u32 %v2501_v36, 16  ;;  %v2286_v36 = vld [vmem:[%s2881_s1 + $0x3e4] ss:$8 sps:$4 sm:$0xff]  }
  0x55   : > { %623 = vmatpush1.bf16.msra.mxu1 %v2214_v31  ;;  %1249 = vmatpush1.bf16.msra.mxu0 %v2217_v32  ;;  %v1318_v31 = vshrl.u32 %v2296_v24, 16  ;;  %v1321_v32 = vshll.u32 %v2296_v24, 16 }
  0x56   : > { %624 = vmatprep.subr.bf16.mxu1 %v2222_v33  ;;  %1250 = vmatprep.subr.bf16.mxu0 %v2225_v34  ;;  %v2283_v33 = vld [vmem:[%s2881_s1 + $0x1e4] ss:$8 sps:$4 sm:$0xff]   ;;  %v1312_v34 = vrot.slane %v1310_v27, 1 }
  0x57   : > { %v1323_v41 = vrot.slane %v1321_v32, 2 }
  0x59   : > { %625 = vmatpush1.bf16.msra.mxu1 %v2220_v37  ;;  %1251 = vmatpush1.bf16.msra.mxu0 %v2223_v38  ;;  %v1315_v37 = vrot.slane %v1313_v28, 2  ;;  %v2281_v38 = vld [vmem:[%s2881_s1 + $0x1e0] ss:$8 sps:$4 sm:$0xff]  }
  0x5a   : > { %626 = vmatprep.subr.bf16.mxu1 %v2228_v39  ;;  %1252 = vmatprep.subr.bf16.mxu0 %v2231_v40  ;;  %v2284_v39 = vld [vmem:[%s2881_s1 + $0x3e0] ss:$8 sps:$4 sm:$0xff]   ;;  %v1320_v40 = vrot.slane %v1318_v31, 1 }
  0x5b   : > { %v1316_v46 = vor.u32 %v1315_v37, %v1312_v34 }
  0x5c   : > { %v1324_v47 = vor.u32 %v1323_v41, %v1320_v40 }
  0x5d   : > { %627 = vmatpush1.bf16.msra.mxu1 %v2226_v42  ;;  %1253 = vmatpush1.bf16.msra.mxu0 %v2229_v43  ;;  %v2289_v42 = vld [vmem:[%s2881_s1 + $0x1f4] ss:$8 sps:$4 sm:$0xff]  }
  0x5e   : > { %628 = vmatprep.subr.bf16.mxu1 %v2234_v45  ;;  %1254 = vmatprep.subr.bf16.mxu0 %v2237_v48  ;;  %v2292_v43 = vld [vmem:[%s2881_s1 + $0x3f4] ss:$8 sps:$4 sm:$0xff]   ;;  %v2290_v45 = vld [vmem:[%s2881_s1 + $0x3f0] ss:$8 sps:$4 sm:$0xff]   ;;  %v2295_v48 = vld [vmem:[%s2881_s1 + $0x404] ss:$8 sps:$4 sm:$0xff]  }
  0x61   : > { %629 = vmatpush1.bf16.msra.mxu1 %v2232_v50  ;;  %1255 = vmatpush1.bf16.msra.mxu0 %v2235_v51  ;;  %v1325_v50 = vsel %vm1151_vm2, %v1316_v46, %v1324_v47  ;;  %v2299_v51 = vld [vmem:[%s2881_s1 + $0x414] ss:$8 sps:$4 sm:$0xff]  }
  0x62   : > { %630 = vmatprep.subr.bf16.mxu1 %v2240_v53  ;;  %1256 = vmatprep.subr.bf16.mxu0 %v2243_v58  ;;  %v2302_v53 = vld [vmem:[%s2881_s1 + $0x424] ss:$8 sps:$4 sm:$0xff]   ;;  %v2311_v58 = vld [vmem:[%s2881_s1 + $0x454] ss:$8 sps:$4 sm:$0xff]  }
  0x65   : > { %631 = vmatpush1.bf16.msra.mxu1 %v2238_v59  ;;  %1257 = vmatpush1.bf16.msra.mxu0 %v2241_v60  ;;  %v2309_v59 = vld [vmem:[%s2881_s1 + $0x450] ss:$8 sps:$4 sm:$0xff]   ;;  %v2314_v60 = vld [vmem:[%s2881_s1 + $0x464] ss:$8 sps:$4 sm:$0xff]  }
  0x66   : > { %772 = vmatprep.subr.bf16.mxu1 %v2246_v61  ;;  %1407 = vmatprep.subr.bf16.mxu0 %v2249_v3  ;;  %v2312_v61 = vld [vmem:[%s2881_s1 + $0x460] ss:$8 sps:$4 sm:$0xff]  }
  0x68   : > { %649 = vmatmul.mubr.bf16.vlgmr.msra.gmra.mrb[0].mxu1 %v534_v6  ;;  %1275 = vmatmul.mubr.bf16.vlgmr.msra.gmra.mrb[0].mxu0 %v1160_v7 }
  0x69   : > { %773 = vmatpush1.bf16.msra.mxu1 %v2244_v4  ;;  %1408 = vmatpush1.bf16.msra.mxu0 %v2247_v5  ;;  %v1605_v5 = vlaneseq }
  0x6a   : > { %774 = vmatprep.subr.bf16.mxu1 %v2253_v8  ;;  %1409 = vmatprep.subr.bf16.mxu0 %v2256_v9  ;;  %v1603_v8 = vld [vmem:[%s2882_s2] sm:$0x3] }
  0x6b   : > { %804 = vmatprep.mubr.bf16.mxu1 %v2342_v2  ;;  %1439 = vmatprep.mubr.bf16.mxu0 %v2342_v2  ;;  %v1606_v6 = vshrl.u32 %v1605_v5, 7 }
  0x6d   : > { %775 = vmatpush1.bf16.msra.mxu1 %v2251_v10  ;;  %1410 = vmatpush1.bf16.msra.mxu0 %v2254_v11  ;;  %v1607_v7 = vsub.s32 0, %v1606_v6  ;;  %v1611_v9 = vsub.s32 1, %v1606_v6 }
  0x6e   : > { %776 = vmatprep.subr.bf16.mxu1 %v2259_v12  ;;  %1411 = vmatprep.subr.bf16.mxu0 %v2262_v13 }
  0x6f   : > { %v1608_v10 = vrot.slane %v1603_v8, %v1607_v7  ;;  %v1612_v12 = vrot.slane %v1603_v8, %v1611_v9 }
  0x71   : > { %777 = vmatpush1.bf16.msra.mxu1 %v2257_v14  ;;  %1412 = vmatpush1.bf16.msra.mxu0 %v2260_v15 }
  0x72   : > { %778 = vmatprep.subr.bf16.mxu1 %v2265_v16  ;;  %1413 = vmatprep.subr.bf16.mxu0 %v2268_v17 }
  0x75   : > { %779 = vmatpush1.bf16.msra.mxu1 %v2263_v18  ;;  %1414 = vmatpush1.bf16.msra.mxu0 %v2266_v19 }
  0x76   : > { %780 = vmatprep.subr.bf16.mxu1 %v2271_v20  ;;  %1415 = vmatprep.subr.bf16.mxu0 %v2274_v21 }
  0x79   : > { %781 = vmatpush1.bf16.msra.mxu1 %v2269_v22  ;;  %1416 = vmatpush1.bf16.msra.mxu0 %v2272_v23 }
  0x7a   : > { %782 = vmatprep.subr.bf16.mxu1 %v2277_v25  ;;  %1417 = vmatprep.subr.bf16.mxu0 %v2280_v26 }
  0x7d   : > { %783 = vmatpush1.bf16.msra.mxu1 %v2275_v29  ;;  %1418 = vmatpush1.bf16.msra.mxu0 %v2278_v30 }
  0x7e   : > { %784 = vmatprep.subr.bf16.mxu1 %v2283_v33  ;;  %1419 = vmatprep.subr.bf16.mxu0 %v2286_v36 }
  0x81   : > { %785 = vmatpush1.bf16.msra.mxu1 %v2281_v38  ;;  %1420 = vmatpush1.bf16.msra.mxu0 %v2284_v39 }
  0x82   : > { %786 = vmatprep.subr.bf16.mxu1 %v2289_v42  ;;  %1421 = vmatprep.subr.bf16.mxu0 %v2292_v43 }
  0x85   : > { %787 = vmatpush1.bf16.msra.mxu1 %v2287_v44  ;;  %1422 = vmatpush1.bf16.msra.mxu0 %v2290_v45 }
  0x86   : > { %1556 = vmatprep.subr.bf16.mxu0 %v2295_v48 }
  0x88   : > { %805 = vmatmul.mubr.bf16.vlgmr.msra.gmra.mrb[0].mxu1 %v2565_v57  ;;  %1440 = vmatmul.mubr.bf16.vlgmr.msra.gmra.mrb[0].mxu0 %v1325_v50  ;;  %v2305_v57 = vld [vmem:[%s2881_s1 + $0x434] ss:$8 sps:$4 sm:$0xff]  }
  0x89   : > { %1557 = vmatpush1.bf16.msra.mxu0 %v2293_v49  ;;  %1588 = vmatprep.mubr.bf16.mxu0 %v2342_v2  ;;  %v2303_v2 = vld [vmem:[%s2881_s1 + $0x430] ss:$8 sps:$4 sm:$0xff]  }
  0x8a   : > { %1558 = vmatprep.subr.bf16.mxu0 %v2299_v51 }
  0x8d   : > { %1559 = vmatpush1.bf16.msra.mxu0 %v2297_v52 }
  0x8e   : > { %1560 = vmatprep.subr.bf16.mxu0 %v2302_v53 }
  0x91   : > { %1561 = vmatpush1.bf16.msra.mxu0 %v2300_v54 }
  0x92   : > { %1562 = vmatprep.subr.bf16.mxu0 %v2305_v57 }
  0x95   : > { %1563 = vmatpush1.bf16.msra.mxu0 %v2303_v2 }
  0x96   : > { %1564 = vmatprep.subr.bf16.mxu0 %v2308_v55 }
  0x99   : > { %1565 = vmatpush1.bf16.msra.mxu0 %v2306_v56 }
  0x9a   : > { %1566 = vmatprep.subr.bf16.mxu0 %v2311_v58 }
  0x9d   : > { %1567 = vmatpush1.bf16.msra.mxu0 %v2309_v59 }
  0x9e   : > { %1568 = vmatprep.subr.bf16.mxu0 %v2314_v60 }
  0xa1   : > { %1569 = vmatpush1.bf16.msra.mxu0 %v2312_v61 }
  0xa2   : > { %1570 = vmatprep.subr.bf16.mxu0 %v2317_v62 }
  0xa5   : > { %1571 = vmatpush1.bf16.msra.mxu0 %v2315_v63 }
  0xa8   : > { %1589 = vmatmul.mubr.bf16.vlgmr.msra.gmra.mrb[0].mxu0 %v2663_v35 }
 0x15b   : > { %v806_v0 = vpop.f32.mrb[0].mxu1 }
 0x15c   : > { %v808_v1 = vpop.f32.mrb[1].mxu1 }
 0x15d   : > { %v810_v3 = vpop.f32.mrb[2].mxu1 }
 0x15e   : > { %v812_v4 = vpop.f32.mrb[3].mxu1 }
 0x17b   : > { %v1590_v11 = vpop.f32.mrb[0].mxu0 }
 0x17c   : > { %v2037_v13 = vadd.f32 %v1590_v11, %v806_v0  ;;  %v1592_v14 = vpop.f32.mrb[1].mxu0 }
 0x17d   : > { %v2038_v15 = vadd.f32 %v1592_v14, %v808_v1  ;;  %v1594_v35 = vpop.f32.mrb[2].mxu0 }
 0x17e   : > { %v1615_v16 = vadd.f32 %v2037_v13, %v1608_v10  ;;  %v2039_v17 = vadd.f32 %v1594_v35, %v810_v3  ;;  %v1596_v18 = vpop.f32.mrb[3].mxu0 }
 0x17f   : > { %v1616_v19 = vadd.f32 %v2038_v15, %v1612_v12  ;;  %v2040_v20 = vadd.f32 %v1596_v18, %v812_v4 }
 0x180   : > { %v1619_v21 = vmax.f32 %v1615_v16, 0.0  ;;  %v1617_v22 = vadd.f32 %v2039_v17, %v1608_v10 }
 0x181   : > { %v1620_v23 = vmax.f32 %v1616_v19, 0.0  ;;  %v1618_v24 = vadd.f32 %v2040_v20, %v1612_v12 }
 0x182   : > { %v1621_v25 = vmax.f32 %v1617_v22, 0.0 }
 0x183   : > { %v2035_v26 = vpack.c.bf16 %v1620_v23, %v1619_v21  ;;  %v1622_v27 = vmax.f32 %v1618_v24, 0.0 }
 0x185   : > { %1635 = vst [vmem:[%s194_s21] sm:$0xff] %v2035_v26  ;;  %v2036_v28 = vpack.c.bf16 %v1622_v27, %v1621_v25 }
 0x187   : > { %1636 = vst [vmem:[%s194_s21 + $0x8] sm:$0xff] %v2036_v28 }
 0x188 PF: > { %s13_s14 = sadd.s32 1, %s2340_s14   ;;  %s2884_s12 = smov %s2336_s13 }
 0x189   : > { %p10_p5 = scmp.ge.s32.totalorder %s13_s14, 4   ;;  %s2885_s13 = smov %s2887_s15 }
 0x18b   :  { %12 = sbr.rel (!%p10_p5) target bundleno = 2 (0x2), region = 74 }

// kernel: resnet_backbone_forward.49
= control target key start
LH: loop header
LB: loop body
LE: loop exit
PB: predicated region body
PF: predicated region fallthrough
CT: control target
= control target key end

     0   :  { %s3826_s15 = smov 0   ;;  %s3828_s16 = smov 0   ;;  %s4831_s0 = inlined_call_operand.vmem [shape: bf16[2,1,48,256], index: 0, kind: input, shape index: {}]   ;;  %s4832_s1 = inlined_call_operand.vmem [shape: bf16[9,256,256], index: 1, kind: input, shape index: {}]   ;;  %s4833_s2 = inlined_call_operand.vmem [shape: f32[1,256], index: 2, kind: input, shape index: {}]   ;;  %s4834_s3 = inlined_call_operand.vmem [shape: bf16[2,16,256], index: 3, kind: input, shape index: {}]   ;;  %s4835_s4 = inlined_call_operand.vmem [shape: bf16[2,16,256], index: 4, kind: output, shape index: {}]  }
   0x1   :  { %s3830_s17 = smov 0  }
   0x2 LB: > { %s26_s18 = sadd.s32 1, %s3795_s16  ;;  %p2714_p0 = scmp.ge.s32.totalorder %s3799_s17, 1  ;;  %s3799_s17 = sphi %s3830_s17, %s14_s17   ;;  %s3795_s16 = sphi %s3828_s16, %s4837_s16   ;;  %s3791_s15 = sphi %s3826_s15, %s4836_s15  }
   0x3   : > { %p28_p1 = scmp.ge.s32.totalorder %s26_s18, 2  ;;  %p194_p2 = scmp.lt.s32.totalorder %s3799_s17, 3 }
   0x5   : > { %s4839_s18 = smov (%p28_p1, %s26_s18), 0  ;;  %p195_p3 = pnand %p2714_p0, %p194_p2 }
   0x6   : > { %v3337_v0 = vld [vmem:[%s4832_s1 + $0x104] ss:$8 sps:$4 sm:$0xff] (!%p195_p3)   ;;  %v3341_v2 = vld [vmem:[%s4832_s1 + $0x100] ss:$8 sps:$4 sm:$0xff] (!%p195_p3)   ;;  %v3343_v4 = vld [vmem:[%s4832_s1 + $0x114] ss:$8 sps:$4 sm:$0xff] (!%p195_p3)  }
   0x7   : > { %198 = sbr.rel (%p195_p3) target bundleno = 554 (0x22a), region = 36  ;;  %v3339_v1 = vld [vmem:[%s4832_s1 + $0x404] ss:$8 sps:$4 sm:$0xff] (!%p195_p3)   ;;  %537 = vmatprep.subr.bf16.mxu1 (!%p195_p3), %v3337_v0  ;;  %v3342_v3 = vld [vmem:[%s4832_s1 + $0x400] ss:$8 sps:$4 sm:$0xff] (!%p195_p3)   ;;  %p235_p4 = scmp.lt.s32.totalorder (!%p195_p3), %s3791_s15, 1 }
   0x8   : > { %1497 = vmatprep.subr.bf16.mxu0 (!%p195_p3), %v3339_v1  ;;  %538 = vmatpush1.bf16.msra.mxu1 (!%p195_p3), %v3341_v2  ;;  %v3345_v5 = vld [vmem:[%s4832_s1 + $0x414] ss:$8 sps:$4 sm:$0xff] (!%p195_p3)   ;;  %v3347_v6 = vld [vmem:[%s4832_s1 + $0x110] ss:$8 sps:$4 sm:$0xff] (!%p195_p3)   ;;  %v3349_v8 = vld [vmem:[%s4832_s1 + $0x124] ss:$8 sps:$4 sm:$0xff] (!%p195_p3)  }
   0x9   : > { %1498 = vmatpush1.bf16.msra.mxu0 (!%p195_p3), %v3342_v3  ;;  %539 = vmatprep.subr.bf16.mxu1 (!%p195_p3), %v3343_v4  ;;  %v3348_v7 = vld [vmem:[%s4832_s1 + $0x410] ss:$8 sps:$4 sm:$0xff] (!%p195_p3)   ;;  %v3351_v9 = vld [vmem:[%s4832_s1 + $0x424] ss:$8 sps:$4 sm:$0xff] (!%p195_p3)   ;;  %v3353_v10 = vld [vmem:[%s4832_s1 + $0x120] ss:$8 sps:$4 sm:$0xff] (!%p195_p3)  }
   0xa   : > { %1499 = vmatprep.subr.bf16.mxu0 (!%p195_p3), %v3345_v5  ;;  %v3354_v11 = vld [vmem:[%s4832_s1 + $0x420] ss:$8 sps:$4 sm:$0xff] (!%p195_p3)   ;;  %v3355_v12 = vld [vmem:[%s4832_s1 + $0x134] ss:$8 sps:$4 sm:$0xff] (!%p195_p3)   ;;  %v3359_v14 = vld [vmem:[%s4832_s1 + $0x130] ss:$8 sps:$4 sm:$0xff] (!%p195_p3)  }
   0xb   : > { %v3357_v13 = vld [vmem:[%s4832_s1 + $0x434] ss:$8 sps:$4 sm:$0xff] (!%p195_p3)   ;;  %v3360_v15 = vld [vmem:[%s4832_s1 + $0x430] ss:$8 sps:$4 sm:$0xff] (!%p195_p3)   ;;  %v3361_v16 = vld [vmem:[%s4832_s1 + $0x144] ss:$8 sps:$4 sm:$0xff] (!%p195_p3)  }
   0xc   : > { %540 = vmatpush1.bf16.msra.mxu1 (!%p195_p3), %v3347_v6  ;;  %v3363_v17 = vld [vmem:[%s4832_s1 + $0x444] ss:$8 sps:$4 sm:$0xff] (!%p195_p3)   ;;  %v3365_v18 = vld [vmem:[%s4832_s1 + $0x140] ss:$8 sps:$4 sm:$0xff] (!%p195_p3)   ;;  %v3367_v20 = vld [vmem:[%s4832_s1 + $0x154] ss:$8 sps:$4 sm:$0xff] (!%p195_p3)  }
   0xd   : > { %1500 = vmatpush1.bf16.msra.mxu0 (!%p195_p3), %v3348_v7  ;;  %541 = vmatprep.subr.bf16.mxu1 (!%p195_p3), %v3349_v8  ;;  %v3366_v19 = vld [vmem:[%s4832_s1 + $0x440] ss:$8 sps:$4 sm:$0xff] (!%p195_p3)   ;;  %v3369_v21 = vld [vmem:[%s4832_s1 + $0x454] ss:$8 sps:$4 sm:$0xff] (!%p195_p3)   ;;  %v3371_v22 = vld [vmem:[%s4832_s1 + $0x150] ss:$8 sps:$4 sm:$0xff] (!%p195_p3)  }
   0xe   : > { %1501 = vmatprep.subr.bf16.mxu0 %v3351_v9  ;;  %v3372_v23 = vld [vmem:[%s4832_s1 + $0x450] ss:$8 sps:$4 sm:$0xff]   ;;  %v3373_v24 = vld [vmem:[%s4832_s1 + $0x164] ss:$8 sps:$4 sm:$0xff]   ;;  %v3377_v26 = vld [vmem:[%s4832_s1 + $0x160] ss:$8 sps:$4 sm:$0xff]  }
   0xf   : > { %v3375_v25 = vld [vmem:[%s4832_s1 + $0x464] ss:$8 sps:$4 sm:$0xff]   ;;  %v3378_v27 = vld [vmem:[%s4832_s1 + $0x460] ss:$8 sps:$4 sm:$0xff]   ;;  %v3379_v28 = vld [vmem:[%s4832_s1 + $0x174] ss:$8 sps:$4 sm:$0xff]  }
  0x10   : > { %542 = vmatpush1.bf16.msra.mxu1 %v3353_v10  ;;  %v3381_v29 = vld [vmem:[%s4832_s1 + $0x474] ss:$8 sps:$4 sm:$0xff]   ;;  %v3383_v30 = vld [vmem:[%s4832_s1 + $0x170] ss:$8 sps:$4 sm:$0xff]   ;;  %v3385_v32 = vld [vmem:[%s4832_s1 + $0x184] ss:$8 sps:$4 sm:$0xff]  }
  0x11   : > { %1502 = vmatpush1.bf16.msra.mxu0 %v3354_v11  ;;  %543 = vmatprep.subr.bf16.mxu1 %v3355_v12  ;;  %v3384_v31 = vld [vmem:[%s4832_s1 + $0x470] ss:$8 sps:$4 sm:$0xff]   ;;  %v3387_v33 = vld [vmem:[%s4832_s1 + $0x484] ss:$8 sps:$4 sm:$0xff]   ;;  %v3389_v34 = vld [vmem:[%s4832_s1 + $0x180] ss:$8 sps:$4 sm:$0xff]  }
  0x12   : > { %1503 = vmatprep.subr.bf16.mxu0 %v3357_v13  ;;  %v3390_v35 = vld [vmem:[%s4832_s1 + $0x480] ss:$8 sps:$4 sm:$0xff]   ;;  %s4841_s15 = smov (!%p235_p4, %s3791_s15), 1  ;;  %v3391_v36 = vld [vmem:[%s4832_s1 + $0x194] ss:$8 sps:$4 sm:$0xff]   ;;  %vm1577_vm2 = vcmask 1044480  }
  0x13   : > { %v3393_v37 = vld [vmem:[%s4832_s1 + $0x494] ss:$8 sps:$4 sm:$0xff]   ;;  %v3395_v38 = vld [vmem:[%s4832_s1 + $0x190] ss:$8 sps:$4 sm:$0xff]   ;;  %s3312_s5 = smul.u32 48, %s4841_s15  ;;  %vm818_vm3 = vcmask 1046528  }
  0x14   : > { %544 = vmatpush1.bf16.msra.mxu1 %v3359_v14  ;;  %v3396_v39 = vld [vmem:[%s4832_s1 + $0x490] ss:$8 sps:$4 sm:$0xff]   ;;  %v3397_v40 = vld [vmem:[%s4832_s1 + $0x1a4] ss:$8 sps:$4 sm:$0xff]   ;;  %v3401_v42 = vld [vmem:[%s4832_s1 + $0x1a0] ss:$8 sps:$4 sm:$0xff]  }
  0x15   : > { %1504 = vmatpush1.bf16.msra.mxu0 %v3360_v15  ;;  %545 = vmatprep.subr.bf16.mxu1 %v3361_v16  ;;  %v3399_v41 = vld [vmem:[%s4832_s1 + $0x4a4] ss:$8 sps:$4 sm:$0xff]   ;;  %v3402_v43 = vld [vmem:[%s4832_s1 + $0x4a0] ss:$8 sps:$4 sm:$0xff]   ;;  %s3986_s22 = scalar_lea.vmem %s4831_s0, %s3312_s5  ;;  %v3403_v44 = vld [vmem:[%s4832_s1 + $0x1b4] ss:$8 sps:$4 sm:$0xff]  }
  0x16   : > { %1505 = vmatprep.subr.bf16.mxu0 %v3363_v17  ;;  %v3405_v45 = vld [vmem:[%s4832_s1 + $0x4b4] ss:$8 sps:$4 sm:$0xff]   ;;  %v3407_v46 = vld [vmem:[%s4832_s1 + $0x1b0] ss:$8 sps:$4 sm:$0xff]   ;;  %v268_v47 = vld [vmem:[%s3986_s22] sm:$0xff]  ;;  %vm1067_vm4 = vcmask 1045504  }
  0x17   : > { %v3999_v48 = vld [vmem:[%s3986_s22 + $0x8] sm:$0xff]  ;;  %v4002_v49 = vld [vmem:[%s3986_s22 + $0x10] sm:$0xff]  ;;  %vm350_vm0 = vsmask.f32 7424  ;;  %vm1316_vm1 = vsmask.f32 5376 }
  0x18   : > { %546 = vmatpush1.bf16.msra.mxu1 %v3365_v18  ;;  %v3408_v50 = vld [vmem:[%s4832_s1 + $0x4b0] ss:$8 sps:$4 sm:$0xff]   ;;  %v3409_v51 = vld [vmem:[%s4832_s1 + $0x1c4] ss:$8 sps:$4 sm:$0xff]   ;;  %v4011_v52 = vcombine.high %v268_v47, %v3999_v48  ;;  %v4015_v53 = vcombine.high %v4002_v49, %v4002_v49  ;;  %v3413_v59 = vld [vmem:[%s4832_s1 + $0x1c0] ss:$8 sps:$4 sm:$0xff]   ;;  %v4028_v60 = vcombine.low %v268_v47, %v3999_v48  ;;  %v4032_v61 = vcombine.low %v4002_v49, %v4002_v49 }
  0x19   : > { %1506 = vmatpush1.bf16.msra.mxu0 %v3366_v19  ;;  %547 = vmatprep.subr.bf16.mxu1 %v3367_v20  ;;  %v3411_v54 = vld [vmem:[%s4832_s1 + $0x4c4] ss:$8 sps:$4 sm:$0xff]   ;;  %v3414_v62 = vld [vmem:[%s4832_s1 + $0x4c0] ss:$8 sps:$4 sm:$0xff]   ;;  %v3415_v3 = vld [vmem:[%s4832_s1 + $0x1d4] ss:$8 sps:$4 sm:$0xff]  }
  0x1a   : > { %1507 = vmatprep.subr.bf16.mxu0 %v3369_v21  ;;  %v364_v55 = vshrl.u32 %v4011_v52, 16  ;;  %v366_v56 = vshll.u32 %v4011_v52, 16  ;;  %v371_v57 = vshll.u32 %v4015_v53, 16  ;;  %v1329_v58 = vshrl.u32 %v4015_v53, 16  ;;  %v3417_v4 = vld [vmem:[%s4832_s1 + $0x4d4] ss:$8 sps:$4 sm:$0xff]  }
  0x1b   : > { %v3419_v9 = vld [vmem:[%s4832_s1 + $0x1d0] ss:$8 sps:$4 sm:$0xff]   ;;  %v354_v11 = vshll.u32 %v4028_v60, 16  ;;  %v352_v14 = vshrl.u32 %v4028_v60, 16  ;;  %v359_v15 = vshll.u32 %v4032_v61, 16  ;;  %v1320_v16 = vshrl.u32 %v4032_v61, 16 }
  0x1c   : > { %548 = vmatpush1.bf16.msra.mxu1 %v3371_v22  ;;  %v368_v63 = vrot.slane %v366_v56, 1  ;;  %v373_v0 = vrot.slane %v371_v57, 1  ;;  %v1326_v1 = vrot.slane %v364_v55, 2  ;;  %v1327_v2 = vrot.slane %v366_v56, 3  ;;  %v3420_v12 = vld [vmem:[%s4832_s1 + $0x4d0] ss:$8 sps:$4 sm:$0xff]  }
  0x1d   : > { %1508 = vmatpush1.bf16.msra.mxu0 %v3372_v23  ;;  %549 = vmatprep.subr.bf16.mxu1 %v3373_v24  ;;  %v1331_v5 = vrot.slane %v1329_v58, 2  ;;  %v1332_v6 = vrot.slane %v371_v57, 3  ;;  %v3421_v17 = vld [vmem:[%s4832_s1 + $0x1e4] ss:$8 sps:$4 sm:$0xff]   ;;  %v3425_v20 = vld [vmem:[%s4832_s1 + $0x1e0] ss:$8 sps:$4 sm:$0xff]  }
  0x1e   : > { %1509 = vmatprep.subr.bf16.mxu0 %v3375_v25  ;;  %v369_v7 = vor.u32 %v368_v63, %v364_v55  ;;  %v1328_v8 = vor.u32 %v1327_v2, %v1326_v1  ;;  %v3423_v18 = vld [vmem:[%s4832_s1 + $0x4e4] ss:$8 sps:$4 sm:$0xff]   ;;  %v3426_v21 = vld [vmem:[%s4832_s1 + $0x4e0] ss:$8 sps:$4 sm:$0xff]   ;;  %v356_v22 = vrot.slane %v354_v11, 1  ;;  %v1317_v23 = vrot.slane %v352_v14, 2 }
  0x1f   : > { %v1333_v10 = vor.u32 %v1332_v6, %v1331_v5  ;;  %v1318_v24 = vrot.slane %v354_v11, 3  ;;  %v1322_v25 = vrot.slane %v1320_v16, 2  ;;  %v3452_v55 = vld [vmem:[%s4832_s1 + $0x520] ss:$8 sps:$4 sm:$0xff]   ;;  %v3457_v56 = vld [vmem:[%s4832_s1 + $0x34] ss:$8 sps:$4 sm:$0xff]  }
  0x20   : > { %550 = vmatpush1.bf16.msra.mxu1 %v3377_v26  ;;  %v374_v13 = vsel %vm350_vm0, %v369_v7, %v373_v0  ;;  %v1323_v26 = vrot.slane %v359_v15, 3  ;;  %v3460_v57 = vld [vmem:[%s4832_s1 + $0x534] ss:$8 sps:$4 sm:$0xff]   ;;  %v3455_v58 = vld [vmem:[%s4832_s1 + $0x30] ss:$8 sps:$4 sm:$0xff]   ;;  %s3276_s13 = sshll.u32 %s4841_s15, 4 }
  0x21   : > { %1510 = vmatpush1.bf16.msra.mxu0 %v3378_v27  ;;  %551 = vmatprep.subr.bf16.mxu1 %v3379_v28  ;;  %v1334_v19 = vsel %vm1316_vm1, %v1328_v8, %v1333_v10  ;;  %v3427_v27 = vld [vmem:[%s4832_s1 + $0x1f4] ss:$8 sps:$4 sm:$0xff]   ;;  %v3466_v63 = vld [vmem:[%s4832_s1 + $0x544] ss:$8 sps:$4 sm:$0xff]   ;;  %v3461_v0 = vld [vmem:[%s4832_s1 + $0x40] ss:$8 sps:$4 sm:$0xff]   ;;  %s249_s20 = scalar_lea.vmem %s4834_s3, %s3276_s13  ;;  %s260_s26 = scalar_lea.vmem %s4835_s4, %s3276_s13 }
  0x22   : > { %1511 = vmatprep.subr.bf16.mxu0 %v3381_v29  ;;  %569 = vmatprep.mubr.bf16.mxu1 %v374_v13  ;;  %v3429_v28 = vld [vmem:[%s4832_s1 + $0x4f4] ss:$8 sps:$4 sm:$0xff]   ;;  %v3431_v29 = vld [vmem:[%s4832_s1 + $0x1f0] ss:$8 sps:$4 sm:$0xff]   ;;  %v3464_v1 = vld [vmem:[%s4832_s1 + $0x540] ss:$8 sps:$4 sm:$0xff]  }
  0x23   : > { %1529 = vmatprep.mubr.bf16.mxu0 %v1334_v19  ;;  %v3469_v2 = vld [vmem:[%s4832_s1 + $0x54] ss:$8 sps:$4 sm:$0xff]   ;;  %v3470_v5 = vld [vmem:[%s4832_s1 + $0x550] ss:$8 sps:$4 sm:$0xff]   ;;  %v3475_v6 = vld [vmem:[%s4832_s1 + $0x64] ss:$8 sps:$4 sm:$0xff]  }
  0x24   : > { %552 = vmatpush1.bf16.msra.mxu1 %v3383_v30  ;;  %v3432_v30 = vld [vmem:[%s4832_s1 + $0x4f0] ss:$8 sps:$4 sm:$0xff]   ;;  %v3478_v7 = vld [vmem:[%s4832_s1 + $0x564] ss:$8 sps:$4 sm:$0xff]   ;;  %v3473_v8 = vld [vmem:[%s4832_s1 + $0x60] ss:$8 sps:$4 sm:$0xff]  }
  0x25   : > { %1512 = vmatpush1.bf16.msra.mxu0 %v3384_v31  ;;  %553 = vmatprep.subr.bf16.mxu1 %v3385_v32  ;;  %v357_v31 = vor.u32 %v356_v22, %v352_v14  ;;  %v361_v32 = vrot.slane %v359_v15, 1  ;;  %v3481_v10 = vld [vmem:[%s4832_s1 + $0x74] ss:$8 sps:$4 sm:$0xff]   ;;  %v3482_v13 = vld [vmem:[%s4832_s1 + $0x570] ss:$8 sps:$4 sm:$0xff]  }
  0x26   : > { %1513 = vmatprep.subr.bf16.mxu0 %v3387_v33  ;;  %v1319_v33 = vor.u32 %v1318_v24, %v1317_v23  ;;  %v3484_v11 = vld [vmem:[%s4832_s1 + $0x574] ss:$8 sps:$4 sm:$0xff]   ;;  %v3487_v14 = vld [vmem:[%s4832_s1 + $0x84] ss:$8 sps:$4 sm:$0xff]   ;;  %v3485_v16 = vld [vmem:[%s4832_s1 + $0x80] ss:$8 sps:$4 sm:$0xff]  }
  0x27   : > { %v3490_v15 = vld [vmem:[%s4832_s1 + $0x584] ss:$8 sps:$4 sm:$0xff]   ;;  %v3496_v19 = vld [vmem:[%s4832_s1 + $0x594] ss:$8 sps:$4 sm:$0xff]   ;;  %v3497_v24 = vld [vmem:[%s4832_s1 + $0xa0] ss:$8 sps:$4 sm:$0xff]  }
  0x28   : > { %554 = vmatpush1.bf16.msra.mxu1 %v3389_v34  ;;  %v1324_v34 = vor.u32 %v1323_v26, %v1322_v25  ;;  %v3499_v22 = vld [vmem:[%s4832_s1 + $0xa4] ss:$8 sps:$4 sm:$0xff]   ;;  %v3500_v25 = vld [vmem:[%s4832_s1 + $0x5a0] ss:$8 sps:$4 sm:$0xff]   ;;  %v3505_v26 = vld [vmem:[%s4832_s1 + $0xb4] ss:$8 sps:$4 sm:$0xff]  }
  0x29   : > { %1514 = vmatpush1.bf16.msra.mxu0 %v3390_v35  ;;  %555 = vmatprep.subr.bf16.mxu1 %v3391_v36  ;;  %v3437_v35 = vld [vmem:[%s4832_s1 + $0x4] ss:$8 sps:$4 sm:$0xff]  }
  0x2a   : > { %1515 = vmatprep.subr.bf16.mxu0 %v3393_v37  ;;  %v3440_v36 = vld [vmem:[%s4832_s1 + $0x504] ss:$8 sps:$4 sm:$0xff]   ;;  %v1581_v37 = vrot.slane %v4011_v52, 3 }
  0x2b   : > { %v3502_v23 = vld [vmem:[%s4832_s1 + $0x5a4] ss:$8 sps:$4 sm:$0xff]  }
  0x2c   : > { %556 = vmatpush1.bf16.msra.mxu1 %v3395_v38  ;;  %v1582_v38 = vrot.slane %v4015_v53, 3 }
  0x2d   : > { %1516 = vmatpush1.bf16.msra.mxu0 %v3396_v39  ;;  %557 = vmatprep.subr.bf16.mxu1 %v3397_v40  ;;  %v3435_v39 = vld [vmem:[%s4832_s1] ss:$8 sps:$4 sm:$0xff]  }
  0x2e   : > { %1517 = vmatprep.subr.bf16.mxu0 %v3399_v41  ;;  %v3438_v40 = vld [vmem:[%s4832_s1 + $0x500] ss:$8 sps:$4 sm:$0xff]   ;;  %v362_v41 = vsel %vm350_vm0, %v357_v31, %v361_v32  ;;  %v1583_v47 = vsel %vm1577_vm2, %v1581_v37, %v1582_v38  ;;  %v3514_v31 = vld [vmem:[%s4832_s1 + $0x5c4] ss:$8 sps:$4 sm:$0xff]   ;;  %v3518_v37 = vld [vmem:[%s4832_s1 + $0x5d0] ss:$8 sps:$4 sm:$0xff]  }
  0x2f   : > { %v3509_v32 = vld [vmem:[%s4832_s1 + $0xc0] ss:$8 sps:$4 sm:$0xff]   ;;  %v3523_v38 = vld [vmem:[%s4832_s1 + $0xe4] ss:$8 sps:$4 sm:$0xff]  }
  0x30   : > { %558 = vmatpush1.bf16.msra.mxu1 %v3401_v42  ;;  %v1325_v42 = vsel %vm1316_vm1, %v1319_v33, %v1324_v34  ;;  %v3512_v33 = vld [vmem:[%s4832_s1 + $0x5c0] ss:$8 sps:$4 sm:$0xff]   ;;  %v3517_v34 = vld [vmem:[%s4832_s1 + $0xd4] ss:$8 sps:$4 sm:$0xff]  }
  0x31   : > { %1518 = vmatpush1.bf16.msra.mxu0 %v3402_v43  ;;  %559 = vmatprep.subr.bf16.mxu1 %v3403_v44  ;;  %v3445_v43 = vld [vmem:[%s4832_s1 + $0x14] ss:$8 sps:$4 sm:$0xff]  }
  0x32   : > { %1519 = vmatprep.subr.bf16.mxu0 %v3405_v45  ;;  %v3448_v44 = vld [vmem:[%s4832_s1 + $0x514] ss:$8 sps:$4 sm:$0xff]   ;;  %v4103_v45 = vcombine.high %v3999_v48, %v4002_v49 }
  0x34   : > { %560 = vmatpush1.bf16.msra.mxu1 %v3407_v46  ;;  %v4107_v46 = vcombine.low %v3999_v48, %v4002_v49  ;;  %v3451_v48 = vld [vmem:[%s4832_s1 + $0x24] ss:$8 sps:$4 sm:$0xff]  }
  0x35   : > { %1520 = vmatpush1.bf16.msra.mxu0 %v3408_v50  ;;  %561 = vmatprep.subr.bf16.mxu1 %v3409_v51  ;;  %v3443_v50 = vld [vmem:[%s4832_s1 + $0x10] ss:$8 sps:$4 sm:$0xff]   ;;  %v3454_v49 = vld [vmem:[%s4832_s1 + $0x524] ss:$8 sps:$4 sm:$0xff]  }
  0x36   : > { %1521 = vmatprep.subr.bf16.mxu0 %v3411_v54  ;;  %v3446_v51 = vld [vmem:[%s4832_s1 + $0x510] ss:$8 sps:$4 sm:$0xff]   ;;  %v3449_v54 = vld [vmem:[%s4832_s1 + $0x20] ss:$8 sps:$4 sm:$0xff]  }
  0x38   : > { %562 = vmatpush1.bf16.msra.mxu1 %v3413_v59  ;;  %v3458_v59 = vld [vmem:[%s4832_s1 + $0x530] ss:$8 sps:$4 sm:$0xff]  }
  0x39   : > { %1522 = vmatpush1.bf16.msra.mxu0 %v3414_v62  ;;  %563 = vmatprep.subr.bf16.mxu1 %v3415_v3  ;;  %v3463_v62 = vld [vmem:[%s4832_s1 + $0x44] ss:$8 sps:$4 sm:$0xff]   ;;  %v3472_v3 = vld [vmem:[%s4832_s1 + $0x554] ss:$8 sps:$4 sm:$0xff]  }
  0x3a   : > { %1523 = vmatprep.subr.bf16.mxu0 %v3417_v4  ;;  %v3467_v4 = vld [vmem:[%s4832_s1 + $0x50] ss:$8 sps:$4 sm:$0xff]  }
  0x3c   : > { %564 = vmatpush1.bf16.msra.mxu1 %v3419_v9  ;;  %v3476_v9 = vld [vmem:[%s4832_s1 + $0x560] ss:$8 sps:$4 sm:$0xff]  }
  0x3d   : > { %1524 = vmatpush1.bf16.msra.mxu0 %v3420_v12  ;;  %565 = vmatprep.subr.bf16.mxu1 %v3421_v17  ;;  %v3479_v12 = vld [vmem:[%s4832_s1 + $0x70] ss:$8 sps:$4 sm:$0xff]   ;;  %v3488_v17 = vld [vmem:[%s4832_s1 + $0x580] ss:$8 sps:$4 sm:$0xff]  }
  0x3e   : > { %1525 = vmatprep.subr.bf16.mxu0 %v3423_v18  ;;  %v3493_v18 = vld [vmem:[%s4832_s1 + $0x94] ss:$8 sps:$4 sm:$0xff]  }
  0x40   : > { %566 = vmatpush1.bf16.msra.mxu1 %v3425_v20  ;;  %v3491_v20 = vld [vmem:[%s4832_s1 + $0x90] ss:$8 sps:$4 sm:$0xff]  }
  0x41   : > { %1526 = vmatpush1.bf16.msra.mxu0 %v3426_v21  ;;  %567 = vmatprep.subr.bf16.mxu1 %v3427_v27  ;;  %v3494_v21 = vld [vmem:[%s4832_s1 + $0x590] ss:$8 sps:$4 sm:$0xff]   ;;  %v3508_v27 = vld [vmem:[%s4832_s1 + $0x5b4] ss:$8 sps:$4 sm:$0xff]  }
  0x42   : > { %1527 = vmatprep.subr.bf16.mxu0 %v3429_v28  ;;  %v3503_v28 = vld [vmem:[%s4832_s1 + $0xb0] ss:$8 sps:$4 sm:$0xff]  }
  0x44   : > { %568 = vmatpush1.bf16.msra.mxu1 %v3431_v29  ;;  %v3506_v29 = vld [vmem:[%s4832_s1 + $0x5b0] ss:$8 sps:$4 sm:$0xff]  }
  0x45   : > { %1528 = vmatpush1.bf16.msra.mxu0 %v3432_v30  ;;  %742 = vmatprep.subr.bf16.mxu1 %v3437_v35  ;;  %v3511_v30 = vld [vmem:[%s4832_s1 + $0xc4] ss:$8 sps:$4 sm:$0xff]   ;;  %v3520_v35 = vld [vmem:[%s4832_s1 + $0x5d4] ss:$8 sps:$4 sm:$0xff]  }
  0x46   : > { %1746 = vmatprep.subr.bf16.mxu0 %v3440_v36  ;;  %v3515_v36 = vld [vmem:[%s4832_s1 + $0xd0] ss:$8 sps:$4 sm:$0xff]  }
  0x47   : > { %570 = vmatmul.mubr.bf16.vlgmr.msra.gmra.mrb[0].mxu1 %v362_v41  ;;  %v3524_v41 = vld [vmem:[%s4832_s1 + $0x5e0] ss:$8 sps:$4 sm:$0xff]  }
  0x48   : > { %1530 = vmatmul.mubr.bf16.vlgmr.msra.gmra.mrb[0].mxu0 %v1325_v42  ;;  %743 = vmatpush1.bf16.msra.mxu1 %v3435_v39  ;;  %v3526_v39 = vld [vmem:[%s4832_s1 + $0x5e4] ss:$8 sps:$4 sm:$0xff]   ;;  %v3529_v42 = vld [vmem:[%s4832_s1 + $0xf4] ss:$8 sps:$4 sm:$0xff]  }
  0x49   : > { %1747 = vmatpush1.bf16.msra.mxu0 %v3438_v40  ;;  %744 = vmatprep.subr.bf16.mxu1 %v3445_v43  ;;  %v3521_v40 = vld [vmem:[%s4832_s1 + $0xe0] ss:$8 sps:$4 sm:$0xff]   ;;  %v3532_v43 = vld [vmem:[%s4832_s1 + $0x5f4] ss:$8 sps:$4 sm:$0xff]  }
  0x4a   : > { %1748 = vmatprep.subr.bf16.mxu0 %v3448_v44  ;;  %774 = vmatprep.mubr.bf16.mxu1 %v4011_v52  ;;  %v1578_v44 = vrot.slane %v4028_v60, 3 }
  0x4b   : > { %1778 = vmatprep.mubr.bf16.mxu0 %v1583_v47  ;;  %v3527_v47 = vld [vmem:[%s4832_s1 + $0xf0] ss:$8 sps:$4 sm:$0xff]  }
  0x4c   : > { %745 = vmatpush1.bf16.msra.mxu1 %v3443_v50  ;;  %v3530_v50 = vld [vmem:[%s4832_s1 + $0x5f0] ss:$8 sps:$4 sm:$0xff]  }
  0x4d   : > { %1749 = vmatpush1.bf16.msra.mxu0 %v3446_v51  ;;  %746 = vmatprep.subr.bf16.mxu1 %v3451_v48  ;;  %v1579_v51 = vrot.slane %v4032_v61, 3  ;;  %v3535_v48 = vld [vmem:[%s4832_s1 + $0x204] ss:$8 sps:$4 sm:$0xff]  }
  0x4e   : > { %1750 = vmatprep.subr.bf16.mxu0 %v3454_v49  ;;  %v3538_v49 = vld [vmem:[%s4832_s1 + $0x604] ss:$8 sps:$4 sm:$0xff]  }
  0x50   : > { %747 = vmatpush1.bf16.msra.mxu1 %v3449_v54  ;;  %v822_v54 = vrot.slane %v4011_v52, 1 }
  0x51   : > { %1751 = vmatpush1.bf16.msra.mxu0 %v3452_v55  ;;  %748 = vmatprep.subr.bf16.mxu1 %v3457_v56  ;;  %v823_v55 = vrot.slane %v4015_v53, 1  ;;  %v3533_v56 = vld [vmem:[%s4832_s1 + $0x200] ss:$8 sps:$4 sm:$0xff]  }
  0x52   : > { %1752 = vmatprep.subr.bf16.mxu0 %v3460_v57  ;;  %v3536_v57 = vld [vmem:[%s4832_s1 + $0x600] ss:$8 sps:$4 sm:$0xff]  }
  0x54   : > { %749 = vmatpush1.bf16.msra.mxu1 %v3455_v58  ;;  %v1580_v58 = vsel %vm1577_vm2, %v1578_v44, %v1579_v51  ;;  %v3605_v44 = vld [vmem:[%s4832_s1 + $0x2c0] ss:$8 sps:$4 sm:$0xff]   ;;  %v3616_v51 = vld [vmem:[%s4832_s1 + $0x6d4] ss:$8 sps:$4 sm:$0xff]  }
  0x55   : > { %1753 = vmatpush1.bf16.msra.mxu0 %v3458_v59  ;;  %750 = vmatprep.subr.bf16.mxu1 %v3463_v62  ;;  %v3541_v59 = vld [vmem:[%s4832_s1 + $0x214] ss:$8 sps:$4 sm:$0xff]  }
  0x56   : > { %1754 = vmatprep.subr.bf16.mxu0 %v3466_v63  ;;  %v3544_v62 = vld [vmem:[%s4832_s1 + $0x614] ss:$8 sps:$4 sm:$0xff]   ;;  %v824_v63 = vsel %vm818_vm3, %v822_v54, %v823_v55  ;;  %v3619_v54 = vld [vmem:[%s4832_s1 + $0x2e4] ss:$8 sps:$4 sm:$0xff]  }
  0x57   : > { %v4465_v55 = vld [vmem:[%s3986_s22 + $0x18] sm:$0xff] }
  0x58   : > { %751 = vmatpush1.bf16.msra.mxu1 %v3461_v0  ;;  %v3539_v0 = vld [vmem:[%s4832_s1 + $0x210] ss:$8 sps:$4 sm:$0xff]  }
  0x59   : > { %1755 = vmatpush1.bf16.msra.mxu0 %v3464_v1  ;;  %752 = vmatprep.subr.bf16.mxu1 %v3469_v2  ;;  %v3542_v1 = vld [vmem:[%s4832_s1 + $0x610] ss:$8 sps:$4 sm:$0xff]   ;;  %v3547_v2 = vld [vmem:[%s4832_s1 + $0x224] ss:$8 sps:$4 sm:$0xff]  }
  0x5a   : > { %1756 = vmatprep.subr.bf16.mxu0 %v3472_v3  ;;  %v3550_v3 = vld [vmem:[%s4832_s1 + $0x624] ss:$8 sps:$4 sm:$0xff]  }
  0x5c   : > { %753 = vmatpush1.bf16.msra.mxu1 %v3467_v4  ;;  %v3545_v4 = vld [vmem:[%s4832_s1 + $0x220] ss:$8 sps:$4 sm:$0xff]  }
  0x5d   : > { %1757 = vmatpush1.bf16.msra.mxu0 %v3470_v5  ;;  %754 = vmatprep.subr.bf16.mxu1 %v3475_v6  ;;  %v3548_v5 = vld [vmem:[%s4832_s1 + $0x620] ss:$8 sps:$4 sm:$0xff]   ;;  %v3553_v6 = vld [vmem:[%s4832_s1 + $0x234] ss:$8 sps:$4 sm:$0xff]  }
  0x5e   : > { %1758 = vmatprep.subr.bf16.mxu0 %v3478_v7  ;;  %v3556_v7 = vld [vmem:[%s4832_s1 + $0x634] ss:$8 sps:$4 sm:$0xff]  }
  0x60   : > { %755 = vmatpush1.bf16.msra.mxu1 %v3473_v8  ;;  %v3551_v8 = vld [vmem:[%s4832_s1 + $0x230] ss:$8 sps:$4 sm:$0xff]  }
  0x61   : > { %1759 = vmatpush1.bf16.msra.mxu0 %v3476_v9  ;;  %756 = vmatprep.subr.bf16.mxu1 %v3481_v10  ;;  %v3554_v9 = vld [vmem:[%s4832_s1 + $0x630] ss:$8 sps:$4 sm:$0xff]   ;;  %v3559_v10 = vld [vmem:[%s4832_s1 + $0x244] ss:$8 sps:$4 sm:$0xff]  }
  0x62   : > { %1760 = vmatprep.subr.bf16.mxu0 %v3484_v11  ;;  %v3562_v11 = vld [vmem:[%s4832_s1 + $0x644] ss:$8 sps:$4 sm:$0xff]  }
  0x64   : > { %757 = vmatpush1.bf16.msra.mxu1 %v3479_v12  ;;  %v3557_v12 = vld [vmem:[%s4832_s1 + $0x240] ss:$8 sps:$4 sm:$0xff]  }
  0x65   : > { %1761 = vmatpush1.bf16.msra.mxu0 %v3482_v13  ;;  %758 = vmatprep.subr.bf16.mxu1 %v3487_v14  ;;  %v3560_v13 = vld [vmem:[%s4832_s1 + $0x640] ss:$8 sps:$4 sm:$0xff]   ;;  %v3565_v14 = vld [vmem:[%s4832_s1 + $0x254] ss:$8 sps:$4 sm:$0xff]  }
  0x66   : > { %1762 = vmatprep.subr.bf16.mxu0 %v3490_v15  ;;  %v3568_v15 = vld [vmem:[%s4832_s1 + $0x654] ss:$8 sps:$4 sm:$0xff]  }
  0x68   : > { %759 = vmatpush1.bf16.msra.mxu1 %v3485_v16  ;;  %v3563_v16 = vld [vmem:[%s4832_s1 + $0x250] ss:$8 sps:$4 sm:$0xff]  }
  0x69   : > { %1763 = vmatpush1.bf16.msra.mxu0 %v3488_v17  ;;  %760 = vmatprep.subr.bf16.mxu1 %v3493_v18  ;;  %v3566_v17 = vld [vmem:[%s4832_s1 + $0x650] ss:$8 sps:$4 sm:$0xff]   ;;  %v3571_v18 = vld [vmem:[%s4832_s1 + $0x264] ss:$8 sps:$4 sm:$0xff]  }
  0x6a   : > { %1764 = vmatprep.subr.bf16.mxu0 %v3496_v19  ;;  %v3574_v19 = vld [vmem:[%s4832_s1 + $0x664] ss:$8 sps:$4 sm:$0xff]  }
  0x6c   : > { %761 = vmatpush1.bf16.msra.mxu1 %v3491_v20  ;;  %v3569_v20 = vld [vmem:[%s4832_s1 + $0x260] ss:$8 sps:$4 sm:$0xff]  }
  0x6d   : > { %1765 = vmatpush1.bf16.msra.mxu0 %v3494_v21  ;;  %762 = vmatprep.subr.bf16.mxu1 %v3499_v22  ;;  %v3572_v21 = vld [vmem:[%s4832_s1 + $0x660] ss:$8 sps:$4 sm:$0xff]   ;;  %v3577_v22 = vld [vmem:[%s4832_s1 + $0x274] ss:$8 sps:$4 sm:$0xff]  }
  0x6e   : > { %1766 = vmatprep.subr.bf16.mxu0 %v3502_v23  ;;  %v3580_v23 = vld [vmem:[%s4832_s1 + $0x674] ss:$8 sps:$4 sm:$0xff]  }
  0x70   : > { %763 = vmatpush1.bf16.msra.mxu1 %v3497_v24  ;;  %v3575_v24 = vld [vmem:[%s4832_s1 + $0x270] ss:$8 sps:$4 sm:$0xff]  }
  0x71   : > { %1767 = vmatpush1.bf16.msra.mxu0 %v3500_v25  ;;  %764 = vmatprep.subr.bf16.mxu1 %v3505_v26  ;;  %v3578_v25 = vld [vmem:[%s4832_s1 + $0x670] ss:$8 sps:$4 sm:$0xff]   ;;  %v3583_v26 = vld [vmem:[%s4832_s1 + $0x284] ss:$8 sps:$4 sm:$0xff]  }
  0x72   : > { %1768 = vmatprep.subr.bf16.mxu0 %v3508_v27  ;;  %v3586_v27 = vld [vmem:[%s4832_s1 + $0x684] ss:$8 sps:$4 sm:$0xff]  }
  0x74   : > { %765 = vmatpush1.bf16.msra.mxu1 %v3503_v28  ;;  %v3581_v28 = vld [vmem:[%s4832_s1 + $0x280] ss:$8 sps:$4 sm:$0xff]  }
  0x75   : > { %1769 = vmatpush1.bf16.msra.mxu0 %v3506_v29  ;;  %766 = vmatprep.subr.bf16.mxu1 %v3511_v30  ;;  %v3584_v29 = vld [vmem:[%s4832_s1 + $0x680] ss:$8 sps:$4 sm:$0xff]   ;;  %v3589_v30 = vld [vmem:[%s4832_s1 + $0x294] ss:$8 sps:$4 sm:$0xff]  }
  0x76   : > { %1770 = vmatprep.subr.bf16.mxu0 %v3514_v31  ;;  %v3592_v31 = vld [vmem:[%s4832_s1 + $0x694] ss:$8 sps:$4 sm:$0xff]  }
  0x78   : > { %767 = vmatpush1.bf16.msra.mxu1 %v3509_v32  ;;  %v3587_v32 = vld [vmem:[%s4832_s1 + $0x290] ss:$8 sps:$4 sm:$0xff]  }
  0x79   : > { %1771 = vmatpush1.bf16.msra.mxu0 %v3512_v33  ;;  %768 = vmatprep.subr.bf16.mxu1 %v3517_v34  ;;  %v3590_v33 = vld [vmem:[%s4832_s1 + $0x690] ss:$8 sps:$4 sm:$0xff]   ;;  %v3595_v34 = vld [vmem:[%s4832_s1 + $0x2a4] ss:$8 sps:$4 sm:$0xff]  }
  0x7a   : > { %1772 = vmatprep.subr.bf16.mxu0 %v3520_v35  ;;  %v3598_v35 = vld [vmem:[%s4832_s1 + $0x6a4] ss:$8 sps:$4 sm:$0xff]  }
  0x7c   : > { %769 = vmatpush1.bf16.msra.mxu1 %v3515_v36  ;;  %v3593_v36 = vld [vmem:[%s4832_s1 + $0x2a0] ss:$8 sps:$4 sm:$0xff]  }
  0x7d   : > { %1773 = vmatpush1.bf16.msra.mxu0 %v3518_v37  ;;  %770 = vmatprep.subr.bf16.mxu1 %v3523_v38  ;;  %v3596_v37 = vld [vmem:[%s4832_s1 + $0x6a0] ss:$8 sps:$4 sm:$0xff]   ;;  %v3601_v38 = vld [vmem:[%s4832_s1 + $0x2b4] ss:$8 sps:$4 sm:$0xff]  }
  0x7e   : > { %1774 = vmatprep.subr.bf16.mxu0 %v3526_v39  ;;  %v3604_v39 = vld [vmem:[%s4832_s1 + $0x6b4] ss:$8 sps:$4 sm:$0xff]  }
  0x80   : > { %771 = vmatpush1.bf16.msra.mxu1 %v3521_v40  ;;  %v3599_v40 = vld [vmem:[%s4832_s1 + $0x2b0] ss:$8 sps:$4 sm:$0xff]  }
  0x81   : > { %1775 = vmatpush1.bf16.msra.mxu0 %v3524_v41  ;;  %772 = vmatprep.subr.bf16.mxu1 %v3529_v42  ;;  %v3602_v41 = vld [vmem:[%s4832_s1 + $0x6b0] ss:$8 sps:$4 sm:$0xff]   ;;  %v3607_v42 = vld [vmem:[%s4832_s1 + $0x2c4] ss:$8 sps:$4 sm:$0xff]  }
  0x82   : > { %1776 = vmatprep.subr.bf16.mxu0 %v3532_v43  ;;  %v3610_v43 = vld [vmem:[%s4832_s1 + $0x6c4] ss:$8 sps:$4 sm:$0xff]  }
  0x84   : > { %773 = vmatpush1.bf16.msra.mxu1 %v3527_v47  ;;  %v3608_v47 = vld [vmem:[%s4832_s1 + $0x6c0] ss:$8 sps:$4 sm:$0xff]  }
  0x85   : > { %1777 = vmatpush1.bf16.msra.mxu0 %v3530_v50  ;;  %987 = vmatprep.subr.bf16.mxu1 %v3535_v48  ;;  %v3613_v50 = vld [vmem:[%s4832_s1 + $0x2d4] ss:$8 sps:$4 sm:$0xff]   ;;  %v3611_v48 = vld [vmem:[%s4832_s1 + $0x2d0] ss:$8 sps:$4 sm:$0xff]  }
  0x86   : > { %1990 = vmatprep.subr.bf16.mxu0 %v3538_v49  ;;  %v3614_v49 = vld [vmem:[%s4832_s1 + $0x6d0] ss:$8 sps:$4 sm:$0xff]  }
  0x87   : > { %775 = vmatmul.mubr.bf16.vlgmr.msra.gmra.mrb[0].mxu1 %v4028_v60 }
  0x88   : > { %1779 = vmatmul.mubr.bf16.vlgmr.msra.gmra.mrb[0].mxu0 %v1580_v58  ;;  %988 = vmatpush1.bf16.msra.mxu1 %v3533_v56  ;;  %v3622_v56 = vld [vmem:[%s4832_s1 + $0x6e4] ss:$8 sps:$4 sm:$0xff]   ;;  %v3617_v58 = vld [vmem:[%s4832_s1 + $0x2e0] ss:$8 sps:$4 sm:$0xff]  }
  0x89   : > { %1991 = vmatpush1.bf16.msra.mxu0 %v3536_v57  ;;  %989 = vmatprep.subr.bf16.mxu1 %v3541_v59  ;;  %v2090_v57 = vshll.u32 %v4103_v45, 16  ;;  %v3620_v59 = vld [vmem:[%s4832_s1 + $0x6e0] ss:$8 sps:$4 sm:$0xff]  }
  0x8a   : > { %1992 = vmatprep.subr.bf16.mxu0 %v3544_v62  ;;  %1019 = vmatprep.mubr.bf16.mxu1 %v824_v63  ;;  %v4479_v62 = vcombine.high %v4465_v55, %v4465_v55  ;;  %v3625_v63 = vld [vmem:[%s4832_s1 + $0x2f4] ss:$8 sps:$4 sm:$0xff]  }
  0x8b   : > { %2022 = vmatprep.mubr.bf16.mxu0 %v4103_v45 }
  0x8c   : > { %990 = vmatpush1.bf16.msra.mxu1 %v3539_v0  ;;  %v3628_v0 = vld [vmem:[%s4832_s1 + $0x6f4] ss:$8 sps:$4 sm:$0xff]  }
  0x8d   : > { %1993 = vmatpush1.bf16.msra.mxu0 %v3542_v1  ;;  %991 = vmatprep.subr.bf16.mxu1 %v3547_v2  ;;  %v2088_v1 = vshrl.u32 %v4103_v45, 16  ;;  %v2092_v2 = vrot.slane %v2090_v57, 1  ;;  %v3688_v57 = vld [vmem:[%s4832_s1 + $0x790] ss:$8 sps:$4 sm:$0xff]  }
  0x8e   : > { %1994 = vmatprep.subr.bf16.mxu0 %v3550_v3  ;;  %v3623_v3 = vld [vmem:[%s4832_s1 + $0x2f0] ss:$8 sps:$4 sm:$0xff]  }
  0x90   : > { %992 = vmatpush1.bf16.msra.mxu1 %v3545_v4  ;;  %v3626_v4 = vld [vmem:[%s4832_s1 + $0x6f0] ss:$8 sps:$4 sm:$0xff]  }
  0x91   : > { %1995 = vmatpush1.bf16.msra.mxu0 %v3548_v5  ;;  %993 = vmatprep.subr.bf16.mxu1 %v3553_v6  ;;  %v2095_v5 = vshll.u32 %v4479_v62, 16  ;;  %v3631_v6 = vld [vmem:[%s4832_s1 + $0x304] ss:$8 sps:$4 sm:$0xff]  }
  0x92   : > { %1996 = vmatprep.subr.bf16.mxu0 %v3556_v7  ;;  %v819_v7 = vrot.slane %v4028_v60, 1 }
  0x94   : > { %994 = vmatpush1.bf16.msra.mxu1 %v3551_v8  ;;  %v820_v8 = vrot.slane %v4032_v61, 1 }
  0x95   : > { %1997 = vmatpush1.bf16.msra.mxu0 %v3554_v9  ;;  %995 = vmatprep.subr.bf16.mxu1 %v3559_v10  ;;  %v3635_v9 = vld [vmem:[%s4832_s1 + $0x704] ss:$8 sps:$4 sm:$0xff]   ;;  %v1071_v10 = vrot.slane %v4011_v52, 2  ;;  %v3639_v52 = vld [vmem:[%s4832_s1 + $0x314] ss:$8 sps:$4 sm:$0xff]  }
  0x96   : > { %1998 = vmatprep.subr.bf16.mxu0 %v3562_v11  ;;  %v1072_v11 = vrot.slane %v4015_v53, 2  ;;  %v3642_v53 = vld [vmem:[%s4832_s1 + $0x714] ss:$8 sps:$4 sm:$0xff]  }
  0x98   : > { %996 = vmatpush1.bf16.msra.mxu1 %v3557_v12  ;;  %v3629_v12 = vld [vmem:[%s4832_s1 + $0x300] ss:$8 sps:$4 sm:$0xff]  }
  0x99   : > { %1999 = vmatpush1.bf16.msra.mxu0 %v3560_v13  ;;  %997 = vmatprep.subr.bf16.mxu1 %v3565_v14  ;;  %v3633_v13 = vld [vmem:[%s4832_s1 + $0x700] ss:$8 sps:$4 sm:$0xff]   ;;  %v2093_v14 = vor.u32 %v2092_v2, %v2088_v1  ;;  %v3699_v1 = vld [vmem:[%s4832_s1 + $0x3b4] ss:$8 sps:$4 sm:$0xff]  }
  0x9a   : > { %2000 = vmatprep.subr.bf16.mxu0 %v3568_v15  ;;  %v2097_v15 = vrot.slane %v2095_v5, 1  ;;  %v3702_v2 = vld [vmem:[%s4832_s1 + $0x7b4] ss:$8 sps:$4 sm:$0xff]   ;;  %v3705_v5 = vld [vmem:[%s4832_s1 + $0x3c4] ss:$8 sps:$4 sm:$0xff]  }
  0x9c   : > { %998 = vmatpush1.bf16.msra.mxu1 %v3563_v16  ;;  %v821_v16 = vsel %vm818_vm3, %v819_v7, %v820_v8  ;;  %v3703_v7 = vld [vmem:[%s4832_s1 + $0x3c0] ss:$8 sps:$4 sm:$0xff]  }
  0x9d   : > { %2001 = vmatpush1.bf16.msra.mxu0 %v3566_v17  ;;  %999 = vmatprep.subr.bf16.mxu1 %v3571_v18  ;;  %v1073_v17 = vsel %vm1067_vm4, %v1071_v10, %v1072_v11  ;;  %v2098_v18 = vsel %vm350_vm0, %v2093_v14, %v2097_v15  ;;  %v3706_v8 = vld [vmem:[%s4832_s1 + $0x7c0] ss:$8 sps:$4 sm:$0xff]   ;;  %v3714_v10 = vld [vmem:[%s4832_s1 + $0x7d4] ss:$8 sps:$4 sm:$0xff]   ;;  %v3709_v11 = vld [vmem:[%s4832_s1 + $0x3d0] ss:$8 sps:$4 sm:$0xff]  }
  0x9e   : > { %2002 = vmatprep.subr.bf16.mxu0 %v3574_v19  ;;  %v3637_v19 = vld [vmem:[%s4832_s1 + $0x310] ss:$8 sps:$4 sm:$0xff]   ;;  %v2078_v14 = vshll.u32 %v4107_v46, 16  ;;  %v3717_v15 = vld [vmem:[%s4832_s1 + $0x3e4] ss:$8 sps:$4 sm:$0xff]  }
  0xa0   : > { %1000 = vmatpush1.bf16.msra.mxu1 %v3569_v20  ;;  %v3640_v20 = vld [vmem:[%s4832_s1 + $0x710] ss:$8 sps:$4 sm:$0xff]  }
  0xa1   : > { %2003 = vmatpush1.bf16.msra.mxu0 %v3572_v21  ;;  %1001 = vmatprep.subr.bf16.mxu1 %v3577_v22  ;;  %v3645_v21 = vld [vmem:[%s4832_s1 + $0x324] ss:$8 sps:$4 sm:$0xff]  }
  0xa2   : > { %2004 = vmatprep.subr.bf16.mxu0 %v3580_v23  ;;  %v3648_v22 = vld [vmem:[%s4832_s1 + $0x724] ss:$8 sps:$4 sm:$0xff]   ;;  %v3643_v23 = vld [vmem:[%s4832_s1 + $0x320] ss:$8 sps:$4 sm:$0xff]  }
  0xa4   : > { %1002 = vmatpush1.bf16.msra.mxu1 %v3575_v24  ;;  %v3646_v24 = vld [vmem:[%s4832_s1 + $0x720] ss:$8 sps:$4 sm:$0xff]  }
  0xa5   : > { %2005 = vmatpush1.bf16.msra.mxu0 %v3578_v25  ;;  %1003 = vmatprep.subr.bf16.mxu1 %v3583_v26  ;;  %v3651_v25 = vld [vmem:[%s4832_s1 + $0x334] ss:$8 sps:$4 sm:$0xff]  }
  0xa6   : > { %2006 = vmatprep.subr.bf16.mxu0 %v3586_v27  ;;  %v3654_v26 = vld [vmem:[%s4832_s1 + $0x734] ss:$8 sps:$4 sm:$0xff]   ;;  %v3649_v27 = vld [vmem:[%s4832_s1 + $0x330] ss:$8 sps:$4 sm:$0xff]  }
  0xa8   : > { %1004 = vmatpush1.bf16.msra.mxu1 %v3581_v28  ;;  %v3652_v28 = vld [vmem:[%s4832_s1 + $0x730] ss:$8 sps:$4 sm:$0xff]  }
  0xa9   : > { %2007 = vmatpush1.bf16.msra.mxu0 %v3584_v29  ;;  %1005 = vmatprep.subr.bf16.mxu1 %v3589_v30  ;;  %v3657_v29 = vld [vmem:[%s4832_s1 + $0x344] ss:$8 sps:$4 sm:$0xff]  }
  0xaa   : > { %2008 = vmatprep.subr.bf16.mxu0 %v3592_v31  ;;  %v3660_v30 = vld [vmem:[%s4832_s1 + $0x744] ss:$8 sps:$4 sm:$0xff]   ;;  %v3655_v31 = vld [vmem:[%s4832_s1 + $0x340] ss:$8 sps:$4 sm:$0xff]  }
  0xac   : > { %1006 = vmatpush1.bf16.msra.mxu1 %v3587_v32  ;;  %v3658_v32 = vld [vmem:[%s4832_s1 + $0x740] ss:$8 sps:$4 sm:$0xff]  }
  0xad   : > { %2009 = vmatpush1.bf16.msra.mxu0 %v3590_v33  ;;  %1007 = vmatprep.subr.bf16.mxu1 %v3595_v34  ;;  %v3663_v33 = vld [vmem:[%s4832_s1 + $0x354] ss:$8 sps:$4 sm:$0xff]  }
  0xae   : > { %2010 = vmatprep.subr.bf16.mxu0 %v3598_v35  ;;  %v3666_v34 = vld [vmem:[%s4832_s1 + $0x754] ss:$8 sps:$4 sm:$0xff]   ;;  %v3661_v35 = vld [vmem:[%s4832_s1 + $0x350] ss:$8 sps:$4 sm:$0xff]  }
  0xb0   : > { %1008 = vmatpush1.bf16.msra.mxu1 %v3593_v36  ;;  %v3664_v36 = vld [vmem:[%s4832_s1 + $0x750] ss:$8 sps:$4 sm:$0xff]  }
  0xb1   : > { %2011 = vmatpush1.bf16.msra.mxu0 %v3596_v37  ;;  %1009 = vmatprep.subr.bf16.mxu1 %v3601_v38  ;;  %v3669_v37 = vld [vmem:[%s4832_s1 + $0x364] ss:$8 sps:$4 sm:$0xff]  }
  0xb2   : > { %2012 = vmatprep.subr.bf16.mxu0 %v3604_v39  ;;  %v3672_v38 = vld [vmem:[%s4832_s1 + $0x764] ss:$8 sps:$4 sm:$0xff]   ;;  %v3667_v39 = vld [vmem:[%s4832_s1 + $0x360] ss:$8 sps:$4 sm:$0xff]  }
  0xb4   : > { %1010 = vmatpush1.bf16.msra.mxu1 %v3599_v40  ;;  %v3670_v40 = vld [vmem:[%s4832_s1 + $0x760] ss:$8 sps:$4 sm:$0xff]  }
  0xb5   : > { %2013 = vmatpush1.bf16.msra.mxu0 %v3602_v41  ;;  %1011 = vmatprep.subr.bf16.mxu1 %v3607_v42  ;;  %v3675_v41 = vld [vmem:[%s4832_s1 + $0x374] ss:$8 sps:$4 sm:$0xff]  }
  0xb6   : > { %2014 = vmatprep.subr.bf16.mxu0 %v3610_v43  ;;  %v3678_v42 = vld [vmem:[%s4832_s1 + $0x774] ss:$8 sps:$4 sm:$0xff]   ;;  %v3673_v43 = vld [vmem:[%s4832_s1 + $0x370] ss:$8 sps:$4 sm:$0xff]  }
  0xb8   : > { %1012 = vmatpush1.bf16.msra.mxu1 %v3605_v44  ;;  %v3676_v44 = vld [vmem:[%s4832_s1 + $0x770] ss:$8 sps:$4 sm:$0xff]  }
  0xb9   : > { %2015 = vmatpush1.bf16.msra.mxu0 %v3608_v47  ;;  %1013 = vmatprep.subr.bf16.mxu1 %v3613_v50  ;;  %v3681_v47 = vld [vmem:[%s4832_s1 + $0x384] ss:$8 sps:$4 sm:$0xff]  }
  0xba   : > { %2016 = vmatprep.subr.bf16.mxu0 %v3616_v51  ;;  %v3684_v50 = vld [vmem:[%s4832_s1 + $0x784] ss:$8 sps:$4 sm:$0xff]   ;;  %v3679_v51 = vld [vmem:[%s4832_s1 + $0x380] ss:$8 sps:$4 sm:$0xff]  }
  0xbc   : > { %1014 = vmatpush1.bf16.msra.mxu1 %v3611_v48  ;;  %v3682_v48 = vld [vmem:[%s4832_s1 + $0x780] ss:$8 sps:$4 sm:$0xff]  }
  0xbd   : > { %2017 = vmatpush1.bf16.msra.mxu0 %v3614_v49  ;;  %1015 = vmatprep.subr.bf16.mxu1 %v3619_v54  ;;  %v3687_v49 = vld [vmem:[%s4832_s1 + $0x394] ss:$8 sps:$4 sm:$0xff]  }
  0xbe   : > { %2018 = vmatprep.subr.bf16.mxu0 %v3622_v56  ;;  %v3690_v54 = vld [vmem:[%s4832_s1 + $0x794] ss:$8 sps:$4 sm:$0xff]   ;;  %v3685_v56 = vld [vmem:[%s4832_s1 + $0x390] ss:$8 sps:$4 sm:$0xff]  }
  0xc0   : > { %1016 = vmatpush1.bf16.msra.mxu1 %v3617_v58  ;;  %v3693_v58 = vld [vmem:[%s4832_s1 + $0x3a4] ss:$8 sps:$4 sm:$0xff]  }
  0xc1   : > { %2019 = vmatpush1.bf16.msra.mxu0 %v3620_v59  ;;  %1017 = vmatprep.subr.bf16.mxu1 %v3625_v63  ;;  %v3696_v59 = vld [vmem:[%s4832_s1 + $0x7a4] ss:$8 sps:$4 sm:$0xff]   ;;  %v3691_v63 = vld [vmem:[%s4832_s1 + $0x3a0] ss:$8 sps:$4 sm:$0xff]  }
  0xc2   : > { %2020 = vmatprep.subr.bf16.mxu0 %v3628_v0  ;;  %v3694_v0 = vld [vmem:[%s4832_s1 + $0x7a0] ss:$8 sps:$4 sm:$0xff]  }
  0xc4   : > { %1018 = vmatpush1.bf16.msra.mxu1 %v3623_v3  ;;  %v3697_v3 = vld [vmem:[%s4832_s1 + $0x3b0] ss:$8 sps:$4 sm:$0xff]  }
  0xc5   : > { %2021 = vmatpush1.bf16.msra.mxu0 %v3626_v4  ;;  %1236 = vmatprep.subr.bf16.mxu1 %v3631_v6  ;;  %v3700_v4 = vld [vmem:[%s4832_s1 + $0x7b0] ss:$8 sps:$4 sm:$0xff]   ;;  %v3708_v6 = vld [vmem:[%s4832_s1 + $0x7c4] ss:$8 sps:$4 sm:$0xff]  }
  0xc6   : > { %2261 = vmatprep.subr.bf16.mxu0 %v3635_v9  ;;  %v3711_v9 = vld [vmem:[%s4832_s1 + $0x3d4] ss:$8 sps:$4 sm:$0xff]  }
  0xc7   : > { %1020 = vmatmul.mubr.bf16.vlgmr.msra.gmra.mrb[0].mxu1 %v821_v16  ;;  %v3720_v16 = vld [vmem:[%s4832_s1 + $0x7e4] ss:$8 sps:$4 sm:$0xff]  }
  0xc8   : > { %2023 = vmatmul.mubr.bf16.vlgmr.msra.gmra.mrb[0].mxu0 %v4107_v46  ;;  %1237 = vmatpush1.bf16.msra.mxu1 %v3629_v12  ;;  %v3712_v12 = vld [vmem:[%s4832_s1 + $0x7d0] ss:$8 sps:$4 sm:$0xff]  }
  0xc9   : > { %2262 = vmatpush1.bf16.msra.mxu0 %v3633_v13  ;;  %1238 = vmatprep.subr.bf16.mxu1 %v3639_v52  ;;  %v4673_v13 = vcombine.low %v4465_v55, %v4465_v55  ;;  %v2076_v52 = vshrl.u32 %v4107_v46, 16  ;;  %v3715_v55 = vld [vmem:[%s4832_s1 + $0x3e0] ss:$8 sps:$4 sm:$0xff]  }
  0xca   : > { %2263 = vmatprep.subr.bf16.mxu0 %v3642_v53  ;;  %1268 = vmatprep.mubr.bf16.mxu1 %v1073_v17  ;;  %v3718_v53 = vld [vmem:[%s4832_s1 + $0x7e0] ss:$8 sps:$4 sm:$0xff]   ;;  %v2080_v17 = vrot.slane %v2078_v14, 1 }
  0xcb   : > { %2293 = vmatprep.mubr.bf16.mxu0 %v2098_v18  ;;  %v2083_v18 = vshll.u32 %v4673_v13, 16 }
  0xcc   : > { %1239 = vmatpush1.bf16.msra.mxu1 %v3637_v19  ;;  %v3723_v19 = vld [vmem:[%s4832_s1 + $0x3f4] ss:$8 sps:$4 sm:$0xff]  }
  0xcd   : > { %2264 = vmatpush1.bf16.msra.mxu0 %v3640_v20  ;;  %1240 = vmatprep.subr.bf16.mxu1 %v3645_v21  ;;  %v3726_v20 = vld [vmem:[%s4832_s1 + $0x7f4] ss:$8 sps:$4 sm:$0xff]   ;;  %v1068_v21 = vrot.slane %v4028_v60, 2  ;;  %v3730_v60 = vld [vmem:[%s4832_s1 + $0x804] ss:$8 sps:$4 sm:$0xff]  }
  0xce   : > { %2265 = vmatprep.subr.bf16.mxu0 %v3648_v22  ;;  %v3721_v22 = vld [vmem:[%s4832_s1 + $0x3f0] ss:$8 sps:$4 sm:$0xff]  }
  0xd0   : > { %1241 = vmatpush1.bf16.msra.mxu1 %v3643_v23  ;;  %v3724_v23 = vld [vmem:[%s4832_s1 + $0x7f0] ss:$8 sps:$4 sm:$0xff]  }
  0xd1   : > { %2266 = vmatpush1.bf16.msra.mxu0 %v3646_v24  ;;  %1242 = vmatprep.subr.bf16.mxu1 %v3651_v25  ;;  %v1069_v24 = vrot.slane %v4032_v61, 2  ;;  %v2081_v25 = vor.u32 %v2080_v17, %v2076_v52  ;;  %v3728_v61 = vld [vmem:[%s4832_s1 + $0x800] ss:$8 sps:$4 sm:$0xff]  }
  0xd2   : > { %2267 = vmatprep.subr.bf16.mxu0 %v3654_v26  ;;  %v2085_v26 = vrot.slane %v2083_v18, 1 }
  0xd4   : > { %1243 = vmatpush1.bf16.msra.mxu1 %v3649_v27  ;;  %v2344_v27 = vrot.slane %v4103_v45, 1  ;;  %v3732_v45 = vld [vmem:[%s4832_s1 + $0x810] ss:$8 sps:$4 sm:$0xff]  }
  0xd5   : > { %2268 = vmatpush1.bf16.msra.mxu0 %v3652_v28  ;;  %1244 = vmatprep.subr.bf16.mxu1 %v3657_v29  ;;  %v2345_v28 = vrot.slane %v4479_v62, 1  ;;  %v1070_v29 = vsel %vm1067_vm4, %v1068_v21, %v1069_v24  ;;  %v3737_v62 = vld [vmem:[%s4832_s1 + $0x824] ss:$8 sps:$4 sm:$0xff]  }
  0xd6   : > { %2269 = vmatprep.subr.bf16.mxu0 %v3660_v30  ;;  %v2086_v30 = vsel %vm350_vm0, %v2081_v25, %v2085_v26 }
  0xd8   : > { %1245 = vmatpush1.bf16.msra.mxu1 %v3655_v31  ;;  %v3734_v31 = vld [vmem:[%s4832_s1 + $0x814] ss:$8 sps:$4 sm:$0xff]  }
  0xd9   : > { %2270 = vmatpush1.bf16.msra.mxu0 %v3658_v32  ;;  %1246 = vmatprep.subr.bf16.mxu1 %v3663_v33  ;;  %v2346_v32 = vsel %vm818_vm3, %v2344_v27, %v2345_v28  ;;  %v3735_v33 = vld [vmem:[%s4832_s1 + $0x820] ss:$8 sps:$4 sm:$0xff]  }
  0xda   : > { %2271 = vmatprep.subr.bf16.mxu0 %v3666_v34  ;;  %v3740_v34 = vld [vmem:[%s4832_s1 + $0x834] ss:$8 sps:$4 sm:$0xff]  }
  0xdc   : > { %1247 = vmatpush1.bf16.msra.mxu1 %v3661_v35  ;;  %v3738_v35 = vld [vmem:[%s4832_s1 + $0x830] ss:$8 sps:$4 sm:$0xff]  }
  0xdd   : > { %2272 = vmatpush1.bf16.msra.mxu0 %v3664_v36  ;;  %1248 = vmatprep.subr.bf16.mxu1 %v3669_v37  ;;  %v3743_v36 = vld [vmem:[%s4832_s1 + $0x844] ss:$8 sps:$4 sm:$0xff]   ;;  %v3741_v37 = vld [vmem:[%s4832_s1 + $0x840] ss:$8 sps:$4 sm:$0xff]  }
  0xde   : > { %2273 = vmatprep.subr.bf16.mxu0 %v3672_v38  ;;  %v3746_v38 = vld [vmem:[%s4832_s1 + $0x854] ss:$8 sps:$4 sm:$0xff]  }
  0xe0   : > { %1249 = vmatpush1.bf16.msra.mxu1 %v3667_v39  ;;  %v3744_v39 = vld [vmem:[%s4832_s1 + $0x850] ss:$8 sps:$4 sm:$0xff]  }
  0xe1   : > { %2274 = vmatpush1.bf16.msra.mxu0 %v3670_v40  ;;  %1250 = vmatprep.subr.bf16.mxu1 %v3675_v41  ;;  %v3749_v40 = vld [vmem:[%s4832_s1 + $0x864] ss:$8 sps:$4 sm:$0xff]   ;;  %v3747_v41 = vld [vmem:[%s4832_s1 + $0x860] ss:$8 sps:$4 sm:$0xff]  }
  0xe2   : > { %2275 = vmatprep.subr.bf16.mxu0 %v3678_v42  ;;  %v3752_v42 = vld [vmem:[%s4832_s1 + $0x874] ss:$8 sps:$4 sm:$0xff]  }
  0xe4   : > { %1251 = vmatpush1.bf16.msra.mxu1 %v3673_v43  ;;  %v3750_v43 = vld [vmem:[%s4832_s1 + $0x870] ss:$8 sps:$4 sm:$0xff]  }
  0xe5   : > { %2276 = vmatpush1.bf16.msra.mxu0 %v3676_v44  ;;  %1252 = vmatprep.subr.bf16.mxu1 %v3681_v47  ;;  %v3755_v44 = vld [vmem:[%s4832_s1 + $0x884] ss:$8 sps:$4 sm:$0xff]   ;;  %v3753_v47 = vld [vmem:[%s4832_s1 + $0x880] ss:$8 sps:$4 sm:$0xff]  }
  0xe6   : > { %2277 = vmatprep.subr.bf16.mxu0 %v3684_v50  ;;  %v3758_v50 = vld [vmem:[%s4832_s1 + $0x894] ss:$8 sps:$4 sm:$0xff]  }
  0xe8   : > { %1253 = vmatpush1.bf16.msra.mxu1 %v3679_v51  ;;  %v3756_v51 = vld [vmem:[%s4832_s1 + $0x890] ss:$8 sps:$4 sm:$0xff]  }
  0xe9   : > { %2278 = vmatpush1.bf16.msra.mxu0 %v3682_v48  ;;  %1254 = vmatprep.subr.bf16.mxu1 %v3687_v49  ;;  %v3761_v48 = vld [vmem:[%s4832_s1 + $0x8a4] ss:$8 sps:$4 sm:$0xff]   ;;  %v3759_v49 = vld [vmem:[%s4832_s1 + $0x8a0] ss:$8 sps:$4 sm:$0xff]  }
  0xea   : > { %2279 = vmatprep.subr.bf16.mxu0 %v3690_v54  ;;  %v3764_v54 = vld [vmem:[%s4832_s1 + $0x8b4] ss:$8 sps:$4 sm:$0xff]  }
  0xec   : > { %1255 = vmatpush1.bf16.msra.mxu1 %v3685_v56  ;;  %v3762_v56 = vld [vmem:[%s4832_s1 + $0x8b0] ss:$8 sps:$4 sm:$0xff]  }
  0xed   : > { %2280 = vmatpush1.bf16.msra.mxu0 %v3688_v57  ;;  %1256 = vmatprep.subr.bf16.mxu1 %v3693_v58  ;;  %v3767_v57 = vld [vmem:[%s4832_s1 + $0x8c4] ss:$8 sps:$4 sm:$0xff]   ;;  %v3765_v58 = vld [vmem:[%s4832_s1 + $0x8c0] ss:$8 sps:$4 sm:$0xff]  }
  0xee   : > { %2281 = vmatprep.subr.bf16.mxu0 %v3696_v59  ;;  %v3770_v59 = vld [vmem:[%s4832_s1 + $0x8d4] ss:$8 sps:$4 sm:$0xff]  }
  0xf0   : > { %1257 = vmatpush1.bf16.msra.mxu1 %v3691_v63  ;;  %v3768_v63 = vld [vmem:[%s4832_s1 + $0x8d0] ss:$8 sps:$4 sm:$0xff]  }
  0xf1   : > { %2282 = vmatpush1.bf16.msra.mxu0 %v3694_v0  ;;  %1258 = vmatprep.subr.bf16.mxu1 %v3699_v1  ;;  %v3773_v0 = vld [vmem:[%s4832_s1 + $0x8e4] ss:$8 sps:$4 sm:$0xff]   ;;  %v3771_v1 = vld [vmem:[%s4832_s1 + $0x8e0] ss:$8 sps:$4 sm:$0xff]  }
  0xf2   : > { %2283 = vmatprep.subr.bf16.mxu0 %v3702_v2  ;;  %v3776_v2 = vld [vmem:[%s4832_s1 + $0x8f4] ss:$8 sps:$4 sm:$0xff]  }
  0xf4   : > { %1259 = vmatpush1.bf16.msra.mxu1 %v3697_v3  ;;  %v3774_v3 = vld [vmem:[%s4832_s1 + $0x8f0] ss:$8 sps:$4 sm:$0xff]  }
  0xf5   : > { %2284 = vmatpush1.bf16.msra.mxu0 %v3700_v4  ;;  %1260 = vmatprep.subr.bf16.mxu1 %v3705_v5  ;;  %v2341_v4 = vrot.slane %v4107_v46, 1  ;;  %v2342_v5 = vrot.slane %v4673_v13, 1  ;;  %v2556_v13 = vld [vmem:[%s4833_s2] sm:$0x3] }
  0xf6   : > { %2285 = vmatprep.subr.bf16.mxu0 %v3708_v6 }
  0xf7   : > { %v2343_v6 = vsel %vm818_vm3, %v2341_v4, %v2342_v5 }
  0xf8   : > { %1261 = vmatpush1.bf16.msra.mxu1 %v3703_v7 }
  0xf9   : > { %2286 = vmatpush1.bf16.msra.mxu0 %v3706_v8  ;;  %1262 = vmatprep.subr.bf16.mxu1 %v3711_v9 }
  0xfa   : > { %2287 = vmatprep.subr.bf16.mxu0 %v3714_v10 }
  0xfc   : > { %1263 = vmatpush1.bf16.msra.mxu1 %v3709_v11  ;;  %v2558_v11 = vlaneseq }
  0xfd   : > { %2288 = vmatpush1.bf16.msra.mxu0 %v3712_v12  ;;  %1264 = vmatprep.subr.bf16.mxu1 %v3717_v15  ;;  %v2572_v15 = vld [vmem:[%s249_s20] sm:$0xff] }
  0xfe   : > { %2289 = vmatprep.subr.bf16.mxu0 %v3720_v16  ;;  %v2559_v12 = vshrl.u32 %v2558_v11, 7  ;;  %v2574_v18 = vunpack.c.l.bf16 %v2572_v15  ;;  %v2575_v21 = vunpack.c.h.bf16 %v2572_v15 }
 0x100   : > { %1265 = vmatpush1.bf16.msra.mxu1 %v3715_v55  ;;  %v2560_v46 = vsub.s32 0, %v2559_v12  ;;  %v2564_v14 = vsub.s32 1, %v2559_v12 }
 0x101   : > { %2290 = vmatpush1.bf16.msra.mxu0 %v3718_v53  ;;  %1266 = vmatprep.subr.bf16.mxu1 %v3723_v19  ;;  %v2573_v53 = vld [vmem:[%s249_s20 + $0x8] sm:$0xff] }
 0x102   : > { %2291 = vmatprep.subr.bf16.mxu0 %v3726_v20  ;;  %v2561_v16 = vrot.slane %v2556_v13, %v2560_v46  ;;  %v2565_v55 = vrot.slane %v2556_v13, %v2564_v14  ;;  %v2576_v25 = vunpack.c.l.bf16 %v2573_v53  ;;  %v2577_v28 = vunpack.c.h.bf16 %v2573_v53 }
 0x104   : > { %1267 = vmatpush1.bf16.msra.mxu1 %v3721_v22 }
 0x105   : > { %2292 = vmatpush1.bf16.msra.mxu0 %v3724_v23 }
 0x106   : > { %2509 = vmatprep.subr.bf16.mxu0 %v3730_v60 }
 0x107   : > { %1269 = vmatmul.mubr.bf16.vlgmr.msra.gmra.mrb[0].mxu1 %v1070_v29 }
 0x108   : > { %2294 = vmatmul.mubr.bf16.vlgmr.msra.gmra.mrb[0].mxu0 %v2086_v30 }
 0x109   : > { %2510 = vmatpush1.bf16.msra.mxu0 %v3728_v61  ;;  %2541 = vmatprep.mubr.bf16.mxu0 %v2346_v32 }
 0x10a   : > { %2511 = vmatprep.subr.bf16.mxu0 %v3734_v31 }
 0x10d   : > { %2512 = vmatpush1.bf16.msra.mxu0 %v3732_v45 }
 0x10e   : > { %2513 = vmatprep.subr.bf16.mxu0 %v3737_v62 }
 0x111   : > { %2514 = vmatpush1.bf16.msra.mxu0 %v3735_v33 }
 0x112   : > { %2515 = vmatprep.subr.bf16.mxu0 %v3740_v34 }
 0x115   : > { %2516 = vmatpush1.bf16.msra.mxu0 %v3738_v35 }
 0x116   : > { %2517 = vmatprep.subr.bf16.mxu0 %v3743_v36 }
 0x119   : > { %2518 = vmatpush1.bf16.msra.mxu0 %v3741_v37 }
 0x11a   : > { %2519 = vmatprep.subr.bf16.mxu0 %v3746_v38 }
 0x11d   : > { %2520 = vmatpush1.bf16.msra.mxu0 %v3744_v39 }
 0x11e   : > { %2521 = vmatprep.subr.bf16.mxu0 %v3749_v40 }
 0x121   : > { %2522 = vmatpush1.bf16.msra.mxu0 %v3747_v41 }
 0x122   : > { %2523 = vmatprep.subr.bf16.mxu0 %v3752_v42 }
 0x125   : > { %2524 = vmatpush1.bf16.msra.mxu0 %v3750_v43 }
 0x126   : > { %2525 = vmatprep.subr.bf16.mxu0 %v3755_v44 }
 0x129   : > { %2526 = vmatpush1.bf16.msra.mxu0 %v3753_v47 }
 0x12a   : > { %2527 = vmatprep.subr.bf16.mxu0 %v3758_v50 }
 0x12d   : > { %2528 = vmatpush1.bf16.msra.mxu0 %v3756_v51 }
 0x12e   : > { %2529 = vmatprep.subr.bf16.mxu0 %v3761_v48 }
 0x131   : > { %2530 = vmatpush1.bf16.msra.mxu0 %v3759_v49 }
 0x132   : > { %2531 = vmatprep.subr.bf16.mxu0 %v3764_v54 }
 0x135   : > { %2532 = vmatpush1.bf16.msra.mxu0 %v3762_v56 }
 0x136   : > { %2533 = vmatprep.subr.bf16.mxu0 %v3767_v57 }
 0x139   : > { %2534 = vmatpush1.bf16.msra.mxu0 %v3765_v58 }
 0x13a   : > { %2535 = vmatprep.subr.bf16.mxu0 %v3770_v59 }
 0x13d   : > { %2536 = vmatpush1.bf16.msra.mxu0 %v3768_v63 }
 0x13e   : > { %2537 = vmatprep.subr.bf16.mxu0 %v3773_v0 }
 0x141   : > { %2538 = vmatpush1.bf16.msra.mxu0 %v3771_v1 }
 0x142   : > { %2539 = vmatprep.subr.bf16.mxu0 %v3776_v2 }
 0x145   : > { %2540 = vmatpush1.bf16.msra.mxu0 %v3774_v3 }
 0x148   : > { %2542 = vmatmul.mubr.bf16.vlgmr.msra.gmra.mrb[0].mxu0 %v2343_v6 }
 0x1da   : > { %v1270_v7 = vpop.f32.mrb[0].mxu1 }
 0x1db   : > { %v1272_v8 = vpop.f32.mrb[1].mxu1 }
 0x1dc   : > { %v1274_v9 = vpop.f32.mrb[2].mxu1 }
 0x1dd   : > { %v1276_v10 = vpop.f32.mrb[3].mxu1 }
 0x21b   : > { %v2543_v52 = vpop.f32.mrb[0].mxu0 }
 0x21c   : > { %v3280_v17 = vadd.f32 %v2543_v52, %v1270_v7  ;;  %v2545_v19 = vpop.f32.mrb[1].mxu0 }
 0x21d   : > { %v3281_v20 = vadd.f32 %v2545_v19, %v1272_v8  ;;  %v2547_v22 = vpop.f32.mrb[2].mxu0 }
 0x21e   : > { %v2568_v23 = vadd.f32 %v3280_v17, %v2561_v16  ;;  %v3282_v24 = vadd.f32 %v2547_v22, %v1274_v9  ;;  %v2549_v26 = vpop.f32.mrb[3].mxu0 }
 0x21f   : > { %v2569_v60 = vadd.f32 %v3281_v20, %v2565_v55  ;;  %v3283_v27 = vadd.f32 %v2549_v26, %v1276_v10 }
 0x220   : > { %v2578_v29 = vadd.f32 %v2574_v18, %v2568_v23  ;;  %v2570_v61 = vadd.f32 %v3282_v24, %v2561_v16 }
 0x221   : > { %v2579_v30 = vadd.f32 %v2575_v21, %v2569_v60  ;;  %v2571_v31 = vadd.f32 %v3283_v27, %v2565_v55 }
 0x222   : > { %v2582_v32 = vmax.f32 %v2578_v29, 0.0  ;;  %v2580_v45 = vadd.f32 %v2576_v25, %v2570_v61 }
 0x223   : > { %v2583_v62 = vmax.f32 %v2579_v30, 0.0  ;;  %v2581_v33 = vadd.f32 %v2577_v28, %v2571_v31 }
 0x224   : > { %v2584_v34 = vmax.f32 %v2580_v45, 0.0 }
 0x225   : > { %v3278_v35 = vpack.c.bf16 %v2583_v62, %v2582_v32  ;;  %v2585_v36 = vmax.f32 %v2581_v33, 0.0 }
 0x227   : > { %2598 = vst [vmem:[%s260_s26] sm:$0xff] %v3278_v35  ;;  %v3279_v37 = vpack.c.bf16 %v2585_v36, %v2584_v34 }
 0x229   : > { %2599 = vst [vmem:[%s260_s26 + $0x8] sm:$0xff] %v3279_v37 }
 0x22a PF: > { %s14_s17 = sadd.s32 1, %s3799_s17   ;;  %s4836_s15 = smov %s3795_s16 }
 0x22b   : > { %p11_p5 = scmp.ge.s32.totalorder %s14_s17, 4   ;;  %s4837_s16 = smov %s4839_s18 }
 0x22d   :  { %13 = sbr.rel (!%p11_p5) target bundleno = 2 (0x2), region = 78 }

// kernel: resnet_backbone_forward.50
= control target key start
LH: loop header
LB: loop body
LE: loop exit
PB: predicated region body
PF: predicated region fallthrough
CT: control target
= control target key end

     0   :  { %s3721_s12 = smov 0   ;;  %s3723_s13 = smov 0   ;;  %s4719_s0 = inlined_call_operand.vmem [shape: bf16[2,1,48,256], index: 0, kind: input, shape index: {}]   ;;  %s4720_s1 = inlined_call_operand.vmem [shape: bf16[9,256,256], index: 1, kind: input, shape index: {}]   ;;  %s4721_s2 = inlined_call_operand.vmem [shape: f32[1,256], index: 2, kind: input, shape index: {}]   ;;  %s4722_s3 = inlined_call_operand.vmem [shape: bf16[2,16,256], index: 3, kind: output, shape index: {}]  }
   0x1   :  { %s3725_s14 = smov 0  }
   0x2 LB: > { %s25_s15 = sadd.s32 1, %s3695_s13  ;;  %p2617_p0 = scmp.ge.s32.totalorder %s3699_s14, 1  ;;  %s3699_s14 = sphi %s3725_s14, %s13_s14   ;;  %s3695_s13 = sphi %s3723_s13, %s4724_s13   ;;  %s3691_s12 = sphi %s3721_s12, %s4723_s12  }
   0x3   : > { %p27_p1 = scmp.ge.s32.totalorder %s25_s15, 2  ;;  %p151_p2 = scmp.lt.s32.totalorder %s3699_s14, 3 }
   0x5   : > { %s4726_s15 = smov (%p27_p1, %s25_s15), 0  ;;  %p152_p3 = pnand %p2617_p0, %p151_p2 }
   0x6   : > { %v3237_v0 = vld [vmem:[%s4720_s1 + $0x104] ss:$8 sps:$4 sm:$0xff] (!%p152_p3)   ;;  %v3241_v2 = vld [vmem:[%s4720_s1 + $0x100] ss:$8 sps:$4 sm:$0xff] (!%p152_p3)   ;;  %v3243_v4 = vld [vmem:[%s4720_s1 + $0x114] ss:$8 sps:$4 sm:$0xff] (!%p152_p3)  }
   0x7   : > { %155 = sbr.rel (%p152_p3) target bundleno = 552 (0x228), region = 32  ;;  %v3239_v1 = vld [vmem:[%s4720_s1 + $0x404] ss:$8 sps:$4 sm:$0xff] (!%p152_p3)   ;;  %471 = vmatprep.subr.bf16.mxu1 (!%p152_p3), %v3237_v0  ;;  %v3242_v3 = vld [vmem:[%s4720_s1 + $0x400] ss:$8 sps:$4 sm:$0xff] (!%p152_p3)   ;;  %p180_p4 = scmp.lt.s32.totalorder (!%p152_p3), %s3691_s12, 1 }
   0x8   : > { %1431 = vmatprep.subr.bf16.mxu0 (!%p152_p3), %v3239_v1  ;;  %472 = vmatpush1.bf16.msra.mxu1 (!%p152_p3), %v3241_v2  ;;  %v3245_v5 = vld [vmem:[%s4720_s1 + $0x414] ss:$8 sps:$4 sm:$0xff] (!%p152_p3)   ;;  %v3247_v6 = vld [vmem:[%s4720_s1 + $0x110] ss:$8 sps:$4 sm:$0xff] (!%p152_p3)   ;;  %v3249_v8 = vld [vmem:[%s4720_s1 + $0x124] ss:$8 sps:$4 sm:$0xff] (!%p152_p3)  }
   0x9   : > { %1432 = vmatpush1.bf16.msra.mxu0 (!%p152_p3), %v3242_v3  ;;  %473 = vmatprep.subr.bf16.mxu1 (!%p152_p3), %v3243_v4  ;;  %v3248_v7 = vld [vmem:[%s4720_s1 + $0x410] ss:$8 sps:$4 sm:$0xff] (!%p152_p3)   ;;  %v3251_v9 = vld [vmem:[%s4720_s1 + $0x424] ss:$8 sps:$4 sm:$0xff] (!%p152_p3)   ;;  %v3253_v10 = vld [vmem:[%s4720_s1 + $0x120] ss:$8 sps:$4 sm:$0xff] (!%p152_p3)  }
   0xa   : > { %1433 = vmatprep.subr.bf16.mxu0 (!%p152_p3), %v3245_v5  ;;  %v3254_v11 = vld [vmem:[%s4720_s1 + $0x420] ss:$8 sps:$4 sm:$0xff] (!%p152_p3)   ;;  %v3255_v12 = vld [vmem:[%s4720_s1 + $0x134] ss:$8 sps:$4 sm:$0xff] (!%p152_p3)   ;;  %v3259_v14 = vld [vmem:[%s4720_s1 + $0x130] ss:$8 sps:$4 sm:$0xff] (!%p152_p3)  }
   0xb   : > { %v3257_v13 = vld [vmem:[%s4720_s1 + $0x434] ss:$8 sps:$4 sm:$0xff] (!%p152_p3)   ;;  %v3260_v15 = vld [vmem:[%s4720_s1 + $0x430] ss:$8 sps:$4 sm:$0xff] (!%p152_p3)   ;;  %v3261_v16 = vld [vmem:[%s4720_s1 + $0x144] ss:$8 sps:$4 sm:$0xff] (!%p152_p3)  }
   0xc   : > { %474 = vmatpush1.bf16.msra.mxu1 (!%p152_p3), %v3247_v6  ;;  %v3263_v17 = vld [vmem:[%s4720_s1 + $0x444] ss:$8 sps:$4 sm:$0xff] (!%p152_p3)   ;;  %v3265_v18 = vld [vmem:[%s4720_s1 + $0x140] ss:$8 sps:$4 sm:$0xff] (!%p152_p3)   ;;  %v3267_v20 = vld [vmem:[%s4720_s1 + $0x154] ss:$8 sps:$4 sm:$0xff] (!%p152_p3)  }
   0xd   : > { %1434 = vmatpush1.bf16.msra.mxu0 (!%p152_p3), %v3248_v7  ;;  %475 = vmatprep.subr.bf16.mxu1 (!%p152_p3), %v3249_v8  ;;  %v3266_v19 = vld [vmem:[%s4720_s1 + $0x440] ss:$8 sps:$4 sm:$0xff] (!%p152_p3)   ;;  %v3269_v21 = vld [vmem:[%s4720_s1 + $0x454] ss:$8 sps:$4 sm:$0xff] (!%p152_p3)   ;;  %v3271_v22 = vld [vmem:[%s4720_s1 + $0x150] ss:$8 sps:$4 sm:$0xff] (!%p152_p3)  }
   0xe   : > { %1435 = vmatprep.subr.bf16.mxu0 %v3251_v9  ;;  %v3272_v23 = vld [vmem:[%s4720_s1 + $0x450] ss:$8 sps:$4 sm:$0xff]   ;;  %v3273_v24 = vld [vmem:[%s4720_s1 + $0x164] ss:$8 sps:$4 sm:$0xff]   ;;  %v3277_v26 = vld [vmem:[%s4720_s1 + $0x160] ss:$8 sps:$4 sm:$0xff]  }
   0xf   : > { %v3275_v25 = vld [vmem:[%s4720_s1 + $0x464] ss:$8 sps:$4 sm:$0xff]   ;;  %v3278_v27 = vld [vmem:[%s4720_s1 + $0x460] ss:$8 sps:$4 sm:$0xff]   ;;  %v3279_v28 = vld [vmem:[%s4720_s1 + $0x174] ss:$8 sps:$4 sm:$0xff]  }
  0x10   : > { %476 = vmatpush1.bf16.msra.mxu1 %v3253_v10  ;;  %v3281_v29 = vld [vmem:[%s4720_s1 + $0x474] ss:$8 sps:$4 sm:$0xff]   ;;  %v3283_v30 = vld [vmem:[%s4720_s1 + $0x170] ss:$8 sps:$4 sm:$0xff]   ;;  %v3285_v32 = vld [vmem:[%s4720_s1 + $0x184] ss:$8 sps:$4 sm:$0xff]  }
  0x11   : > { %1436 = vmatpush1.bf16.msra.mxu0 %v3254_v11  ;;  %477 = vmatprep.subr.bf16.mxu1 %v3255_v12  ;;  %v3284_v31 = vld [vmem:[%s4720_s1 + $0x470] ss:$8 sps:$4 sm:$0xff]   ;;  %v3287_v33 = vld [vmem:[%s4720_s1 + $0x484] ss:$8 sps:$4 sm:$0xff]   ;;  %v3289_v34 = vld [vmem:[%s4720_s1 + $0x180] ss:$8 sps:$4 sm:$0xff]  }
  0x12   : > { %1437 = vmatprep.subr.bf16.mxu0 %v3257_v13  ;;  %v3290_v35 = vld [vmem:[%s4720_s1 + $0x480] ss:$8 sps:$4 sm:$0xff]   ;;  %s4728_s12 = smov (!%p180_p4, %s3691_s12), 1  ;;  %v3291_v36 = vld [vmem:[%s4720_s1 + $0x194] ss:$8 sps:$4 sm:$0xff]   ;;  %vm1511_vm2 = vcmask 1044480  }
  0x13   : > { %v3293_v37 = vld [vmem:[%s4720_s1 + $0x494] ss:$8 sps:$4 sm:$0xff]   ;;  %v3295_v38 = vld [vmem:[%s4720_s1 + $0x190] ss:$8 sps:$4 sm:$0xff]   ;;  %s3212_s25 = smul.u32 48, %s4728_s12  ;;  %vm752_vm3 = vcmask 1046528  }
  0x14   : > { %478 = vmatpush1.bf16.msra.mxu1 %v3259_v14  ;;  %v3296_v39 = vld [vmem:[%s4720_s1 + $0x490] ss:$8 sps:$4 sm:$0xff]   ;;  %v3297_v40 = vld [vmem:[%s4720_s1 + $0x1a4] ss:$8 sps:$4 sm:$0xff]   ;;  %v3301_v42 = vld [vmem:[%s4720_s1 + $0x1a0] ss:$8 sps:$4 sm:$0xff]  }
  0x15   : > { %1438 = vmatpush1.bf16.msra.mxu0 %v3260_v15  ;;  %479 = vmatprep.subr.bf16.mxu1 %v3261_v16  ;;  %v3299_v41 = vld [vmem:[%s4720_s1 + $0x4a4] ss:$8 sps:$4 sm:$0xff]   ;;  %v3302_v43 = vld [vmem:[%s4720_s1 + $0x4a0] ss:$8 sps:$4 sm:$0xff]   ;;  %s3881_s11 = scalar_lea.vmem %s4719_s0, %s3212_s25  ;;  %v3303_v44 = vld [vmem:[%s4720_s1 + $0x1b4] ss:$8 sps:$4 sm:$0xff]  }
  0x16   : > { %1439 = vmatprep.subr.bf16.mxu0 %v3263_v17  ;;  %v3305_v45 = vld [vmem:[%s4720_s1 + $0x4b4] ss:$8 sps:$4 sm:$0xff]   ;;  %v3307_v46 = vld [vmem:[%s4720_s1 + $0x1b0] ss:$8 sps:$4 sm:$0xff]   ;;  %v202_v47 = vld [vmem:[%s3881_s11] sm:$0xff]  ;;  %vm1001_vm4 = vcmask 1045504  }
  0x17   : > { %v3894_v48 = vld [vmem:[%s3881_s11 + $0x8] sm:$0xff]  ;;  %v3897_v49 = vld [vmem:[%s3881_s11 + $0x10] sm:$0xff]  ;;  %vm284_vm0 = vsmask.f32 7424  ;;  %vm1250_vm1 = vsmask.f32 5376 }
  0x18   : > { %480 = vmatpush1.bf16.msra.mxu1 %v3265_v18  ;;  %v3308_v50 = vld [vmem:[%s4720_s1 + $0x4b0] ss:$8 sps:$4 sm:$0xff]   ;;  %v3309_v51 = vld [vmem:[%s4720_s1 + $0x1c4] ss:$8 sps:$4 sm:$0xff]   ;;  %v3906_v52 = vcombine.high %v202_v47, %v3894_v48  ;;  %v3910_v53 = vcombine.high %v3897_v49, %v3897_v49  ;;  %v3313_v59 = vld [vmem:[%s4720_s1 + $0x1c0] ss:$8 sps:$4 sm:$0xff]   ;;  %v3923_v60 = vcombine.low %v202_v47, %v3894_v48  ;;  %v3927_v61 = vcombine.low %v3897_v49, %v3897_v49 }
  0x19   : > { %1440 = vmatpush1.bf16.msra.mxu0 %v3266_v19  ;;  %481 = vmatprep.subr.bf16.mxu1 %v3267_v20  ;;  %v3311_v54 = vld [vmem:[%s4720_s1 + $0x4c4] ss:$8 sps:$4 sm:$0xff]   ;;  %v3314_v62 = vld [vmem:[%s4720_s1 + $0x4c0] ss:$8 sps:$4 sm:$0xff]   ;;  %v3315_v3 = vld [vmem:[%s4720_s1 + $0x1d4] ss:$8 sps:$4 sm:$0xff]  }
  0x1a   : > { %1441 = vmatprep.subr.bf16.mxu0 %v3269_v21  ;;  %v298_v55 = vshrl.u32 %v3906_v52, 16  ;;  %v300_v56 = vshll.u32 %v3906_v52, 16  ;;  %v305_v57 = vshll.u32 %v3910_v53, 16  ;;  %v1263_v58 = vshrl.u32 %v3910_v53, 16  ;;  %v3317_v4 = vld [vmem:[%s4720_s1 + $0x4d4] ss:$8 sps:$4 sm:$0xff]  }
  0x1b   : > { %v3319_v9 = vld [vmem:[%s4720_s1 + $0x1d0] ss:$8 sps:$4 sm:$0xff]   ;;  %v288_v11 = vshll.u32 %v3923_v60, 16  ;;  %v286_v14 = vshrl.u32 %v3923_v60, 16  ;;  %v293_v15 = vshll.u32 %v3927_v61, 16  ;;  %v1254_v16 = vshrl.u32 %v3927_v61, 16 }
  0x1c   : > { %482 = vmatpush1.bf16.msra.mxu1 %v3271_v22  ;;  %v302_v63 = vrot.slane %v300_v56, 1  ;;  %v307_v0 = vrot.slane %v305_v57, 1  ;;  %v1260_v1 = vrot.slane %v298_v55, 2  ;;  %v1261_v2 = vrot.slane %v300_v56, 3  ;;  %v3320_v12 = vld [vmem:[%s4720_s1 + $0x4d0] ss:$8 sps:$4 sm:$0xff]  }
  0x1d   : > { %1442 = vmatpush1.bf16.msra.mxu0 %v3272_v23  ;;  %483 = vmatprep.subr.bf16.mxu1 %v3273_v24  ;;  %v1265_v5 = vrot.slane %v1263_v58, 2  ;;  %v1266_v6 = vrot.slane %v305_v57, 3  ;;  %v3321_v17 = vld [vmem:[%s4720_s1 + $0x1e4] ss:$8 sps:$4 sm:$0xff]   ;;  %v3325_v20 = vld [vmem:[%s4720_s1 + $0x1e0] ss:$8 sps:$4 sm:$0xff]  }
  0x1e   : > { %1443 = vmatprep.subr.bf16.mxu0 %v3275_v25  ;;  %v303_v7 = vor.u32 %v302_v63, %v298_v55  ;;  %v1262_v8 = vor.u32 %v1261_v2, %v1260_v1  ;;  %v3323_v18 = vld [vmem:[%s4720_s1 + $0x4e4] ss:$8 sps:$4 sm:$0xff]   ;;  %v3326_v21 = vld [vmem:[%s4720_s1 + $0x4e0] ss:$8 sps:$4 sm:$0xff]   ;;  %v290_v22 = vrot.slane %v288_v11, 1  ;;  %v1251_v23 = vrot.slane %v286_v14, 2 }
  0x1f   : > { %v1267_v10 = vor.u32 %v1266_v6, %v1265_v5  ;;  %v1252_v24 = vrot.slane %v288_v11, 3  ;;  %v1256_v25 = vrot.slane %v1254_v16, 2  ;;  %v3352_v55 = vld [vmem:[%s4720_s1 + $0x520] ss:$8 sps:$4 sm:$0xff]   ;;  %v3357_v56 = vld [vmem:[%s4720_s1 + $0x34] ss:$8 sps:$4 sm:$0xff]  }
  0x20   : > { %484 = vmatpush1.bf16.msra.mxu1 %v3277_v26  ;;  %v308_v13 = vsel %vm284_vm0, %v303_v7, %v307_v0  ;;  %v1257_v26 = vrot.slane %v293_v15, 3  ;;  %v3360_v57 = vld [vmem:[%s4720_s1 + $0x534] ss:$8 sps:$4 sm:$0xff]   ;;  %v3355_v58 = vld [vmem:[%s4720_s1 + $0x30] ss:$8 sps:$4 sm:$0xff]   ;;  %s3177_s8 = sshll.u32 %s4728_s12, 4 }
  0x21   : > { %1444 = vmatpush1.bf16.msra.mxu0 %v3278_v27  ;;  %485 = vmatprep.subr.bf16.mxu1 %v3279_v28  ;;  %v1268_v19 = vsel %vm1250_vm1, %v1262_v8, %v1267_v10  ;;  %v3327_v27 = vld [vmem:[%s4720_s1 + $0x1f4] ss:$8 sps:$4 sm:$0xff]   ;;  %v3366_v63 = vld [vmem:[%s4720_s1 + $0x544] ss:$8 sps:$4 sm:$0xff]   ;;  %v3361_v0 = vld [vmem:[%s4720_s1 + $0x40] ss:$8 sps:$4 sm:$0xff]   ;;  %s194_s16 = scalar_lea.vmem %s4722_s3, %s3177_s8 }
  0x22   : > { %1445 = vmatprep.subr.bf16.mxu0 %v3281_v29  ;;  %503 = vmatprep.mubr.bf16.mxu1 %v308_v13  ;;  %v3329_v28 = vld [vmem:[%s4720_s1 + $0x4f4] ss:$8 sps:$4 sm:$0xff]   ;;  %v3331_v29 = vld [vmem:[%s4720_s1 + $0x1f0] ss:$8 sps:$4 sm:$0xff]   ;;  %v3364_v1 = vld [vmem:[%s4720_s1 + $0x540] ss:$8 sps:$4 sm:$0xff]  }
  0x23   : > { %1463 = vmatprep.mubr.bf16.mxu0 %v1268_v19  ;;  %v3369_v2 = vld [vmem:[%s4720_s1 + $0x54] ss:$8 sps:$4 sm:$0xff]   ;;  %v3370_v5 = vld [vmem:[%s4720_s1 + $0x550] ss:$8 sps:$4 sm:$0xff]   ;;  %v3375_v6 = vld [vmem:[%s4720_s1 + $0x64] ss:$8 sps:$4 sm:$0xff]  }
  0x24   : > { %486 = vmatpush1.bf16.msra.mxu1 %v3283_v30  ;;  %v3332_v30 = vld [vmem:[%s4720_s1 + $0x4f0] ss:$8 sps:$4 sm:$0xff]   ;;  %v3378_v7 = vld [vmem:[%s4720_s1 + $0x564] ss:$8 sps:$4 sm:$0xff]   ;;  %v3373_v8 = vld [vmem:[%s4720_s1 + $0x60] ss:$8 sps:$4 sm:$0xff]  }
  0x25   : > { %1446 = vmatpush1.bf16.msra.mxu0 %v3284_v31  ;;  %487 = vmatprep.subr.bf16.mxu1 %v3285_v32  ;;  %v291_v31 = vor.u32 %v290_v22, %v286_v14  ;;  %v295_v32 = vrot.slane %v293_v15, 1  ;;  %v3381_v10 = vld [vmem:[%s4720_s1 + $0x74] ss:$8 sps:$4 sm:$0xff]   ;;  %v3382_v13 = vld [vmem:[%s4720_s1 + $0x570] ss:$8 sps:$4 sm:$0xff]  }
  0x26   : > { %1447 = vmatprep.subr.bf16.mxu0 %v3287_v33  ;;  %v1253_v33 = vor.u32 %v1252_v24, %v1251_v23  ;;  %v3384_v11 = vld [vmem:[%s4720_s1 + $0x574] ss:$8 sps:$4 sm:$0xff]   ;;  %v3387_v14 = vld [vmem:[%s4720_s1 + $0x84] ss:$8 sps:$4 sm:$0xff]   ;;  %v3385_v16 = vld [vmem:[%s4720_s1 + $0x80] ss:$8 sps:$4 sm:$0xff]  }
  0x27   : > { %v3390_v15 = vld [vmem:[%s4720_s1 + $0x584] ss:$8 sps:$4 sm:$0xff]   ;;  %v3396_v19 = vld [vmem:[%s4720_s1 + $0x594] ss:$8 sps:$4 sm:$0xff]   ;;  %v3397_v24 = vld [vmem:[%s4720_s1 + $0xa0] ss:$8 sps:$4 sm:$0xff]  }
  0x28   : > { %488 = vmatpush1.bf16.msra.mxu1 %v3289_v34  ;;  %v1258_v34 = vor.u32 %v1257_v26, %v1256_v25  ;;  %v3399_v22 = vld [vmem:[%s4720_s1 + $0xa4] ss:$8 sps:$4 sm:$0xff]   ;;  %v3400_v25 = vld [vmem:[%s4720_s1 + $0x5a0] ss:$8 sps:$4 sm:$0xff]   ;;  %v3405_v26 = vld [vmem:[%s4720_s1 + $0xb4] ss:$8 sps:$4 sm:$0xff]  }
  0x29   : > { %1448 = vmatpush1.bf16.msra.mxu0 %v3290_v35  ;;  %489 = vmatprep.subr.bf16.mxu1 %v3291_v36  ;;  %v3337_v35 = vld [vmem:[%s4720_s1 + $0x4] ss:$8 sps:$4 sm:$0xff]  }
  0x2a   : > { %1449 = vmatprep.subr.bf16.mxu0 %v3293_v37  ;;  %v3340_v36 = vld [vmem:[%s4720_s1 + $0x504] ss:$8 sps:$4 sm:$0xff]   ;;  %v1515_v37 = vrot.slane %v3906_v52, 3 }
  0x2b   : > { %v3402_v23 = vld [vmem:[%s4720_s1 + $0x5a4] ss:$8 sps:$4 sm:$0xff]  }
  0x2c   : > { %490 = vmatpush1.bf16.msra.mxu1 %v3295_v38  ;;  %v1516_v38 = vrot.slane %v3910_v53, 3 }
  0x2d   : > { %1450 = vmatpush1.bf16.msra.mxu0 %v3296_v39  ;;  %491 = vmatprep.subr.bf16.mxu1 %v3297_v40  ;;  %v3335_v39 = vld [vmem:[%s4720_s1] ss:$8 sps:$4 sm:$0xff]  }
  0x2e   : > { %1451 = vmatprep.subr.bf16.mxu0 %v3299_v41  ;;  %v3338_v40 = vld [vmem:[%s4720_s1 + $0x500] ss:$8 sps:$4 sm:$0xff]   ;;  %v296_v41 = vsel %vm284_vm0, %v291_v31, %v295_v32  ;;  %v1517_v47 = vsel %vm1511_vm2, %v1515_v37, %v1516_v38  ;;  %v3414_v31 = vld [vmem:[%s4720_s1 + $0x5c4] ss:$8 sps:$4 sm:$0xff]   ;;  %v3418_v37 = vld [vmem:[%s4720_s1 + $0x5d0] ss:$8 sps:$4 sm:$0xff]  }
  0x2f   : > { %v3409_v32 = vld [vmem:[%s4720_s1 + $0xc0] ss:$8 sps:$4 sm:$0xff]   ;;  %v3423_v38 = vld [vmem:[%s4720_s1 + $0xe4] ss:$8 sps:$4 sm:$0xff]  }
  0x30   : > { %492 = vmatpush1.bf16.msra.mxu1 %v3301_v42  ;;  %v1259_v42 = vsel %vm1250_vm1, %v1253_v33, %v1258_v34  ;;  %v3412_v33 = vld [vmem:[%s4720_s1 + $0x5c0] ss:$8 sps:$4 sm:$0xff]   ;;  %v3417_v34 = vld [vmem:[%s4720_s1 + $0xd4] ss:$8 sps:$4 sm:$0xff]  }
  0x31   : > { %1452 = vmatpush1.bf16.msra.mxu0 %v3302_v43  ;;  %493 = vmatprep.subr.bf16.mxu1 %v3303_v44  ;;  %v3345_v43 = vld [vmem:[%s4720_s1 + $0x14] ss:$8 sps:$4 sm:$0xff]  }
  0x32   : > { %1453 = vmatprep.subr.bf16.mxu0 %v3305_v45  ;;  %v3348_v44 = vld [vmem:[%s4720_s1 + $0x514] ss:$8 sps:$4 sm:$0xff]   ;;  %v3998_v45 = vcombine.high %v3894_v48, %v3897_v49 }
  0x34   : > { %494 = vmatpush1.bf16.msra.mxu1 %v3307_v46  ;;  %v4002_v46 = vcombine.low %v3894_v48, %v3897_v49  ;;  %v3351_v48 = vld [vmem:[%s4720_s1 + $0x24] ss:$8 sps:$4 sm:$0xff]  }
  0x35   : > { %1454 = vmatpush1.bf16.msra.mxu0 %v3308_v50  ;;  %495 = vmatprep.subr.bf16.mxu1 %v3309_v51  ;;  %v3343_v50 = vld [vmem:[%s4720_s1 + $0x10] ss:$8 sps:$4 sm:$0xff]   ;;  %v3354_v49 = vld [vmem:[%s4720_s1 + $0x524] ss:$8 sps:$4 sm:$0xff]  }
  0x36   : > { %1455 = vmatprep.subr.bf16.mxu0 %v3311_v54  ;;  %v3346_v51 = vld [vmem:[%s4720_s1 + $0x510] ss:$8 sps:$4 sm:$0xff]   ;;  %v3349_v54 = vld [vmem:[%s4720_s1 + $0x20] ss:$8 sps:$4 sm:$0xff]  }
  0x38   : > { %496 = vmatpush1.bf16.msra.mxu1 %v3313_v59  ;;  %v3358_v59 = vld [vmem:[%s4720_s1 + $0x530] ss:$8 sps:$4 sm:$0xff]  }
  0x39   : > { %1456 = vmatpush1.bf16.msra.mxu0 %v3314_v62  ;;  %497 = vmatprep.subr.bf16.mxu1 %v3315_v3  ;;  %v3363_v62 = vld [vmem:[%s4720_s1 + $0x44] ss:$8 sps:$4 sm:$0xff]   ;;  %v3372_v3 = vld [vmem:[%s4720_s1 + $0x554] ss:$8 sps:$4 sm:$0xff]  }
  0x3a   : > { %1457 = vmatprep.subr.bf16.mxu0 %v3317_v4  ;;  %v3367_v4 = vld [vmem:[%s4720_s1 + $0x50] ss:$8 sps:$4 sm:$0xff]  }
  0x3c   : > { %498 = vmatpush1.bf16.msra.mxu1 %v3319_v9  ;;  %v3376_v9 = vld [vmem:[%s4720_s1 + $0x560] ss:$8 sps:$4 sm:$0xff]  }
  0x3d   : > { %1458 = vmatpush1.bf16.msra.mxu0 %v3320_v12  ;;  %499 = vmatprep.subr.bf16.mxu1 %v3321_v17  ;;  %v3379_v12 = vld [vmem:[%s4720_s1 + $0x70] ss:$8 sps:$4 sm:$0xff]   ;;  %v3388_v17 = vld [vmem:[%s4720_s1 + $0x580] ss:$8 sps:$4 sm:$0xff]  }
  0x3e   : > { %1459 = vmatprep.subr.bf16.mxu0 %v3323_v18  ;;  %v3393_v18 = vld [vmem:[%s4720_s1 + $0x94] ss:$8 sps:$4 sm:$0xff]  }
  0x40   : > { %500 = vmatpush1.bf16.msra.mxu1 %v3325_v20  ;;  %v3391_v20 = vld [vmem:[%s4720_s1 + $0x90] ss:$8 sps:$4 sm:$0xff]  }
  0x41   : > { %1460 = vmatpush1.bf16.msra.mxu0 %v3326_v21  ;;  %501 = vmatprep.subr.bf16.mxu1 %v3327_v27  ;;  %v3394_v21 = vld [vmem:[%s4720_s1 + $0x590] ss:$8 sps:$4 sm:$0xff]   ;;  %v3408_v27 = vld [vmem:[%s4720_s1 + $0x5b4] ss:$8 sps:$4 sm:$0xff]  }
  0x42   : > { %1461 = vmatprep.subr.bf16.mxu0 %v3329_v28  ;;  %v3403_v28 = vld [vmem:[%s4720_s1 + $0xb0] ss:$8 sps:$4 sm:$0xff]  }
  0x44   : > { %502 = vmatpush1.bf16.msra.mxu1 %v3331_v29  ;;  %v3406_v29 = vld [vmem:[%s4720_s1 + $0x5b0] ss:$8 sps:$4 sm:$0xff]  }
  0x45   : > { %1462 = vmatpush1.bf16.msra.mxu0 %v3332_v30  ;;  %676 = vmatprep.subr.bf16.mxu1 %v3337_v35  ;;  %v3411_v30 = vld [vmem:[%s4720_s1 + $0xc4] ss:$8 sps:$4 sm:$0xff]   ;;  %v3420_v35 = vld [vmem:[%s4720_s1 + $0x5d4] ss:$8 sps:$4 sm:$0xff]  }
  0x46   : > { %1680 = vmatprep.subr.bf16.mxu0 %v3340_v36  ;;  %v3415_v36 = vld [vmem:[%s4720_s1 + $0xd0] ss:$8 sps:$4 sm:$0xff]  }
  0x47   : > { %504 = vmatmul.mubr.bf16.vlgmr.msra.gmra.mrb[0].mxu1 %v296_v41  ;;  %v3424_v41 = vld [vmem:[%s4720_s1 + $0x5e0] ss:$8 sps:$4 sm:$0xff]  }
  0x48   : > { %1464 = vmatmul.mubr.bf16.vlgmr.msra.gmra.mrb[0].mxu0 %v1259_v42  ;;  %677 = vmatpush1.bf16.msra.mxu1 %v3335_v39  ;;  %v3426_v39 = vld [vmem:[%s4720_s1 + $0x5e4] ss:$8 sps:$4 sm:$0xff]   ;;  %v3429_v42 = vld [vmem:[%s4720_s1 + $0xf4] ss:$8 sps:$4 sm:$0xff]  }
  0x49   : > { %1681 = vmatpush1.bf16.msra.mxu0 %v3338_v40  ;;  %678 = vmatprep.subr.bf16.mxu1 %v3345_v43  ;;  %v3421_v40 = vld [vmem:[%s4720_s1 + $0xe0] ss:$8 sps:$4 sm:$0xff]   ;;  %v3432_v43 = vld [vmem:[%s4720_s1 + $0x5f4] ss:$8 sps:$4 sm:$0xff]  }
  0x4a   : > { %1682 = vmatprep.subr.bf16.mxu0 %v3348_v44  ;;  %708 = vmatprep.mubr.bf16.mxu1 %v3906_v52  ;;  %v1512_v44 = vrot.slane %v3923_v60, 3 }
  0x4b   : > { %1712 = vmatprep.mubr.bf16.mxu0 %v1517_v47  ;;  %v3427_v47 = vld [vmem:[%s4720_s1 + $0xf0] ss:$8 sps:$4 sm:$0xff]  }
  0x4c   : > { %679 = vmatpush1.bf16.msra.mxu1 %v3343_v50  ;;  %v3430_v50 = vld [vmem:[%s4720_s1 + $0x5f0] ss:$8 sps:$4 sm:$0xff]  }
  0x4d   : > { %1683 = vmatpush1.bf16.msra.mxu0 %v3346_v51  ;;  %680 = vmatprep.subr.bf16.mxu1 %v3351_v48  ;;  %v1513_v51 = vrot.slane %v3927_v61, 3  ;;  %v3435_v48 = vld [vmem:[%s4720_s1 + $0x204] ss:$8 sps:$4 sm:$0xff]  }
  0x4e   : > { %1684 = vmatprep.subr.bf16.mxu0 %v3354_v49  ;;  %v3438_v49 = vld [vmem:[%s4720_s1 + $0x604] ss:$8 sps:$4 sm:$0xff]  }
  0x50   : > { %681 = vmatpush1.bf16.msra.mxu1 %v3349_v54  ;;  %v756_v54 = vrot.slane %v3906_v52, 1 }
  0x51   : > { %1685 = vmatpush1.bf16.msra.mxu0 %v3352_v55  ;;  %682 = vmatprep.subr.bf16.mxu1 %v3357_v56  ;;  %v757_v55 = vrot.slane %v3910_v53, 1  ;;  %v3433_v56 = vld [vmem:[%s4720_s1 + $0x200] ss:$8 sps:$4 sm:$0xff]  }
  0x52   : > { %1686 = vmatprep.subr.bf16.mxu0 %v3360_v57  ;;  %v3436_v57 = vld [vmem:[%s4720_s1 + $0x600] ss:$8 sps:$4 sm:$0xff]  }
  0x54   : > { %683 = vmatpush1.bf16.msra.mxu1 %v3355_v58  ;;  %v1514_v58 = vsel %vm1511_vm2, %v1512_v44, %v1513_v51  ;;  %v3505_v44 = vld [vmem:[%s4720_s1 + $0x2c0] ss:$8 sps:$4 sm:$0xff]   ;;  %v3516_v51 = vld [vmem:[%s4720_s1 + $0x6d4] ss:$8 sps:$4 sm:$0xff]  }
  0x55   : > { %1687 = vmatpush1.bf16.msra.mxu0 %v3358_v59  ;;  %684 = vmatprep.subr.bf16.mxu1 %v3363_v62  ;;  %v3441_v59 = vld [vmem:[%s4720_s1 + $0x214] ss:$8 sps:$4 sm:$0xff]  }
  0x56   : > { %1688 = vmatprep.subr.bf16.mxu0 %v3366_v63  ;;  %v3444_v62 = vld [vmem:[%s4720_s1 + $0x614] ss:$8 sps:$4 sm:$0xff]   ;;  %v758_v63 = vsel %vm752_vm3, %v756_v54, %v757_v55  ;;  %v3519_v54 = vld [vmem:[%s4720_s1 + $0x2e4] ss:$8 sps:$4 sm:$0xff]  }
  0x57   : > { %v4360_v55 = vld [vmem:[%s3881_s11 + $0x18] sm:$0xff] }
  0x58   : > { %685 = vmatpush1.bf16.msra.mxu1 %v3361_v0  ;;  %v3439_v0 = vld [vmem:[%s4720_s1 + $0x210] ss:$8 sps:$4 sm:$0xff]  }
  0x59   : > { %1689 = vmatpush1.bf16.msra.mxu0 %v3364_v1  ;;  %686 = vmatprep.subr.bf16.mxu1 %v3369_v2  ;;  %v3442_v1 = vld [vmem:[%s4720_s1 + $0x610] ss:$8 sps:$4 sm:$0xff]   ;;  %v3447_v2 = vld [vmem:[%s4720_s1 + $0x224] ss:$8 sps:$4 sm:$0xff]  }
  0x5a   : > { %1690 = vmatprep.subr.bf16.mxu0 %v3372_v3  ;;  %v3450_v3 = vld [vmem:[%s4720_s1 + $0x624] ss:$8 sps:$4 sm:$0xff]  }
  0x5c   : > { %687 = vmatpush1.bf16.msra.mxu1 %v3367_v4  ;;  %v3445_v4 = vld [vmem:[%s4720_s1 + $0x220] ss:$8 sps:$4 sm:$0xff]  }
  0x5d   : > { %1691 = vmatpush1.bf16.msra.mxu0 %v3370_v5  ;;  %688 = vmatprep.subr.bf16.mxu1 %v3375_v6  ;;  %v3448_v5 = vld [vmem:[%s4720_s1 + $0x620] ss:$8 sps:$4 sm:$0xff]   ;;  %v3453_v6 = vld [vmem:[%s4720_s1 + $0x234] ss:$8 sps:$4 sm:$0xff]  }
  0x5e   : > { %1692 = vmatprep.subr.bf16.mxu0 %v3378_v7  ;;  %v3456_v7 = vld [vmem:[%s4720_s1 + $0x634] ss:$8 sps:$4 sm:$0xff]  }
  0x60   : > { %689 = vmatpush1.bf16.msra.mxu1 %v3373_v8  ;;  %v3451_v8 = vld [vmem:[%s4720_s1 + $0x230] ss:$8 sps:$4 sm:$0xff]  }
  0x61   : > { %1693 = vmatpush1.bf16.msra.mxu0 %v3376_v9  ;;  %690 = vmatprep.subr.bf16.mxu1 %v3381_v10  ;;  %v3454_v9 = vld [vmem:[%s4720_s1 + $0x630] ss:$8 sps:$4 sm:$0xff]   ;;  %v3459_v10 = vld [vmem:[%s4720_s1 + $0x244] ss:$8 sps:$4 sm:$0xff]  }
  0x62   : > { %1694 = vmatprep.subr.bf16.mxu0 %v3384_v11  ;;  %v3462_v11 = vld [vmem:[%s4720_s1 + $0x644] ss:$8 sps:$4 sm:$0xff]  }
  0x64   : > { %691 = vmatpush1.bf16.msra.mxu1 %v3379_v12  ;;  %v3457_v12 = vld [vmem:[%s4720_s1 + $0x240] ss:$8 sps:$4 sm:$0xff]  }
  0x65   : > { %1695 = vmatpush1.bf16.msra.mxu0 %v3382_v13  ;;  %692 = vmatprep.subr.bf16.mxu1 %v3387_v14  ;;  %v3460_v13 = vld [vmem:[%s4720_s1 + $0x640] ss:$8 sps:$4 sm:$0xff]   ;;  %v3465_v14 = vld [vmem:[%s4720_s1 + $0x254] ss:$8 sps:$4 sm:$0xff]  }
  0x66   : > { %1696 = vmatprep.subr.bf16.mxu0 %v3390_v15  ;;  %v3468_v15 = vld [vmem:[%s4720_s1 + $0x654] ss:$8 sps:$4 sm:$0xff]  }
  0x68   : > { %693 = vmatpush1.bf16.msra.mxu1 %v3385_v16  ;;  %v3463_v16 = vld [vmem:[%s4720_s1 + $0x250] ss:$8 sps:$4 sm:$0xff]  }
  0x69   : > { %1697 = vmatpush1.bf16.msra.mxu0 %v3388_v17  ;;  %694 = vmatprep.subr.bf16.mxu1 %v3393_v18  ;;  %v3466_v17 = vld [vmem:[%s4720_s1 + $0x650] ss:$8 sps:$4 sm:$0xff]   ;;  %v3471_v18 = vld [vmem:[%s4720_s1 + $0x264] ss:$8 sps:$4 sm:$0xff]  }
  0x6a   : > { %1698 = vmatprep.subr.bf16.mxu0 %v3396_v19  ;;  %v3474_v19 = vld [vmem:[%s4720_s1 + $0x664] ss:$8 sps:$4 sm:$0xff]  }
  0x6c   : > { %695 = vmatpush1.bf16.msra.mxu1 %v3391_v20  ;;  %v3469_v20 = vld [vmem:[%s4720_s1 + $0x260] ss:$8 sps:$4 sm:$0xff]  }
  0x6d   : > { %1699 = vmatpush1.bf16.msra.mxu0 %v3394_v21  ;;  %696 = vmatprep.subr.bf16.mxu1 %v3399_v22  ;;  %v3472_v21 = vld [vmem:[%s4720_s1 + $0x660] ss:$8 sps:$4 sm:$0xff]   ;;  %v3477_v22 = vld [vmem:[%s4720_s1 + $0x274] ss:$8 sps:$4 sm:$0xff]  }
  0x6e   : > { %1700 = vmatprep.subr.bf16.mxu0 %v3402_v23  ;;  %v3480_v23 = vld [vmem:[%s4720_s1 + $0x674] ss:$8 sps:$4 sm:$0xff]  }
  0x70   : > { %697 = vmatpush1.bf16.msra.mxu1 %v3397_v24  ;;  %v3475_v24 = vld [vmem:[%s4720_s1 + $0x270] ss:$8 sps:$4 sm:$0xff]  }
  0x71   : > { %1701 = vmatpush1.bf16.msra.mxu0 %v3400_v25  ;;  %698 = vmatprep.subr.bf16.mxu1 %v3405_v26  ;;  %v3478_v25 = vld [vmem:[%s4720_s1 + $0x670] ss:$8 sps:$4 sm:$0xff]   ;;  %v3483_v26 = vld [vmem:[%s4720_s1 + $0x284] ss:$8 sps:$4 sm:$0xff]  }
  0x72   : > { %1702 = vmatprep.subr.bf16.mxu0 %v3408_v27  ;;  %v3486_v27 = vld [vmem:[%s4720_s1 + $0x684] ss:$8 sps:$4 sm:$0xff]  }
  0x74   : > { %699 = vmatpush1.bf16.msra.mxu1 %v3403_v28  ;;  %v3481_v28 = vld [vmem:[%s4720_s1 + $0x280] ss:$8 sps:$4 sm:$0xff]  }
  0x75   : > { %1703 = vmatpush1.bf16.msra.mxu0 %v3406_v29  ;;  %700 = vmatprep.subr.bf16.mxu1 %v3411_v30  ;;  %v3484_v29 = vld [vmem:[%s4720_s1 + $0x680] ss:$8 sps:$4 sm:$0xff]   ;;  %v3489_v30 = vld [vmem:[%s4720_s1 + $0x294] ss:$8 sps:$4 sm:$0xff]  }
  0x76   : > { %1704 = vmatprep.subr.bf16.mxu0 %v3414_v31  ;;  %v3492_v31 = vld [vmem:[%s4720_s1 + $0x694] ss:$8 sps:$4 sm:$0xff]  }
  0x78   : > { %701 = vmatpush1.bf16.msra.mxu1 %v3409_v32  ;;  %v3487_v32 = vld [vmem:[%s4720_s1 + $0x290] ss:$8 sps:$4 sm:$0xff]  }
  0x79   : > { %1705 = vmatpush1.bf16.msra.mxu0 %v3412_v33  ;;  %702 = vmatprep.subr.bf16.mxu1 %v3417_v34  ;;  %v3490_v33 = vld [vmem:[%s4720_s1 + $0x690] ss:$8 sps:$4 sm:$0xff]   ;;  %v3495_v34 = vld [vmem:[%s4720_s1 + $0x2a4] ss:$8 sps:$4 sm:$0xff]  }
  0x7a   : > { %1706 = vmatprep.subr.bf16.mxu0 %v3420_v35  ;;  %v3498_v35 = vld [vmem:[%s4720_s1 + $0x6a4] ss:$8 sps:$4 sm:$0xff]  }
  0x7c   : > { %703 = vmatpush1.bf16.msra.mxu1 %v3415_v36  ;;  %v3493_v36 = vld [vmem:[%s4720_s1 + $0x2a0] ss:$8 sps:$4 sm:$0xff]  }
  0x7d   : > { %1707 = vmatpush1.bf16.msra.mxu0 %v3418_v37  ;;  %704 = vmatprep.subr.bf16.mxu1 %v3423_v38  ;;  %v3496_v37 = vld [vmem:[%s4720_s1 + $0x6a0] ss:$8 sps:$4 sm:$0xff]   ;;  %v3501_v38 = vld [vmem:[%s4720_s1 + $0x2b4] ss:$8 sps:$4 sm:$0xff]  }
  0x7e   : > { %1708 = vmatprep.subr.bf16.mxu0 %v3426_v39  ;;  %v3504_v39 = vld [vmem:[%s4720_s1 + $0x6b4] ss:$8 sps:$4 sm:$0xff]  }
  0x80   : > { %705 = vmatpush1.bf16.msra.mxu1 %v3421_v40  ;;  %v3499_v40 = vld [vmem:[%s4720_s1 + $0x2b0] ss:$8 sps:$4 sm:$0xff]  }
  0x81   : > { %1709 = vmatpush1.bf16.msra.mxu0 %v3424_v41  ;;  %706 = vmatprep.subr.bf16.mxu1 %v3429_v42  ;;  %v3502_v41 = vld [vmem:[%s4720_s1 + $0x6b0] ss:$8 sps:$4 sm:$0xff]   ;;  %v3507_v42 = vld [vmem:[%s4720_s1 + $0x2c4] ss:$8 sps:$4 sm:$0xff]  }
  0x82   : > { %1710 = vmatprep.subr.bf16.mxu0 %v3432_v43  ;;  %v3510_v43 = vld [vmem:[%s4720_s1 + $0x6c4] ss:$8 sps:$4 sm:$0xff]  }
  0x84   : > { %707 = vmatpush1.bf16.msra.mxu1 %v3427_v47  ;;  %v3508_v47 = vld [vmem:[%s4720_s1 + $0x6c0] ss:$8 sps:$4 sm:$0xff]  }
  0x85   : > { %1711 = vmatpush1.bf16.msra.mxu0 %v3430_v50  ;;  %921 = vmatprep.subr.bf16.mxu1 %v3435_v48  ;;  %v3513_v50 = vld [vmem:[%s4720_s1 + $0x2d4] ss:$8 sps:$4 sm:$0xff]   ;;  %v3511_v48 = vld [vmem:[%s4720_s1 + $0x2d0] ss:$8 sps:$4 sm:$0xff]  }
  0x86   : > { %1924 = vmatprep.subr.bf16.mxu0 %v3438_v49  ;;  %v3514_v49 = vld [vmem:[%s4720_s1 + $0x6d0] ss:$8 sps:$4 sm:$0xff]  }
  0x87   : > { %709 = vmatmul.mubr.bf16.vlgmr.msra.gmra.mrb[0].mxu1 %v3923_v60 }
  0x88   : > { %1713 = vmatmul.mubr.bf16.vlgmr.msra.gmra.mrb[0].mxu0 %v1514_v58  ;;  %922 = vmatpush1.bf16.msra.mxu1 %v3433_v56  ;;  %v3522_v56 = vld [vmem:[%s4720_s1 + $0x6e4] ss:$8 sps:$4 sm:$0xff]   ;;  %v3517_v58 = vld [vmem:[%s4720_s1 + $0x2e0] ss:$8 sps:$4 sm:$0xff]  }
  0x89   : > { %1925 = vmatpush1.bf16.msra.mxu0 %v3436_v57  ;;  %923 = vmatprep.subr.bf16.mxu1 %v3441_v59  ;;  %v2024_v57 = vshll.u32 %v3998_v45, 16  ;;  %v3520_v59 = vld [vmem:[%s4720_s1 + $0x6e0] ss:$8 sps:$4 sm:$0xff]  }
  0x8a   : > { %1926 = vmatprep.subr.bf16.mxu0 %v3444_v62  ;;  %953 = vmatprep.mubr.bf16.mxu1 %v758_v63  ;;  %v4374_v62 = vcombine.high %v4360_v55, %v4360_v55  ;;  %v3525_v63 = vld [vmem:[%s4720_s1 + $0x2f4] ss:$8 sps:$4 sm:$0xff]  }
  0x8b   : > { %1956 = vmatprep.mubr.bf16.mxu0 %v3998_v45 }
  0x8c   : > { %924 = vmatpush1.bf16.msra.mxu1 %v3439_v0  ;;  %v3528_v0 = vld [vmem:[%s4720_s1 + $0x6f4] ss:$8 sps:$4 sm:$0xff]  }
  0x8d   : > { %1927 = vmatpush1.bf16.msra.mxu0 %v3442_v1  ;;  %925 = vmatprep.subr.bf16.mxu1 %v3447_v2  ;;  %v2022_v1 = vshrl.u32 %v3998_v45, 16  ;;  %v2026_v2 = vrot.slane %v2024_v57, 1  ;;  %v3588_v57 = vld [vmem:[%s4720_s1 + $0x790] ss:$8 sps:$4 sm:$0xff]  }
  0x8e   : > { %1928 = vmatprep.subr.bf16.mxu0 %v3450_v3  ;;  %v3523_v3 = vld [vmem:[%s4720_s1 + $0x2f0] ss:$8 sps:$4 sm:$0xff]  }
  0x90   : > { %926 = vmatpush1.bf16.msra.mxu1 %v3445_v4  ;;  %v3526_v4 = vld [vmem:[%s4720_s1 + $0x6f0] ss:$8 sps:$4 sm:$0xff]  }
  0x91   : > { %1929 = vmatpush1.bf16.msra.mxu0 %v3448_v5  ;;  %927 = vmatprep.subr.bf16.mxu1 %v3453_v6  ;;  %v2029_v5 = vshll.u32 %v4374_v62, 16  ;;  %v3531_v6 = vld [vmem:[%s4720_s1 + $0x304] ss:$8 sps:$4 sm:$0xff]  }
  0x92   : > { %1930 = vmatprep.subr.bf16.mxu0 %v3456_v7  ;;  %v753_v7 = vrot.slane %v3923_v60, 1 }
  0x94   : > { %928 = vmatpush1.bf16.msra.mxu1 %v3451_v8  ;;  %v754_v8 = vrot.slane %v3927_v61, 1 }
  0x95   : > { %1931 = vmatpush1.bf16.msra.mxu0 %v3454_v9  ;;  %929 = vmatprep.subr.bf16.mxu1 %v3459_v10  ;;  %v3535_v9 = vld [vmem:[%s4720_s1 + $0x704] ss:$8 sps:$4 sm:$0xff]   ;;  %v1005_v10 = vrot.slane %v3906_v52, 2  ;;  %v3539_v52 = vld [vmem:[%s4720_s1 + $0x314] ss:$8 sps:$4 sm:$0xff]  }
  0x96   : > { %1932 = vmatprep.subr.bf16.mxu0 %v3462_v11  ;;  %v1006_v11 = vrot.slane %v3910_v53, 2  ;;  %v3542_v53 = vld [vmem:[%s4720_s1 + $0x714] ss:$8 sps:$4 sm:$0xff]  }
  0x98   : > { %930 = vmatpush1.bf16.msra.mxu1 %v3457_v12  ;;  %v3529_v12 = vld [vmem:[%s4720_s1 + $0x300] ss:$8 sps:$4 sm:$0xff]  }
  0x99   : > { %1933 = vmatpush1.bf16.msra.mxu0 %v3460_v13  ;;  %931 = vmatprep.subr.bf16.mxu1 %v3465_v14  ;;  %v3533_v13 = vld [vmem:[%s4720_s1 + $0x700] ss:$8 sps:$4 sm:$0xff]   ;;  %v2027_v14 = vor.u32 %v2026_v2, %v2022_v1  ;;  %v3599_v1 = vld [vmem:[%s4720_s1 + $0x3b4] ss:$8 sps:$4 sm:$0xff]  }
  0x9a   : > { %1934 = vmatprep.subr.bf16.mxu0 %v3468_v15  ;;  %v2031_v15 = vrot.slane %v2029_v5, 1  ;;  %v3602_v2 = vld [vmem:[%s4720_s1 + $0x7b4] ss:$8 sps:$4 sm:$0xff]   ;;  %v3605_v5 = vld [vmem:[%s4720_s1 + $0x3c4] ss:$8 sps:$4 sm:$0xff]  }
  0x9c   : > { %932 = vmatpush1.bf16.msra.mxu1 %v3463_v16  ;;  %v755_v16 = vsel %vm752_vm3, %v753_v7, %v754_v8  ;;  %v3603_v7 = vld [vmem:[%s4720_s1 + $0x3c0] ss:$8 sps:$4 sm:$0xff]  }
  0x9d   : > { %1935 = vmatpush1.bf16.msra.mxu0 %v3466_v17  ;;  %933 = vmatprep.subr.bf16.mxu1 %v3471_v18  ;;  %v1007_v17 = vsel %vm1001_vm4, %v1005_v10, %v1006_v11  ;;  %v2032_v18 = vsel %vm284_vm0, %v2027_v14, %v2031_v15  ;;  %v3606_v8 = vld [vmem:[%s4720_s1 + $0x7c0] ss:$8 sps:$4 sm:$0xff]   ;;  %v3614_v10 = vld [vmem:[%s4720_s1 + $0x7d4] ss:$8 sps:$4 sm:$0xff]   ;;  %v3609_v11 = vld [vmem:[%s4720_s1 + $0x3d0] ss:$8 sps:$4 sm:$0xff]  }
  0x9e   : > { %1936 = vmatprep.subr.bf16.mxu0 %v3474_v19  ;;  %v3537_v19 = vld [vmem:[%s4720_s1 + $0x310] ss:$8 sps:$4 sm:$0xff]   ;;  %v2012_v14 = vshll.u32 %v4002_v46, 16  ;;  %v3617_v15 = vld [vmem:[%s4720_s1 + $0x3e4] ss:$8 sps:$4 sm:$0xff]  }
  0xa0   : > { %934 = vmatpush1.bf16.msra.mxu1 %v3469_v20  ;;  %v3540_v20 = vld [vmem:[%s4720_s1 + $0x710] ss:$8 sps:$4 sm:$0xff]  }
  0xa1   : > { %1937 = vmatpush1.bf16.msra.mxu0 %v3472_v21  ;;  %935 = vmatprep.subr.bf16.mxu1 %v3477_v22  ;;  %v3545_v21 = vld [vmem:[%s4720_s1 + $0x324] ss:$8 sps:$4 sm:$0xff]  }
  0xa2   : > { %1938 = vmatprep.subr.bf16.mxu0 %v3480_v23  ;;  %v3548_v22 = vld [vmem:[%s4720_s1 + $0x724] ss:$8 sps:$4 sm:$0xff]   ;;  %v3543_v23 = vld [vmem:[%s4720_s1 + $0x320] ss:$8 sps:$4 sm:$0xff]  }
  0xa4   : > { %936 = vmatpush1.bf16.msra.mxu1 %v3475_v24  ;;  %v3546_v24 = vld [vmem:[%s4720_s1 + $0x720] ss:$8 sps:$4 sm:$0xff]  }
  0xa5   : > { %1939 = vmatpush1.bf16.msra.mxu0 %v3478_v25  ;;  %937 = vmatprep.subr.bf16.mxu1 %v3483_v26  ;;  %v3551_v25 = vld [vmem:[%s4720_s1 + $0x334] ss:$8 sps:$4 sm:$0xff]  }
  0xa6   : > { %1940 = vmatprep.subr.bf16.mxu0 %v3486_v27  ;;  %v3554_v26 = vld [vmem:[%s4720_s1 + $0x734] ss:$8 sps:$4 sm:$0xff]   ;;  %v3549_v27 = vld [vmem:[%s4720_s1 + $0x330] ss:$8 sps:$4 sm:$0xff]  }
  0xa8   : > { %938 = vmatpush1.bf16.msra.mxu1 %v3481_v28  ;;  %v3552_v28 = vld [vmem:[%s4720_s1 + $0x730] ss:$8 sps:$4 sm:$0xff]  }
  0xa9   : > { %1941 = vmatpush1.bf16.msra.mxu0 %v3484_v29  ;;  %939 = vmatprep.subr.bf16.mxu1 %v3489_v30  ;;  %v3557_v29 = vld [vmem:[%s4720_s1 + $0x344] ss:$8 sps:$4 sm:$0xff]  }
  0xaa   : > { %1942 = vmatprep.subr.bf16.mxu0 %v3492_v31  ;;  %v3560_v30 = vld [vmem:[%s4720_s1 + $0x744] ss:$8 sps:$4 sm:$0xff]   ;;  %v3555_v31 = vld [vmem:[%s4720_s1 + $0x340] ss:$8 sps:$4 sm:$0xff]  }
  0xac   : > { %940 = vmatpush1.bf16.msra.mxu1 %v3487_v32  ;;  %v3558_v32 = vld [vmem:[%s4720_s1 + $0x740] ss:$8 sps:$4 sm:$0xff]  }
  0xad   : > { %1943 = vmatpush1.bf16.msra.mxu0 %v3490_v33  ;;  %941 = vmatprep.subr.bf16.mxu1 %v3495_v34  ;;  %v3563_v33 = vld [vmem:[%s4720_s1 + $0x354] ss:$8 sps:$4 sm:$0xff]  }
  0xae   : > { %1944 = vmatprep.subr.bf16.mxu0 %v3498_v35  ;;  %v3566_v34 = vld [vmem:[%s4720_s1 + $0x754] ss:$8 sps:$4 sm:$0xff]   ;;  %v3561_v35 = vld [vmem:[%s4720_s1 + $0x350] ss:$8 sps:$4 sm:$0xff]  }
  0xb0   : > { %942 = vmatpush1.bf16.msra.mxu1 %v3493_v36  ;;  %v3564_v36 = vld [vmem:[%s4720_s1 + $0x750] ss:$8 sps:$4 sm:$0xff]  }
  0xb1   : > { %1945 = vmatpush1.bf16.msra.mxu0 %v3496_v37  ;;  %943 = vmatprep.subr.bf16.mxu1 %v3501_v38  ;;  %v3569_v37 = vld [vmem:[%s4720_s1 + $0x364] ss:$8 sps:$4 sm:$0xff]  }
  0xb2   : > { %1946 = vmatprep.subr.bf16.mxu0 %v3504_v39  ;;  %v3572_v38 = vld [vmem:[%s4720_s1 + $0x764] ss:$8 sps:$4 sm:$0xff]   ;;  %v3567_v39 = vld [vmem:[%s4720_s1 + $0x360] ss:$8 sps:$4 sm:$0xff]  }
  0xb4   : > { %944 = vmatpush1.bf16.msra.mxu1 %v3499_v40  ;;  %v3570_v40 = vld [vmem:[%s4720_s1 + $0x760] ss:$8 sps:$4 sm:$0xff]  }
  0xb5   : > { %1947 = vmatpush1.bf16.msra.mxu0 %v3502_v41  ;;  %945 = vmatprep.subr.bf16.mxu1 %v3507_v42  ;;  %v3575_v41 = vld [vmem:[%s4720_s1 + $0x374] ss:$8 sps:$4 sm:$0xff]  }
  0xb6   : > { %1948 = vmatprep.subr.bf16.mxu0 %v3510_v43  ;;  %v3578_v42 = vld [vmem:[%s4720_s1 + $0x774] ss:$8 sps:$4 sm:$0xff]   ;;  %v3573_v43 = vld [vmem:[%s4720_s1 + $0x370] ss:$8 sps:$4 sm:$0xff]  }
  0xb8   : > { %946 = vmatpush1.bf16.msra.mxu1 %v3505_v44  ;;  %v3576_v44 = vld [vmem:[%s4720_s1 + $0x770] ss:$8 sps:$4 sm:$0xff]  }
  0xb9   : > { %1949 = vmatpush1.bf16.msra.mxu0 %v3508_v47  ;;  %947 = vmatprep.subr.bf16.mxu1 %v3513_v50  ;;  %v3581_v47 = vld [vmem:[%s4720_s1 + $0x384] ss:$8 sps:$4 sm:$0xff]  }
  0xba   : > { %1950 = vmatprep.subr.bf16.mxu0 %v3516_v51  ;;  %v3584_v50 = vld [vmem:[%s4720_s1 + $0x784] ss:$8 sps:$4 sm:$0xff]   ;;  %v3579_v51 = vld [vmem:[%s4720_s1 + $0x380] ss:$8 sps:$4 sm:$0xff]  }
  0xbc   : > { %948 = vmatpush1.bf16.msra.mxu1 %v3511_v48  ;;  %v3582_v48 = vld [vmem:[%s4720_s1 + $0x780] ss:$8 sps:$4 sm:$0xff]  }
  0xbd   : > { %1951 = vmatpush1.bf16.msra.mxu0 %v3514_v49  ;;  %949 = vmatprep.subr.bf16.mxu1 %v3519_v54  ;;  %v3587_v49 = vld [vmem:[%s4720_s1 + $0x394] ss:$8 sps:$4 sm:$0xff]  }
  0xbe   : > { %1952 = vmatprep.subr.bf16.mxu0 %v3522_v56  ;;  %v3590_v54 = vld [vmem:[%s4720_s1 + $0x794] ss:$8 sps:$4 sm:$0xff]   ;;  %v3585_v56 = vld [vmem:[%s4720_s1 + $0x390] ss:$8 sps:$4 sm:$0xff]  }
  0xc0   : > { %950 = vmatpush1.bf16.msra.mxu1 %v3517_v58  ;;  %v3593_v58 = vld [vmem:[%s4720_s1 + $0x3a4] ss:$8 sps:$4 sm:$0xff]  }
  0xc1   : > { %1953 = vmatpush1.bf16.msra.mxu0 %v3520_v59  ;;  %951 = vmatprep.subr.bf16.mxu1 %v3525_v63  ;;  %v3596_v59 = vld [vmem:[%s4720_s1 + $0x7a4] ss:$8 sps:$4 sm:$0xff]   ;;  %v3591_v63 = vld [vmem:[%s4720_s1 + $0x3a0] ss:$8 sps:$4 sm:$0xff]  }
  0xc2   : > { %1954 = vmatprep.subr.bf16.mxu0 %v3528_v0  ;;  %v3594_v0 = vld [vmem:[%s4720_s1 + $0x7a0] ss:$8 sps:$4 sm:$0xff]  }
  0xc4   : > { %952 = vmatpush1.bf16.msra.mxu1 %v3523_v3  ;;  %v3597_v3 = vld [vmem:[%s4720_s1 + $0x3b0] ss:$8 sps:$4 sm:$0xff]  }
  0xc5   : > { %1955 = vmatpush1.bf16.msra.mxu0 %v3526_v4  ;;  %1170 = vmatprep.subr.bf16.mxu1 %v3531_v6  ;;  %v3600_v4 = vld [vmem:[%s4720_s1 + $0x7b0] ss:$8 sps:$4 sm:$0xff]   ;;  %v3608_v6 = vld [vmem:[%s4720_s1 + $0x7c4] ss:$8 sps:$4 sm:$0xff]  }
  0xc6   : > { %2195 = vmatprep.subr.bf16.mxu0 %v3535_v9  ;;  %v3611_v9 = vld [vmem:[%s4720_s1 + $0x3d4] ss:$8 sps:$4 sm:$0xff]  }
  0xc7   : > { %954 = vmatmul.mubr.bf16.vlgmr.msra.gmra.mrb[0].mxu1 %v755_v16  ;;  %v3620_v16 = vld [vmem:[%s4720_s1 + $0x7e4] ss:$8 sps:$4 sm:$0xff]  }
  0xc8   : > { %1957 = vmatmul.mubr.bf16.vlgmr.msra.gmra.mrb[0].mxu0 %v4002_v46  ;;  %1171 = vmatpush1.bf16.msra.mxu1 %v3529_v12  ;;  %v3612_v12 = vld [vmem:[%s4720_s1 + $0x7d0] ss:$8 sps:$4 sm:$0xff]  }
  0xc9   : > { %2196 = vmatpush1.bf16.msra.mxu0 %v3533_v13  ;;  %1172 = vmatprep.subr.bf16.mxu1 %v3539_v52  ;;  %v4568_v13 = vcombine.low %v4360_v55, %v4360_v55  ;;  %v2010_v52 = vshrl.u32 %v4002_v46, 16  ;;  %v3615_v55 = vld [vmem:[%s4720_s1 + $0x3e0] ss:$8 sps:$4 sm:$0xff]  }
  0xca   : > { %2197 = vmatprep.subr.bf16.mxu0 %v3542_v53  ;;  %1202 = vmatprep.mubr.bf16.mxu1 %v1007_v17  ;;  %v3618_v53 = vld [vmem:[%s4720_s1 + $0x7e0] ss:$8 sps:$4 sm:$0xff]   ;;  %v2014_v17 = vrot.slane %v2012_v14, 1 }
  0xcb   : > { %2227 = vmatprep.mubr.bf16.mxu0 %v2032_v18  ;;  %v2017_v18 = vshll.u32 %v4568_v13, 16 }
  0xcc   : > { %1173 = vmatpush1.bf16.msra.mxu1 %v3537_v19  ;;  %v3623_v19 = vld [vmem:[%s4720_s1 + $0x3f4] ss:$8 sps:$4 sm:$0xff]  }
  0xcd   : > { %2198 = vmatpush1.bf16.msra.mxu0 %v3540_v20  ;;  %1174 = vmatprep.subr.bf16.mxu1 %v3545_v21  ;;  %v3626_v20 = vld [vmem:[%s4720_s1 + $0x7f4] ss:$8 sps:$4 sm:$0xff]   ;;  %v1002_v21 = vrot.slane %v3923_v60, 2  ;;  %v3630_v60 = vld [vmem:[%s4720_s1 + $0x804] ss:$8 sps:$4 sm:$0xff]  }
  0xce   : > { %2199 = vmatprep.subr.bf16.mxu0 %v3548_v22  ;;  %v3621_v22 = vld [vmem:[%s4720_s1 + $0x3f0] ss:$8 sps:$4 sm:$0xff]  }
  0xd0   : > { %1175 = vmatpush1.bf16.msra.mxu1 %v3543_v23  ;;  %v3624_v23 = vld [vmem:[%s4720_s1 + $0x7f0] ss:$8 sps:$4 sm:$0xff]  }
  0xd1   : > { %2200 = vmatpush1.bf16.msra.mxu0 %v3546_v24  ;;  %1176 = vmatprep.subr.bf16.mxu1 %v3551_v25  ;;  %v1003_v24 = vrot.slane %v3927_v61, 2  ;;  %v2015_v25 = vor.u32 %v2014_v17, %v2010_v52  ;;  %v3628_v61 = vld [vmem:[%s4720_s1 + $0x800] ss:$8 sps:$4 sm:$0xff]  }
  0xd2   : > { %2201 = vmatprep.subr.bf16.mxu0 %v3554_v26  ;;  %v2019_v26 = vrot.slane %v2017_v18, 1 }
  0xd4   : > { %1177 = vmatpush1.bf16.msra.mxu1 %v3549_v27  ;;  %v2278_v27 = vrot.slane %v3998_v45, 1  ;;  %v3632_v45 = vld [vmem:[%s4720_s1 + $0x810] ss:$8 sps:$4 sm:$0xff]  }
  0xd5   : > { %2202 = vmatpush1.bf16.msra.mxu0 %v3552_v28  ;;  %1178 = vmatprep.subr.bf16.mxu1 %v3557_v29  ;;  %v2279_v28 = vrot.slane %v4374_v62, 1  ;;  %v1004_v29 = vsel %vm1001_vm4, %v1002_v21, %v1003_v24  ;;  %v3637_v62 = vld [vmem:[%s4720_s1 + $0x824] ss:$8 sps:$4 sm:$0xff]  }
  0xd6   : > { %2203 = vmatprep.subr.bf16.mxu0 %v3560_v30  ;;  %v2020_v30 = vsel %vm284_vm0, %v2015_v25, %v2019_v26 }
  0xd8   : > { %1179 = vmatpush1.bf16.msra.mxu1 %v3555_v31  ;;  %v3634_v31 = vld [vmem:[%s4720_s1 + $0x814] ss:$8 sps:$4 sm:$0xff]  }
  0xd9   : > { %2204 = vmatpush1.bf16.msra.mxu0 %v3558_v32  ;;  %1180 = vmatprep.subr.bf16.mxu1 %v3563_v33  ;;  %v2280_v32 = vsel %vm752_vm3, %v2278_v27, %v2279_v28  ;;  %v3635_v33 = vld [vmem:[%s4720_s1 + $0x820] ss:$8 sps:$4 sm:$0xff]  }
  0xda   : > { %2205 = vmatprep.subr.bf16.mxu0 %v3566_v34  ;;  %v3640_v34 = vld [vmem:[%s4720_s1 + $0x834] ss:$8 sps:$4 sm:$0xff]  }
  0xdc   : > { %1181 = vmatpush1.bf16.msra.mxu1 %v3561_v35  ;;  %v3638_v35 = vld [vmem:[%s4720_s1 + $0x830] ss:$8 sps:$4 sm:$0xff]  }
  0xdd   : > { %2206 = vmatpush1.bf16.msra.mxu0 %v3564_v36  ;;  %1182 = vmatprep.subr.bf16.mxu1 %v3569_v37  ;;  %v3643_v36 = vld [vmem:[%s4720_s1 + $0x844] ss:$8 sps:$4 sm:$0xff]   ;;  %v3641_v37 = vld [vmem:[%s4720_s1 + $0x840] ss:$8 sps:$4 sm:$0xff]  }
  0xde   : > { %2207 = vmatprep.subr.bf16.mxu0 %v3572_v38  ;;  %v3646_v38 = vld [vmem:[%s4720_s1 + $0x854] ss:$8 sps:$4 sm:$0xff]  }
  0xe0   : > { %1183 = vmatpush1.bf16.msra.mxu1 %v3567_v39  ;;  %v3644_v39 = vld [vmem:[%s4720_s1 + $0x850] ss:$8 sps:$4 sm:$0xff]  }
  0xe1   : > { %2208 = vmatpush1.bf16.msra.mxu0 %v3570_v40  ;;  %1184 = vmatprep.subr.bf16.mxu1 %v3575_v41  ;;  %v3649_v40 = vld [vmem:[%s4720_s1 + $0x864] ss:$8 sps:$4 sm:$0xff]   ;;  %v3647_v41 = vld [vmem:[%s4720_s1 + $0x860] ss:$8 sps:$4 sm:$0xff]  }
  0xe2   : > { %2209 = vmatprep.subr.bf16.mxu0 %v3578_v42  ;;  %v3652_v42 = vld [vmem:[%s4720_s1 + $0x874] ss:$8 sps:$4 sm:$0xff]  }
  0xe4   : > { %1185 = vmatpush1.bf16.msra.mxu1 %v3573_v43  ;;  %v3650_v43 = vld [vmem:[%s4720_s1 + $0x870] ss:$8 sps:$4 sm:$0xff]  }
  0xe5   : > { %2210 = vmatpush1.bf16.msra.mxu0 %v3576_v44  ;;  %1186 = vmatprep.subr.bf16.mxu1 %v3581_v47  ;;  %v3655_v44 = vld [vmem:[%s4720_s1 + $0x884] ss:$8 sps:$4 sm:$0xff]   ;;  %v3653_v47 = vld [vmem:[%s4720_s1 + $0x880] ss:$8 sps:$4 sm:$0xff]  }
  0xe6   : > { %2211 = vmatprep.subr.bf16.mxu0 %v3584_v50  ;;  %v3658_v50 = vld [vmem:[%s4720_s1 + $0x894] ss:$8 sps:$4 sm:$0xff]  }
  0xe8   : > { %1187 = vmatpush1.bf16.msra.mxu1 %v3579_v51  ;;  %v3656_v51 = vld [vmem:[%s4720_s1 + $0x890] ss:$8 sps:$4 sm:$0xff]  }
  0xe9   : > { %2212 = vmatpush1.bf16.msra.mxu0 %v3582_v48  ;;  %1188 = vmatprep.subr.bf16.mxu1 %v3587_v49  ;;  %v3661_v48 = vld [vmem:[%s4720_s1 + $0x8a4] ss:$8 sps:$4 sm:$0xff]   ;;  %v3659_v49 = vld [vmem:[%s4720_s1 + $0x8a0] ss:$8 sps:$4 sm:$0xff]  }
  0xea   : > { %2213 = vmatprep.subr.bf16.mxu0 %v3590_v54  ;;  %v3664_v54 = vld [vmem:[%s4720_s1 + $0x8b4] ss:$8 sps:$4 sm:$0xff]  }
  0xec   : > { %1189 = vmatpush1.bf16.msra.mxu1 %v3585_v56  ;;  %v3662_v56 = vld [vmem:[%s4720_s1 + $0x8b0] ss:$8 sps:$4 sm:$0xff]  }
  0xed   : > { %2214 = vmatpush1.bf16.msra.mxu0 %v3588_v57  ;;  %1190 = vmatprep.subr.bf16.mxu1 %v3593_v58  ;;  %v3667_v57 = vld [vmem:[%s4720_s1 + $0x8c4] ss:$8 sps:$4 sm:$0xff]   ;;  %v3665_v58 = vld [vmem:[%s4720_s1 + $0x8c0] ss:$8 sps:$4 sm:$0xff]  }
  0xee   : > { %2215 = vmatprep.subr.bf16.mxu0 %v3596_v59  ;;  %v3670_v59 = vld [vmem:[%s4720_s1 + $0x8d4] ss:$8 sps:$4 sm:$0xff]  }
  0xf0   : > { %1191 = vmatpush1.bf16.msra.mxu1 %v3591_v63  ;;  %v3668_v63 = vld [vmem:[%s4720_s1 + $0x8d0] ss:$8 sps:$4 sm:$0xff]  }
  0xf1   : > { %2216 = vmatpush1.bf16.msra.mxu0 %v3594_v0  ;;  %1192 = vmatprep.subr.bf16.mxu1 %v3599_v1  ;;  %v3673_v0 = vld [vmem:[%s4720_s1 + $0x8e4] ss:$8 sps:$4 sm:$0xff]   ;;  %v3671_v1 = vld [vmem:[%s4720_s1 + $0x8e0] ss:$8 sps:$4 sm:$0xff]  }
  0xf2   : > { %2217 = vmatprep.subr.bf16.mxu0 %v3602_v2  ;;  %v3676_v2 = vld [vmem:[%s4720_s1 + $0x8f4] ss:$8 sps:$4 sm:$0xff]  }
  0xf4   : > { %1193 = vmatpush1.bf16.msra.mxu1 %v3597_v3  ;;  %v3674_v3 = vld [vmem:[%s4720_s1 + $0x8f0] ss:$8 sps:$4 sm:$0xff]  }
  0xf5   : > { %2218 = vmatpush1.bf16.msra.mxu0 %v3600_v4  ;;  %1194 = vmatprep.subr.bf16.mxu1 %v3605_v5  ;;  %v2275_v4 = vrot.slane %v4002_v46, 1  ;;  %v2276_v5 = vrot.slane %v4568_v13, 1 }
  0xf6   : > { %2219 = vmatprep.subr.bf16.mxu0 %v3608_v6 }
  0xf7   : > { %v2277_v6 = vsel %vm752_vm3, %v2275_v4, %v2276_v5 }
  0xf8   : > { %1195 = vmatpush1.bf16.msra.mxu1 %v3603_v7 }
  0xf9   : > { %2220 = vmatpush1.bf16.msra.mxu0 %v3606_v8  ;;  %1196 = vmatprep.subr.bf16.mxu1 %v3611_v9 }
  0xfa   : > { %2221 = vmatprep.subr.bf16.mxu0 %v3614_v10 }
  0xfc   : > { %1197 = vmatpush1.bf16.msra.mxu1 %v3609_v11  ;;  %v2492_v11 = vlaneseq }
  0xfd   : > { %2222 = vmatpush1.bf16.msra.mxu0 %v3612_v12  ;;  %1198 = vmatprep.subr.bf16.mxu1 %v3617_v15  ;;  %v2490_v15 = vld [vmem:[%s4721_s2] sm:$0x3] }
  0xfe   : > { %2223 = vmatprep.subr.bf16.mxu0 %v3620_v16  ;;  %v2493_v12 = vshrl.u32 %v2492_v11, 7 }
 0x100   : > { %1199 = vmatpush1.bf16.msra.mxu1 %v3615_v55  ;;  %v2494_v14 = vsub.s32 0, %v2493_v12  ;;  %v2498_v46 = vsub.s32 1, %v2493_v12 }
 0x101   : > { %2224 = vmatpush1.bf16.msra.mxu0 %v3618_v53  ;;  %1200 = vmatprep.subr.bf16.mxu1 %v3623_v19 }
 0x102   : > { %2225 = vmatprep.subr.bf16.mxu0 %v3626_v20  ;;  %v2495_v16 = vrot.slane %v2490_v15, %v2494_v14  ;;  %v2499_v52 = vrot.slane %v2490_v15, %v2498_v46 }
 0x104   : > { %1201 = vmatpush1.bf16.msra.mxu1 %v3621_v22 }
 0x105   : > { %2226 = vmatpush1.bf16.msra.mxu0 %v3624_v23 }
 0x106   : > { %2443 = vmatprep.subr.bf16.mxu0 %v3630_v60 }
 0x107   : > { %1203 = vmatmul.mubr.bf16.vlgmr.msra.gmra.mrb[0].mxu1 %v1004_v29 }
 0x108   : > { %2228 = vmatmul.mubr.bf16.vlgmr.msra.gmra.mrb[0].mxu0 %v2020_v30 }
 0x109   : > { %2444 = vmatpush1.bf16.msra.mxu0 %v3628_v61  ;;  %2475 = vmatprep.mubr.bf16.mxu0 %v2280_v32 }
 0x10a   : > { %2445 = vmatprep.subr.bf16.mxu0 %v3634_v31 }
 0x10d   : > { %2446 = vmatpush1.bf16.msra.mxu0 %v3632_v45 }
 0x10e   : > { %2447 = vmatprep.subr.bf16.mxu0 %v3637_v62 }
 0x111   : > { %2448 = vmatpush1.bf16.msra.mxu0 %v3635_v33 }
 0x112   : > { %2449 = vmatprep.subr.bf16.mxu0 %v3640_v34 }
 0x115   : > { %2450 = vmatpush1.bf16.msra.mxu0 %v3638_v35 }
 0x116   : > { %2451 = vmatprep.subr.bf16.mxu0 %v3643_v36 }
 0x119   : > { %2452 = vmatpush1.bf16.msra.mxu0 %v3641_v37 }
 0x11a   : > { %2453 = vmatprep.subr.bf16.mxu0 %v3646_v38 }
 0x11d   : > { %2454 = vmatpush1.bf16.msra.mxu0 %v3644_v39 }
 0x11e   : > { %2455 = vmatprep.subr.bf16.mxu0 %v3649_v40 }
 0x121   : > { %2456 = vmatpush1.bf16.msra.mxu0 %v3647_v41 }
 0x122   : > { %2457 = vmatprep.subr.bf16.mxu0 %v3652_v42 }
 0x125   : > { %2458 = vmatpush1.bf16.msra.mxu0 %v3650_v43 }
 0x126   : > { %2459 = vmatprep.subr.bf16.mxu0 %v3655_v44 }
 0x129   : > { %2460 = vmatpush1.bf16.msra.mxu0 %v3653_v47 }
 0x12a   : > { %2461 = vmatprep.subr.bf16.mxu0 %v3658_v50 }
 0x12d   : > { %2462 = vmatpush1.bf16.msra.mxu0 %v3656_v51 }
 0x12e   : > { %2463 = vmatprep.subr.bf16.mxu0 %v3661_v48 }
 0x131   : > { %2464 = vmatpush1.bf16.msra.mxu0 %v3659_v49 }
 0x132   : > { %2465 = vmatprep.subr.bf16.mxu0 %v3664_v54 }
 0x135   : > { %2466 = vmatpush1.bf16.msra.mxu0 %v3662_v56 }
 0x136   : > { %2467 = vmatprep.subr.bf16.mxu0 %v3667_v57 }
 0x139   : > { %2468 = vmatpush1.bf16.msra.mxu0 %v3665_v58 }
 0x13a   : > { %2469 = vmatprep.subr.bf16.mxu0 %v3670_v59 }
 0x13d   : > { %2470 = vmatpush1.bf16.msra.mxu0 %v3668_v63 }
 0x13e   : > { %2471 = vmatprep.subr.bf16.mxu0 %v3673_v0 }
 0x141   : > { %2472 = vmatpush1.bf16.msra.mxu0 %v3671_v1 }
 0x142   : > { %2473 = vmatprep.subr.bf16.mxu0 %v3676_v2 }
 0x145   : > { %2474 = vmatpush1.bf16.msra.mxu0 %v3674_v3 }
 0x148   : > { %2476 = vmatmul.mubr.bf16.vlgmr.msra.gmra.mrb[0].mxu0 %v2277_v6 }
 0x1da   : > { %v1204_v7 = vpop.f32.mrb[0].mxu1 }
 0x1db   : > { %v1206_v8 = vpop.f32.mrb[1].mxu1 }
 0x1dc   : > { %v1208_v9 = vpop.f32.mrb[2].mxu1 }
 0x1dd   : > { %v1210_v10 = vpop.f32.mrb[3].mxu1 }
 0x21b   : > { %v2477_v13 = vpop.f32.mrb[0].mxu0 }
 0x21c   : > { %v3180_v55 = vadd.f32 %v2477_v13, %v1204_v7  ;;  %v2479_v53 = vpop.f32.mrb[1].mxu0 }
 0x21d   : > { %v3181_v17 = vadd.f32 %v2479_v53, %v1206_v8  ;;  %v2481_v18 = vpop.f32.mrb[2].mxu0 }
 0x21e   : > { %v2502_v19 = vadd.f32 %v3180_v55, %v2495_v16  ;;  %v3182_v20 = vadd.f32 %v2481_v18, %v1208_v9  ;;  %v2483_v21 = vpop.f32.mrb[3].mxu0 }
 0x21f   : > { %v2503_v22 = vadd.f32 %v3181_v17, %v2499_v52  ;;  %v3183_v23 = vadd.f32 %v2483_v21, %v1210_v10 }
 0x220   : > { %v2506_v24 = vmax.f32 %v2502_v19, 0.0  ;;  %v2504_v25 = vadd.f32 %v3182_v20, %v2495_v16 }
 0x221   : > { %v2507_v26 = vmax.f32 %v2503_v22, 0.0  ;;  %v2505_v60 = vadd.f32 %v3183_v23, %v2499_v52 }
 0x222   : > { %v2508_v27 = vmax.f32 %v2504_v25, 0.0 }
 0x223   : > { %v3178_v28 = vpack.c.bf16 %v2507_v26, %v2506_v24  ;;  %v2509_v29 = vmax.f32 %v2505_v60, 0.0 }
 0x225   : > { %2522 = vst [vmem:[%s194_s16] sm:$0xff] %v3178_v28  ;;  %v3179_v61 = vpack.c.bf16 %v2509_v29, %v2508_v27 }
 0x227   : > { %2523 = vst [vmem:[%s194_s16 + $0x8] sm:$0xff] %v3179_v61 }
 0x228 PF: > { %s13_s14 = sadd.s32 1, %s3699_s14   ;;  %s4723_s12 = smov %s3695_s13 }
 0x229   : > { %p10_p5 = scmp.ge.s32.totalorder %s13_s14, 4   ;;  %s4724_s13 = smov %s4726_s15 }
 0x22b   :  { %12 = sbr.rel (!%p10_p5) target bundleno = 2 (0x2), region = 71 }

</bundles_post_ra>
